<compile_context>
chip_gen: v7x
topology: tpu7x:2x2x1
jax: 0.10.0
libtpu: 0.0.40
codegen_flags: <defaults>
</compile_context>

<pallas_src>
import functools

import jax
import jax.numpy as jnp
import numpy as np
from jax.experimental import pallas as pl
from jax.experimental.pallas import tpu as pltpu


# ------------------------------ Pallas kernel ------------------------------ #

def _net_kernel(x_ref, y_ref,
                a1_ref, r1_ref, bst1_ref,
                a2_ref, r2_ref, bst2_ref,
                a3_ref, r3_ref, bst3_ref,
                a4_ref, r4_ref, bst4_ref,
                a5_ref, r5_ref, bst5_ref,
                w1a_ref, w1b_ref, fb1_ref,
                w2_ref, fb2_ref, w3_ref, fb3_ref, w4_ref, fb4_ref,
                w5a_ref, w5b_ref, fb5_ref, w6_ref, fb6_ref,
                o_ref):
    """Whole Net forward for one batch element; all activations stay in VMEM."""
    dot = functools.partial(jnp.dot, preferred_element_type=jnp.float32)

    x = x_ref[0]                        # (128, 384) = (H, W*Cin), lane dense
    yv = y_ref[0]                       # (1, 4)

    # --- conv1 + ReLU + 2x2 max-pool + BN1 (pool folded into 4 phase combos) ---
    pooled = None
    for pi in range(2):                                   # output-row phase
        g = [dot(a1_ref[pi * 3 + kh], x) for kh in range(3)]      # (32, 384)
        for pj in range(2):                               # output-col phase
            q = dot(g[0], r1_ref[pj * 3 + 0])
            q = q + dot(g[1], r1_ref[pj * 3 + 1])
            q = q + dot(g[2], r1_ref[pj * 3 + 2])
            pooled = q if pooled is None else jnp.maximum(pooled, q)
    bst = bst1_ref[...]                                   # (3, 128): bias, scale, shift
    h = jnp.maximum(pooled + bst[0:1, :], 0.0) * bst[1:2, :] + bst[2:3, :]   # (32, 128)

    # --- conv2..conv5: ReLU + eval-mode BN fused; activations stay as values ---
    def conv_bn_relu(hin, a_ref, r_ref, bst_ref):
        acc = dot(dot(a_ref[0], hin), r_ref[0])
        acc = acc + dot(dot(a_ref[1], hin), r_ref[1])
        acc = acc + dot(dot(a_ref[2], hin), r_ref[2])
        b = bst_ref[...]
        return jnp.maximum(acc + b[0:1, :], 0.0) * b[1:2, :] + b[2:3, :]

    h = conv_bn_relu(h, a2_ref, r2_ref, bst2_ref)         # (16, 128)
    h = conv_bn_relu(h, a3_ref, r3_ref, bst3_ref)         # (8, 128)
    h = conv_bn_relu(h, a4_ref, r4_ref, bst4_ref)         # (4, 128)
    h = conv_bn_relu(h, a5_ref, r5_ref, bst5_ref)         # (2, 128) = (H=2, W*C=2*64)

    # --- FC head.  The NCHW flatten is absorbed into fc1's permuted weight,
    #     split per conv5 output row; cat((x, y)) @ W5 is a split matmul. ---
    z = jnp.maximum(dot(h[0:1, :], w1a_ref[...]) + dot(h[1:2, :], w1b_ref[...])
                    + fb1_ref[...], 0.0)                  # fc1 + relu
    z = jnp.maximum(dot(z, w2_ref[...]) + fb2_ref[...], 0.0)   # fc2 + relu
    z = jnp.maximum(dot(z, w3_ref[...]) + fb3_ref[...], 0.0)   # fc3 + relu
    z = jnp.maximum(dot(z, w4_ref[...]) + fb4_ref[...], 0.0)   # fc4 + relu
    z = jnp.maximum(dot(z, w5a_ref[...]) + dot(yv, w5b_ref[...]) + fb5_ref[...], 0.0)
    o_ref[0] = dot(z, w6_ref[...]) + fb6_ref[...]         # (1, 128); col 0 is the output


# ------------------------ constant operand construction --------------------- #

def bn_affine(gamma, beta, mean, var, eps=1e-5):
    s = gamma / jnp.sqrt(var + eps)
    return s, beta - mean * s


def _h_select(ho, h_in, stride, offset, kh):
    """A[i, h] = 1 iff h == stride*i + offset + kh - 1 (conv H gather, pad folded)."""
    a = np.zeros((ho, h_in), np.float32)
    for i in range(ho):
        src = stride * i + offset + kh - 1
        if 0 <= src < h_in:
            a[i, src] = 1.0
    return a


def _w_struct(w_in, wo, stride, offset):
    """T[w, j, kw] = 1 iff w == stride*j + offset + kw - 1 (conv W gather, pad folded)."""
    t = np.zeros((w_in, wo, 3), np.float32)
    for j in range(wo):
        for kw in range(3):
            src = stride * j + offset + kw - 1
            if 0 <= src < w_in:
                t[src, j, kw] = 1.0
    return t


def _conv_rmat(w_torch, kh, tstruct):
    """Fold W gather + padding + (Cin -> Cout) contraction of kernel row kh."""
    wk = jnp.transpose(w_torch[:, :, kh, :], (2, 1, 0))          # (kw, Cin, Cout)
    r = jnp.einsum('wjk,kcd->wcjd', jnp.asarray(tstruct), wk)
    w_in, wo = tstruct.shape[0], tstruct.shape[1]
    cin, cout = wk.shape[1], wk.shape[2]
    return r.reshape(w_in * cin, wo * cout)


def _build_operands(params):
    """Precompute every constant matrix consumed by the fused kernel."""
    ops = []

    # conv1 (+ fused 2x2 max-pool): 4 phase combinations (pi, pj)
    w1c, b1c = params["conv1"]
    a1 = np.concatenate(
        [np.stack([_h_select(32, 128, 4, 2 * pi, kh) for kh in range(3)])
         for pi in range(2)])                                    # (6, 32, 128)
    r1 = jnp.concatenate(
        [jnp.stack([_conv_rmat(w1c, kh, _w_struct(128, 32, 4, 2 * pj))
                    for kh in range(3)])
         for pj in range(2)])                                    # (6, 384, 128)
    s1, t1 = bn_affine(*params["bn1"])
    bst1 = jnp.stack([jnp.tile(b1c, 32), jnp.tile(s1, 32), jnp.tile(t1, 32)])
    ops += [jnp.asarray(a1), r1, bst1]

    # conv2..conv5 (output columns are always exactly Wo*Cout == 128 lanes)
    h_sp = 32
    for l in range(2, 6):
        wcl, bcl = params[f"conv{l}"]
        ho = h_sp // 2
        a_l = np.stack([_h_select(ho, h_sp, 2, 0, kh) for kh in range(3)])
        ts = _w_struct(h_sp, ho, 2, 0)
        r_l = jnp.stack([_conv_rmat(wcl, kh, ts) for kh in range(3)])
        sl, tl = bn_affine(*params[f"bn{l}"])
        bst_l = jnp.stack([jnp.tile(bcl, ho), jnp.tile(sl, ho), jnp.tile(tl, ho)])
        ops += [jnp.asarray(a_l), r_l, bst_l]
        h_sp = ho

    # FC head: torch flattens NCHW (index c*4 + h*2 + w); our conv5 slab is
    # (h, w*64 + c), so permute fc1's input columns and split per h row.
    fw1, fbias1 = params["fc1"]
    perm = np.array([c * 4 + h * 2 + w
                     for h in range(2) for w in range(2) for c in range(64)])
    w1p = fw1[:, perm].T                                        # (256, 128)

    def lin(name):
        w_, b_ = params[name]
        return w_.T, b_.reshape(1, -1)

    w2, b2 = lin("fc2"); w3, b3 = lin("fc3"); w4, b4 = lin("fc4")
    w5, b5 = lin("fc5"); w6, b6 = lin("fc6")
    ops += [w1p[:128], w1p[128:], fbias1.reshape(1, -1),
            w2, b2, w3, b3, w4, b4,
            w5[:8], w5[8:], b5,                                 # concat -> split matmul
            jnp.pad(w6, ((0, 0), (0, 127))),                    # (12, 128) lane-dense
            jnp.pad(b6, ((0, 0), (0, 127)))]                    # (1, 128)
    return ops


# ------------------------------ forward wrapper ----------------------------- #

def net_forward(x_nchw, y, params):
    n, _, hh, ww = x_nchw.shape
    # input prep only: NCHW -> NHWC -> lane-dense (N, H, W*Cin) slab
    x2d = jnp.transpose(x_nchw, (0, 2, 3, 1)).reshape(n, hh, ww * 3)
    y3 = y.reshape(n, 1, y.shape[1])
    ops = _build_operands(params)

    def full_spec(arr):
        nd = arr.ndim
        return pl.BlockSpec(arr.shape, lambda i, _nd=nd: (0,) * _nd)

    in_specs = ([pl.BlockSpec((1, hh, ww * 3), lambda i: (i, 0, 0)),
                 pl.BlockSpec((1, 1, y.shape[1]), lambda i: (i, 0, 0))]
                + [full_spec(a) for a in ops])

    out3 = pl.pallas_call(
        _net_kernel,
        out_shape=jax.ShapeDtypeStruct((n, 1, 128), jnp.float32),
        grid=(n,),
        in_specs=in_specs,
        out_specs=pl.BlockSpec((1, 1, 128), lambda i: (i, 0, 0)),
        compiler_params=pltpu.CompilerParams(
            dimension_semantics=("parallel",),          # v7x: one sample per TC
            vmem_limit_bytes=32 * 1024 * 1024),         # explicit headroom (v5e)
        cost_estimate=pl.CostEstimate(flops=125_000_000, transcendentals=0,
                                      bytes_accessed=3_000_000),
    )(x2d, y3, *ops)
    return out3[:, 0, :1]                               # (N, 1)


# -------------------------------- parameters -------------------------------- #

def init_params(key):
    params = {}
    conv_dims = [(3, 4), (4, 8), (8, 16), (16, 32), (32, 64)]
    fc_dims = [(256, 128), (128, 64), (64, 16), (16, 8), (12, 12), (12, 1)]
    keys = iter(jax.random.split(key, 64))
    for i, (cin, cout) in enumerate(conv_dims, start=1):
        params[f"conv{i}"] = (
            0.1 * jax.random.normal(next(keys), (cout, cin, 3, 3), jnp.float32),
            0.05 * jax.random.normal(next(keys), (cout,), jnp.float32),
        )
        params[f"bn{i}"] = (
            1.0 + 0.1 * jax.random.normal(next(keys), (cout,), jnp.float32),   # gamma
            0.1 * jax.random.normal(next(keys), (cout,), jnp.float32),          # beta
            0.1 * jax.random.normal(next(keys), (cout,), jnp.float32),          # running_mean
            1.0 + 0.1 * jnp.abs(jax.random.normal(next(keys), (cout,), jnp.float32)),  # running_var
        )
    for i, (fin, fout) in enumerate(fc_dims, start=1):
        params[f"fc{i}"] = (
            0.1 * jax.random.normal(next(keys), (fout, fin), jnp.float32),
            0.05 * jax.random.normal(next(keys), (fout,), jnp.float32),
        )
    return params


# ---------------------------- pure-JAX reference ---------------------------- #

def reference_forward(x_nchw, y, params, eps=1e-5):
    x = jnp.transpose(x_nchw, (0, 2, 3, 1))

    def conv(h, w, b):
        out = jax.lax.conv_general_dilated(
            h, jnp.transpose(w, (2, 3, 1, 0)), (2, 2), ((1, 1), (1, 1)),
            dimension_numbers=("NHWC", "HWIO", "NHWC"))
        return out + b

    def bn(h, g, bta, m, v):
        return (h - m) / jnp.sqrt(v + eps) * g + bta

    h = jax.nn.relu(conv(x, *params["conv1"]))
    n, ho, wo, c = h.shape
    h = h.reshape(n, ho // 2, 2, wo // 2, 2, c).max(axis=(2, 4))
    h = bn(h, *params["bn1"])
    for i in range(2, 6):
        h = jax.nn.relu(conv(h, *params[f"conv{i}"]))
        h = bn(h, *params[f"bn{i}"])
    flat = jnp.transpose(h, (0, 3, 1, 2)).reshape(n, -1)

    def lin(a, name):
        w, b = params[name]
        return a @ w.T + b

    a = jax.nn.relu(lin(flat, "fc1"))
    a = jax.nn.relu(lin(a, "fc2"))
    a = jax.nn.relu(lin(a, "fc3"))
    a = jax.nn.relu(lin(a, "fc4"))
    z = jnp.concatenate([a, y], axis=1)
    z = jax.nn.relu(lin(z, "fc5"))
    return lin(z, "fc6")


if __name__ == "__main__":
    key = jax.random.PRNGKey(0)
    kx, ky, kp = jax.random.split(key, 3)
    # Spatial size must be 128 so conv5's output is 64x2x2 = 256 = fc1.in_features.
    x = jax.random.normal(kx, (2, 3, 128, 128), jnp.float32)   # NCHW, like PyTorch
    y = jax.random.normal(ky, (2, 4), jnp.float32)
    params = init_params(kp)

    out = jax.jit(net_forward)(x, y, params)
    out = jax.block_until_ready(out)

    ref = reference_forward(x, y, params)
    assert out.shape == (2, 1), out.shape
    assert jnp.allclose(out, ref, rtol=2e-3, atol=2e-4), (out, ref)
    print("KERNEL_OK")
</pallas_src>

<mosaic_0001>
module attributes {stable_mosaic.version = 11 : i64} {
  func.func @_net_kernel(%arg0: i32, %arg1: memref<1x128x384xf32, #tpu.memory_space<vmem>>, %arg2: memref<1x1x4xf32, #tpu.memory_space<vmem>>, %arg3: memref<6x32x128xf32, #tpu.memory_space<vmem>>, %arg4: memref<6x384x128xf32, #tpu.memory_space<vmem>>, %arg5: memref<3x128xf32, #tpu.memory_space<vmem>>, %arg6: memref<3x16x32xf32, #tpu.memory_space<vmem>>, %arg7: memref<3x128x128xf32, #tpu.memory_space<vmem>>, %arg8: memref<3x128xf32, #tpu.memory_space<vmem>>, %arg9: memref<3x8x16xf32, #tpu.memory_space<vmem>>, %arg10: memref<3x128x128xf32, #tpu.memory_space<vmem>>, %arg11: memref<3x128xf32, #tpu.memory_space<vmem>>, %arg12: memref<3x4x8xf32, #tpu.memory_space<vmem>>, %arg13: memref<3x128x128xf32, #tpu.memory_space<vmem>>, %arg14: memref<3x128xf32, #tpu.memory_space<vmem>>, %arg15: memref<3x2x4xf32, #tpu.memory_space<vmem>>, %arg16: memref<3x128x128xf32, #tpu.memory_space<vmem>>, %arg17: memref<3x128xf32, #tpu.memory_space<vmem>>, %arg18: memref<128x128xf32, #tpu.memory_space<vmem>>, %arg19: memref<128x128xf32, #tpu.memory_space<vmem>>, %arg20: memref<1x128xf32, #tpu.memory_space<vmem>>, %arg21: memref<128x64xf32, #tpu.memory_space<vmem>>, %arg22: memref<1x64xf32, #tpu.memory_space<vmem>>, %arg23: memref<64x16xf32, #tpu.memory_space<vmem>>, %arg24: memref<1x16xf32, #tpu.memory_space<vmem>>, %arg25: memref<16x8xf32, #tpu.memory_space<vmem>>, %arg26: memref<1x8xf32, #tpu.memory_space<vmem>>, %arg27: memref<8x12xf32, #tpu.memory_space<vmem>>, %arg28: memref<4x12xf32, #tpu.memory_space<vmem>>, %arg29: memref<1x12xf32, #tpu.memory_space<vmem>>, %arg30: memref<12x128xf32, #tpu.memory_space<vmem>>, %arg31: memref<1x128xf32, #tpu.memory_space<vmem>>, %arg32: memref<1x1x128xf32, #tpu.memory_space<vmem>>) attributes {dimension_semantics = [#tpu.dimension_semantics<parallel>], iteration_bounds = array<i64: 2>, scalar_prefetch = 0 : i64, scratch_operands = 0 : i64, tpu.core_type = #tpu.core_type<tc>, window_params = [{transform_indices = @transform_0, window_bounds = array<i64: 1, 128, 384>}, {transform_indices = @transform_1, window_bounds = array<i64: 1, 1, 4>}, {pipeline_mode = #tpu.pipeline_mode<synchronous>, transform_indices = @transform_2, window_bounds = array<i64: 6, 32, 128>}, {pipeline_mode = #tpu.pipeline_mode<synchronous>, transform_indices = @transform_3, window_bounds = array<i64: 6, 384, 128>}, {pipeline_mode = #tpu.pipeline_mode<synchronous>, transform_indices = @transform_4, window_bounds = array<i64: 3, 128>}, {pipeline_mode = #tpu.pipeline_mode<synchronous>, transform_indices = @transform_5, window_bounds = array<i64: 3, 16, 32>}, {pipeline_mode = #tpu.pipeline_mode<synchronous>, transform_indices = @transform_6, window_bounds = array<i64: 3, 128, 128>}, {pipeline_mode = #tpu.pipeline_mode<synchronous>, transform_indices = @transform_7, window_bounds = array<i64: 3, 128>}, {pipeline_mode = #tpu.pipeline_mode<synchronous>, transform_indices = @transform_8, window_bounds = array<i64: 3, 8, 16>}, {pipeline_mode = #tpu.pipeline_mode<synchronous>, transform_indices = @transform_9, window_bounds = array<i64: 3, 128, 128>}, {pipeline_mode = #tpu.pipeline_mode<synchronous>, transform_indices = @transform_10, window_bounds = array<i64: 3, 128>}, {pipeline_mode = #tpu.pipeline_mode<synchronous>, transform_indices = @transform_11, window_bounds = array<i64: 3, 4, 8>}, {pipeline_mode = #tpu.pipeline_mode<synchronous>, transform_indices = @transform_12, window_bounds = array<i64: 3, 128, 128>}, {pipeline_mode = #tpu.pipeline_mode<synchronous>, transform_indices = @transform_13, window_bounds = array<i64: 3, 128>}, {pipeline_mode = #tpu.pipeline_mode<synchronous>, transform_indices = @transform_14, window_bounds = array<i64: 3, 2, 4>}, {pipeline_mode = #tpu.pipeline_mode<synchronous>, transform_indices = @transform_15, window_bounds = array<i64: 3, 128, 128>}, {pipeline_mode = #tpu.pipeline_mode<synchronous>, transform_indices = @transform_16, window_bounds = array<i64: 3, 128>}, {pipeline_mode = #tpu.pipeline_mode<synchronous>, transform_indices = @transform_17, window_bounds = array<i64: 128, 128>}, {pipeline_mode = #tpu.pipeline_mode<synchronous>, transform_indices = @transform_18, window_bounds = array<i64: 128, 128>}, {pipeline_mode = #tpu.pipeline_mode<synchronous>, transform_indices = @transform_19, window_bounds = array<i64: 1, 128>}, {pipeline_mode = #tpu.pipeline_mode<synchronous>, transform_indices = @transform_20, window_bounds = array<i64: 128, 64>}, {pipeline_mode = #tpu.pipeline_mode<synchronous>, transform_indices = @transform_21, window_bounds = array<i64: 1, 64>}, {pipeline_mode = #tpu.pipeline_mode<synchronous>, transform_indices = @transform_22, window_bounds = array<i64: 64, 16>}, {pipeline_mode = #tpu.pipeline_mode<synchronous>, transform_indices = @transform_23, window_bounds = array<i64: 1, 16>}, {pipeline_mode = #tpu.pipeline_mode<synchronous>, transform_indices = @transform_24, window_bounds = array<i64: 16, 8>}, {pipeline_mode = #tpu.pipeline_mode<synchronous>, transform_indices = @transform_25, window_bounds = array<i64: 1, 8>}, {pipeline_mode = #tpu.pipeline_mode<synchronous>, transform_indices = @transform_26, window_bounds = array<i64: 8, 12>}, {pipeline_mode = #tpu.pipeline_mode<synchronous>, transform_indices = @transform_27, window_bounds = array<i64: 4, 12>}, {pipeline_mode = #tpu.pipeline_mode<synchronous>, transform_indices = @transform_28, window_bounds = array<i64: 1, 12>}, {pipeline_mode = #tpu.pipeline_mode<synchronous>, transform_indices = @transform_29, window_bounds = array<i64: 12, 128>}, {pipeline_mode = #tpu.pipeline_mode<synchronous>, transform_indices = @transform_30, window_bounds = array<i64: 1, 128>}, {transform_indices = @transform_31, window_bounds = array<i64: 1, 1, 128>}]} {
    %c0 = arith.constant 0 : index
    %c0_0 = arith.constant 0 : index
    %c0_1 = arith.constant 0 : index
    %0 = vector.load %arg1[%c0, %c0_0, %c0_1] : memref<1x128x384xf32, #tpu.memory_space<vmem>>, vector<1x128x384xf32>
    %1 = vector.shape_cast %0 : vector<1x128x384xf32> to vector<128x384xf32>
    %c0_2 = arith.constant 0 : index
    %c0_3 = arith.constant 0 : index
    %c0_4 = arith.constant 0 : index
    %2 = vector.load %arg2[%c0_2, %c0_3, %c0_4] : memref<1x1x4xf32, #tpu.memory_space<vmem>>, vector<1x1x4xf32>
    %3 = vector.shape_cast %2 : vector<1x1x4xf32> to vector<1x4xf32>
    %c0_5 = arith.constant 0 : index
    %c0_6 = arith.constant 0 : index
    %c0_7 = arith.constant 0 : index
    %4 = vector.load %arg3[%c0_5, %c0_6, %c0_7] : memref<6x32x128xf32, #tpu.memory_space<vmem>>, vector<1x32x128xf32>
    %5 = vector.shape_cast %4 : vector<1x32x128xf32> to vector<32x128xf32>
    %cst = arith.constant dense<0.000000e+00> : vector<32x384xf32>
    %6 = tpu.matmul %5, %1, %cst {dimension_numbers = #tpu.dot_dimension_numbers<[1], [0], [0], [1], [0, 0, 1, 1], [], []>} : vector<32x128xf32>, vector<128x384xf32>, vector<32x384xf32> -> vector<32x384xf32>
    %c1 = arith.constant 1 : index
    %c0_8 = arith.constant 0 : index
    %c0_9 = arith.constant 0 : index
    %7 = vector.load %arg3[%c1, %c0_8, %c0_9] : memref<6x32x128xf32, #tpu.memory_space<vmem>>, vector<1x32x128xf32>
    %8 = vector.shape_cast %7 : vector<1x32x128xf32> to vector<32x128xf32>
    %cst_10 = arith.constant dense<0.000000e+00> : vector<32x384xf32>
    %9 = tpu.matmul %8, %1, %cst_10 {dimension_numbers = #tpu.dot_dimension_numbers<[1], [0], [0], [1], [0, 0, 1, 1], [], []>} : vector<32x128xf32>, vector<128x384xf32>, vector<32x384xf32> -> vector<32x384xf32>
    %c2 = arith.constant 2 : index
    %c0_11 = arith.constant 0 : index
    %c0_12 = arith.constant 0 : index
    %10 = vector.load %arg3[%c2, %c0_11, %c0_12] : memref<6x32x128xf32, #tpu.memory_space<vmem>>, vector<1x32x128xf32>
    %11 = vector.shape_cast %10 : vector<1x32x128xf32> to vector<32x128xf32>
    %cst_13 = arith.constant dense<0.000000e+00> : vector<32x384xf32>
    %12 = tpu.matmul %11, %1, %cst_13 {dimension_numbers = #tpu.dot_dimension_numbers<[1], [0], [0], [1], [0, 0, 1, 1], [], []>} : vector<32x128xf32>, vector<128x384xf32>, vector<32x384xf32> -> vector<32x384xf32>
    %c0_14 = arith.constant 0 : index
    %c0_15 = arith.constant 0 : index
    %c0_16 = arith.constant 0 : index
    %13 = vector.load %arg4[%c0_14, %c0_15, %c0_16] : memref<6x384x128xf32, #tpu.memory_space<vmem>>, vector<1x384x128xf32>
    %14 = vector.shape_cast %13 : vector<1x384x128xf32> to vector<384x128xf32>
    %cst_17 = arith.constant dense<0.000000e+00> : vector<32x128xf32>
    %15 = tpu.matmul %6, %14, %cst_17 {dimension_numbers = #tpu.dot_dimension_numbers<[1], [0], [0], [1], [0, 0, 1, 1], [], []>} : vector<32x384xf32>, vector<384x128xf32>, vector<32x128xf32> -> vector<32x128xf32>
    %c1_18 = arith.constant 1 : index
    %c0_19 = arith.constant 0 : index
    %c0_20 = arith.constant 0 : index
    %16 = vector.load %arg4[%c1_18, %c0_19, %c0_20] : memref<6x384x128xf32, #tpu.memory_space<vmem>>, vector<1x384x128xf32>
    %17 = vector.shape_cast %16 : vector<1x384x128xf32> to vector<384x128xf32>
    %cst_21 = arith.constant dense<0.000000e+00> : vector<32x128xf32>
    %18 = tpu.matmul %9, %17, %cst_21 {dimension_numbers = #tpu.dot_dimension_numbers<[1], [0], [0], [1], [0, 0, 1, 1], [], []>} : vector<32x384xf32>, vector<384x128xf32>, vector<32x128xf32> -> vector<32x128xf32>
    %19 = arith.addf %15, %18 : vector<32x128xf32>
    %c2_22 = arith.constant 2 : index
    %c0_23 = arith.constant 0 : index
    %c0_24 = arith.constant 0 : index
    %20 = vector.load %arg4[%c2_22, %c0_23, %c0_24] : memref<6x384x128xf32, #tpu.memory_space<vmem>>, vector<1x384x128xf32>
    %21 = vector.shape_cast %20 : vector<1x384x128xf32> to vector<384x128xf32>
    %cst_25 = arith.constant dense<0.000000e+00> : vector<32x128xf32>
    %22 = tpu.matmul %12, %21, %cst_25 {dimension_numbers = #tpu.dot_dimension_numbers<[1], [0], [0], [1], [0, 0, 1, 1], [], []>} : vector<32x384xf32>, vector<384x128xf32>, vector<32x128xf32> -> vector<32x128xf32>
    %23 = arith.addf %19, %22 : vector<32x128xf32>
    %c3 = arith.constant 3 : index
    %c0_26 = arith.constant 0 : index
    %c0_27 = arith.constant 0 : index
    %24 = vector.load %arg4[%c3, %c0_26, %c0_27] : memref<6x384x128xf32, #tpu.memory_space<vmem>>, vector<1x384x128xf32>
    %25 = vector.shape_cast %24 : vector<1x384x128xf32> to vector<384x128xf32>
    %cst_28 = arith.constant dense<0.000000e+00> : vector<32x128xf32>
    %26 = tpu.matmul %6, %25, %cst_28 {dimension_numbers = #tpu.dot_dimension_numbers<[1], [0], [0], [1], [0, 0, 1, 1], [], []>} : vector<32x384xf32>, vector<384x128xf32>, vector<32x128xf32> -> vector<32x128xf32>
    %c4 = arith.constant 4 : index
    %c0_29 = arith.constant 0 : index
    %c0_30 = arith.constant 0 : index
    %27 = vector.load %arg4[%c4, %c0_29, %c0_30] : memref<6x384x128xf32, #tpu.memory_space<vmem>>, vector<1x384x128xf32>
    %28 = vector.shape_cast %27 : vector<1x384x128xf32> to vector<384x128xf32>
    %cst_31 = arith.constant dense<0.000000e+00> : vector<32x128xf32>
    %29 = tpu.matmul %9, %28, %cst_31 {dimension_numbers = #tpu.dot_dimension_numbers<[1], [0], [0], [1], [0, 0, 1, 1], [], []>} : vector<32x384xf32>, vector<384x128xf32>, vector<32x128xf32> -> vector<32x128xf32>
    %30 = arith.addf %26, %29 : vector<32x128xf32>
    %c5 = arith.constant 5 : index
    %c0_32 = arith.constant 0 : index
    %c0_33 = arith.constant 0 : index
    %31 = vector.load %arg4[%c5, %c0_32, %c0_33] : memref<6x384x128xf32, #tpu.memory_space<vmem>>, vector<1x384x128xf32>
    %32 = vector.shape_cast %31 : vector<1x384x128xf32> to vector<384x128xf32>
    %cst_34 = arith.constant dense<0.000000e+00> : vector<32x128xf32>
    %33 = tpu.matmul %12, %32, %cst_34 {dimension_numbers = #tpu.dot_dimension_numbers<[1], [0], [0], [1], [0, 0, 1, 1], [], []>} : vector<32x384xf32>, vector<384x128xf32>, vector<32x128xf32> -> vector<32x128xf32>
    %34 = arith.addf %30, %33 : vector<32x128xf32>
    %35 = arith.maximumf %23, %34 : vector<32x128xf32>
    %c3_35 = arith.constant 3 : index
    %c0_36 = arith.constant 0 : index
    %c0_37 = arith.constant 0 : index
    %36 = vector.load %arg3[%c3_35, %c0_36, %c0_37] : memref<6x32x128xf32, #tpu.memory_space<vmem>>, vector<1x32x128xf32>
    %37 = vector.shape_cast %36 : vector<1x32x128xf32> to vector<32x128xf32>
    %cst_38 = arith.constant dense<0.000000e+00> : vector<32x384xf32>
    %38 = tpu.matmul %37, %1, %cst_38 {dimension_numbers = #tpu.dot_dimension_numbers<[1], [0], [0], [1], [0, 0, 1, 1], [], []>} : vector<32x128xf32>, vector<128x384xf32>, vector<32x384xf32> -> vector<32x384xf32>
    %c4_39 = arith.constant 4 : index
    %c0_40 = arith.constant 0 : index
    %c0_41 = arith.constant 0 : index
    %39 = vector.load %arg3[%c4_39, %c0_40, %c0_41] : memref<6x32x128xf32, #tpu.memory_space<vmem>>, vector<1x32x128xf32>
    %40 = vector.shape_cast %39 : vector<1x32x128xf32> to vector<32x128xf32>
    %cst_42 = arith.constant dense<0.000000e+00> : vector<32x384xf32>
    %41 = tpu.matmul %40, %1, %cst_42 {dimension_numbers = #tpu.dot_dimension_numbers<[1], [0], [0], [1], [0, 0, 1, 1], [], []>} : vector<32x128xf32>, vector<128x384xf32>, vector<32x384xf32> -> vector<32x384xf32>
    %c5_43 = arith.constant 5 : index
    %c0_44 = arith.constant 0 : index
    %c0_45 = arith.constant 0 : index
    %42 = vector.load %arg3[%c5_43, %c0_44, %c0_45] : memref<6x32x128xf32, #tpu.memory_space<vmem>>, vector<1x32x128xf32>
    %43 = vector.shape_cast %42 : vector<1x32x128xf32> to vector<32x128xf32>
    %cst_46 = arith.constant dense<0.000000e+00> : vector<32x384xf32>
    %44 = tpu.matmul %43, %1, %cst_46 {dimension_numbers = #tpu.dot_dimension_numbers<[1], [0], [0], [1], [0, 0, 1, 1], [], []>} : vector<32x128xf32>, vector<128x384xf32>, vector<32x384xf32> -> vector<32x384xf32>
    %c0_47 = arith.constant 0 : index
    %c0_48 = arith.constant 0 : index
    %c0_49 = arith.constant 0 : index
    %45 = vector.load %arg4[%c0_47, %c0_48, %c0_49] : memref<6x384x128xf32, #tpu.memory_space<vmem>>, vector<1x384x128xf32>
    %46 = vector.shape_cast %45 : vector<1x384x128xf32> to vector<384x128xf32>
    %cst_50 = arith.constant dense<0.000000e+00> : vector<32x128xf32>
    %47 = tpu.matmul %38, %46, %cst_50 {dimension_numbers = #tpu.dot_dimension_numbers<[1], [0], [0], [1], [0, 0, 1, 1], [], []>} : vector<32x384xf32>, vector<384x128xf32>, vector<32x128xf32> -> vector<32x128xf32>
    %c1_51 = arith.constant 1 : index
    %c0_52 = arith.constant 0 : index
    %c0_53 = arith.constant 0 : index
    %48 = vector.load %arg4[%c1_51, %c0_52, %c0_53] : memref<6x384x128xf32, #tpu.memory_space<vmem>>, vector<1x384x128xf32>
    %49 = vector.shape_cast %48 : vector<1x384x128xf32> to vector<384x128xf32>
    %cst_54 = arith.constant dense<0.000000e+00> : vector<32x128xf32>
    %50 = tpu.matmul %41, %49, %cst_54 {dimension_numbers = #tpu.dot_dimension_numbers<[1], [0], [0], [1], [0, 0, 1, 1], [], []>} : vector<32x384xf32>, vector<384x128xf32>, vector<32x128xf32> -> vector<32x128xf32>
    %51 = arith.addf %47, %50 : vector<32x128xf32>
    %c2_55 = arith.constant 2 : index
    %c0_56 = arith.constant 0 : index
    %c0_57 = arith.constant 0 : index
    %52 = vector.load %arg4[%c2_55, %c0_56, %c0_57] : memref<6x384x128xf32, #tpu.memory_space<vmem>>, vector<1x384x128xf32>
    %53 = vector.shape_cast %52 : vector<1x384x128xf32> to vector<384x128xf32>
    %cst_58 = arith.constant dense<0.000000e+00> : vector<32x128xf32>
    %54 = tpu.matmul %44, %53, %cst_58 {dimension_numbers = #tpu.dot_dimension_numbers<[1], [0], [0], [1], [0, 0, 1, 1], [], []>} : vector<32x384xf32>, vector<384x128xf32>, vector<32x128xf32> -> vector<32x128xf32>
    %55 = arith.addf %51, %54 : vector<32x128xf32>
    %56 = arith.maximumf %35, %55 : vector<32x128xf32>
    %c3_59 = arith.constant 3 : index
    %c0_60 = arith.constant 0 : index
    %c0_61 = arith.constant 0 : index
    %57 = vector.load %arg4[%c3_59, %c0_60, %c0_61] : memref<6x384x128xf32, #tpu.memory_space<vmem>>, vector<1x384x128xf32>
    %58 = vector.shape_cast %57 : vector<1x384x128xf32> to vector<384x128xf32>
    %cst_62 = arith.constant dense<0.000000e+00> : vector<32x128xf32>
    %59 = tpu.matmul %38, %58, %cst_62 {dimension_numbers = #tpu.dot_dimension_numbers<[1], [0], [0], [1], [0, 0, 1, 1], [], []>} : vector<32x384xf32>, vector<384x128xf32>, vector<32x128xf32> -> vector<32x128xf32>
    %c4_63 = arith.constant 4 : index
    %c0_64 = arith.constant 0 : index
    %c0_65 = arith.constant 0 : index
    %60 = vector.load %arg4[%c4_63, %c0_64, %c0_65] : memref<6x384x128xf32, #tpu.memory_space<vmem>>, vector<1x384x128xf32>
    %61 = vector.shape_cast %60 : vector<1x384x128xf32> to vector<384x128xf32>
    %cst_66 = arith.constant dense<0.000000e+00> : vector<32x128xf32>
    %62 = tpu.matmul %41, %61, %cst_66 {dimension_numbers = #tpu.dot_dimension_numbers<[1], [0], [0], [1], [0, 0, 1, 1], [], []>} : vector<32x384xf32>, vector<384x128xf32>, vector<32x128xf32> -> vector<32x128xf32>
    %63 = arith.addf %59, %62 : vector<32x128xf32>
    %c5_67 = arith.constant 5 : index
    %c0_68 = arith.constant 0 : index
    %c0_69 = arith.constant 0 : index
    %64 = vector.load %arg4[%c5_67, %c0_68, %c0_69] : memref<6x384x128xf32, #tpu.memory_space<vmem>>, vector<1x384x128xf32>
    %65 = vector.shape_cast %64 : vector<1x384x128xf32> to vector<384x128xf32>
    %cst_70 = arith.constant dense<0.000000e+00> : vector<32x128xf32>
    %66 = tpu.matmul %44, %65, %cst_70 {dimension_numbers = #tpu.dot_dimension_numbers<[1], [0], [0], [1], [0, 0, 1, 1], [], []>} : vector<32x384xf32>, vector<384x128xf32>, vector<32x128xf32> -> vector<32x128xf32>
    %67 = arith.addf %63, %66 : vector<32x128xf32>
    %68 = arith.maximumf %56, %67 : vector<32x128xf32>
    %c0_71 = arith.constant 0 : index
    %c0_72 = arith.constant 0 : index
    %69 = vector.load %arg5[%c0_71, %c0_72] : memref<3x128xf32, #tpu.memory_space<vmem>>, vector<3x128xf32>
    %70 = vector.extract_strided_slice %69 {offsets = [0, 0], sizes = [1, 128], strides = [1, 1]} : vector<3x128xf32> to vector<1x128xf32>
    %71 = vector.broadcast %70 : vector<1x128xf32> to vector<32x128xf32>
    %72 = arith.addf %68, %71 : vector<32x128xf32>
    %cst_73 = arith.constant 0.000000e+00 : f32
    %73 = vector.broadcast %cst_73 : f32 to vector<32x128xf32>
    %74 = arith.maximumf %72, %73 : vector<32x128xf32>
    %75 = vector.extract_strided_slice %69 {offsets = [1, 0], sizes = [1, 128], strides = [1, 1]} : vector<3x128xf32> to vector<1x128xf32>
    %76 = vector.broadcast %75 : vector<1x128xf32> to vector<32x128xf32>
    %77 = arith.mulf %74, %76 : vector<32x128xf32>
    %78 = vector.extract_strided_slice %69 {offsets = [2, 0], sizes = [1, 128], strides = [1, 1]} : vector<3x128xf32> to vector<1x128xf32>
    %79 = vector.broadcast %78 : vector<1x128xf32> to vector<32x128xf32>
    %80 = arith.addf %77, %79 : vector<32x128xf32>
    %c0_74 = arith.constant 0 : index
    %c0_75 = arith.constant 0 : index
    %c0_76 = arith.constant 0 : index
    %81 = vector.load %arg6[%c0_74, %c0_75, %c0_76] : memref<3x16x32xf32, #tpu.memory_space<vmem>>, vector<1x16x32xf32>
    %82 = vector.shape_cast %81 : vector<1x16x32xf32> to vector<16x32xf32>
    %cst_77 = arith.constant dense<0.000000e+00> : vector<16x128xf32>
    %83 = tpu.matmul %82, %80, %cst_77 {dimension_numbers = #tpu.dot_dimension_numbers<[1], [0], [0], [1], [0, 0, 1, 1], [], []>} : vector<16x32xf32>, vector<32x128xf32>, vector<16x128xf32> -> vector<16x128xf32>
    %c0_78 = arith.constant 0 : index
    %c0_79 = arith.constant 0 : index
    %c0_80 = arith.constant 0 : index
    %84 = vector.load %arg7[%c0_78, %c0_79, %c0_80] : memref<3x128x128xf32, #tpu.memory_space<vmem>>, vector<1x128x128xf32>
    %85 = vector.shape_cast %84 : vector<1x128x128xf32> to vector<128x128xf32>
    %cst_81 = arith.constant dense<0.000000e+00> : vector<16x128xf32>
    %86 = tpu.matmul %83, %85, %cst_81 {dimension_numbers = #tpu.dot_dimension_numbers<[1], [0], [0], [1], [0, 0, 1, 1], [], []>} : vector<16x128xf32>, vector<128x128xf32>, vector<16x128xf32> -> vector<16x128xf32>
    %c1_82 = arith.constant 1 : index
    %c0_83 = arith.constant 0 : index
    %c0_84 = arith.constant 0 : index
    %87 = vector.load %arg6[%c1_82, %c0_83, %c0_84] : memref<3x16x32xf32, #tpu.memory_space<vmem>>, vector<1x16x32xf32>
    %88 = vector.shape_cast %87 : vector<1x16x32xf32> to vector<16x32xf32>
    %cst_85 = arith.constant dense<0.000000e+00> : vector<16x128xf32>
    %89 = tpu.matmul %88, %80, %cst_85 {dimension_numbers = #tpu.dot_dimension_numbers<[1], [0], [0], [1], [0, 0, 1, 1], [], []>} : vector<16x32xf32>, vector<32x128xf32>, vector<16x128xf32> -> vector<16x128xf32>
    %c1_86 = arith.constant 1 : index
    %c0_87 = arith.constant 0 : index
    %c0_88 = arith.constant 0 : index
    %90 = vector.load %arg7[%c1_86, %c0_87, %c0_88] : memref<3x128x128xf32, #tpu.memory_space<vmem>>, vector<1x128x128xf32>
    %91 = vector.shape_cast %90 : vector<1x128x128xf32> to vector<128x128xf32>
    %cst_89 = arith.constant dense<0.000000e+00> : vector<16x128xf32>
    %92 = tpu.matmul %89, %91, %cst_89 {dimension_numbers = #tpu.dot_dimension_numbers<[1], [0], [0], [1], [0, 0, 1, 1], [], []>} : vector<16x128xf32>, vector<128x128xf32>, vector<16x128xf32> -> vector<16x128xf32>
    %93 = arith.addf %86, %92 : vector<16x128xf32>
    %c2_90 = arith.constant 2 : index
    %c0_91 = arith.constant 0 : index
    %c0_92 = arith.constant 0 : index
    %94 = vector.load %arg6[%c2_90, %c0_91, %c0_92] : memref<3x16x32xf32, #tpu.memory_space<vmem>>, vector<1x16x32xf32>
    %95 = vector.shape_cast %94 : vector<1x16x32xf32> to vector<16x32xf32>
    %cst_93 = arith.constant dense<0.000000e+00> : vector<16x128xf32>
    %96 = tpu.matmul %95, %80, %cst_93 {dimension_numbers = #tpu.dot_dimension_numbers<[1], [0], [0], [1], [0, 0, 1, 1], [], []>} : vector<16x32xf32>, vector<32x128xf32>, vector<16x128xf32> -> vector<16x128xf32>
    %c2_94 = arith.constant 2 : index
    %c0_95 = arith.constant 0 : index
    %c0_96 = arith.constant 0 : index
    %97 = vector.load %arg7[%c2_94, %c0_95, %c0_96] : memref<3x128x128xf32, #tpu.memory_space<vmem>>, vector<1x128x128xf32>
    %98 = vector.shape_cast %97 : vector<1x128x128xf32> to vector<128x128xf32>
    %cst_97 = arith.constant dense<0.000000e+00> : vector<16x128xf32>
    %99 = tpu.matmul %96, %98, %cst_97 {dimension_numbers = #tpu.dot_dimension_numbers<[1], [0], [0], [1], [0, 0, 1, 1], [], []>} : vector<16x128xf32>, vector<128x128xf32>, vector<16x128xf32> -> vector<16x128xf32>
    %100 = arith.addf %93, %99 : vector<16x128xf32>
    %c0_98 = arith.constant 0 : index
    %c0_99 = arith.constant 0 : index
    %101 = vector.load %arg8[%c0_98, %c0_99] : memref<3x128xf32, #tpu.memory_space<vmem>>, vector<3x128xf32>
    %102 = vector.extract_strided_slice %101 {offsets = [0, 0], sizes = [1, 128], strides = [1, 1]} : vector<3x128xf32> to vector<1x128xf32>
    %103 = vector.broadcast %102 : vector<1x128xf32> to vector<16x128xf32>
    %104 = arith.addf %100, %103 : vector<16x128xf32>
    %cst_100 = arith.constant 0.000000e+00 : f32
    %105 = vector.broadcast %cst_100 : f32 to vector<16x128xf32>
    %106 = arith.maximumf %104, %105 : vector<16x128xf32>
    %107 = vector.extract_strided_slice %101 {offsets = [1, 0], sizes = [1, 128], strides = [1, 1]} : vector<3x128xf32> to vector<1x128xf32>
    %108 = vector.broadcast %107 : vector<1x128xf32> to vector<16x128xf32>
    %109 = arith.mulf %106, %108 : vector<16x128xf32>
    %110 = vector.extract_strided_slice %101 {offsets = [2, 0], sizes = [1, 128], strides = [1, 1]} : vector<3x128xf32> to vector<1x128xf32>
    %111 = vector.broadcast %110 : vector<1x128xf32> to vector<16x128xf32>
    %112 = arith.addf %109, %111 : vector<16x128xf32>
    %c0_101 = arith.constant 0 : index
    %c0_102 = arith.constant 0 : index
    %c0_103 = arith.constant 0 : index
    %113 = vector.load %arg9[%c0_101, %c0_102, %c0_103] : memref<3x8x16xf32, #tpu.memory_space<vmem>>, vector<1x8x16xf32>
    %114 = vector.shape_cast %113 : vector<1x8x16xf32> to vector<8x16xf32>
    %cst_104 = arith.constant dense<0.000000e+00> : vector<8x128xf32>
    %115 = tpu.matmul %114, %112, %cst_104 {dimension_numbers = #tpu.dot_dimension_numbers<[1], [0], [0], [1], [0, 0, 1, 1], [], []>} : vector<8x16xf32>, vector<16x128xf32>, vector<8x128xf32> -> vector<8x128xf32>
    %c0_105 = arith.constant 0 : index
    %c0_106 = arith.constant 0 : index
    %c0_107 = arith.constant 0 : index
    %116 = vector.load %arg10[%c0_105, %c0_106, %c0_107] : memref<3x128x128xf32, #tpu.memory_space<vmem>>, vector<1x128x128xf32>
    %117 = vector.shape_cast %116 : vector<1x128x128xf32> to vector<128x128xf32>
    %cst_108 = arith.constant dense<0.000000e+00> : vector<8x128xf32>
    %118 = tpu.matmul %115, %117, %cst_108 {dimension_numbers = #tpu.dot_dimension_numbers<[1], [0], [0], [1], [0, 0, 1, 1], [], []>} : vector<8x128xf32>, vector<128x128xf32>, vector<8x128xf32> -> vector<8x128xf32>
    %c1_109 = arith.constant 1 : index
    %c0_110 = arith.constant 0 : index
    %c0_111 = arith.constant 0 : index
    %119 = vector.load %arg9[%c1_109, %c0_110, %c0_111] : memref<3x8x16xf32, #tpu.memory_space<vmem>>, vector<1x8x16xf32>
    %120 = vector.shape_cast %119 : vector<1x8x16xf32> to vector<8x16xf32>
    %cst_112 = arith.constant dense<0.000000e+00> : vector<8x128xf32>
    %121 = tpu.matmul %120, %112, %cst_112 {dimension_numbers = #tpu.dot_dimension_numbers<[1], [0], [0], [1], [0, 0, 1, 1], [], []>} : vector<8x16xf32>, vector<16x128xf32>, vector<8x128xf32> -> vector<8x128xf32>
    %c1_113 = arith.constant 1 : index
    %c0_114 = arith.constant 0 : index
    %c0_115 = arith.constant 0 : index
    %122 = vector.load %arg10[%c1_113, %c0_114, %c0_115] : memref<3x128x128xf32, #tpu.memory_space<vmem>>, vector<1x128x128xf32>
    %123 = vector.shape_cast %122 : vector<1x128x128xf32> to vector<128x128xf32>
    %cst_116 = arith.constant dense<0.000000e+00> : vector<8x128xf32>
    %124 = tpu.matmul %121, %123, %cst_116 {dimension_numbers = #tpu.dot_dimension_numbers<[1], [0], [0], [1], [0, 0, 1, 1], [], []>} : vector<8x128xf32>, vector<128x128xf32>, vector<8x128xf32> -> vector<8x128xf32>
    %125 = arith.addf %118, %124 : vector<8x128xf32>
    %c2_117 = arith.constant 2 : index
    %c0_118 = arith.constant 0 : index
    %c0_119 = arith.constant 0 : index
    %126 = vector.load %arg9[%c2_117, %c0_118, %c0_119] : memref<3x8x16xf32, #tpu.memory_space<vmem>>, vector<1x8x16xf32>
    %127 = vector.shape_cast %126 : vector<1x8x16xf32> to vector<8x16xf32>
    %cst_120 = arith.constant dense<0.000000e+00> : vector<8x128xf32>
    %128 = tpu.matmul %127, %112, %cst_120 {dimension_numbers = #tpu.dot_dimension_numbers<[1], [0], [0], [1], [0, 0, 1, 1], [], []>} : vector<8x16xf32>, vector<16x128xf32>, vector<8x128xf32> -> vector<8x128xf32>
    %c2_121 = arith.constant 2 : index
    %c0_122 = arith.constant 0 : index
    %c0_123 = arith.constant 0 : index
    %129 = vector.load %arg10[%c2_121, %c0_122, %c0_123] : memref<3x128x128xf32, #tpu.memory_space<vmem>>, vector<1x128x128xf32>
    %130 = vector.shape_cast %129 : vector<1x128x128xf32> to vector<128x128xf32>
    %cst_124 = arith.constant dense<0.000000e+00> : vector<8x128xf32>
    %131 = tpu.matmul %128, %130, %cst_124 {dimension_numbers = #tpu.dot_dimension_numbers<[1], [0], [0], [1], [0, 0, 1, 1], [], []>} : vector<8x128xf32>, vector<128x128xf32>, vector<8x128xf32> -> vector<8x128xf32>
    %132 = arith.addf %125, %131 : vector<8x128xf32>
    %c0_125 = arith.constant 0 : index
    %c0_126 = arith.constant 0 : index
    %133 = vector.load %arg11[%c0_125, %c0_126] : memref<3x128xf32, #tpu.memory_space<vmem>>, vector<3x128xf32>
    %134 = vector.extract_strided_slice %133 {offsets = [0, 0], sizes = [1, 128], strides = [1, 1]} : vector<3x128xf32> to vector<1x128xf32>
    %135 = vector.broadcast %134 : vector<1x128xf32> to vector<8x128xf32>
    %136 = arith.addf %132, %135 : vector<8x128xf32>
    %cst_127 = arith.constant 0.000000e+00 : f32
    %137 = vector.broadcast %cst_127 : f32 to vector<8x128xf32>
    %138 = arith.maximumf %136, %137 : vector<8x128xf32>
    %139 = vector.extract_strided_slice %133 {offsets = [1, 0], sizes = [1, 128], strides = [1, 1]} : vector<3x128xf32> to vector<1x128xf32>
    %140 = vector.broadcast %139 : vector<1x128xf32> to vector<8x128xf32>
    %141 = arith.mulf %138, %140 : vector<8x128xf32>
    %142 = vector.extract_strided_slice %133 {offsets = [2, 0], sizes = [1, 128], strides = [1, 1]} : vector<3x128xf32> to vector<1x128xf32>
    %143 = vector.broadcast %142 : vector<1x128xf32> to vector<8x128xf32>
    %144 = arith.addf %141, %143 : vector<8x128xf32>
    %c0_128 = arith.constant 0 : index
    %c0_129 = arith.constant 0 : index
    %c0_130 = arith.constant 0 : index
    %145 = vector.load %arg12[%c0_128, %c0_129, %c0_130] : memref<3x4x8xf32, #tpu.memory_space<vmem>>, vector<1x4x8xf32>
    %146 = vector.shape_cast %145 : vector<1x4x8xf32> to vector<4x8xf32>
    %cst_131 = arith.constant dense<0.000000e+00> : vector<4x128xf32>
    %147 = tpu.matmul %146, %144, %cst_131 {dimension_numbers = #tpu.dot_dimension_numbers<[1], [0], [0], [1], [0, 0, 1, 1], [], []>} : vector<4x8xf32>, vector<8x128xf32>, vector<4x128xf32> -> vector<4x128xf32>
    %c0_132 = arith.constant 0 : index
    %c0_133 = arith.constant 0 : index
    %c0_134 = arith.constant 0 : index
    %148 = vector.load %arg13[%c0_132, %c0_133, %c0_134] : memref<3x128x128xf32, #tpu.memory_space<vmem>>, vector<1x128x128xf32>
    %149 = vector.shape_cast %148 : vector<1x128x128xf32> to vector<128x128xf32>
    %cst_135 = arith.constant dense<0.000000e+00> : vector<4x128xf32>
    %150 = tpu.matmul %147, %149, %cst_135 {dimension_numbers = #tpu.dot_dimension_numbers<[1], [0], [0], [1], [0, 0, 1, 1], [], []>} : vector<4x128xf32>, vector<128x128xf32>, vector<4x128xf32> -> vector<4x128xf32>
    %c1_136 = arith.constant 1 : index
    %c0_137 = arith.constant 0 : index
    %c0_138 = arith.constant 0 : index
    %151 = vector.load %arg12[%c1_136, %c0_137, %c0_138] : memref<3x4x8xf32, #tpu.memory_space<vmem>>, vector<1x4x8xf32>
    %152 = vector.shape_cast %151 : vector<1x4x8xf32> to vector<4x8xf32>
    %cst_139 = arith.constant dense<0.000000e+00> : vector<4x128xf32>
    %153 = tpu.matmul %152, %144, %cst_139 {dimension_numbers = #tpu.dot_dimension_numbers<[1], [0], [0], [1], [0, 0, 1, 1], [], []>} : vector<4x8xf32>, vector<8x128xf32>, vector<4x128xf32> -> vector<4x128xf32>
    %c1_140 = arith.constant 1 : index
    %c0_141 = arith.constant 0 : index
    %c0_142 = arith.constant 0 : index
    %154 = vector.load %arg13[%c1_140, %c0_141, %c0_142] : memref<3x128x128xf32, #tpu.memory_space<vmem>>, vector<1x128x128xf32>
    %155 = vector.shape_cast %154 : vector<1x128x128xf32> to vector<128x128xf32>
    %cst_143 = arith.constant dense<0.000000e+00> : vector<4x128xf32>
    %156 = tpu.matmul %153, %155, %cst_143 {dimension_numbers = #tpu.dot_dimension_numbers<[1], [0], [0], [1], [0, 0, 1, 1], [], []>} : vector<4x128xf32>, vector<128x128xf32>, vector<4x128xf32> -> vector<4x128xf32>
    %157 = arith.addf %150, %156 : vector<4x128xf32>
    %c2_144 = arith.constant 2 : index
    %c0_145 = arith.constant 0 : index
    %c0_146 = arith.constant 0 : index
    %158 = vector.load %arg12[%c2_144, %c0_145, %c0_146] : memref<3x4x8xf32, #tpu.memory_space<vmem>>, vector<1x4x8xf32>
    %159 = vector.shape_cast %158 : vector<1x4x8xf32> to vector<4x8xf32>
    %cst_147 = arith.constant dense<0.000000e+00> : vector<4x128xf32>
    %160 = tpu.matmul %159, %144, %cst_147 {dimension_numbers = #tpu.dot_dimension_numbers<[1], [0], [0], [1], [0, 0, 1, 1], [], []>} : vector<4x8xf32>, vector<8x128xf32>, vector<4x128xf32> -> vector<4x128xf32>
    %c2_148 = arith.constant 2 : index
    %c0_149 = arith.constant 0 : index
    %c0_150 = arith.constant 0 : index
    %161 = vector.load %arg13[%c2_148, %c0_149, %c0_150] : memref<3x128x128xf32, #tpu.memory_space<vmem>>, vector<1x128x128xf32>
    %162 = vector.shape_cast %161 : vector<1x128x128xf32> to vector<128x128xf32>
    %cst_151 = arith.constant dense<0.000000e+00> : vector<4x128xf32>
    %163 = tpu.matmul %160, %162, %cst_151 {dimension_numbers = #tpu.dot_dimension_numbers<[1], [0], [0], [1], [0, 0, 1, 1], [], []>} : vector<4x128xf32>, vector<128x128xf32>, vector<4x128xf32> -> vector<4x128xf32>
    %164 = arith.addf %157, %163 : vector<4x128xf32>
    %c0_152 = arith.constant 0 : index
    %c0_153 = arith.constant 0 : index
    %165 = vector.load %arg14[%c0_152, %c0_153] : memref<3x128xf32, #tpu.memory_space<vmem>>, vector<3x128xf32>
    %166 = vector.extract_strided_slice %165 {offsets = [0, 0], sizes = [1, 128], strides = [1, 1]} : vector<3x128xf32> to vector<1x128xf32>
    %167 = vector.broadcast %166 : vector<1x128xf32> to vector<4x128xf32>
    %168 = arith.addf %164, %167 : vector<4x128xf32>
    %cst_154 = arith.constant 0.000000e+00 : f32
    %169 = vector.broadcast %cst_154 : f32 to vector<4x128xf32>
    %170 = arith.maximumf %168, %169 : vector<4x128xf32>
    %171 = vector.extract_strided_slice %165 {offsets = [1, 0], sizes = [1, 128], strides = [1, 1]} : vector<3x128xf32> to vector<1x128xf32>
    %172 = vector.broadcast %171 : vector<1x128xf32> to vector<4x128xf32>
    %173 = arith.mulf %170, %172 : vector<4x128xf32>
    %174 = vector.extract_strided_slice %165 {offsets = [2, 0], sizes = [1, 128], strides = [1, 1]} : vector<3x128xf32> to vector<1x128xf32>
    %175 = vector.broadcast %174 : vector<1x128xf32> to vector<4x128xf32>
    %176 = arith.addf %173, %175 : vector<4x128xf32>
    %c0_155 = arith.constant 0 : index
    %c0_156 = arith.constant 0 : index
    %c0_157 = arith.constant 0 : index
    %177 = vector.load %arg15[%c0_155, %c0_156, %c0_157] : memref<3x2x4xf32, #tpu.memory_space<vmem>>, vector<1x2x4xf32>
    %178 = vector.shape_cast %177 : vector<1x2x4xf32> to vector<2x4xf32>
    %cst_158 = arith.constant dense<0.000000e+00> : vector<2x128xf32>
    %179 = tpu.matmul %178, %176, %cst_158 {dimension_numbers = #tpu.dot_dimension_numbers<[1], [0], [0], [1], [0, 0, 1, 1], [], []>} : vector<2x4xf32>, vector<4x128xf32>, vector<2x128xf32> -> vector<2x128xf32>
    %c0_159 = arith.constant 0 : index
    %c0_160 = arith.constant 0 : index
    %c0_161 = arith.constant 0 : index
    %180 = vector.load %arg16[%c0_159, %c0_160, %c0_161] : memref<3x128x128xf32, #tpu.memory_space<vmem>>, vector<1x128x128xf32>
    %181 = vector.shape_cast %180 : vector<1x128x128xf32> to vector<128x128xf32>
    %cst_162 = arith.constant dense<0.000000e+00> : vector<2x128xf32>
    %182 = tpu.matmul %179, %181, %cst_162 {dimension_numbers = #tpu.dot_dimension_numbers<[1], [0], [0], [1], [0, 0, 1, 1], [], []>} : vector<2x128xf32>, vector<128x128xf32>, vector<2x128xf32> -> vector<2x128xf32>
    %c1_163 = arith.constant 1 : index
    %c0_164 = arith.constant 0 : index
    %c0_165 = arith.constant 0 : index
    %183 = vector.load %arg15[%c1_163, %c0_164, %c0_165] : memref<3x2x4xf32, #tpu.memory_space<vmem>>, vector<1x2x4xf32>
    %184 = vector.shape_cast %183 : vector<1x2x4xf32> to vector<2x4xf32>
    %cst_166 = arith.constant dense<0.000000e+00> : vector<2x128xf32>
    %185 = tpu.matmul %184, %176, %cst_166 {dimension_numbers = #tpu.dot_dimension_numbers<[1], [0], [0], [1], [0, 0, 1, 1], [], []>} : vector<2x4xf32>, vector<4x128xf32>, vector<2x128xf32> -> vector<2x128xf32>
    %c1_167 = arith.constant 1 : index
    %c0_168 = arith.constant 0 : index
    %c0_169 = arith.constant 0 : index
    %186 = vector.load %arg16[%c1_167, %c0_168, %c0_169] : memref<3x128x128xf32, #tpu.memory_space<vmem>>, vector<1x128x128xf32>
    %187 = vector.shape_cast %186 : vector<1x128x128xf32> to vector<128x128xf32>
    %cst_170 = arith.constant dense<0.000000e+00> : vector<2x128xf32>
    %188 = tpu.matmul %185, %187, %cst_170 {dimension_numbers = #tpu.dot_dimension_numbers<[1], [0], [0], [1], [0, 0, 1, 1], [], []>} : vector<2x128xf32>, vector<128x128xf32>, vector<2x128xf32> -> vector<2x128xf32>
    %189 = arith.addf %182, %188 : vector<2x128xf32>
    %c2_171 = arith.constant 2 : index
    %c0_172 = arith.constant 0 : index
    %c0_173 = arith.constant 0 : index
    %190 = vector.load %arg15[%c2_171, %c0_172, %c0_173] : memref<3x2x4xf32, #tpu.memory_space<vmem>>, vector<1x2x4xf32>
    %191 = vector.shape_cast %190 : vector<1x2x4xf32> to vector<2x4xf32>
    %cst_174 = arith.constant dense<0.000000e+00> : vector<2x128xf32>
    %192 = tpu.matmul %191, %176, %cst_174 {dimension_numbers = #tpu.dot_dimension_numbers<[1], [0], [0], [1], [0, 0, 1, 1], [], []>} : vector<2x4xf32>, vector<4x128xf32>, vector<2x128xf32> -> vector<2x128xf32>
    %c2_175 = arith.constant 2 : index
    %c0_176 = arith.constant 0 : index
    %c0_177 = arith.constant 0 : index
    %193 = vector.load %arg16[%c2_175, %c0_176, %c0_177] : memref<3x128x128xf32, #tpu.memory_space<vmem>>, vector<1x128x128xf32>
    %194 = vector.shape_cast %193 : vector<1x128x128xf32> to vector<128x128xf32>
    %cst_178 = arith.constant dense<0.000000e+00> : vector<2x128xf32>
    %195 = tpu.matmul %192, %194, %cst_178 {dimension_numbers = #tpu.dot_dimension_numbers<[1], [0], [0], [1], [0, 0, 1, 1], [], []>} : vector<2x128xf32>, vector<128x128xf32>, vector<2x128xf32> -> vector<2x128xf32>
    %196 = arith.addf %189, %195 : vector<2x128xf32>
    %c0_179 = arith.constant 0 : index
    %c0_180 = arith.constant 0 : index
    %197 = vector.load %arg17[%c0_179, %c0_180] : memref<3x128xf32, #tpu.memory_space<vmem>>, vector<3x128xf32>
    %198 = vector.extract_strided_slice %197 {offsets = [0, 0], sizes = [1, 128], strides = [1, 1]} : vector<3x128xf32> to vector<1x128xf32>
    %199 = vector.broadcast %198 : vector<1x128xf32> to vector<2x128xf32>
    %200 = arith.addf %196, %199 : vector<2x128xf32>
    %cst_181 = arith.constant 0.000000e+00 : f32
    %201 = vector.broadcast %cst_181 : f32 to vector<2x128xf32>
    %202 = arith.maximumf %200, %201 : vector<2x128xf32>
    %203 = vector.extract_strided_slice %197 {offsets = [1, 0], sizes = [1, 128], strides = [1, 1]} : vector<3x128xf32> to vector<1x128xf32>
    %204 = vector.broadcast %203 : vector<1x128xf32> to vector<2x128xf32>
    %205 = arith.mulf %202, %204 : vector<2x128xf32>
    %206 = vector.extract_strided_slice %197 {offsets = [2, 0], sizes = [1, 128], strides = [1, 1]} : vector<3x128xf32> to vector<1x128xf32>
    %207 = vector.broadcast %206 : vector<1x128xf32> to vector<2x128xf32>
    %208 = arith.addf %205, %207 : vector<2x128xf32>
    %209 = vector.extract_strided_slice %208 {offsets = [0, 0], sizes = [1, 128], strides = [1, 1]} : vector<2x128xf32> to vector<1x128xf32>
    %c0_182 = arith.constant 0 : index
    %c0_183 = arith.constant 0 : index
    %210 = vector.load %arg18[%c0_182, %c0_183] : memref<128x128xf32, #tpu.memory_space<vmem>>, vector<128x128xf32>
    %cst_184 = arith.constant dense<0.000000e+00> : vector<1x128xf32>
    %211 = tpu.matmul %209, %210, %cst_184 {dimension_numbers = #tpu.dot_dimension_numbers<[1], [0], [0], [1], [0, 0, 1, 1], [], []>} : vector<1x128xf32>, vector<128x128xf32>, vector<1x128xf32> -> vector<1x128xf32>
    %212 = vector.extract_strided_slice %208 {offsets = [1, 0], sizes = [1, 128], strides = [1, 1]} : vector<2x128xf32> to vector<1x128xf32>
    %c0_185 = arith.constant 0 : index
    %c0_186 = arith.constant 0 : index
    %213 = vector.load %arg19[%c0_185, %c0_186] : memref<128x128xf32, #tpu.memory_space<vmem>>, vector<128x128xf32>
    %cst_187 = arith.constant dense<0.000000e+00> : vector<1x128xf32>
    %214 = tpu.matmul %212, %213, %cst_187 {dimension_numbers = #tpu.dot_dimension_numbers<[1], [0], [0], [1], [0, 0, 1, 1], [], []>} : vector<1x128xf32>, vector<128x128xf32>, vector<1x128xf32> -> vector<1x128xf32>
    %215 = arith.addf %211, %214 : vector<1x128xf32>
    %c0_188 = arith.constant 0 : index
    %c0_189 = arith.constant 0 : index
    %216 = vector.load %arg20[%c0_188, %c0_189] : memref<1x128xf32, #tpu.memory_space<vmem>>, vector<1x128xf32>
    %217 = arith.addf %215, %216 : vector<1x128xf32>
    %cst_190 = arith.constant 0.000000e+00 : f32
    %218 = vector.broadcast %cst_190 : f32 to vector<1x128xf32>
    %219 = arith.maximumf %217, %218 : vector<1x128xf32>
    %c0_191 = arith.constant 0 : index
    %c0_192 = arith.constant 0 : index
    %220 = vector.load %arg21[%c0_191, %c0_192] : memref<128x64xf32, #tpu.memory_space<vmem>>, vector<128x64xf32>
    %cst_193 = arith.constant dense<0.000000e+00> : vector<1x64xf32>
    %221 = tpu.matmul %219, %220, %cst_193 {dimension_numbers = #tpu.dot_dimension_numbers<[1], [0], [0], [1], [0, 0, 1, 1], [], []>} : vector<1x128xf32>, vector<128x64xf32>, vector<1x64xf32> -> vector<1x64xf32>
    %c0_194 = arith.constant 0 : index
    %c0_195 = arith.constant 0 : index
    %222 = vector.load %arg22[%c0_194, %c0_195] : memref<1x64xf32, #tpu.memory_space<vmem>>, vector<1x64xf32>
    %223 = arith.addf %221, %222 : vector<1x64xf32>
    %cst_196 = arith.constant 0.000000e+00 : f32
    %224 = vector.broadcast %cst_196 : f32 to vector<1x64xf32>
    %225 = arith.maximumf %223, %224 : vector<1x64xf32>
    %c0_197 = arith.constant 0 : index
    %c0_198 = arith.constant 0 : index
    %226 = vector.load %arg23[%c0_197, %c0_198] : memref<64x16xf32, #tpu.memory_space<vmem>>, vector<64x16xf32>
    %cst_199 = arith.constant dense<0.000000e+00> : vector<1x16xf32>
    %227 = tpu.matmul %225, %226, %cst_199 {dimension_numbers = #tpu.dot_dimension_numbers<[1], [0], [0], [1], [0, 0, 1, 1], [], []>} : vector<1x64xf32>, vector<64x16xf32>, vector<1x16xf32> -> vector<1x16xf32>
    %c0_200 = arith.constant 0 : index
    %c0_201 = arith.constant 0 : index
    %228 = vector.load %arg24[%c0_200, %c0_201] : memref<1x16xf32, #tpu.memory_space<vmem>>, vector<1x16xf32>
    %229 = arith.addf %227, %228 : vector<1x16xf32>
    %cst_202 = arith.constant 0.000000e+00 : f32
    %230 = vector.broadcast %cst_202 : f32 to vector<1x16xf32>
    %231 = arith.maximumf %229, %230 : vector<1x16xf32>
    %c0_203 = arith.constant 0 : index
    %c0_204 = arith.constant 0 : index
    %232 = vector.load %arg25[%c0_203, %c0_204] : memref<16x8xf32, #tpu.memory_space<vmem>>, vector<16x8xf32>
    %cst_205 = arith.constant dense<0.000000e+00> : vector<1x8xf32>
    %233 = tpu.matmul %231, %232, %cst_205 {dimension_numbers = #tpu.dot_dimension_numbers<[1], [0], [0], [1], [0, 0, 1, 1], [], []>} : vector<1x16xf32>, vector<16x8xf32>, vector<1x8xf32> -> vector<1x8xf32>
    %c0_206 = arith.constant 0 : index
    %c0_207 = arith.constant 0 : index
    %234 = vector.load %arg26[%c0_206, %c0_207] : memref<1x8xf32, #tpu.memory_space<vmem>>, vector<1x8xf32>
    %235 = arith.addf %233, %234 : vector<1x8xf32>
    %cst_208 = arith.constant 0.000000e+00 : f32
    %236 = vector.broadcast %cst_208 : f32 to vector<1x8xf32>
    %237 = arith.maximumf %235, %236 : vector<1x8xf32>
    %c0_209 = arith.constant 0 : index
    %c0_210 = arith.constant 0 : index
    %238 = vector.load %arg27[%c0_209, %c0_210] : memref<8x12xf32, #tpu.memory_space<vmem>>, vector<8x12xf32>
    %cst_211 = arith.constant dense<0.000000e+00> : vector<1x12xf32>
    %239 = tpu.matmul %237, %238, %cst_211 {dimension_numbers = #tpu.dot_dimension_numbers<[1], [0], [0], [1], [0, 0, 1, 1], [], []>} : vector<1x8xf32>, vector<8x12xf32>, vector<1x12xf32> -> vector<1x12xf32>
    %c0_212 = arith.constant 0 : index
    %c0_213 = arith.constant 0 : index
    %240 = vector.load %arg28[%c0_212, %c0_213] : memref<4x12xf32, #tpu.memory_space<vmem>>, vector<4x12xf32>
    %cst_214 = arith.constant dense<0.000000e+00> : vector<1x12xf32>
    %241 = tpu.matmul %3, %240, %cst_214 {dimension_numbers = #tpu.dot_dimension_numbers<[1], [0], [0], [1], [0, 0, 1, 1], [], []>} : vector<1x4xf32>, vector<4x12xf32>, vector<1x12xf32> -> vector<1x12xf32>
    %242 = arith.addf %239, %241 : vector<1x12xf32>
    %c0_215 = arith.constant 0 : index
    %c0_216 = arith.constant 0 : index
    %243 = vector.load %arg29[%c0_215, %c0_216] : memref<1x12xf32, #tpu.memory_space<vmem>>, vector<1x12xf32>
    %244 = arith.addf %242, %243 : vector<1x12xf32>
    %cst_217 = arith.constant 0.000000e+00 : f32
    %245 = vector.broadcast %cst_217 : f32 to vector<1x12xf32>
    %246 = arith.maximumf %244, %245 : vector<1x12xf32>
    %c0_218 = arith.constant 0 : index
    %c0_219 = arith.constant 0 : index
    %247 = vector.load %arg30[%c0_218, %c0_219] : memref<12x128xf32, #tpu.memory_space<vmem>>, vector<12x128xf32>
    %cst_220 = arith.constant dense<0.000000e+00> : vector<1x128xf32>
    %248 = tpu.matmul %246, %247, %cst_220 {dimension_numbers = #tpu.dot_dimension_numbers<[1], [0], [0], [1], [0, 0, 1, 1], [], []>} : vector<1x12xf32>, vector<12x128xf32>, vector<1x128xf32> -> vector<1x128xf32>
    %c0_221 = arith.constant 0 : index
    %c0_222 = arith.constant 0 : index
    %249 = vector.load %arg31[%c0_221, %c0_222] : memref<1x128xf32, #tpu.memory_space<vmem>>, vector<1x128xf32>
    %250 = arith.addf %248, %249 : vector<1x128xf32>
    %c0_223 = arith.constant 0 : index
    %c0_224 = arith.constant 0 : index
    %c0_225 = arith.constant 0 : index
    %251 = vector.load %arg32[%c0_223, %c0_224, %c0_225] : memref<1x1x128xf32, #tpu.memory_space<vmem>>, vector<1x1x128xf32>
    %252 = vector.shape_cast %251 : vector<1x1x128xf32> to vector<1x128xf32>
    %253 = vector.shape_cast %250 : vector<1x128xf32> to vector<1x1x128xf32>
    tpu.vector_store %arg32[%c0_223, %c0_224, %c0_225], %253 {strides = array<i32>} : memref<1x1x128xf32, #tpu.memory_space<vmem>>, vector<1x1x128xf32>,
    return
  }
  func.func @transform_0(%arg0: i32) -> (i32, i32, i32) {
    %c0_i32 = arith.constant 0 : i32
    %c0_i32_0 = arith.constant 0 : i32
    %c0_i32_1 = arith.constant 0 : i32
    return %arg0, %c0_i32, %c0_i32_0 : i32, i32, i32
  }
  func.func @transform_1(%arg0: i32) -> (i32, i32, i32) {
    %c0_i32 = arith.constant 0 : i32
    %c0_i32_0 = arith.constant 0 : i32
    %c0_i32_1 = arith.constant 0 : i32
    return %arg0, %c0_i32, %c0_i32_0 : i32, i32, i32
  }
  func.func @transform_2(%arg0: i32) -> (i32, i32, i32) {
    %c0_i32 = arith.constant 0 : i32
    %c0_i32_0 = arith.constant 0 : i32
    %c0_i32_1 = arith.constant 0 : i32
    %c0_i32_2 = arith.constant 0 : i32
    return %c0_i32, %c0_i32_0, %c0_i32_1 : i32, i32, i32
  }
  func.func @transform_3(%arg0: i32) -> (i32, i32, i32) {
    %c0_i32 = arith.constant 0 : i32
    %c0_i32_0 = arith.constant 0 : i32
    %c0_i32_1 = arith.constant 0 : i32
    %c0_i32_2 = arith.constant 0 : i32
    return %c0_i32, %c0_i32_0, %c0_i32_1 : i32, i32, i32
  }
  func.func @transform_4(%arg0: i32) -> (i32, i32) {
    %c0_i32 = arith.constant 0 : i32
    %c0_i32_0 = arith.constant 0 : i32
    %c0_i32_1 = arith.constant 0 : i32
    return %c0_i32, %c0_i32_0 : i32, i32
  }
  func.func @transform_5(%arg0: i32) -> (i32, i32, i32) {
    %c0_i32 = arith.constant 0 : i32
    %c0_i32_0 = arith.constant 0 : i32
    %c0_i32_1 = arith.constant 0 : i32
    %c0_i32_2 = arith.constant 0 : i32
    return %c0_i32, %c0_i32_0, %c0_i32_1 : i32, i32, i32
  }
  func.func @transform_6(%arg0: i32) -> (i32, i32, i32) {
    %c0_i32 = arith.constant 0 : i32
    %c0_i32_0 = arith.constant 0 : i32
    %c0_i32_1 = arith.constant 0 : i32
    %c0_i32_2 = arith.constant 0 : i32
    return %c0_i32, %c0_i32_0, %c0_i32_1 : i32, i32, i32
  }
  func.func @transform_7(%arg0: i32) -> (i32, i32) {
    %c0_i32 = arith.constant 0 : i32
    %c0_i32_0 = arith.constant 0 : i32
    %c0_i32_1 = arith.constant 0 : i32
    return %c0_i32, %c0_i32_0 : i32, i32
  }
  func.func @transform_8(%arg0: i32) -> (i32, i32, i32) {
    %c0_i32 = arith.constant 0 : i32
    %c0_i32_0 = arith.constant 0 : i32
    %c0_i32_1 = arith.constant 0 : i32
    %c0_i32_2 = arith.constant 0 : i32
    return %c0_i32, %c0_i32_0, %c0_i32_1 : i32, i32, i32
  }
  func.func @transform_9(%arg0: i32) -> (i32, i32, i32) {
    %c0_i32 = arith.constant 0 : i32
    %c0_i32_0 = arith.constant 0 : i32
    %c0_i32_1 = arith.constant 0 : i32
    %c0_i32_2 = arith.constant 0 : i32
    return %c0_i32, %c0_i32_0, %c0_i32_1 : i32, i32, i32
  }
  func.func @transform_10(%arg0: i32) -> (i32, i32) {
    %c0_i32 = arith.constant 0 : i32
    %c0_i32_0 = arith.constant 0 : i32
    %c0_i32_1 = arith.constant 0 : i32
    return %c0_i32, %c0_i32_0 : i32, i32
  }
  func.func @transform_11(%arg0: i32) -> (i32, i32, i32) {
    %c0_i32 = arith.constant 0 : i32
    %c0_i32_0 = arith.constant 0 : i32
    %c0_i32_1 = arith.constant 0 : i32
    %c0_i32_2 = arith.constant 0 : i32
    return %c0_i32, %c0_i32_0, %c0_i32_1 : i32, i32, i32
  }
  func.func @transform_12(%arg0: i32) -> (i32, i32, i32) {
    %c0_i32 = arith.constant 0 : i32
    %c0_i32_0 = arith.constant 0 : i32
    %c0_i32_1 = arith.constant 0 : i32
    %c0_i32_2 = arith.constant 0 : i32
    return %c0_i32, %c0_i32_0, %c0_i32_1 : i32, i32, i32
  }
  func.func @transform_13(%arg0: i32) -> (i32, i32) {
    %c0_i32 = arith.constant 0 : i32
    %c0_i32_0 = arith.constant 0 : i32
    %c0_i32_1 = arith.constant 0 : i32
    return %c0_i32, %c0_i32_0 : i32, i32
  }
  func.func @transform_14(%arg0: i32) -> (i32, i32, i32) {
    %c0_i32 = arith.constant 0 : i32
    %c0_i32_0 = arith.constant 0 : i32
    %c0_i32_1 = arith.constant 0 : i32
    %c0_i32_2 = arith.constant 0 : i32
    return %c0_i32, %c0_i32_0, %c0_i32_1 : i32, i32, i32
  }
  func.func @transform_15(%arg0: i32) -> (i32, i32, i32) {
    %c0_i32 = arith.constant 0 : i32
    %c0_i32_0 = arith.constant 0 : i32
    %c0_i32_1 = arith.constant 0 : i32
    %c0_i32_2 = arith.constant 0 : i32
    return %c0_i32, %c0_i32_0, %c0_i32_1 : i32, i32, i32
  }
  func.func @transform_16(%arg0: i32) -> (i32, i32) {
    %c0_i32 = arith.constant 0 : i32
    %c0_i32_0 = arith.constant 0 : i32
    %c0_i32_1 = arith.constant 0 : i32
    return %c0_i32, %c0_i32_0 : i32, i32
  }
  func.func @transform_17(%arg0: i32) -> (i32, i32) {
    %c0_i32 = arith.constant 0 : i32
    %c0_i32_0 = arith.constant 0 : i32
    %c0_i32_1 = arith.constant 0 : i32
    return %c0_i32, %c0_i32_0 : i32, i32
  }
  func.func @transform_18(%arg0: i32) -> (i32, i32) {
    %c0_i32 = arith.constant 0 : i32
    %c0_i32_0 = arith.constant 0 : i32
    %c0_i32_1 = arith.constant 0 : i32
    return %c0_i32, %c0_i32_0 : i32, i32
  }
  func.func @transform_19(%arg0: i32) -> (i32, i32) {
    %c0_i32 = arith.constant 0 : i32
    %c0_i32_0 = arith.constant 0 : i32
    %c0_i32_1 = arith.constant 0 : i32
    return %c0_i32, %c0_i32_0 : i32, i32
  }
  func.func @transform_20(%arg0: i32) -> (i32, i32) {
    %c0_i32 = arith.constant 0 : i32
    %c0_i32_0 = arith.constant 0 : i32
    %c0_i32_1 = arith.constant 0 : i32
    return %c0_i32, %c0_i32_0 : i32, i32
  }
  func.func @transform_21(%arg0: i32) -> (i32, i32) {
    %c0_i32 = arith.constant 0 : i32
    %c0_i32_0 = arith.constant 0 : i32
    %c0_i32_1 = arith.constant 0 : i32
    return %c0_i32, %c0_i32_0 : i32, i32
  }
  func.func @transform_22(%arg0: i32) -> (i32, i32) {
    %c0_i32 = arith.constant 0 : i32
    %c0_i32_0 = arith.constant 0 : i32
    %c0_i32_1 = arith.constant 0 : i32
    return %c0_i32, %c0_i32_0 : i32, i32
  }
  func.func @transform_23(%arg0: i32) -> (i32, i32) {
    %c0_i32 = arith.constant 0 : i32
    %c0_i32_0 = arith.constant 0 : i32
    %c0_i32_1 = arith.constant 0 : i32
    return %c0_i32, %c0_i32_0 : i32, i32
  }
  func.func @transform_24(%arg0: i32) -> (i32, i32) {
    %c0_i32 = arith.constant 0 : i32
    %c0_i32_0 = arith.constant 0 : i32
    %c0_i32_1 = arith.constant 0 : i32
    return %c0_i32, %c0_i32_0 : i32, i32
  }
  func.func @transform_25(%arg0: i32) -> (i32, i32) {
    %c0_i32 = arith.constant 0 : i32
    %c0_i32_0 = arith.constant 0 : i32
    %c0_i32_1 = arith.constant 0 : i32
    return %c0_i32, %c0_i32_0 : i32, i32
  }
  func.func @transform_26(%arg0: i32) -> (i32, i32) {
    %c0_i32 = arith.constant 0 : i32
    %c0_i32_0 = arith.constant 0 : i32
    %c0_i32_1 = arith.constant 0 : i32
    return %c0_i32, %c0_i32_0 : i32, i32
  }
  func.func @transform_27(%arg0: i32) -> (i32, i32) {
    %c0_i32 = arith.constant 0 : i32
    %c0_i32_0 = arith.constant 0 : i32
    %c0_i32_1 = arith.constant 0 : i32
    return %c0_i32, %c0_i32_0 : i32, i32
  }
  func.func @transform_28(%arg0: i32) -> (i32, i32) {
    %c0_i32 = arith.constant 0 : i32
    %c0_i32_0 = arith.constant 0 : i32
    %c0_i32_1 = arith.constant 0 : i32
    return %c0_i32, %c0_i32_0 : i32, i32
  }
  func.func @transform_29(%arg0: i32) -> (i32, i32) {
    %c0_i32 = arith.constant 0 : i32
    %c0_i32_0 = arith.constant 0 : i32
    %c0_i32_1 = arith.constant 0 : i32
    return %c0_i32, %c0_i32_0 : i32, i32
  }
  func.func @transform_30(%arg0: i32) -> (i32, i32) {
    %c0_i32 = arith.constant 0 : i32
    %c0_i32_0 = arith.constant 0 : i32
    %c0_i32_1 = arith.constant 0 : i32
    return %c0_i32, %c0_i32_0 : i32, i32
  }
  func.func @transform_31(%arg0: i32) -> (i32, i32, i32) {
    %c0_i32 = arith.constant 0 : i32
    %c0_i32_0 = arith.constant 0 : i32
    %c0_i32_1 = arith.constant 0 : i32
    return %arg0, %c0_i32, %c0_i32_0 : i32, i32, i32
  }
}

</mosaic_0001>

<bundles_post_ra>
// kernel: tile.86
= control target key start
LH: loop header
LB: loop body
LE: loop exit
PB: predicated region body
PF: predicated region fallthrough
CT: control target
= control target key end

     0   :  { %s40_s0 = inlined_call_operand.vmem [shape: f32[4], index: 0, kind: input, shape index: {}]   ;;  %s41_s1 = inlined_call_operand.vmem [shape: f32[32,4], index: 1, kind: output, shape index: {}]  }
   0x1   :  { %v4_v0 = vld [vmem:[%s40_s0] ss:$0 sm:$0xff] }
   0x2   :  { %5 = vst [vmem:[%s41_s1] sm:$0xff] %v4_v0  ;;  %12 = vst [vmem:[%s41_s1 + $0x8] sm:$0xff] %v4_v0 }
   0x3   :  { %13 = vst [vmem:[%s41_s1 + $0x10] sm:$0xff] %v4_v0  ;;  %14 = vst [vmem:[%s41_s1 + $0x18] sm:$0xff] %v4_v0 }

// kernel: tile.89
= control target key start
LH: loop header
LB: loop body
LE: loop exit
PB: predicated region body
PF: predicated region fallthrough
CT: control target
= control target key end

     0   :  { %s259_s10 = smov 124   ;;  %s260_s11 = smov 116   ;;  %vm3_vm0 = vcmask 31744   ;;  %vm9_vm1 = vcmask 1048544   ;;  %vm15_vm2 = vcmask 1015744   ;;  %vm21_vm3 = vcmask 982944   ;;  %s399_s0 = inlined_call_operand.vmem [shape: f32[32,4], index: 0, kind: input, shape index: {}]   ;;  %s400_s1 = inlined_call_operand.vmem [shape: f32[1,128], index: 1, kind: output, shape index: {}]  }
   0x1   :  { %v197_v0 = vld [vmem:[%s399_s0 + $0x1f] sm:$0x1]   ;;  %v199_v1 = vld [vmem:[%s399_s0 + $0x1d] sm:$0x1]   ;;  %v198_v2 = vld [vmem:[%s399_s0 + $0x1e] sm:$0x1]  }
   0x2   :  { %7 = vrot.lane.b32.xlu0 %v197_v0, %s259_s10  ;;  %19 = vrot.lane.b32.xlu1 %v199_v1, %s260_s11  ;;  %v200_v3 = vld [vmem:[%s399_s0 + $0x1c] sm:$0x1]   ;;  %s261_s16 = smov 120   ;;  %s262_s17 = smov 112   ;;  %v201_v4 = vld [vmem:[%s399_s0 + $0x1b] sm:$0x1]  }
   0x3   :  { %v202_v5 = vld [vmem:[%s399_s0 + $0x1a] sm:$0x1]   ;;  %s263_s22 = smov 108   ;;  %s264_s23 = smov 104   ;;  %v203_v6 = vld [vmem:[%s399_s0 + $0x19] sm:$0x1]  }
   0x4   :  { %v204_v7 = vld [vmem:[%s399_s0 + $0x18] sm:$0x1]   ;;  %s265_s28 = smov 100   ;;  %s266_s29 = smov 96   ;;  %v205_v8 = vld [vmem:[%s399_s0 + $0x17] sm:$0x1]  }
   0x5   :  { %v206_v9 = vld [vmem:[%s399_s0 + $0x16] sm:$0x1]   ;;  %v2_v10 = vld [vmem:[%s399_s0] sm:$0x1]   ;;  %s267_s7 = smov 92   ;;  %s268_s8 = smov 88  }
   0x6   :  { %13 = vrot.lane.b32.xlu0 %v198_v2, %s261_s16  ;;  %25 = vrot.lane.b32.xlu1 %v200_v3, %s262_s17  ;;  %4 = vst.msk [vmem:[#allocation0] sm:$0x1] %vm3_vm0, %v2_v10   ;;  %v207_v11 = vld [vmem:[%s399_s0 + $0x15] sm:$0x1]   ;;  %v208_v12 = vld [vmem:[%s399_s0 + $0x14] sm:$0x1]  }
   0x7   :  { %s269_s13 = smov 84   ;;  %s270_s14 = smov 80   ;;  %v209_v13 = vld [vmem:[%s399_s0 + $0x13] sm:$0x1]   ;;  %v210_v14 = vld [vmem:[%s399_s0 + $0x12] sm:$0x1]  }
   0x8   :  { %s271_s19 = smov 76   ;;  %s272_s20 = smov 72   ;;  %v211_v15 = vld [vmem:[%s399_s0 + $0x11] sm:$0x1]   ;;  %v212_v16 = vld [vmem:[%s399_s0 + $0x10] sm:$0x1]  }
   0x9   :  { %s273_s25 = smov 68   ;;  %s274_s26 = smov 64   ;;  %v213_v17 = vld [vmem:[%s399_s0 + $0xf] sm:$0x1]   ;;  %v214_v18 = vld [vmem:[%s399_s0 + $0xe] sm:$0x1]  }
   0xa   :  { %31 = vrot.lane.b32.xlu0 %v201_v4, %s263_s22  ;;  %37 = vrot.lane.b32.xlu1 %v202_v5, %s264_s23  ;;  %s275_s2 = smov 60   ;;  %s276_s3 = smov 56   ;;  %v215_v19 = vld [vmem:[%s399_s0 + $0xd] sm:$0x1]   ;;  %v216_v20 = vld [vmem:[%s399_s0 + $0xc] sm:$0x1]  }
   0xb   :  { %s278_s9 = smov 48   ;;  %v217_v21 = vld [vmem:[%s399_s0 + $0xb] sm:$0x1]   ;;  %v218_v22 = vld [vmem:[%s399_s0 + $0xa] sm:$0x1]   ;;  %s280_s15 = smov 40  }
   0xc   :  { %v219_v23 = vld [vmem:[%s399_s0 + $0x9] sm:$0x1]   ;;  %v220_v24 = vld [vmem:[%s399_s0 + $0x8] sm:$0x1]   ;;  %s282_s21 = smov 32   ;;  %s284_s27 = smov 24  }
   0xd   :  { %v221_v25 = vld [vmem:[%s399_s0 + $0x7] sm:$0x1]   ;;  %v222_v26 = vld [vmem:[%s399_s0 + $0x6] sm:$0x1]   ;;  %v223_v27 = vld [vmem:[%s399_s0 + $0x5] sm:$0x1]  }
   0xe   :  { %43 = vrot.lane.b32.xlu0 %v203_v6, %s265_s28  ;;  %49 = vrot.lane.b32.xlu1 %v204_v7, %s266_s29  ;;  %v224_v28 = vld [vmem:[%s399_s0 + $0x4] sm:$0x1]   ;;  %s286_s4 = smov 16   ;;  %v225_v29 = vld [vmem:[%s399_s0 + $0x3] sm:$0x1]   ;;  %s288_s10 = smov 8  }
   0xf   :  { %v226_v30 = vld [vmem:[%s399_s0 + $0x2] sm:$0x1]   ;;  %v227_v31 = vld [vmem:[%s399_s0 + $0x1] sm:$0x1]   ;;  %s289_s0 = smov 4   ;;  %vm27_vm4 = vcmask 950144  }
  0x10   :  { %vm33_vm5 = vcmask 917344   ;;  %vm39_vm6 = vcmask 884544   ;;  %vm45_vm7 = vcmask 851744   ;;  %vm51_vm8 = vcmask 818944  }
  0x11   :  { %vm57_vm9 = vcmask 786144   ;;  %vm63_vm10 = vcmask 753344   ;;  %vm69_vm11 = vcmask 720544   ;;  %vm75_vm12 = vcmask 687744  }
  0x12   :  { %55 = vrot.lane.b32.xlu0 %v205_v8, %s267_s7  ;;  %61 = vrot.lane.b32.xlu1 %v206_v9, %s268_s8  ;;  %s277_s8 = smov 52   ;;  %vm81_vm13 = vcmask 654944   ;;  %vm87_vm14 = vcmask 622144   ;;  %vm93_vm15 = vcmask 589344   ;;  %vm99_vm0 = vcmask 556544  }
  0x16   :  { %67 = vrot.lane.b32.xlu0 %v207_v11, %s269_s13  ;;  %73 = vrot.lane.b32.xlu1 %v208_v12, %s270_s14  ;;  %s279_s14 = smov 44  }
  0x1a   :  { %79 = vrot.lane.b32.xlu0 %v209_v13, %s271_s19  ;;  %85 = vrot.lane.b32.xlu1 %v210_v14, %s272_s20  ;;  %s281_s20 = smov 36  }
  0x1e   :  { %91 = vrot.lane.b32.xlu0 %v211_v15, %s273_s25  ;;  %97 = vrot.lane.b32.xlu1 %v212_v16, %s274_s26  ;;  %s283_s26 = smov 28  }
  0x22   :  { %103 = vrot.lane.b32.xlu0 %v213_v17, %s275_s2  ;;  %109 = vrot.lane.b32.xlu1 %v214_v18, %s276_s3  ;;  %s285_s3 = smov 20  }
  0x26   :  { %115 = vrot.lane.b32.xlu0 %v215_v19, %s277_s8  ;;  %121 = vrot.lane.b32.xlu1 %v216_v20, %s278_s9  ;;  %s287_s9 = smov 12  }
  0x2a   :  { %127 = vrot.lane.b32.xlu0 %v217_v21, %s279_s14  ;;  %133 = vrot.lane.b32.xlu1 %v218_v22, %s280_s15 }
  0x2e   :  { %139 = vrot.lane.b32.xlu0 %v219_v23, %s281_s20  ;;  %145 = vrot.lane.b32.xlu1 %v220_v24, %s282_s21 }
  0x32   :  { %151 = vrot.lane.b32.xlu0 %v221_v25, %s283_s26  ;;  %157 = vrot.lane.b32.xlu1 %v222_v26, %s284_s27 }
  0x36   :  { %163 = vrot.lane.b32.xlu0 %v223_v27, %s285_s3  ;;  %169 = vrot.lane.b32.xlu1 %v224_v28, %s286_s4 }
  0x3a   :  { %175 = vrot.lane.b32.xlu0 %v225_v29, %s287_s9  ;;  %181 = vrot.lane.b32.xlu1 %v226_v30, %s288_s10 }
  0x3e   :  { %187 = vrot.lane.b32.xlu0 %v227_v31, %s289_s0 }
  0x74   :  { %v8_v32 = vpop.permute.xlu0 %7   ;;  %v20_v33 = vpop.permute.xlu1 %19  }
  0x75   :  { %10 = vst.msk [vmem:[#allocation0] sm:$0x1] %vm9_vm1, %v8_v32   ;;  %vm105_vm1 = vcmask 523744  }
  0x78   :  { %v14_v34 = vpop.permute.xlu0 %13   ;;  %v26_v35 = vpop.permute.xlu1 %25  }
  0x79   :  { %16 = vst.msk [vmem:[#allocation0] sm:$0x1] %vm15_vm2, %v14_v34   ;;  %vm111_vm2 = vcmask 490944  }
  0x7a   :  { %22 = vst.msk [vmem:[#allocation0] sm:$0x1] %vm21_vm3, %v20_v33   ;;  %vm117_vm3 = vcmask 458144  }
  0x7b   :  { %28 = vst.msk [vmem:[#allocation0] sm:$0x1] %vm27_vm4, %v26_v35   ;;  %vm123_vm4 = vcmask 425344  }
  0x7c   :  { %v32_v36 = vpop.permute.xlu0 %31   ;;  %v38_v37 = vpop.permute.xlu1 %37  }
  0x7d   :  { %34 = vst.msk [vmem:[#allocation0] sm:$0x1] %vm33_vm5, %v32_v36   ;;  %vm129_vm5 = vcmask 392544  }
  0x7e   :  { %40 = vst.msk [vmem:[#allocation0] sm:$0x1] %vm39_vm6, %v38_v37   ;;  %vm135_vm6 = vcmask 359744  }
  0x80   :  { %v44_v38 = vpop.permute.xlu0 %43   ;;  %v50_v39 = vpop.permute.xlu1 %49  }
  0x81   :  { %46 = vst.msk [vmem:[#allocation0] sm:$0x1] %vm45_vm7, %v44_v38   ;;  %vm141_vm7 = vcmask 326944  }
  0x82   :  { %52 = vst.msk [vmem:[#allocation0] sm:$0x1] %vm51_vm8, %v50_v39   ;;  %vm147_vm8 = vcmask 294144  }
  0x84   :  { %v56_v40 = vpop.permute.xlu0 %55   ;;  %v62_v41 = vpop.permute.xlu1 %61  }
  0x85   :  { %58 = vst.msk [vmem:[#allocation0] sm:$0x1] %vm57_vm9, %v56_v40   ;;  %vm153_vm9 = vcmask 261344  }
  0x86   :  { %64 = vst.msk [vmem:[#allocation0] sm:$0x1] %vm63_vm10, %v62_v41   ;;  %vm159_vm10 = vcmask 228544  }
  0x88   :  { %v68_v42 = vpop.permute.xlu0 %67   ;;  %v74_v43 = vpop.permute.xlu1 %73  }
  0x89   :  { %70 = vst.msk [vmem:[#allocation0] sm:$0x1] %vm69_vm11, %v68_v42   ;;  %vm165_vm11 = vcmask 195744  }
  0x8a   :  { %76 = vst.msk [vmem:[#allocation0] sm:$0x1] %vm75_vm12, %v74_v43   ;;  %vm171_vm12 = vcmask 162944  }
  0x8c   :  { %v80_v44 = vpop.permute.xlu0 %79   ;;  %v86_v45 = vpop.permute.xlu1 %85  }
  0x8d   :  { %82 = vst.msk [vmem:[#allocation0] sm:$0x1] %vm81_vm13, %v80_v44   ;;  %vm177_vm13 = vcmask 130144  }
  0x8e   :  { %88 = vst.msk [vmem:[#allocation0] sm:$0x1] %vm87_vm14, %v86_v45   ;;  %vm183_vm14 = vcmask 97344  }
  0x90   :  { %v92_v46 = vpop.permute.xlu0 %91   ;;  %v98_v47 = vpop.permute.xlu1 %97  }
  0x91   :  { %94 = vst.msk [vmem:[#allocation0] sm:$0x1] %vm93_vm15, %v92_v46   ;;  %vm189_vm15 = vcmask 64544  }
  0x92   :  { %100 = vst.msk [vmem:[#allocation0] sm:$0x1] %vm99_vm0, %v98_v47  }
  0x94   :  { %v104_v48 = vpop.permute.xlu0 %103   ;;  %v110_v49 = vpop.permute.xlu1 %109  }
  0x95   :  { %106 = vst.msk [vmem:[#allocation0] sm:$0x1] %vm105_vm1, %v104_v48  }
  0x96   :  { %112 = vst.msk [vmem:[#allocation0] sm:$0x1] %vm111_vm2, %v110_v49  }
  0x98   :  { %v116_v50 = vpop.permute.xlu0 %115   ;;  %v122_v51 = vpop.permute.xlu1 %121  }
  0x99   :  { %118 = vst.msk [vmem:[#allocation0] sm:$0x1] %vm117_vm3, %v116_v50  }
  0x9a   :  { %124 = vst.msk [vmem:[#allocation0] sm:$0x1] %vm123_vm4, %v122_v51  }
  0x9c   :  { %v128_v52 = vpop.permute.xlu0 %127   ;;  %v134_v53 = vpop.permute.xlu1 %133  }
  0x9d   :  { %130 = vst.msk [vmem:[#allocation0] sm:$0x1] %vm129_vm5, %v128_v52  }
  0x9e   :  { %136 = vst.msk [vmem:[#allocation0] sm:$0x1] %vm135_vm6, %v134_v53  }
  0xa0   :  { %v140_v54 = vpop.permute.xlu0 %139   ;;  %v146_v55 = vpop.permute.xlu1 %145  }
  0xa1   :  { %142 = vst.msk [vmem:[#allocation0] sm:$0x1] %vm141_vm7, %v140_v54  }
  0xa2   :  { %148 = vst.msk [vmem:[#allocation0] sm:$0x1] %vm147_vm8, %v146_v55  }
  0xa4   :  { %v152_v56 = vpop.permute.xlu0 %151   ;;  %v158_v57 = vpop.permute.xlu1 %157  }
  0xa5   :  { %154 = vst.msk [vmem:[#allocation0] sm:$0x1] %vm153_vm9, %v152_v56  }
  0xa6   :  { %160 = vst.msk [vmem:[#allocation0] sm:$0x1] %vm159_vm10, %v158_v57  }
  0xa8   :  { %v164_v58 = vpop.permute.xlu0 %163   ;;  %v170_v59 = vpop.permute.xlu1 %169  }
  0xa9   :  { %166 = vst.msk [vmem:[#allocation0] sm:$0x1] %vm165_vm11, %v164_v58  }
  0xaa   :  { %172 = vst.msk [vmem:[#allocation0] sm:$0x1] %vm171_vm12, %v170_v59  }
  0xac   :  { %v176_v60 = vpop.permute.xlu0 %175   ;;  %v182_v61 = vpop.permute.xlu1 %181  }
  0xad   :  { %178 = vst.msk [vmem:[#allocation0] sm:$0x1] %vm177_vm13, %v176_v60  }
  0xae   :  { %184 = vst.msk [vmem:[#allocation0] sm:$0x1] %vm183_vm14, %v182_v61  }
  0xb0   :  { %v188_v62 = vpop.permute.xlu0 %187  }
  0xb1   :  { %190 = vst.msk [vmem:[#allocation0] sm:$0x1] %vm189_vm15, %v188_v62  }
  0xb8   :  { %v194_v63 = vld [vmem:[#allocation0] sm:$0x1] }
  0xb9   :  { %196 = vst [vmem:[%s400_s1] sm:$0x1] %v194_v63 }

// kernel: tile.101
= control target key start
LH: loop header
LB: loop body
LE: loop exit
PB: predicated region body
PF: predicated region fallthrough
CT: control target
= control target key end

     0   :  { %s28_s0 = inlined_call_operand.vmem [shape: f32[8], index: 0, kind: input, shape index: {}]   ;;  %s29_s1 = inlined_call_operand.vmem [shape: f32[16,8], index: 1, kind: output, shape index: {}]  }
   0x1   :  { %v4_v0 = vld [vmem:[%s28_s0] ss:$0 sm:$0xff] }
   0x2   :  { %5 = vst [vmem:[%s29_s1] sm:$0xff] %v4_v0  ;;  %8 = vst [vmem:[%s29_s1 + $0x8] sm:$0xff] %v4_v0 }

// kernel: tile.104
= control target key start
LH: loop header
LB: loop body
LE: loop exit
PB: predicated region body
PF: predicated region fallthrough
CT: control target
= control target key end

     0   :  { %s131_s10 = smov 120   ;;  %s132_s11 = smov 104   ;;  %vm3_vm0 = vcmask 64512   ;;  %vm9_vm1 = vcmask 1048512   ;;  %vm15_vm2 = vcmask 982912   ;;  %vm21_vm3 = vcmask 917312   ;;  %s207_s0 = inlined_call_operand.vmem [shape: f32[16,8], index: 0, kind: input, shape index: {}]   ;;  %s208_s1 = inlined_call_operand.vmem [shape: f32[1,128], index: 1, kind: output, shape index: {}]  }
   0x1   :  { %v101_v0 = vld [vmem:[%s207_s0 + $0xf] sm:$0x1]   ;;  %v103_v1 = vld [vmem:[%s207_s0 + $0xd] sm:$0x1]   ;;  %v102_v2 = vld [vmem:[%s207_s0 + $0xe] sm:$0x1]  }
   0x2   :  { %7 = vrot.lane.b32.xlu0 %v101_v0, %s131_s10  ;;  %19 = vrot.lane.b32.xlu1 %v103_v1, %s132_s11  ;;  %v104_v3 = vld [vmem:[%s207_s0 + $0xc] sm:$0x1]   ;;  %s133_s16 = smov 112   ;;  %s134_s17 = smov 96   ;;  %v105_v4 = vld [vmem:[%s207_s0 + $0xb] sm:$0x1]  }
   0x3   :  { %v106_v5 = vld [vmem:[%s207_s0 + $0xa] sm:$0x1]   ;;  %v2_v6 = vld [vmem:[%s207_s0] sm:$0x1]   ;;  %s135_s24 = smov 88   ;;  %s136_s25 = smov 80  }
   0x4   :  { %4 = vst.msk [vmem:[#allocation0] sm:$0x1] %vm3_vm0, %v2_v6   ;;  %v107_v7 = vld [vmem:[%s207_s0 + $0x9] sm:$0x1]   ;;  %v108_v8 = vld [vmem:[%s207_s0 + $0x8] sm:$0x1]  }
   0x5   :  { %s137_s30 = smov 72   ;;  %s138_s2 = smov 64   ;;  %v109_v9 = vld [vmem:[%s207_s0 + $0x7] sm:$0x1]   ;;  %v110_v10 = vld [vmem:[%s207_s0 + $0x6] sm:$0x1]  }
   0x6   :  { %13 = vrot.lane.b32.xlu0 %v102_v2, %s133_s16  ;;  %25 = vrot.lane.b32.xlu1 %v104_v3, %s134_s17  ;;  %s139_s7 = smov 56   ;;  %s140_s8 = smov 48   ;;  %v111_v11 = vld [vmem:[%s207_s0 + $0x5] sm:$0x1]   ;;  %v112_v12 = vld [vmem:[%s207_s0 + $0x4] sm:$0x1]  }
   0x7   :  { %s141_s13 = smov 40   ;;  %s142_s14 = smov 32   ;;  %v113_v13 = vld [vmem:[%s207_s0 + $0x3] sm:$0x1]   ;;  %v114_v14 = vld [vmem:[%s207_s0 + $0x2] sm:$0x1]  }
   0x8   :  { %s143_s19 = smov 24   ;;  %s144_s20 = smov 16   ;;  %v115_v15 = vld [vmem:[%s207_s0 + $0x1] sm:$0x1]   ;;  %vm27_vm4 = vcmask 851712   ;;  %vm33_vm5 = vcmask 786112  }
   0x9   :  { %s145_s0 = smov 8   ;;  %vm39_vm6 = vcmask 720512   ;;  %vm45_vm7 = vcmask 654912   ;;  %vm51_vm8 = vcmask 589312   ;;  %vm57_vm9 = vcmask 523712  }
   0xa   :  { %31 = vrot.lane.b32.xlu0 %v105_v4, %s135_s24  ;;  %37 = vrot.lane.b32.xlu1 %v106_v5, %s136_s25  ;;  %vm63_vm10 = vcmask 458112   ;;  %vm69_vm11 = vcmask 392512   ;;  %vm75_vm12 = vcmask 326912   ;;  %vm81_vm13 = vcmask 261312  }
   0xb   :  { %vm87_vm14 = vcmask 195712   ;;  %vm93_vm15 = vcmask 130112  }
   0xe   :  { %43 = vrot.lane.b32.xlu0 %v107_v7, %s137_s30  ;;  %49 = vrot.lane.b32.xlu1 %v108_v8, %s138_s2 }
  0x12   :  { %55 = vrot.lane.b32.xlu0 %v109_v9, %s139_s7  ;;  %61 = vrot.lane.b32.xlu1 %v110_v10, %s140_s8 }
  0x16   :  { %67 = vrot.lane.b32.xlu0 %v111_v11, %s141_s13  ;;  %73 = vrot.lane.b32.xlu1 %v112_v12, %s142_s14 }
  0x1a   :  { %79 = vrot.lane.b32.xlu0 %v113_v13, %s143_s19  ;;  %85 = vrot.lane.b32.xlu1 %v114_v14, %s144_s20 }
  0x1e   :  { %91 = vrot.lane.b32.xlu0 %v115_v15, %s145_s0 }
  0x74   :  { %v8_v16 = vpop.permute.xlu0 %7   ;;  %v20_v17 = vpop.permute.xlu1 %19  }
  0x75   :  { %10 = vst.msk [vmem:[#allocation0] sm:$0x1] %vm9_vm1, %v8_v16  }
  0x78   :  { %v14_v18 = vpop.permute.xlu0 %13   ;;  %v26_v19 = vpop.permute.xlu1 %25  }
  0x79   :  { %16 = vst.msk [vmem:[#allocation0] sm:$0x1] %vm15_vm2, %v14_v18  }
  0x7a   :  { %22 = vst.msk [vmem:[#allocation0] sm:$0x1] %vm21_vm3, %v20_v17  }
  0x7b   :  { %28 = vst.msk [vmem:[#allocation0] sm:$0x1] %vm27_vm4, %v26_v19  }
  0x7c   :  { %v32_v20 = vpop.permute.xlu0 %31   ;;  %v38_v21 = vpop.permute.xlu1 %37  }
  0x7d   :  { %34 = vst.msk [vmem:[#allocation0] sm:$0x1] %vm33_vm5, %v32_v20  }
  0x7e   :  { %40 = vst.msk [vmem:[#allocation0] sm:$0x1] %vm39_vm6, %v38_v21  }
  0x80   :  { %v44_v22 = vpop.permute.xlu0 %43   ;;  %v50_v23 = vpop.permute.xlu1 %49  }
  0x81   :  { %46 = vst.msk [vmem:[#allocation0] sm:$0x1] %vm45_vm7, %v44_v22  }
  0x82   :  { %52 = vst.msk [vmem:[#allocation0] sm:$0x1] %vm51_vm8, %v50_v23  }
  0x84   :  { %v56_v24 = vpop.permute.xlu0 %55   ;;  %v62_v25 = vpop.permute.xlu1 %61  }
  0x85   :  { %58 = vst.msk [vmem:[#allocation0] sm:$0x1] %vm57_vm9, %v56_v24  }
  0x86   :  { %64 = vst.msk [vmem:[#allocation0] sm:$0x1] %vm63_vm10, %v62_v25  }
  0x88   :  { %v68_v26 = vpop.permute.xlu0 %67   ;;  %v74_v27 = vpop.permute.xlu1 %73  }
  0x89   :  { %70 = vst.msk [vmem:[#allocation0] sm:$0x1] %vm69_vm11, %v68_v26  }
  0x8a   :  { %76 = vst.msk [vmem:[#allocation0] sm:$0x1] %vm75_vm12, %v74_v27  }
  0x8c   :  { %v80_v28 = vpop.permute.xlu0 %79   ;;  %v86_v29 = vpop.permute.xlu1 %85  }
  0x8d   :  { %82 = vst.msk [vmem:[#allocation0] sm:$0x1] %vm81_vm13, %v80_v28  }
  0x8e   :  { %88 = vst.msk [vmem:[#allocation0] sm:$0x1] %vm87_vm14, %v86_v29  }
  0x90   :  { %v92_v30 = vpop.permute.xlu0 %91  }
  0x91   :  { %94 = vst.msk [vmem:[#allocation0] sm:$0x1] %vm93_vm15, %v92_v30  }
  0x98   :  { %v98_v31 = vld [vmem:[#allocation0] sm:$0x1] }
  0x99   :  { %100 = vst [vmem:[%s208_s1] sm:$0x1] %v98_v31 }

// kernel: tile.116
= control target key start
LH: loop header
LB: loop body
LE: loop exit
PB: predicated region body
PF: predicated region fallthrough
CT: control target
= control target key end

     0   :  { %s22_s0 = inlined_call_operand.vmem [shape: f32[16], index: 0, kind: input, shape index: {}]   ;;  %s23_s1 = inlined_call_operand.vmem [shape: f32[8,16], index: 1, kind: output, shape index: {}]  }
   0x1   :  { %v4_v0 = vld [vmem:[%s22_s0] ss:$0 sm:$0xff] }
   0x2   :  { %5 = vst [vmem:[%s23_s1] sm:$0xff] %v4_v0 }

// kernel: tile.119
= control target key start
LH: loop header
LB: loop body
LE: loop exit
PB: predicated region body
PF: predicated region fallthrough
CT: control target
= control target key end

     0   :  { %s67_s10 = smov 112   ;;  %s68_s11 = smov 80   ;;  %vm3_vm0 = vcmask 130048   ;;  %vm9_vm1 = vcmask 1048448   ;;  %vm15_vm2 = vcmask 917248   ;;  %vm21_vm3 = vcmask 786048   ;;  %s111_s0 = inlined_call_operand.vmem [shape: f32[8,16], index: 0, kind: input, shape index: {}]   ;;  %s112_s1 = inlined_call_operand.vmem [shape: f32[1,128], index: 1, kind: output, shape index: {}]  }
   0x1   :  { %v53_v0 = vld [vmem:[%s111_s0 + $0x7] sm:$0x1]   ;;  %v55_v1 = vld [vmem:[%s111_s0 + $0x5] sm:$0x1]   ;;  %v54_v2 = vld [vmem:[%s111_s0 + $0x6] sm:$0x1]  }
   0x2   :  { %7 = vrot.lane.b32.xlu0 %v53_v0, %s67_s10  ;;  %19 = vrot.lane.b32.xlu1 %v55_v1, %s68_s11  ;;  %v56_v3 = vld [vmem:[%s111_s0 + $0x4] sm:$0x1]   ;;  %v2_v4 = vld [vmem:[%s111_s0] sm:$0x1]   ;;  %s69_s18 = smov 96   ;;  %s70_s19 = smov 64  }
   0x3   :  { %4 = vst.msk [vmem:[#allocation0] sm:$0x1] %vm3_vm0, %v2_v4   ;;  %v57_v5 = vld [vmem:[%s111_s0 + $0x3] sm:$0x1]   ;;  %v58_v6 = vld [vmem:[%s111_s0 + $0x2] sm:$0x1]  }
   0x4   :  { %s71_s24 = smov 48   ;;  %s72_s25 = smov 32   ;;  %v59_v7 = vld [vmem:[%s111_s0 + $0x1] sm:$0x1]   ;;  %vm27_vm4 = vcmask 654848   ;;  %vm33_vm5 = vcmask 523648  }
   0x5   :  { %s73_s0 = smov 16   ;;  %vm39_vm6 = vcmask 392448   ;;  %vm45_vm7 = vcmask 261248  }
   0x6   :  { %13 = vrot.lane.b32.xlu0 %v54_v2, %s69_s18  ;;  %25 = vrot.lane.b32.xlu1 %v56_v3, %s70_s19 }
   0xa   :  { %31 = vrot.lane.b32.xlu0 %v57_v5, %s71_s24  ;;  %37 = vrot.lane.b32.xlu1 %v58_v6, %s72_s25 }
   0xe   :  { %43 = vrot.lane.b32.xlu0 %v59_v7, %s73_s0 }
  0x74   :  { %v8_v8 = vpop.permute.xlu0 %7   ;;  %v20_v9 = vpop.permute.xlu1 %19  }
  0x75   :  { %10 = vst.msk [vmem:[#allocation0] sm:$0x1] %vm9_vm1, %v8_v8  }
  0x78   :  { %v14_v10 = vpop.permute.xlu0 %13   ;;  %v26_v11 = vpop.permute.xlu1 %25  }
  0x79   :  { %16 = vst.msk [vmem:[#allocation0] sm:$0x1] %vm15_vm2, %v14_v10  }
  0x7a   :  { %22 = vst.msk [vmem:[#allocation0] sm:$0x1] %vm21_vm3, %v20_v9  }
  0x7b   :  { %28 = vst.msk [vmem:[#allocation0] sm:$0x1] %vm27_vm4, %v26_v11  }
  0x7c   :  { %v32_v12 = vpop.permute.xlu0 %31   ;;  %v38_v13 = vpop.permute.xlu1 %37  }
  0x7d   :  { %34 = vst.msk [vmem:[#allocation0] sm:$0x1] %vm33_vm5, %v32_v12  }
  0x7e   :  { %40 = vst.msk [vmem:[#allocation0] sm:$0x1] %vm39_vm6, %v38_v13  }
  0x80   :  { %v44_v14 = vpop.permute.xlu0 %43  }
  0x81   :  { %46 = vst.msk [vmem:[#allocation0] sm:$0x1] %vm45_vm7, %v44_v14  }
  0x88   :  { %v50_v15 = vld [vmem:[#allocation0] sm:$0x1] }
  0x89   :  { %52 = vst [vmem:[%s112_s1] sm:$0x1] %v50_v15 }

// kernel: tile.131
= control target key start
LH: loop header
LB: loop body
LE: loop exit
PB: predicated region body
PF: predicated region fallthrough
CT: control target
= control target key end

     0   :  { %s22_s0 = inlined_call_operand.vmem [shape: f32[32], index: 0, kind: input, shape index: {}]   ;;  %s23_s1 = inlined_call_operand.vmem [shape: f32[4,32], index: 1, kind: output, shape index: {}]  }
   0x1   :  { %v4_v0 = vld [vmem:[%s22_s0] ss:$0 sm:$0xff] }
   0x2   :  { %5 = vst [vmem:[%s23_s1] sm:$0xf] %v4_v0 }

// kernel: tile.134
= control target key start
LH: loop header
LB: loop body
LE: loop exit
PB: predicated region body
PF: predicated region fallthrough
CT: control target
= control target key end

     0   :  { %vm7_vm0 = vcmask 261120   ;;  %s37_s8 = smov 32   ;;  %s38_s9 = smov 64   ;;  %vm13_vm1 = vcmask 1048320   ;;  %vm19_vm2 = vcmask 785920   ;;  %vm25_vm3 = vcmask 523520   ;;  %s55_s0 = inlined_call_operand.vmem [shape: f32[4,32], index: 0, kind: input, shape index: {}]   ;;  %s56_s1 = inlined_call_operand.vmem [shape: f32[1,128], index: 1, kind: output, shape index: {}]  }
   0x1   :  { %v4_v0 = vld [vmem:[%s55_s0] sm:$0xf]  ;;  %s36_s0 = smov 96  }
   0x2   :  { %5 = vst [vmem:[#allocation1] sm:$0xf] %v4_v0 }
   0x9   :  { %v10_v1 = vld [vmem:[#allocation1 + $0x3] sm:$0x1]   ;;  %v22_v2 = vld [vmem:[#allocation1 + $0x1] sm:$0x1]   ;;  %v6_v3 = vld [vmem:[#allocation1] sm:$0x1]  }
   0xa   :  { %11 = vrot.lane.b32.xlu0 %v10_v1, %s36_s0  ;;  %23 = vrot.lane.b32.xlu1 %v22_v2, %s37_s8  ;;  %v16_v4 = vld [vmem:[#allocation1 + $0x2] sm:$0x1]   ;;  %8 = vst.msk [vmem:[#allocation0] sm:$0x1] %vm7_vm0, %v6_v3  }
   0xe   :  { %17 = vrot.lane.b32.xlu0 %v16_v4, %s38_s9 }
  0x7c   :  { %v12_v5 = vpop.permute.xlu0 %11   ;;  %v24_v6 = vpop.permute.xlu1 %23  }
  0x7d   :  { %14 = vst.msk [vmem:[#allocation0] sm:$0x1] %vm13_vm1, %v12_v5  }
  0x80   :  { %v18_v7 = vpop.permute.xlu0 %17  }
  0x81   :  { %20 = vst.msk [vmem:[#allocation0] sm:$0x1] %vm19_vm2, %v18_v7  }
  0x82   :  { %26 = vst.msk [vmem:[#allocation0] sm:$0x1] %vm25_vm3, %v24_v6  }
  0x89   :  { %v30_v8 = vld [vmem:[#allocation0] sm:$0x1] }
  0x8a   :  { %32 = vst [vmem:[%s56_s1] sm:$0x1] %v30_v8 }

// kernel: tile.146
= control target key start
LH: loop header
LB: loop body
LE: loop exit
PB: predicated region body
PF: predicated region fallthrough
CT: control target
= control target key end

     0   :  { %s22_s0 = inlined_call_operand.vmem [shape: f32[64], index: 0, kind: input, shape index: {}]   ;;  %s23_s1 = inlined_call_operand.vmem [shape: f32[2,64], index: 1, kind: output, shape index: {}]  }
   0x1   :  { %v4_v0 = vld [vmem:[%s22_s0] ss:$0 sm:$0xff] }
   0x2   :  { %5 = vst [vmem:[%s23_s1] sm:$0x3] %v4_v0 }

// kernel: tile.149
= control target key start
LH: loop header
LB: loop body
LE: loop exit
PB: predicated region body
PF: predicated region fallthrough
CT: control target
= control target key end

     0   :  { %vm7_vm0 = vcmask 523264   ;;  %vm13_vm1 = vcmask 1048064   ;;  %s39_s0 = inlined_call_operand.vmem [shape: f32[2,64], index: 0, kind: input, shape index: {}]   ;;  %s40_s1 = inlined_call_operand.vmem [shape: f32[1,128], index: 1, kind: output, shape index: {}]  }
   0x1   :  { %v4_v0 = vld [vmem:[%s39_s0] sm:$0x3]  ;;  %s22_s0 = smov 64  }
   0x2   :  { %5 = vst [vmem:[#allocation1] sm:$0x3] %v4_v0 }
   0x9   :  { %v10_v1 = vld [vmem:[#allocation1 + $0x1] sm:$0x1]   ;;  %v6_v2 = vld [vmem:[#allocation1] sm:$0x1]  }
   0xa   :  { %11 = vrot.lane.b32.xlu0 %v10_v1, %s22_s0  ;;  %8 = vst.msk [vmem:[#allocation0] sm:$0x1] %vm7_vm0, %v6_v2  }
  0x7c   :  { %v12_v3 = vpop.permute.xlu0 %11  }
  0x7d   :  { %14 = vst.msk [vmem:[#allocation0] sm:$0x1] %vm13_vm1, %v12_v3  }
  0x84   :  { %v18_v4 = vld [vmem:[#allocation0] sm:$0x1] }
  0x85   :  { %20 = vst [vmem:[%s40_s1] sm:$0x1] %v18_v4 }

// kernel: net_forward.1
= control target key start
LH: loop header
LB: loop body
LE: loop exit
PB: predicated region body
PF: predicated region fallthrough
CT: control target
= control target key end

     0   :  { %s11988_s6 = smov 1   ;;  %s11989_s10 = smov 2   ;;  %s14365_s0 = inlined_call_operand.smem [shape: u32[32], index: -1, kind: input, shape index: {}] }
   0x1   :  { %s12031_s5 = sld [smem:[%s14365_s0]]   ;;  %s11990_s14 = smov 3  }
   0x2   :  { %s12036_s9 = sld [smem:[%s14365_s0 + %s11988_s6]]   ;;  %s11991_s18 = smov 4  }
   0x3   :  { %s12041_s13 = sld [smem:[%s14365_s0 + %s11989_s10]]   ;;  %s11992_s22 = smov 5  }
   0x4   :  { %s12046_s17 = sld [smem:[%s14365_s0 + %s11990_s14]]   ;;  %s11993_s26 = smov 6  }
   0x5   :  { %s12051_s21 = sld [smem:[%s14365_s0 + %s11991_s18]]   ;;  %s11994_s30 = smov 7  }
   0x6   :  { %s12056_s25 = sld [smem:[%s14365_s0 + %s11992_s22]]   ;;  %s11995_s4 = smov 8  }
   0x7   :  { %s12061_s29 = sld [smem:[%s14365_s0 + %s11993_s26]]   ;;  %s11996_s10 = smov 9  }
   0x8   :  { %14571 = sst [smem:[#allocation2_spill]] %s12036_s9  ;;  %s11997_s15 = smov 10  }
   0x9   :  { %s12066_s3 = sld [smem:[%s14365_s0 + %s11994_s30]]   ;;  %s11998_s20 = smov 11  }
   0xa   :  { %s12071_s8 = sld [smem:[%s14365_s0 + %s11995_s4]]   ;;  %s11999_s26 = smov 12  }
   0xb   :  { %s12076_s14 = sld [smem:[%s14365_s0 + %s11996_s10]]   ;;  %s12000_s1 = smov 13  }
   0xc   :  { %s12081_s19 = sld [smem:[%s14365_s0 + %s11997_s15]]   ;;  %s12001_s7 = smov 14  }
   0xd   :  { %s12086_s24 = sld [smem:[%s14365_s0 + %s11998_s20]]   ;;  %s12002_s15 = smov 15  }
   0xe   :  { %s12091_s30 = sld [smem:[%s14365_s0 + %s11999_s26]]   ;;  %s12003_s22 = smov 16  }
   0xf   :  { %s12096_s6 = sld [smem:[%s14365_s0 + %s12000_s1]]   ;;  %s12004_s28 = smov 17  }
  0x10   :  { %s12101_s12 = sld [smem:[%s14365_s0 + %s12001_s7]]   ;;  %s12005_s7 = smov 18  }
  0x11   :  { %s12106_s20 = sld [smem:[%s14365_s0 + %s12002_s15]]   ;;  %s12006_s15 = smov 19  }
  0x12   :  { %s12111_s27 = sld [smem:[%s14365_s0 + %s12003_s22]]   ;;  %s12007_s22 = smov 20  }
  0x13   :  { %s12116_s4 = sld [smem:[%s14365_s0 + %s12004_s28]]   ;;  %s12008_s28 = smov 21  }
  0x14   :  { %s12121_s9 = sld [smem:[%s14365_s0 + %s12005_s7]]   ;;  %s12009_s7 = smov 22  }
  0x16   :  { %14572 = sst [smem:[#allocation3_spill]] %s12101_s12 }
  0x17   :  { %s12126_s12 = sld [smem:[%s14365_s0 + %s12006_s15]]   ;;  %s12010_s15 = smov 23  }
  0x18   :  { %14573 = sst [smem:[#allocation4_spill]] %s12111_s27 }
  0x19   :  { %14574 = sst [smem:[#allocation5_spill]] %s12116_s4 }
  0x1a   :  { %14575 = sst [smem:[#allocation6_spill]] %s12121_s9 }
  0x1b   :  { %s12131_s27 = sld [smem:[%s14365_s0 + %s12007_s22]]   ;;  %s12011_s22 = smov 24  }
  0x1c   :  { %s12136_s4 = sld [smem:[%s14365_s0 + %s12008_s28]]   ;;  %s12012_s28 = smov 25  }
  0x1d   :  { %14576 = sst [smem:[#allocation7_spill]] %s12126_s12 }
  0x1e   :  { %s12141_s9 = sld [smem:[%s14365_s0 + %s12009_s7]]   ;;  %s12013_s7 = smov 26  }
  0x1f   :  { %s12146_s12 = sld [smem:[%s14365_s0 + %s12010_s15]]   ;;  %s12014_s15 = smov 27  }
  0x21   :  { %14577 = sst [smem:[#allocation8_spill]] %s12131_s27 }
  0x22   :  { %14578 = sst [smem:[#allocation9_spill]] %s12136_s4 }
  0x23   :  { %s12151_s27 = sld [smem:[%s14365_s0 + %s12011_s22]]   ;;  %s12015_s22 = smov 28  }
  0x24   :  { %14579 = sst [smem:[#allocation10_spill]] %s12141_s9 }
  0x25   :  { %14580 = sst [smem:[#allocation11_spill]] %s12146_s12 }
  0x26   :  { %s12156_s4 = sld [smem:[%s14365_s0 + %s12012_s28]]   ;;  %s12016_s28 = smov 29  }
  0x27   :  { %s12161_s9 = sld [smem:[%s14365_s0 + %s12013_s7]]   ;;  %s12017_s7 = smov 30  }
  0x28   :  { %s12166_s12 = sld [smem:[%s14365_s0 + %s12014_s15]]   ;;  %s12018_s15 = smov 31  }
  0x29   :  { %14581 = sst [smem:[#allocation12_spill]] %s12151_s27 }
  0x2a   :  { %s12171_s27 = sld [smem:[%s14365_s0 + %s12015_s22]]   ;;  %s12188_s22 = smov 0  }
  0x2c   :  { %14582 = sst [smem:[#allocation13_spill]] %s12156_s4 }
  0x2d   :  { %14583 = sst [smem:[#allocation14_spill]] %s12161_s9 }
  0x2e   :  { %14584 = sst [smem:[#allocation15_spill]] %s12166_s12 }
  0x2f   :  { %s12176_s4 = sld [smem:[%s14365_s0 + %s12016_s28]]  }
  0x30   :  { %s12181_s9 = sld [smem:[%s14365_s0 + %s12017_s7]]  }
  0x31   :  { %s12186_s12 = sld [smem:[%s14365_s0 + %s12018_s15]]  }
  0x32 LB: > { %s7293_s23 = sadd.s32 4294967295, %s11986_s22   ;;  %p7297_p0 = scmp.ge.s32.totalorder %s11986_s22, 1  ;;  %s11986_s22 = sphi %s12188_s22, %s73_s22  }
  0x33   : > { %p877_p1 = scmp.lt.s32.totalorder %s11986_s22, 3 }
  0x35   : > { %p878_p2 = pnand %p7297_p0, %p877_p1 }
  0x37   : > { %881 = sbr.rel (%p878_p2) target bundleno = 5002 (0x138a), region = 144 }
  0x3e   : > { %p958_p3 = scmp.lt.s32.totalorder %s7293_s23, 1  ;;  %v12197_v0 = vld [vmem:[%s12041_s13] sm:$0xff]  ;;  %v14372_v1 = vmov 0.0   ;;  %vm4483_vm0 = vcmask 261120   ;;  %vm12021_vm1 = vmmov 0   ;;  %vm5032_vm2 = vcmask 130048  }
  0x3f   : > { %1086 = vmatprep.mubr.f32.mxu0 %v14372_v1  ;;  %8960 = vmatprep.mubr.f32.mxu1 %v12197_v0  ;;  %vm5535_vm3 = vcmask 64512   ;;  %s14881_s28 = sld [smem:[#allocation3_spill]]  ;;  %vm6042_vm4 = vcmask 1043456   ;;  %vm6038_vm5 = vcmask 31744   ;;  %s14882_s1 = sld [smem:[#allocation6_spill]]  ;;  %vm6819_vm6 = vcmask 523264  }
  0x40   : > { %s14896_s23 = smov (!%p958_p3, %s7293_s23), 1  ;;  %s14883_s2 = sld [smem:[#allocation5_spill]]  ;;  %vm12022_vm7 = vmmov 1   ;;  %vm7128_vm9 = vcmask 97280  }
  0x41   : > { %s11936_s0 = smul.u32 384, %s14896_s23  ;;  %s14884_s7 = sld [smem:[#allocation4_spill]]  ;;  %vm11850_vm8 = vmpackc.low %vm6042_vm4, %vm12022_vm7 }
  0x42   : > { %s14885_s10 = sld [smem:[#allocation8_spill]]  ;;  %s14886_s11 = sld [smem:[#allocation10_spill]] }
  0x43   : > { %s12205_s26 = scalar_lea.vmem %s12031_s5, %s11936_s0  ;;  %s14887_s15 = sld [smem:[#allocation7_spill]] }
  0x44   : > { %v970_v2 = vld [vmem:[%s12205_s26 + $0x8] sm:$0xff]  ;;  %v973_v3 = vld [vmem:[%s12205_s26 + $0x20] sm:$0xff]  ;;  %v971_v4 = vld [vmem:[%s12205_s26 + $0x10] sm:$0xff]  ;;  %s14888_s16 = sld [smem:[#allocation9_spill]]  ;;  %s14889_s18 = sld [smem:[#allocation12_spill]] }
  0x45   : > { %v12210_v5 = vpack.c.bf16 %v973_v3, %v970_v2  ;;  %v974_v6 = vld [vmem:[%s12205_s26 + $0x28] sm:$0xff]  ;;  %v969_v7 = vld [vmem:[%s12205_s26] sm:$0xff]  ;;  %v972_v8 = vld [vmem:[%s12205_s26 + $0x18] sm:$0xff]  ;;  %s14890_s0 = sld [smem:[#allocation11_spill]] }
  0x46   : > { %v12215_v9 = vpack.c.bf16 %v974_v6, %v971_v4  ;;  %v12217_v10 = vpack.c.bf16 %v972_v8, %v969_v7  ;;  %v976_v11 = vld [vmem:[%s12205_s26 + $0x38] sm:$0xff]  ;;  %v979_v12 = vld [vmem:[%s12205_s26 + $0x50] sm:$0xff]  ;;  %v977_v13 = vld [vmem:[%s12205_s26 + $0x40] sm:$0xff] }
  0x47   : > { %10265 = vmatprep.subr.bf16.mxu0 %v12210_v5  ;;  %v12223_v14 = vpack.c.bf16 %v979_v12, %v976_v11  ;;  %v980_v15 = vld [vmem:[%s12205_s26 + $0x58] sm:$0xff]  ;;  %v975_v16 = vld [vmem:[%s12205_s26 + $0x30] sm:$0xff]  ;;  %v978_v17 = vld [vmem:[%s12205_s26 + $0x48] sm:$0xff] }
  0x48   : > { %10297 = vmatprep.subr.bf16.mxu1 %v12215_v9  ;;  %10267 = vmatpush1.bf16.msra.mxu0 %v12217_v10  ;;  %v12230_v18 = vpack.c.bf16 %v980_v15, %v977_v13  ;;  %v12232_v19 = vpack.c.bf16 %v978_v17, %v975_v16  ;;  %v982_v20 = vld [vmem:[%s12205_s26 + $0x68] sm:$0xff]  ;;  %v985_v21 = vld [vmem:[%s12205_s26 + $0x80] sm:$0xff]  ;;  %v983_v22 = vld [vmem:[%s12205_s26 + $0x70] sm:$0xff] }
  0x49   : > { %10299 = vmatpush3.bf16.msra.mxu1 %v12215_v9  ;;  %10269 = vmatprep.subr.bf16.mxu0 %v12223_v14  ;;  %v12239_v23 = vpack.c.bf16 %v985_v21, %v982_v20  ;;  %v986_v24 = vld [vmem:[%s12205_s26 + $0x88] sm:$0xff]  ;;  %v981_v25 = vld [vmem:[%s12205_s26 + $0x60] sm:$0xff]  ;;  %v984_v26 = vld [vmem:[%s12205_s26 + $0x78] sm:$0xff] }
  0x4a   : > { %10301 = vmatprep.subr.bf16.mxu1 %v12230_v18  ;;  %v12245_v27 = vpack.c.bf16 %v986_v24, %v983_v22  ;;  %v988_v28 = vld [vmem:[%s12205_s26 + $0x98] sm:$0xff]  ;;  %v991_v29 = vld [vmem:[%s12205_s26 + $0xb0] sm:$0xff]  ;;  %v989_v30 = vld [vmem:[%s12205_s26 + $0xa0] sm:$0xff]  ;;  %v12252_v32 = vpack.c.bf16 %v984_v26, %v981_v25 }
  0x4b   : > { %v992_v31 = vld [vmem:[%s12205_s26 + $0xb8] sm:$0xff]  ;;  %v12256_v33 = vpack.c.bf16 %v991_v29, %v988_v28  ;;  %v987_v34 = vld [vmem:[%s12205_s26 + $0x90] sm:$0xff]  ;;  %v990_v35 = vld [vmem:[%s12205_s26 + $0xa8] sm:$0xff] }
  0x4c   : > { %10271 = vmatpush1.bf16.msra.mxu0 %v12232_v19  ;;  %v12261_v36 = vpack.c.bf16 %v992_v31, %v989_v30  ;;  %v994_v37 = vld [vmem:[%s12205_s26 + $0xc8] sm:$0xff]  ;;  %v997_v38 = vld [vmem:[%s12205_s26 + $0xe0] sm:$0xff]  ;;  %v995_v39 = vld [vmem:[%s12205_s26 + $0xd0] sm:$0xff]  ;;  %v12268_v41 = vpack.c.bf16 %v990_v35, %v987_v34 }
  0x4d   : > { %10303 = vmatpush3.bf16.msra.mxu1 %v12230_v18  ;;  %10273 = vmatprep.subr.bf16.mxu0 %v12239_v23  ;;  %v998_v40 = vld [vmem:[%s12205_s26 + $0xe8] sm:$0xff]  ;;  %v12272_v42 = vpack.c.bf16 %v997_v38, %v994_v37  ;;  %v993_v43 = vld [vmem:[%s12205_s26 + $0xc0] sm:$0xff]  ;;  %v996_v44 = vld [vmem:[%s12205_s26 + $0xd8] sm:$0xff] }
  0x4e   : > { %10305 = vmatprep.subr.bf16.mxu1 %v12245_v27  ;;  %v12277_v45 = vpack.c.bf16 %v998_v40, %v995_v39  ;;  %v1000_v46 = vld [vmem:[%s12205_s26 + $0xf8] sm:$0xff]  ;;  %v1003_v47 = vld [vmem:[%s12205_s26 + $0x110] sm:$0xff]  ;;  %v1001_v48 = vld [vmem:[%s12205_s26 + $0x100] sm:$0xff]  ;;  %v12284_v50 = vpack.c.bf16 %v996_v44, %v993_v43 }
  0x4f   : > { %14585 = vst [vmem:[#allocation16_spill] sm:$0xff] %v12272_v42  ;;  %v1004_v49 = vld [vmem:[%s12205_s26 + $0x118] sm:$0xff]  ;;  %v12288_v51 = vpack.c.bf16 %v1003_v47, %v1000_v46  ;;  %v999_v52 = vld [vmem:[%s12205_s26 + $0xf0] sm:$0xff]  ;;  %v1002_v53 = vld [vmem:[%s12205_s26 + $0x108] sm:$0xff] }
  0x50   : > { %10275 = vmatpush1.bf16.msra.mxu0 %v12252_v32  ;;  %14586 = vst [vmem:[#allocation17_spill] sm:$0xff] %v12277_v45  ;;  %14587 = vst [vmem:[#allocation18_spill] sm:$0xff] %v12284_v50  ;;  %v12293_v54 = vpack.c.bf16 %v1004_v49, %v1001_v48  ;;  %v1006_v55 = vld [vmem:[%s12205_s26 + $0x128] sm:$0xff]  ;;  %v1009_v56 = vld [vmem:[%s12205_s26 + $0x140] sm:$0xff]  ;;  %v12300_v59 = vpack.c.bf16 %v1002_v53, %v999_v52 }
  0x51   : > { %10307 = vmatpush3.bf16.msra.mxu1 %v12245_v27  ;;  %10277 = vmatprep.subr.bf16.mxu0 %v12256_v33  ;;  %14588 = vst [vmem:[#allocation19_spill] sm:$0xff] %v12288_v51  ;;  %v1007_v57 = vld [vmem:[%s12205_s26 + $0x130] sm:$0xff]  ;;  %v1010_v58 = vld [vmem:[%s12205_s26 + $0x148] sm:$0xff]  ;;  %v12304_v60 = vpack.c.bf16 %v1009_v56, %v1006_v55  ;;  %v1005_v61 = vld [vmem:[%s12205_s26 + $0x120] sm:$0xff] }
  0x52   : > { %10309 = vmatprep.subr.bf16.mxu1 %v12261_v36  ;;  %14589 = vst [vmem:[#allocation20_spill] sm:$0xff] %v12293_v54  ;;  %14590 = vst [vmem:[#allocation21_spill] sm:$0xff] %v12300_v59  ;;  %v1008_v62 = vld [vmem:[%s12205_s26 + $0x138] sm:$0xff]  ;;  %v12309_v63 = vpack.c.bf16 %v1010_v58, %v1007_v57  ;;  %v1015_v3 = vld [vmem:[%s12205_s26 + $0x170] sm:$0xff] }
  0x53   : > { %14591 = vst [vmem:[#allocation22_spill] sm:$0xff] %v12304_v60  ;;  %v1012_v2 = vld [vmem:[%s12205_s26 + $0x158] sm:$0xff]  ;;  %v1013_v4 = vld [vmem:[%s12205_s26 + $0x160] sm:$0xff]  ;;  %v12316_v7 = vpack.c.bf16 %v1008_v62, %v1005_v61  ;;  %v1011_v11 = vld [vmem:[%s12205_s26 + $0x150] sm:$0xff] }
  0x54   : > { %10279 = vmatpush1.bf16.msra.mxu0 %v12268_v41  ;;  %14592 = vst [vmem:[#allocation23_spill] sm:$0xff] %v12309_v63  ;;  %v1016_v6 = vld [vmem:[%s12205_s26 + $0x178] sm:$0xff]  ;;  %v12320_v8 = vpack.c.bf16 %v1015_v3, %v1012_v2  ;;  %v1014_v12 = vld [vmem:[%s12205_s26 + $0x168] sm:$0xff]  ;;  %v1020_v17 = vld [vmem:[%s12041_s13 + $0x10] sm:$0xff]  ;;  %s14891_s26 = sld [smem:[#allocation15_spill]] }
  0x55   : > { %10311 = vmatpush3.bf16.msra.mxu1 %v12261_v36  ;;  %10281 = vmatprep.subr.bf16.mxu0 %v12272_v42  ;;  %14593 = vst [vmem:[#allocation24_spill] sm:$0xff] %v12316_v7  ;;  %v12325_v13 = vpack.c.bf16 %v1016_v6, %v1013_v4  ;;  %v12328_v15 = vpack.c.bf16 %v1014_v12, %v1011_v11  ;;  %v1019_v16 = vld [vmem:[%s12041_s13 + $0x8] sm:$0xff]  ;;  %v1021_v20 = vld [vmem:[%s12041_s13 + $0x18] sm:$0xff]  ;;  %v7301_v22 = vld [vmem:[%s12041_s13 + $0x30] sm:$0xff] }
  0x56   : > { %10313 = vmatprep.subr.bf16.mxu1 %v12277_v45  ;;  %14594 = vst [vmem:[#allocation25_spill] sm:$0xff] %v12320_v8  ;;  %v7300_v21 = vld [vmem:[%s12041_s13 + $0x28] sm:$0xff]  ;;  %v7302_v24 = vld [vmem:[%s12041_s13 + $0x38] sm:$0xff]  ;;  %v7303_v25 = vld [vmem:[%s12041_s13 + $0x40] sm:$0xff] }
  0x57   : > { %14595 = vst [vmem:[#allocation26_spill] sm:$0xff] %v12325_v13  ;;  %14596 = vst [vmem:[#allocation27_spill] sm:$0xff] %v12328_v15  ;;  %v7304_v26 = vld [vmem:[%s12041_s13 + $0x48] sm:$0xff]  ;;  %v7305_v28 = vld [vmem:[%s12041_s13 + $0x50] sm:$0xff] }
  0x58   : > { %10283 = vmatpush1.bf16.msra.mxu0 %v12284_v50  ;;  %v7306_v29 = vld [vmem:[%s12041_s13 + $0x58] sm:$0xff]  ;;  %v7323_v30 = vld [vmem:[%s12046_s17 + $0x200] sm:$0xff]  ;;  %v7324_v31 = vld [vmem:[%s12046_s17 + $0x208] sm:$0xff] }
  0x59   : > { %10315 = vmatpush3.bf16.msra.mxu1 %v12277_v45  ;;  %10285 = vmatprep.subr.bf16.mxu0 %v12288_v51  ;;  %v7339_v34 = vld [vmem:[%s12046_s17 + $0x280] sm:$0xff]  ;;  %v12425_v35 = vpack.c.bf16 %v7324_v31, %v7323_v30  ;;  %v7340_v37 = vld [vmem:[%s12046_s17 + $0x288] sm:$0xff]  ;;  %v7325_v44 = vld [vmem:[%s12046_s17 + $0x210] sm:$0xff] }
  0x5a   : > { %10317 = vmatprep.subr.bf16.mxu1 %v12293_v54  ;;  %v7307_v38 = vld [vmem:[%s12046_s17 + $0x180] sm:$0xff]  ;;  %v7308_v39 = vld [vmem:[%s12046_s17 + $0x188] sm:$0xff]  ;;  %v12430_v40 = vpack.c.bf16 %v7340_v37, %v7339_v34  ;;  %v7326_v46 = vld [vmem:[%s12046_s17 + $0x218] sm:$0xff] }
  0x5b   : > { %14597 = vst [vmem:[#allocation28_spill] sm:$0xff] %v12425_v35  ;;  %v12432_v43 = vpack.c.bf16 %v7308_v39, %v7307_v38  ;;  %v7341_v47 = vld [vmem:[%s12046_s17 + $0x290] sm:$0xff]  ;;  %v12438_v48 = vpack.c.bf16 %v7326_v46, %v7325_v44  ;;  %v7342_v49 = vld [vmem:[%s12046_s17 + $0x298] sm:$0xff]  ;;  %v7327_v57 = vld [vmem:[%s12046_s17 + $0x220] sm:$0xff] }
  0x5c   : > { %10287 = vmatpush1.bf16.msra.mxu0 %v12300_v59  ;;  %14598 = vst [vmem:[#allocation29_spill] sm:$0xff] %v12430_v40  ;;  %v7309_v52 = vld [vmem:[%s12046_s17 + $0x190] sm:$0xff]  ;;  %v7310_v53 = vld [vmem:[%s12046_s17 + $0x198] sm:$0xff]  ;;  %v12445_v55 = vpack.c.bf16 %v7342_v49, %v7341_v47  ;;  %v7328_v58 = vld [vmem:[%s12046_s17 + $0x228] sm:$0xff] }
  0x5d   : > { %10319 = vmatpush3.bf16.msra.mxu1 %v12293_v54  ;;  %10289 = vmatprep.subr.bf16.mxu0 %v12304_v60  ;;  %14599 = vst [vmem:[#allocation30_spill] sm:$0xff] %v12432_v43  ;;  %14600 = vst [vmem:[#allocation31_spill] sm:$0xff] %v12438_v48  ;;  %v12447_v56 = vpack.c.bf16 %v7310_v53, %v7309_v52  ;;  %v7343_v61 = vld [vmem:[%s12046_s17 + $0x2a0] sm:$0xff]  ;;  %v12454_v62 = vpack.c.bf16 %v7328_v58, %v7327_v57  ;;  %v7344_v2 = vld [vmem:[%s12046_s17 + $0x2a8] sm:$0xff] }
  0x5e   : > { %10321 = vmatprep.subr.bf16.mxu1 %v12309_v63  ;;  %14601 = vst [vmem:[#allocation32_spill] sm:$0xff] %v12445_v55  ;;  %v7311_v3 = vld [vmem:[%s12046_s17 + $0x1a0] sm:$0xff]  ;;  %v7312_v4 = vld [vmem:[%s12046_s17 + $0x1a8] sm:$0xff]  ;;  %v12460_v6 = vpack.c.bf16 %v7344_v2, %v7343_v61  ;;  %v7329_v11 = vld [vmem:[%s12046_s17 + $0x230] sm:$0xff] }
  0x5f   : > { %14602 = vst [vmem:[#allocation33_spill] sm:$0xff] %v12447_v56  ;;  %14603 = vst [vmem:[#allocation34_spill] sm:$0xff] %v12454_v62  ;;  %v7330_v12 = vld [vmem:[%s12046_s17 + $0x238] sm:$0xff]  ;;  %v7315_v34 = vld [vmem:[%s12046_s17 + $0x1c0] sm:$0xff] }
  0x60   : > { %10291 = vmatpush1.bf16.msra.mxu0 %v12316_v7  ;;  %14604 = vst [vmem:[#allocation35_spill] sm:$0xff] %v12460_v6  ;;  %v7316_v37 = vld [vmem:[%s12046_s17 + $0x1c8] sm:$0xff]  ;;  %v7333_v39 = vld [vmem:[%s12046_s17 + $0x250] sm:$0xff]  ;;  %v7334_v44 = vld [vmem:[%s12046_s17 + $0x258] sm:$0xff] }
  0x61   : > { %10323 = vmatpush3.bf16.msra.mxu1 %v12309_v63  ;;  %10293 = vmatprep.subr.bf16.mxu0 %v12320_v8  ;;  %v7349_v46 = vld [vmem:[%s12046_s17 + $0x2d0] sm:$0xff]  ;;  %v7350_v47 = vld [vmem:[%s12046_s17 + $0x2d8] sm:$0xff]  ;;  %v12499_v49 = vpack.c.bf16 %v7316_v37, %v7315_v34  ;;  %v12503_v52 = vpack.c.bf16 %v7334_v44, %v7333_v39  ;;  %v7335_v61 = vld [vmem:[%s12046_s17 + $0x260] sm:$0xff] }
  0x62   : > { %10325 = vmatprep.subr.bf16.mxu1 %v12325_v13  ;;  %v7317_v53 = vld [vmem:[%s12046_s17 + $0x1d0] sm:$0xff]  ;;  %v7318_v57 = vld [vmem:[%s12046_s17 + $0x1d8] sm:$0xff]  ;;  %v12508_v58 = vpack.c.bf16 %v7350_v47, %v7349_v46  ;;  %v7336_v2 = vld [vmem:[%s12046_s17 + $0x268] sm:$0xff] }
  0x63   : > { %14611 = vst [vmem:[#allocation42_spill] sm:$0xff] %v12499_v49  ;;  %14612 = vst [vmem:[#allocation43_spill] sm:$0xff] %v12503_v52  ;;  %v7321_v37 = vld [vmem:[%s12046_s17 + $0x1f0] sm:$0xff]  ;;  %v7322_v39 = vld [vmem:[%s12046_s17 + $0x1f8] sm:$0xff] }
  0x64   : > { %10295 = vmatpush1.bf16.msra.mxu0 %v12328_v15  ;;  %14613 = vst [vmem:[#allocation44_spill] sm:$0xff] %v12508_v58  ;;  %v12543_v46 = vpack.c.bf16 %v7322_v39, %v7321_v37  ;;  %v1570_v47 = vld [vmem:[%s12046_s17 + $0x80] sm:$0xff] }
  0x65   : > { %10327 = vmatpush3.bf16.msra.mxu1 %v12325_v13  ;;  %10329 = vmatprep.subr.bf16.mxu0 %v12210_v5 }
  0x66   : > { %10361 = vmatprep.subr.bf16.mxu1 %v12215_v9  ;;  %14620 = vst [vmem:[#allocation51_spill] sm:$0xff] %v12543_v46 }
  0x67   : > { %1087 = vmatmul.mubr.f32.vlgmr.msra.gmra.mrb[0].mxu0 %v12197_v0  ;;  %v7299_v0 = vld [vmem:[%s12041_s13 + $0x20] sm:$0xff] }
  0x68   : > { %8961 = vmatmul.mubr.f32.vlgmr.msra.gmra.mrb[0].mxu1 %v1019_v16  ;;  %10331 = vmatpush1.bf16.msra.mxu0 %v12217_v10 }
  0x69   : > { %10363 = vmatpush3.bf16.msra.mxu1 %v12215_v9  ;;  %10333 = vmatprep.subr.bf16.mxu0 %v12223_v14 }
  0x6a   : > { %10365 = vmatprep.subr.bf16.mxu1 %v12230_v18  ;;  %1092 = vmatprep.mubr.f32.mxu0 %v14372_v1 }
  0x6b   : > { %1093 = vmatmul.mubr.f32.gmra.mrb[2].mxu0 %v1019_v16  ;;  %8963 = vmatprep.mubr.f32.mxu1 %v1020_v17  ;;  %v7345_v16 = vld [vmem:[%s12046_s17 + $0x2b0] sm:$0xff] }
  0x6c   : > { %10335 = vmatpush1.bf16.msra.mxu0 %v12232_v19  ;;  %1098 = vmatprep.mubr.f32.mxu0 %v14372_v1 }
  0x6d   : > { %10367 = vmatpush3.bf16.msra.mxu1 %v12230_v18  ;;  %10337 = vmatprep.subr.bf16.mxu0 %v12239_v23 }
  0x6e   : > { %10369 = vmatprep.subr.bf16.mxu1 %v12245_v27  ;;  %8964 = vmatmul.mubr.f32.gmra.mrb[2].mxu1 %v1021_v20 }
  0x6f   : > { %1099 = vmatmul.mubr.f32.gmra.mrb[4].mxu0 %v1020_v17  ;;  %8998 = vmatprep.mubr.f32.mxu1 %v7299_v0  ;;  %v7346_v17 = vld [vmem:[%s12046_s17 + $0x2b8] sm:$0xff] }
  0x70   : > { %10339 = vmatpush1.bf16.msra.mxu0 %v12252_v32  ;;  %1104 = vmatprep.mubr.f32.mxu0 %v14372_v1 }
  0x71   : > { %10371 = vmatpush3.bf16.msra.mxu1 %v12245_v27  ;;  %10341 = vmatprep.subr.bf16.mxu0 %v12256_v33 }
  0x72   : > { %10373 = vmatprep.subr.bf16.mxu1 %v12261_v36 }
  0x73   : > { %1105 = vmatmul.mubr.f32.gmra.mrb[6].mxu0 %v1021_v20  ;;  %v12467_v20 = vpack.c.bf16 %v7312_v4, %v7311_v3  ;;  %v7351_v3 = vld [vmem:[%s12046_s17 + $0x2e0] sm:$0xff]  ;;  %v7352_v4 = vld [vmem:[%s12046_s17 + $0x2e8] sm:$0xff] }
  0x74   : > { %10343 = vmatpush1.bf16.msra.mxu0 %v12268_v41  ;;  %1265 = vmatprep.mubr.f32.mxu0 %v14372_v1 }
  0x75   : > { %10375 = vmatpush3.bf16.msra.mxu1 %v12261_v36  ;;  %10345 = vmatprep.subr.bf16.mxu0 %v12272_v42  ;;  %14605 = vst [vmem:[#allocation36_spill] sm:$0xff] %v12467_v20 }
  0x76   : > { %10377 = vmatprep.subr.bf16.mxu1 %v12277_v45 }
  0x78   : > { %10347 = vmatpush1.bf16.msra.mxu0 %v12284_v50 }
  0x79   : > { %10379 = vmatpush3.bf16.msra.mxu1 %v12277_v45  ;;  %10349 = vmatprep.subr.bf16.mxu0 %v12288_v51 }
  0x7a   : > { %10381 = vmatprep.subr.bf16.mxu1 %v12293_v54 }
  0x7c   : > { %10351 = vmatpush1.bf16.msra.mxu0 %v12300_v59 }
  0x7d   : > { %10383 = vmatpush3.bf16.msra.mxu1 %v12293_v54  ;;  %10353 = vmatprep.subr.bf16.mxu0 %v12304_v60 }
  0x7e   : > { %10385 = vmatprep.subr.bf16.mxu1 %v12309_v63 }
  0x80   : > { %10355 = vmatpush1.bf16.msra.mxu0 %v12316_v7 }
  0x81   : > { %10387 = vmatpush3.bf16.msra.mxu1 %v12309_v63  ;;  %10357 = vmatprep.subr.bf16.mxu0 %v12320_v8 }
  0x82   : > { %10389 = vmatprep.subr.bf16.mxu1 %v12325_v13 }
  0x84   : > { %10359 = vmatpush1.bf16.msra.mxu0 %v12328_v15 }
  0x85   : > { %10391 = vmatpush3.bf16.msra.mxu1 %v12325_v13  ;;  %10393 = vmatprep.subr.bf16.mxu0 %v12210_v5 }
  0x86   : > { %10425 = vmatprep.subr.bf16.mxu1 %v12215_v9 }
  0x87   : > { %1266 = vmatmul.mubr.f32.vlgmr.msra.gmra.mrb[8].mxu0 %v7299_v0  ;;  %v12471_v0 = vpack.c.bf16 %v7330_v12, %v7329_v11  ;;  %v12515_v11 = vpack.c.bf16 %v7318_v57, %v7317_v53  ;;  %v12519_v12 = vpack.c.bf16 %v7336_v2, %v7335_v61  ;;  %v1571_v53 = vld [vmem:[%s12046_s17 + $0x88] sm:$0xff]  ;;  %v1586_v57 = vld [vmem:[%s12046_s17 + $0x100] sm:$0xff] }
  0x88   : > { %8999 = vmatmul.mubr.f32.vlgmr.msra.gmra.mrb[4].mxu1 %v7300_v21  ;;  %1271 = vmatprep.mubr.f32.mxu0 %v14372_v1  ;;  %v12553_v61 = vpack.c.bf16 %v1571_v53, %v1570_v47  ;;  %v1587_v2 = vld [vmem:[%s12046_s17 + $0x108] sm:$0xff] }
  0x89   : > { %9001 = vmatprep.mubr.f32.mxu1 %v7301_v22  ;;  %10395 = vmatpush1.bf16.msra.mxu0 %v12217_v10  ;;  %14606 = vst [vmem:[#allocation37_spill] sm:$0xff] %v12471_v0  ;;  %14614 = vst [vmem:[#allocation45_spill] sm:$0xff] %v12515_v11 }
  0x8a   : > { %10427 = vmatpush3.bf16.msra.mxu1 %v12215_v9  ;;  %10397 = vmatprep.subr.bf16.mxu0 %v12223_v14  ;;  %14615 = vst [vmem:[#allocation46_spill] sm:$0xff] %v12519_v12  ;;  %14621 = vst [vmem:[#allocation52_spill] sm:$0xff] %v12553_v61 }
  0x8b   : > { %1272 = vmatmul.mubr.f32.gmra.mrb[10].mxu0 %v7300_v21  ;;  %10429 = vmatprep.subr.bf16.mxu1 %v12230_v18  ;;  %v7313_v21 = vld [vmem:[%s12046_s17 + $0x1b0] sm:$0xff] }
  0x8c   : > { %9002 = vmatmul.mubr.f32.gmra.mrb[6].mxu1 %v7302_v24  ;;  %1277 = vmatprep.mubr.f32.mxu0 %v14372_v1 }
  0x8d   : > { %10399 = vmatpush1.bf16.msra.mxu0 %v12232_v19  ;;  %9036 = vmatprep.mubr.f32.mxu1 %v7303_v25 }
  0x8e   : > { %10431 = vmatpush3.bf16.msra.mxu1 %v12230_v18  ;;  %10401 = vmatprep.subr.bf16.mxu0 %v12239_v23 }
  0x8f   : > { %1278 = vmatmul.mubr.f32.gmra.mrb[12].mxu0 %v7301_v22  ;;  %10433 = vmatprep.subr.bf16.mxu1 %v12245_v27  ;;  %v7314_v22 = vld [vmem:[%s12046_s17 + $0x1b8] sm:$0xff] }
  0x90   : > { %1283 = vmatprep.mubr.f32.mxu0 %v14372_v1  ;;  %v12483_v30 = vpack.c.bf16 %v7314_v22, %v7313_v21  ;;  %v12524_v21 = vpack.c.bf16 %v7352_v4, %v7351_v3  ;;  %v7337_v22 = vld [vmem:[%s12046_s17 + $0x270] sm:$0xff]  ;;  %v12556_v3 = vpack.c.bf16 %v1587_v2, %v1586_v57  ;;  %v1554_v2 = vld [vmem:[%s12046_s17] sm:$0xff] }
  0x91   : > { %10403 = vmatpush1.bf16.msra.mxu0 %v12252_v32 }
  0x92   : > { %10435 = vmatpush3.bf16.msra.mxu1 %v12245_v27  ;;  %10405 = vmatprep.subr.bf16.mxu0 %v12256_v33  ;;  %14608 = vst [vmem:[#allocation39_spill] sm:$0xff] %v12483_v30  ;;  %14616 = vst [vmem:[#allocation47_spill] sm:$0xff] %v12524_v21 }
  0x93   : > { %1284 = vmatmul.mubr.f32.gmra.mrb[14].mxu0 %v7302_v24  ;;  %10437 = vmatprep.subr.bf16.mxu1 %v12261_v36  ;;  %v12476_v24 = vpack.c.bf16 %v7346_v17, %v7345_v16  ;;  %v7319_v16 = vld [vmem:[%s12046_s17 + $0x1e0] sm:$0xff]  ;;  %v7320_v17 = vld [vmem:[%s12046_s17 + $0x1e8] sm:$0xff]  ;;  %14622 = vst [vmem:[#allocation53_spill] sm:$0xff] %v12556_v3 }
  0x94   : > { %1444 = vmatprep.mubr.f32.mxu0 %v14372_v1 }
  0x95   : > { %10407 = vmatpush1.bf16.msra.mxu0 %v12268_v41  ;;  %14607 = vst [vmem:[#allocation38_spill] sm:$0xff] %v12476_v24 }
  0x96   : > { %10439 = vmatpush3.bf16.msra.mxu1 %v12261_v36  ;;  %10409 = vmatprep.subr.bf16.mxu0 %v12272_v42  ;;  %v7467_v42 = vld [vmem:[%s12046_s17 + $0x680] sm:$0xff] }
  0x97   : > { %10441 = vmatprep.subr.bf16.mxu1 %v12277_v45 }
  0x99   : > { %10411 = vmatpush1.bf16.msra.mxu0 %v12284_v50 }
  0x9a   : > { %10443 = vmatpush3.bf16.msra.mxu1 %v12277_v45  ;;  %10413 = vmatprep.subr.bf16.mxu0 %v12288_v51  ;;  %v7364_v51 = vld [vmem:[%s12046_s17 + $0x348] sm:$0xff] }
  0x9b   : > { %10445 = vmatprep.subr.bf16.mxu1 %v12293_v54 }
  0x9d   : > { %10415 = vmatpush1.bf16.msra.mxu0 %v12300_v59  ;;  %v7362_v59 = vld [vmem:[%s12046_s17 + $0x338] sm:$0xff] }
  0x9e   : > { %10447 = vmatpush3.bf16.msra.mxu1 %v12293_v54  ;;  %10417 = vmatprep.subr.bf16.mxu0 %v12304_v60  ;;  %v7361_v60 = vld [vmem:[%s12046_s17 + $0x330] sm:$0xff] }
  0x9f   : > { %10449 = vmatprep.subr.bf16.mxu1 %v12309_v63 }
  0xa1   : > { %10419 = vmatpush1.bf16.msra.mxu0 %v12316_v7 }
  0xa2   : > { %10451 = vmatpush3.bf16.msra.mxu1 %v12309_v63  ;;  %10421 = vmatprep.subr.bf16.mxu0 %v12320_v8  ;;  %v7360_v8 = vld [vmem:[%s12046_s17 + $0x328] sm:$0xff] }
  0xa3   : > { %10453 = vmatprep.subr.bf16.mxu1 %v12325_v13 }
  0xa5   : > { %10423 = vmatpush1.bf16.msra.mxu0 %v12328_v15  ;;  %v7374_v15 = vld [vmem:[%s12046_s17 + $0x398] sm:$0xff] }
  0xa6   : > { %10455 = vmatpush3.bf16.msra.mxu1 %v12325_v13  ;;  %10457 = vmatprep.subr.bf16.mxu0 %v12425_v35  ;;  %v7371_v35 = vld [vmem:[%s12046_s17 + $0x380] sm:$0xff] }
  0xa7   : > { %10489 = vmatprep.subr.bf16.mxu1 %v12430_v40  ;;  %v7359_v13 = vld [vmem:[%s12046_s17 + $0x320] sm:$0xff] }
  0xa8   : > { %1445 = vmatmul.mubr.f32.vlgmr.msra.gmra.mrb[16].mxu0 %v7303_v25  ;;  %v7331_v25 = vld [vmem:[%s12046_s17 + $0x240] sm:$0xff] }
  0xa9   : > { %9037 = vmatmul.mubr.f32.vlgmr.msra.gmra.mrb[8].mxu1 %v7304_v26  ;;  %1450 = vmatprep.mubr.f32.mxu0 %v14372_v1 }
  0xaa   : > { %9039 = vmatprep.mubr.f32.mxu1 %v7305_v28  ;;  %10459 = vmatpush3.bf16.msra.mxu0 %v12432_v43  ;;  %v1563_v43 = vld [vmem:[%s12046_s17 + $0x48] sm:$0xff] }
  0xab   : > { %10491 = vmatpush3.bf16.msra.mxu1 %v12430_v40  ;;  %10461 = vmatprep.subr.bf16.mxu0 %v12438_v48  ;;  %v1562_v48 = vld [vmem:[%s12046_s17 + $0x40] sm:$0xff] }
  0xac   : > { %1451 = vmatmul.mubr.f32.gmra.mrb[18].mxu0 %v7304_v26  ;;  %10493 = vmatprep.subr.bf16.mxu1 %v12445_v55  ;;  %v7332_v26 = vld [vmem:[%s12046_s17 + $0x248] sm:$0xff] }
  0xad   : > { %9040 = vmatmul.mubr.f32.gmra.mrb[10].mxu1 %v7306_v29  ;;  %1456 = vmatprep.mubr.f32.mxu0 %v14372_v1  ;;  %v12487_v31 = vpack.c.bf16 %v7332_v26, %v7331_v25  ;;  %v7338_v25 = vld [vmem:[%s12046_s17 + $0x278] sm:$0xff]  ;;  %v7353_v26 = vld [vmem:[%s12046_s17 + $0x2f0] sm:$0xff] }
  0xae   : > { %10463 = vmatpush3.bf16.msra.mxu0 %v12447_v56  ;;  %v12535_v34 = vpack.c.bf16 %v7338_v25, %v7337_v22  ;;  %v1560_v56 = vld [vmem:[%s12046_s17 + $0x30] sm:$0xff] }
  0xaf   : > { %10495 = vmatpush3.bf16.msra.mxu1 %v12445_v55  ;;  %10465 = vmatprep.subr.bf16.mxu0 %v12454_v62  ;;  %14609 = vst [vmem:[#allocation40_spill] sm:$0xff] %v12487_v31  ;;  %v1593_v62 = vld [vmem:[%s12046_s17 + $0x138] sm:$0xff] }
  0xb0   : > { %1457 = vmatmul.mubr.f32.gmra.mrb[20].mxu0 %v7305_v28  ;;  %10497 = vmatprep.subr.bf16.mxu1 %v12460_v6  ;;  %v7347_v28 = vld [vmem:[%s12046_s17 + $0x2c0] sm:$0xff]  ;;  %14618 = vst [vmem:[#allocation49_spill] sm:$0xff] %v12535_v34  ;;  %v1561_v55 = vld [vmem:[%s12046_s17 + $0x38] sm:$0xff] }
  0xb1   : > { %1462 = vmatprep.mubr.f32.mxu0 %v14372_v1  ;;  %v1555_v1 = vld [vmem:[%s12046_s17 + $0x8] sm:$0xff] }
  0xb2   : > { %10467 = vmatpush3.bf16.msra.mxu0 %v12467_v20  ;;  %v1559_v20 = vld [vmem:[%s12046_s17 + $0x28] sm:$0xff] }
  0xb3   : > { %10499 = vmatpush3.bf16.msra.mxu1 %v12460_v6  ;;  %10469 = vmatprep.subr.bf16.mxu0 %v12471_v0  ;;  %v1558_v0 = vld [vmem:[%s12046_s17 + $0x20] sm:$0xff] }
  0xb4   : > { %1463 = vmatmul.mubr.f32.gmra.mrb[22].mxu0 %v7306_v29  ;;  %v7348_v29 = vld [vmem:[%s12046_s17 + $0x2c8] sm:$0xff]  ;;  %10501 = vmatprep.subr.bf16.mxu1 %v12476_v24 }
  0xb5   : > { %v12492_v38 = vpack.c.bf16 %v7348_v29, %v7347_v28  ;;  %v7354_v28 = vld [vmem:[%s12046_s17 + $0x2f8] sm:$0xff]  ;;  %v12531_v29 = vpack.c.bf16 %v7320_v17, %v7319_v16 }
  0xb6   : > { %10471 = vmatpush3.bf16.msra.mxu0 %v12483_v30  ;;  %v12540_v44 = vpack.c.bf16 %v7354_v28, %v7353_v26  ;;  %v1590_v30 = vld [vmem:[%s12046_s17 + $0x120] sm:$0xff] }
  0xb7   : > { %14610 = vst [vmem:[#allocation41_spill] sm:$0xff] %v12492_v38  ;;  %10503 = vmatpush3.bf16.msra.mxu1 %v12476_v24  ;;  %10473 = vmatprep.subr.bf16.mxu0 %v12487_v31  ;;  %14617 = vst [vmem:[#allocation48_spill] sm:$0xff] %v12531_v29 }
  0xb8   : > { %10505 = vmatprep.subr.bf16.mxu1 %v12492_v38  ;;  %14619 = vst [vmem:[#allocation50_spill] sm:$0xff] %v12540_v44 }
  0xba   : > { %10475 = vmatpush3.bf16.msra.mxu0 %v12499_v49  ;;  %v1557_v49 = vld [vmem:[%s12046_s17 + $0x18] sm:$0xff] }
  0xbb   : > { %10507 = vmatpush3.bf16.msra.mxu1 %v12492_v38  ;;  %10477 = vmatprep.subr.bf16.mxu0 %v12503_v52  ;;  %v1556_v52 = vld [vmem:[%s12046_s17 + $0x10] sm:$0xff] }
  0xbc   : > { %10509 = vmatprep.subr.bf16.mxu1 %v12508_v58 }
  0xbe   : > { %10479 = vmatpush3.bf16.msra.mxu0 %v12515_v11 }
  0xbf   : > { %10511 = vmatpush3.bf16.msra.mxu1 %v12508_v58  ;;  %10481 = vmatprep.subr.bf16.mxu0 %v12519_v12 }
  0xc0   : > { %10513 = vmatprep.subr.bf16.mxu1 %v12524_v21 }
  0xc2   : > { %10483 = vmatpush3.bf16.msra.mxu0 %v12531_v29 }
  0xc3   : > { %10515 = vmatpush3.bf16.msra.mxu1 %v12524_v21  ;;  %10485 = vmatprep.subr.bf16.mxu0 %v12535_v34  ;;  %v1589_v34 = vld [vmem:[%s12046_s17 + $0x118] sm:$0xff]  ;;  %v12592_v21 = vpack.c.bf16 %v1555_v1, %v1554_v2  ;;  %v1574_v1 = vld [vmem:[%s12046_s17 + $0xa0] sm:$0xff]  ;;  %v1575_v2 = vld [vmem:[%s12046_s17 + $0xa8] sm:$0xff] }
  0xc4   : > { %10517 = vmatprep.subr.bf16.mxu1 %v12540_v44 }
  0xc5   : > { %14623 = vst [vmem:[#allocation54_spill] sm:$0xff] %v12592_v21 }
  0xc6   : > { %10487 = vmatpush3.bf16.msra.mxu0 %v12543_v46  ;;  %v1573_v46 = vld [vmem:[%s12046_s17 + $0x98] sm:$0xff] }
  0xc7   : > { %10519 = vmatpush3.bf16.msra.mxu1 %v12540_v44  ;;  %10521 = vmatprep.subr.bf16.mxu0 %v12553_v61  ;;  %v1572_v61 = vld [vmem:[%s12046_s17 + $0x90] sm:$0xff] }
  0xc8   : > { %10553 = vmatprep.subr.bf16.mxu1 %v12556_v3  ;;  %v1588_v44 = vld [vmem:[%s12046_s17 + $0x110] sm:$0xff]  ;;  %v12598_v58 = vpack.c.bf16 %v1573_v46, %v1572_v61  ;;  %v12615_v61 = vpack.c.bf16 %v1557_v49, %v1556_v52  ;;  %v12631_v49 = vpack.c.bf16 %v1575_v2, %v1574_v1  ;;  %v12645_v2 = vpack.c.bf16 %v1559_v20, %v1558_v0  ;;  %v1578_v20 = vld [vmem:[%s12046_s17 + $0xc0] sm:$0xff]  ;;  %v1579_v0 = vld [vmem:[%s12046_s17 + $0xc8] sm:$0xff] }
  0xc9   : > { %v12605_v31 = vpack.c.bf16 %v1589_v34, %v1588_v44  ;;  %v1591_v34 = vld [vmem:[%s12046_s17 + $0x128] sm:$0xff]  ;;  %v1576_v52 = vld [vmem:[%s12046_s17 + $0xb0] sm:$0xff] }
  0xca   : > { %14624 = vst [vmem:[#allocation55_spill] sm:$0xff] %v12598_v58  ;;  %14626 = vst [vmem:[#allocation57_spill] sm:$0xff] %v12615_v61  ;;  %v12637_v6 = vpack.c.bf16 %v1591_v34, %v1590_v30 }
  0xcb   : > { %14625 = vst [vmem:[#allocation56_spill] sm:$0xff] %v12605_v31  ;;  %14627 = vst [vmem:[#allocation58_spill] sm:$0xff] %v12631_v49 }
  0xcc   : > { %14628 = vst [vmem:[#allocation59_spill] sm:$0xff] %v12637_v6  ;;  %14629 = vst [vmem:[#allocation60_spill] sm:$0xff] %v12645_v2 }
 0x13a   : > { %v12560_v4 = vpop.f32.mrb[0].mxu0 }
 0x13b   : > { %v12562_v16 = vpop.f32.mrb[1].mxu0  ;;  %v12564_v17 = vpop.f32.mrb[0].mxu1 }
 0x13c   : > { %v12566_v22 = vpop.f32.mrb[1].mxu1 }
 0x13e   : > { %v12568_v25 = vpop.f32.mrb[2].mxu0 }
 0x13f   : > { %v12570_v26 = vpop.f32.mrb[3].mxu0 }
 0x141   : > { %v12572_v28 = vpop.f32.mrb[2].mxu1 }
 0x142   : > { %v12574_v37 = vpop.f32.mrb[4].mxu0  ;;  %v12576_v39 = vpop.f32.mrb[3].mxu1 }
 0x143   : > { %v12578_v47 = vpop.f32.mrb[5].mxu0 }
 0x146   : > { %v12580_v53 = vpop.f32.mrb[6].mxu0 }
 0x147   : > { %v12582_v57 = vpop.f32.mrb[7].mxu0 }
 0x15a   : > { %v12590_v29 = vpop.f32.mrb[8].mxu0 }
 0x15b   : > { %v12594_v12 = vpop.f32.mrb[4].mxu1  ;;  %v12596_v11 = vpop.f32.mrb[9].mxu0 }
 0x15c   : > { %v12602_v38 = vpop.f32.mrb[5].mxu1  ;;  %1715 = vmatprep.mubr.f32.mxu0 %v12596_v11 }
 0x15d   : > { %9074 = vmatprep.mubr.f32.mxu1 %v12602_v38  ;;  %1716 = vmatmul.mubr.f32.vlgmr.msra.gmra.mrb[24].mxu0 %v12590_v29 }
 0x15e   : > { %9075 = vmatmul.mubr.f32.vlgmr.msra.gmra.mrb[12].mxu1 %v12594_v12  ;;  %10523 = vmatpush3.bf16.msra.mxu0 %v12592_v21  ;;  %v12613_v46 = vpop.f32.mrb[10].mxu0 }
 0x15f   : > { %10555 = vmatpush3.bf16.msra.mxu1 %v12556_v3  ;;  %v12620_v44 = vpop.f32.mrb[6].mxu1  ;;  %v12622_v24 = vpop.f32.mrb[11].mxu0  ;;  %10525 = vmatprep.subr.bf16.mxu0 %v12598_v58  ;;  %v1577_v3 = vld [vmem:[%s12046_s17 + $0xb8] sm:$0xff]  ;;  %v1592_v58 = vld [vmem:[%s12046_s17 + $0x130] sm:$0xff] }
 0x160   : > { %v12627_v21 = vpop.f32.mrb[7].mxu1  ;;  %1720 = vmatprep.mubr.f32.mxu0 %v12622_v24  ;;  %10557 = vmatprep.subr.bf16.mxu1 %v12605_v31  ;;  %v12651_v34 = vpack.c.bf16 %v1577_v3, %v1576_v52  ;;  %v1594_v3 = vld [vmem:[%s12046_s17 + $0x140] sm:$0xff]  ;;  %v1595_v52 = vld [vmem:[%s12046_s17 + $0x148] sm:$0xff] }
 0x161   : > { %9077 = vmatprep.mubr.f32.mxu1 %v12627_v21  ;;  %1721 = vmatmul.mubr.f32.gmra.mrb[26].mxu0 %v12613_v46 }
 0x162   : > { %9078 = vmatmul.mubr.f32.gmra.mrb[14].mxu1 %v12620_v44  ;;  %10527 = vmatpush3.bf16.msra.mxu0 %v12615_v61  ;;  %v12643_v1 = vpop.f32.mrb[12].mxu0  ;;  %14630 = vst [vmem:[#allocation61_spill] sm:$0xff] %v12651_v34  ;;  %v12657_v61 = vpack.c.bf16 %v1593_v62, %v1592_v58  ;;  %v12674_v58 = vpack.c.bf16 %v1579_v0, %v1578_v20  ;;  %v1596_v20 = vld [vmem:[%s12046_s17 + $0x150] sm:$0xff]  ;;  %v1597_v0 = vld [vmem:[%s12046_s17 + $0x158] sm:$0xff] }
 0x163   : > { %10559 = vmatpush3.bf16.msra.mxu1 %v12605_v31  ;;  %9112 = vmatprep.mubr.f32.mxu1 %v12566_v22  ;;  %v12649_v30 = vpop.f32.mrb[13].mxu0  ;;  %v12698_v40 = vpack.c.bf16 %v1597_v0, %v1596_v20  ;;  %v1567_v20 = vld [vmem:[%s12046_s17 + $0x68] sm:$0xff] }
 0x164   : > { %1725 = vmatprep.mubr.f32.mxu0 %v12649_v30  ;;  %10529 = vmatprep.subr.bf16.mxu0 %v12631_v49  ;;  %14631 = vst [vmem:[#allocation62_spill] sm:$0xff] %v12657_v61  ;;  %v12668_v49 = vpack.c.bf16 %v1561_v55, %v1560_v56  ;;  %14633 = vst [vmem:[#allocation64_spill] sm:$0xff] %v12674_v58  ;;  %v1580_v55 = vld [vmem:[%s12046_s17 + $0xd0] sm:$0xff]  ;;  %v1581_v56 = vld [vmem:[%s12046_s17 + $0xd8] sm:$0xff] }
 0x165   : > { %10561 = vmatprep.subr.bf16.mxu1 %v12637_v6  ;;  %1726 = vmatmul.mubr.f32.gmra.mrb[28].mxu0 %v12643_v1  ;;  %14637 = vst [vmem:[#allocation68_spill] sm:$0xff] %v12698_v40 }
 0x166   : > { %10531 = vmatpush3.bf16.msra.mxu0 %v12645_v2  ;;  %v12666_v31 = vpop.f32.mrb[14].mxu0  ;;  %14632 = vst [vmem:[#allocation63_spill] sm:$0xff] %v12668_v49  ;;  %v12680_v2 = vpack.c.bf16 %v1595_v52, %v1594_v3  ;;  %v12693_v3 = vpack.c.bf16 %v1581_v56, %v1580_v55  ;;  %v1564_v52 = vld [vmem:[%s12046_s17 + $0x50] sm:$0xff]  ;;  %v1566_v56 = vld [vmem:[%s12046_s17 + $0x60] sm:$0xff] }
 0x167   : > { %10563 = vmatpush3.bf16.msra.mxu1 %v12637_v6  ;;  %v12671_v62 = vpop.f32.mrb[15].mxu0  ;;  %10533 = vmatprep.subr.bf16.mxu0 %v12651_v34  ;;  %v12689_v34 = vpack.c.bf16 %v1563_v43, %v1562_v48  ;;  %v1565_v6 = vld [vmem:[%s12046_s17 + $0x58] sm:$0xff]  ;;  %v1583_v43 = vld [vmem:[%s12046_s17 + $0xe8] sm:$0xff]  ;;  %v1598_v48 = vld [vmem:[%s12046_s17 + $0x160] sm:$0xff] }
 0x168   : > { %1730 = vmatprep.mubr.f32.mxu0 %v12671_v62  ;;  %10565 = vmatprep.subr.bf16.mxu1 %v12657_v61  ;;  %14634 = vst [vmem:[#allocation65_spill] sm:$0xff] %v12680_v2  ;;  %14636 = vst [vmem:[#allocation67_spill] sm:$0xff] %v12693_v3 }
 0x169   : > { %1731 = vmatmul.mubr.f32.gmra.mrb[30].mxu0 %v12666_v31  ;;  %14635 = vst [vmem:[#allocation66_spill] sm:$0xff] %v12689_v34 }
 0x16a   : > { %10535 = vmatpush3.bf16.msra.mxu0 %v12668_v49  ;;  %1885 = vmatprep.mubr.f32.mxu0 %v12562_v16  ;;  %v1582_v49 = vld [vmem:[%s12046_s17 + $0xe0] sm:$0xff] }
 0x16b   : > { %10567 = vmatpush3.bf16.msra.mxu1 %v12657_v61  ;;  %10537 = vmatprep.subr.bf16.mxu0 %v12674_v58  ;;  %v1599_v61 = vld [vmem:[%s12046_s17 + $0x168] sm:$0xff]  ;;  %v12705_v58 = vpack.c.bf16 %v1565_v6, %v1564_v52  ;;  %v12709_v55 = vpack.c.bf16 %v1583_v43, %v1582_v49  ;;  %v1585_v6 = vld [vmem:[%s12046_s17 + $0xf8] sm:$0xff]  ;;  %v1600_v52 = vld [vmem:[%s12046_s17 + $0x170] sm:$0xff] }
 0x16c   : > { %10569 = vmatprep.subr.bf16.mxu1 %v12680_v2  ;;  %v12714_v0 = vpack.c.bf16 %v1599_v61, %v1598_v48  ;;  %v1568_v43 = vld [vmem:[%s12046_s17 + $0x70] sm:$0xff]  ;;  %v1569_v61 = vld [vmem:[%s12046_s17 + $0x78] sm:$0xff] }
 0x16d   : > { %14638 = vst [vmem:[#allocation69_spill] sm:$0xff] %v12705_v58  ;;  %14639 = vst [vmem:[#allocation70_spill] sm:$0xff] %v12709_v55 }
 0x16e   : > { %10539 = vmatpush3.bf16.msra.mxu0 %v12689_v34  ;;  %14640 = vst [vmem:[#allocation71_spill] sm:$0xff] %v12714_v0  ;;  %v1584_v34 = vld [vmem:[%s12046_s17 + $0xf0] sm:$0xff] }
 0x16f   : > { %10571 = vmatpush3.bf16.msra.mxu1 %v12680_v2  ;;  %10541 = vmatprep.subr.bf16.mxu0 %v12693_v3  ;;  %v1601_v2 = vld [vmem:[%s12046_s17 + $0x178] sm:$0xff]  ;;  %v12721_v3 = vpack.c.bf16 %v1567_v20, %v1566_v56  ;;  %v12725_v49 = vpack.c.bf16 %v1585_v6, %v1584_v34  ;;  %v7372_v56 = vld [vmem:[%s12046_s17 + $0x388] sm:$0xff]  ;;  %v7387_v20 = vld [vmem:[%s12046_s17 + $0x400] sm:$0xff]  ;;  %v12737_v34 = vpack.c.bf16 %v1569_v61, %v1568_v43 }
 0x170   : > { %10573 = vmatprep.subr.bf16.mxu1 %v12698_v40  ;;  %v12730_v48 = vpack.c.bf16 %v1601_v2, %v1600_v52  ;;  %v12741_v6 = vpack.c.bf16 %v7372_v56, %v7371_v35  ;;  %v7355_v52 = vld [vmem:[%s12046_s17 + $0x300] sm:$0xff]  ;;  %v7389_v43 = vld [vmem:[%s12046_s17 + $0x410] sm:$0xff]  ;;  %v7390_v61 = vld [vmem:[%s12046_s17 + $0x418] sm:$0xff] }
 0x171   : > { %14641 = vst [vmem:[#allocation72_spill] sm:$0xff] %v12721_v3  ;;  %14642 = vst [vmem:[#allocation73_spill] sm:$0xff] %v12725_v49 }
 0x172   : > { %10543 = vmatpush3.bf16.msra.mxu0 %v12705_v58  ;;  %14643 = vst [vmem:[#allocation74_spill] sm:$0xff] %v12730_v48  ;;  %v7388_v58 = vld [vmem:[%s12046_s17 + $0x408] sm:$0xff]  ;;  %14644 = vst [vmem:[#allocation75_spill] sm:$0xff] %v12737_v34 }
 0x173   : > { %10575 = vmatpush3.bf16.msra.mxu1 %v12698_v40  ;;  %10545 = vmatprep.subr.bf16.mxu0 %v12709_v55  ;;  %14645 = vst [vmem:[#allocation76_spill] sm:$0xff] %v12741_v6  ;;  %v12744_v2 = vpack.c.bf16 %v7388_v58, %v7387_v20  ;;  %v7356_v55 = vld [vmem:[%s12046_s17 + $0x308] sm:$0xff]  ;;  %v7373_v40 = vld [vmem:[%s12046_s17 + $0x390] sm:$0xff] }
 0x174   : > { %10577 = vmatprep.subr.bf16.mxu1 %v12714_v0  ;;  %v12755_v35 = vpack.c.bf16 %v7356_v55, %v7355_v52  ;;  %v12760_v56 = vpack.c.bf16 %v7374_v15, %v7373_v40  ;;  %v7357_v20 = vld [vmem:[%s12046_s17 + $0x310] sm:$0xff]  ;;  %v7375_v55 = vld [vmem:[%s12046_s17 + $0x3a0] sm:$0xff]  ;;  %v7376_v52 = vld [vmem:[%s12046_s17 + $0x3a8] sm:$0xff] }
 0x175   : > { %14646 = vst [vmem:[#allocation77_spill] sm:$0xff] %v12744_v2  ;;  %v7391_v15 = vld [vmem:[%s12046_s17 + $0x420] sm:$0xff]  ;;  %v7392_v40 = vld [vmem:[%s12046_s17 + $0x428] sm:$0xff] }
 0x176   : > { %10547 = vmatpush3.bf16.msra.mxu0 %v12721_v3  ;;  %14647 = vst [vmem:[#allocation78_spill] sm:$0xff] %v12755_v35  ;;  %14648 = vst [vmem:[#allocation79_spill] sm:$0xff] %v12760_v56 }
 0x177   : > { %10579 = vmatpush3.bf16.msra.mxu1 %v12714_v0  ;;  %10549 = vmatprep.subr.bf16.mxu0 %v12725_v49  ;;  %v7358_v49 = vld [vmem:[%s12046_s17 + $0x318] sm:$0xff] }
 0x178   : > { %10581 = vmatprep.subr.bf16.mxu1 %v12730_v48  ;;  %v12781_v0 = vpack.c.bf16 %v7358_v49, %v7357_v20  ;;  %v12797_v49 = vpack.c.bf16 %v7392_v40, %v7391_v15  ;;  %v7377_v20 = vld [vmem:[%s12046_s17 + $0x3b0] sm:$0xff] }
 0x17a   : > { %10551 = vmatpush3.bf16.msra.mxu0 %v12737_v34  ;;  %14650 = vst [vmem:[#allocation81_spill] sm:$0xff] %v12781_v0  ;;  %14652 = vst [vmem:[#allocation83_spill] sm:$0xff] %v12797_v49 }
 0x17b   : > { %10583 = vmatpush3.bf16.msra.mxu1 %v12730_v48  ;;  %10585 = vmatprep.subr.bf16.mxu0 %v12741_v6  ;;  %v12757_v58 = vpop.f32.mrb[16].mxu0  ;;  %v12769_v6 = vpack.c.bf16 %v7390_v61, %v7389_v43  ;;  %v12787_v61 = vpack.c.bf16 %v7376_v52, %v7375_v55  ;;  %v7393_v55 = vld [vmem:[%s12046_s17 + $0x430] sm:$0xff]  ;;  %v7394_v52 = vld [vmem:[%s12046_s17 + $0x438] sm:$0xff] }
 0x17c   : > { %10617 = vmatprep.subr.bf16.mxu1 %v12744_v2  ;;  %v12764_v34 = vpop.f32.mrb[8].mxu1  ;;  %v12766_v3 = vpop.f32.mrb[17].mxu0 }
 0x17d   : > { %1886 = vmatmul.mubr.f32.vlgmr.msra.gmra.mrb[32].mxu0 %v12560_v4  ;;  %14649 = vst [vmem:[#allocation80_spill] sm:$0xff] %v12769_v6  ;;  %v12773_v48 = vpop.f32.mrb[9].mxu1  ;;  %14651 = vst [vmem:[#allocation82_spill] sm:$0xff] %v12787_v61 }
 0x17e   : > { %9113 = vmatmul.mubr.f32.vlgmr.msra.gmra.mrb[12].mxu1 %v12564_v17  ;;  %1890 = vmatprep.mubr.f32.mxu0 %v12570_v26 }
 0x17f   : > { %9115 = vmatprep.mubr.f32.mxu1 %v12576_v39  ;;  %10587 = vmatpush3.bf16.msra.mxu0 %v12755_v35  ;;  %v12783_v43 = vpop.f32.mrb[18].mxu0  ;;  %v7378_v35 = vld [vmem:[%s12046_s17 + $0x3b8] sm:$0xff] }
 0x180   : > { %10619 = vmatpush3.bf16.msra.mxu1 %v12744_v2  ;;  %10589 = vmatprep.subr.bf16.mxu0 %v12760_v56  ;;  %v12791_v7 = vpop.f32.mrb[10].mxu1  ;;  %v12793_v63 = vpop.f32.mrb[19].mxu0  ;;  %v12808_v56 = vpack.c.bf16 %v7360_v8, %v7359_v13  ;;  %v12815_v40 = vpack.c.bf16 %v7378_v35, %v7377_v20  ;;  %v12823_v8 = vpack.c.bf16 %v7394_v52, %v7393_v55  ;;  %v7379_v13 = vld [vmem:[%s12046_s17 + $0x3c0] sm:$0xff]  ;;  %v7396_v20 = vld [vmem:[%s12046_s17 + $0x448] sm:$0xff] }
 0x181   : > { %1891 = vmatmul.mubr.f32.gmra.mrb[34].mxu0 %v12568_v25  ;;  %10621 = vmatprep.subr.bf16.mxu1 %v12769_v6  ;;  %v12801_v2 = vpop.f32.mrb[11].mxu1  ;;  %v7395_v35 = vld [vmem:[%s12046_s17 + $0x440] sm:$0xff] }
 0x182   : > { %9116 = vmatmul.mubr.f32.gmra.mrb[14].mxu1 %v12572_v28  ;;  %1895 = vmatprep.mubr.f32.mxu0 %v12578_v47  ;;  %14653 = vst [vmem:[#allocation84_spill] sm:$0xff] %v12808_v56  ;;  %14654 = vst [vmem:[#allocation85_spill] sm:$0xff] %v12815_v40  ;;  %v7363_v52 = vld [vmem:[%s12046_s17 + $0x340] sm:$0xff] }
 0x183   : > { %10591 = vmatpush3.bf16.msra.mxu0 %v12781_v0  ;;  %9150 = vmatprep.mubr.f32.mxu1 %v12773_v48  ;;  %v12811_v15 = vpop.f32.mrb[20].mxu0  ;;  %14655 = vst [vmem:[#allocation86_spill] sm:$0xff] %v12823_v8  ;;  %v7380_v0 = vld [vmem:[%s12046_s17 + $0x3c8] sm:$0xff] }
 0x184   : > { %10623 = vmatpush3.bf16.msra.mxu1 %v12769_v6  ;;  %10593 = vmatprep.subr.bf16.mxu0 %v12787_v61  ;;  %v12819_v54 = vpop.f32.mrb[21].mxu0  ;;  %v12831_v61 = vpack.c.bf16 %v7362_v59, %v7361_v60  ;;  %v12837_v55 = vpack.c.bf16 %v7380_v0, %v7379_v13  ;;  %v12845_v59 = vpack.c.bf16 %v7396_v20, %v7395_v35  ;;  %v7381_v60 = vld [vmem:[%s12046_s17 + $0x3d0] sm:$0xff]  ;;  %v7398_v13 = vld [vmem:[%s12046_s17 + $0x458] sm:$0xff] }
 0x185   : > { %1896 = vmatmul.mubr.f32.gmra.mrb[36].mxu0 %v12574_v37  ;;  %10625 = vmatprep.subr.bf16.mxu1 %v12797_v49  ;;  %v7397_v0 = vld [vmem:[%s12046_s17 + $0x450] sm:$0xff] }
 0x186   : > { %1900 = vmatprep.mubr.f32.mxu0 %v12582_v57  ;;  %14656 = vst [vmem:[#allocation87_spill] sm:$0xff] %v12831_v61  ;;  %14657 = vst [vmem:[#allocation88_spill] sm:$0xff] %v12837_v55  ;;  %v7365_v20 = vld [vmem:[%s12046_s17 + $0x350] sm:$0xff]  ;;  %v12862_v45 = vpack.c.bf16 %v7398_v13, %v7397_v0  ;;  %v7368_v0 = vld [vmem:[%s12046_s17 + $0x368] sm:$0xff] }
 0x187   : > { %10595 = vmatpush3.bf16.msra.mxu0 %v12808_v56  ;;  %v12833_v6 = vpop.f32.mrb[22].mxu0  ;;  %14658 = vst [vmem:[#allocation89_spill] sm:$0xff] %v12845_v59  ;;  %v7382_v56 = vld [vmem:[%s12046_s17 + $0x3d8] sm:$0xff] }
 0x188   : > { %10627 = vmatpush3.bf16.msra.mxu1 %v12797_v49  ;;  %10597 = vmatprep.subr.bf16.mxu0 %v12815_v40  ;;  %v12841_v50 = vpop.f32.mrb[23].mxu0  ;;  %v12853_v40 = vpack.c.bf16 %v7364_v51, %v7363_v52  ;;  %v12857_v35 = vpack.c.bf16 %v7382_v56, %v7381_v60  ;;  %v7366_v49 = vld [vmem:[%s12046_s17 + $0x358] sm:$0xff]  ;;  %14661 = vst [vmem:[#allocation92_spill] sm:$0xff] %v12862_v45  ;;  %v7384_v51 = vld [vmem:[%s12046_s17 + $0x3e8] sm:$0xff]  ;;  %v7399_v52 = vld [vmem:[%s12046_s17 + $0x460] sm:$0xff] }
 0x189   : > { %1901 = vmatmul.mubr.f32.gmra.mrb[38].mxu0 %v12580_v53  ;;  %10629 = vmatprep.subr.bf16.mxu1 %v12823_v8  ;;  %v7367_v60 = vld [vmem:[%s12046_s17 + $0x360] sm:$0xff] }
 0x18a   : > { %2104 = vmatprep.mubr.f32.mxu0 %v12766_v3  ;;  %14659 = vst [vmem:[#allocation90_spill] sm:$0xff] %v12853_v40  ;;  %14660 = vst [vmem:[#allocation91_spill] sm:$0xff] %v12857_v35 }
 0x18b   : > { %10599 = vmatpush3.bf16.msra.mxu0 %v12831_v61  ;;  %v7383_v61 = vld [vmem:[%s12046_s17 + $0x3e0] sm:$0xff] }
 0x18c   : > { %10631 = vmatpush3.bf16.msra.mxu1 %v12823_v8  ;;  %10601 = vmatprep.subr.bf16.mxu0 %v12837_v55  ;;  %v7400_v8 = vld [vmem:[%s12046_s17 + $0x468] sm:$0xff]  ;;  %v12869_v55 = vpack.c.bf16 %v7366_v49, %v7365_v20  ;;  %v12873_v56 = vpack.c.bf16 %v7384_v51, %v7383_v61  ;;  %v7386_v49 = vld [vmem:[%s12046_s17 + $0x3f8] sm:$0xff]  ;;  %v7401_v20 = vld [vmem:[%s12046_s17 + $0x470] sm:$0xff] }
 0x18d   : > { %10633 = vmatprep.subr.bf16.mxu1 %v12845_v59  ;;  %v12878_v13 = vpack.c.bf16 %v7400_v8, %v7399_v52  ;;  %v7369_v8 = vld [vmem:[%s12046_s17 + $0x370] sm:$0xff]  ;;  %v7370_v51 = vld [vmem:[%s12046_s17 + $0x378] sm:$0xff] }
 0x18e   : > { %14662 = vst [vmem:[#allocation93_spill] sm:$0xff] %v12869_v55  ;;  %14663 = vst [vmem:[#allocation94_spill] sm:$0xff] %v12873_v56 }
 0x18f   : > { %10603 = vmatpush3.bf16.msra.mxu0 %v12853_v40  ;;  %14664 = vst [vmem:[#allocation95_spill] sm:$0xff] %v12878_v13  ;;  %v7385_v40 = vld [vmem:[%s12046_s17 + $0x3f0] sm:$0xff] }
 0x190   : > { %10635 = vmatpush3.bf16.msra.mxu1 %v12845_v59  ;;  %10605 = vmatprep.subr.bf16.mxu0 %v12857_v35  ;;  %v7402_v59 = vld [vmem:[%s12046_s17 + $0x478] sm:$0xff]  ;;  %v12885_v35 = vpack.c.bf16 %v7368_v0, %v7367_v60  ;;  %v12889_v61 = vpack.c.bf16 %v7386_v49, %v7385_v40  ;;  %v7483_v60 = vld [vmem:[%s12046_s17 + $0x700] sm:$0xff]  ;;  %v7484_v0 = vld [vmem:[%s12046_s17 + $0x708] sm:$0xff] }
 0x191   : > { %10637 = vmatprep.subr.bf16.mxu1 %v12862_v45  ;;  %v12894_v52 = vpack.c.bf16 %v7402_v59, %v7401_v20  ;;  %v7451_v59 = vld [vmem:[%s12046_s17 + $0x600] sm:$0xff]  ;;  %v7452_v49 = vld [vmem:[%s12046_s17 + $0x608] sm:$0xff]  ;;  %v12910_v20 = vpack.c.bf16 %v7484_v0, %v7483_v60 }
 0x192   : > { %14665 = vst [vmem:[#allocation96_spill] sm:$0xff] %v12885_v35  ;;  %14666 = vst [vmem:[#allocation97_spill] sm:$0xff] %v12889_v61 }
 0x193   : > { %10607 = vmatpush3.bf16.msra.mxu0 %v12869_v55  ;;  %14667 = vst [vmem:[#allocation98_spill] sm:$0xff] %v12894_v52  ;;  %v7468_v55 = vld [vmem:[%s12046_s17 + $0x688] sm:$0xff]  ;;  %14670 = vst [vmem:[#allocation101_spill] sm:$0xff] %v12910_v20 }
 0x194   : > { %10639 = vmatpush3.bf16.msra.mxu1 %v12862_v45  ;;  %10609 = vmatprep.subr.bf16.mxu0 %v12873_v56  ;;  %v12901_v56 = vpack.c.bf16 %v7370_v51, %v7369_v8  ;;  %v12905_v40 = vpack.c.bf16 %v7468_v55, %v7467_v42  ;;  %v7469_v45 = vld [vmem:[%s12046_s17 + $0x690] sm:$0xff]  ;;  %v12915_v8 = vpack.c.bf16 %v7452_v49, %v7451_v59  ;;  %v7454_v55 = vld [vmem:[%s12046_s17 + $0x618] sm:$0xff]  ;;  %v7471_v59 = vld [vmem:[%s12046_s17 + $0x6a0] sm:$0xff] }
 0x195   : > { %10641 = vmatprep.subr.bf16.mxu1 %v12878_v13  ;;  %v7485_v51 = vld [vmem:[%s12046_s17 + $0x710] sm:$0xff]  ;;  %v7472_v49 = vld [vmem:[%s12046_s17 + $0x6a8] sm:$0xff] }
 0x196   : > { %14668 = vst [vmem:[#allocation99_spill] sm:$0xff] %v12901_v56  ;;  %14669 = vst [vmem:[#allocation100_spill] sm:$0xff] %v12905_v40  ;;  %v7453_v42 = vld [vmem:[%s12046_s17 + $0x610] sm:$0xff] }
 0x197   : > { %10611 = vmatpush3.bf16.msra.mxu0 %v12885_v35  ;;  %v7470_v35 = vld [vmem:[%s12046_s17 + $0x698] sm:$0xff]  ;;  %14671 = vst [vmem:[#allocation102_spill] sm:$0xff] %v12915_v8 }
 0x198   : > { %10643 = vmatpush3.bf16.msra.mxu1 %v12878_v13  ;;  %10613 = vmatprep.subr.bf16.mxu0 %v12889_v61  ;;  %v7486_v61 = vld [vmem:[%s12046_s17 + $0x718] sm:$0xff]  ;;  %v12924_v60 = vpack.c.bf16 %v7470_v35, %v7469_v45  ;;  %v7455_v45 = vld [vmem:[%s12046_s17 + $0x620] sm:$0xff]  ;;  %v7456_v35 = vld [vmem:[%s12046_s17 + $0x628] sm:$0xff] }
 0x199   : > { %10645 = vmatprep.subr.bf16.mxu1 %v12894_v52  ;;  %v12927_v0 = vpack.c.bf16 %v7486_v61, %v7485_v51  ;;  %v12943_v61 = vpack.c.bf16 %v7472_v49, %v7471_v59  ;;  %v7473_v51 = vld [vmem:[%s12046_s17 + $0x6b0] sm:$0xff]  ;;  %v12955_v59 = vpack.c.bf16 %v7456_v35, %v7455_v45  ;;  %v7458_v13 = vld [vmem:[%s12046_s17 + $0x638] sm:$0xff]  ;;  %v7476_v45 = vld [vmem:[%s12046_s17 + $0x6c8] sm:$0xff] }
 0x19a   : > { %14672 = vst [vmem:[#allocation103_spill] sm:$0xff] %v12924_v60  ;;  %v7492_v35 = vld [vmem:[%s12046_s17 + $0x748] sm:$0xff] }
 0x19b   : > { %10615 = vmatpush3.bf16.msra.mxu0 %v12901_v56  ;;  %v7487_v56 = vld [vmem:[%s12046_s17 + $0x720] sm:$0xff]  ;;  %14674 = vst [vmem:[#allocation105_spill] sm:$0xff] %v12943_v61  ;;  %14675 = vst [vmem:[#allocation106_spill] sm:$0xff] %v12955_v59 }
 0x19c   : > { %10647 = vmatpush3.bf16.msra.mxu1 %v12894_v52  ;;  %10649 = vmatprep.subr.bf16.mxu0 %v12905_v40  ;;  %v12933_v40 = vpack.c.bf16 %v7454_v55, %v7453_v42  ;;  %v7488_v52 = vld [vmem:[%s12046_s17 + $0x728] sm:$0xff]  ;;  %v7474_v42 = vld [vmem:[%s12046_s17 + $0x6b8] sm:$0xff] }
 0x19d   : > { %10681 = vmatprep.subr.bf16.mxu1 %v12910_v20  ;;  %v12949_v55 = vpack.c.bf16 %v7488_v52, %v7487_v56  ;;  %v12959_v49 = vpack.c.bf16 %v7474_v42, %v7473_v51  ;;  %v7475_v52 = vld [vmem:[%s12046_s17 + $0x6c0] sm:$0xff]  ;;  %v7460_v42 = vld [vmem:[%s12046_s17 + $0x648] sm:$0xff] }
 0x19e   : > { %2105 = vmatmul.mubr.f32.vlgmr.msra.gmra.mrb[40].mxu0 %v12757_v58  ;;  %14673 = vst [vmem:[#allocation104_spill] sm:$0xff] %v12933_v40 }
 0x19f   : > { %9151 = vmatmul.mubr.f32.vlgmr.msra.gmra.mrb[12].mxu1 %v12764_v34  ;;  %10651 = vmatpush3.bf16.msra.mxu0 %v12915_v8  ;;  %v7489_v8 = vld [vmem:[%s12046_s17 + $0x730] sm:$0xff]  ;;  %14676 = vst [vmem:[#allocation107_spill] sm:$0xff] %v12959_v49 }
 0x1a0   : > { %10683 = vmatpush3.bf16.msra.mxu1 %v12910_v20  ;;  %2109 = vmatprep.mubr.f32.mxu0 %v12793_v63  ;;  %v7490_v20 = vld [vmem:[%s12046_s17 + $0x738] sm:$0xff] }
 0x1a1   : > { %9153 = vmatprep.mubr.f32.mxu1 %v12801_v2  ;;  %10653 = vmatprep.subr.bf16.mxu0 %v12924_v60  ;;  %v7457_v60 = vld [vmem:[%s12046_s17 + $0x630] sm:$0xff]  ;;  %v12965_v56 = vpack.c.bf16 %v7490_v20, %v7489_v8  ;;  %v12979_v20 = vpack.c.bf16 %v7476_v45, %v7475_v52  ;;  %v7459_v8 = vld [vmem:[%s12046_s17 + $0x640] sm:$0xff] }
 0x1a2   : > { %2110 = vmatmul.mubr.f32.gmra.mrb[42].mxu0 %v12783_v43  ;;  %10685 = vmatprep.subr.bf16.mxu1 %v12927_v0  ;;  %v12975_v51 = vpack.c.bf16 %v7458_v13, %v7457_v60  ;;  %v7493_v13 = vld [vmem:[%s12046_s17 + $0x750] sm:$0xff]  ;;  %v7494_v60 = vld [vmem:[%s12046_s17 + $0x758] sm:$0xff]  ;;  %v12993_v52 = vpack.c.bf16 %v7460_v42, %v7459_v8  ;;  %v7480_v8 = vld [vmem:[%s12046_s17 + $0x6e8] sm:$0xff] }
 0x1a3   : > { %9154 = vmatmul.mubr.f32.gmra.mrb[14].mxu1 %v12791_v7  ;;  %10655 = vmatpush3.bf16.msra.mxu0 %v12933_v40  ;;  %14677 = vst [vmem:[#allocation108_spill] sm:$0xff] %v12965_v56  ;;  %14679 = vst [vmem:[#allocation110_spill] sm:$0xff] %v12979_v20  ;;  %v7478_v40 = vld [vmem:[%s12046_s17 + $0x6d8] sm:$0xff]  ;;  %v7495_v42 = vld [vmem:[%s12046_s17 + $0x760] sm:$0xff] }
 0x1a4   : > { %10687 = vmatpush3.bf16.msra.mxu1 %v12927_v0  ;;  %9188 = vmatprep.mubr.f32.mxu1 %v12602_v38  ;;  %v7491_v38 = vld [vmem:[%s12046_s17 + $0x740] sm:$0xff]  ;;  %14678 = vst [vmem:[#allocation109_spill] sm:$0xff] %v12975_v51  ;;  %14681 = vst [vmem:[#allocation112_spill] sm:$0xff] %v12993_v52 }
 0x1a5   : > { %2114 = vmatprep.mubr.f32.mxu0 %v12819_v54  ;;  %10657 = vmatprep.subr.bf16.mxu0 %v12943_v61  ;;  %v12984_v61 = vpack.c.bf16 %v7492_v35, %v7491_v38  ;;  %v7461_v38 = vld [vmem:[%s12046_s17 + $0x650] sm:$0xff]  ;;  %v7462_v35 = vld [vmem:[%s12046_s17 + $0x658] sm:$0xff] }
 0x1a6   : > { %2115 = vmatmul.mubr.f32.gmra.mrb[44].mxu0 %v12811_v15  ;;  %10689 = vmatprep.subr.bf16.mxu1 %v12949_v55 }
 0x1a7   : > { %10659 = vmatpush3.bf16.msra.mxu0 %v12955_v59  ;;  %2119 = vmatprep.mubr.f32.mxu0 %v12841_v50  ;;  %14680 = vst [vmem:[#allocation111_spill] sm:$0xff] %v12984_v61  ;;  %v7477_v59 = vld [vmem:[%s12046_s17 + $0x6d0] sm:$0xff] }
 0x1a8   : > { %10691 = vmatpush3.bf16.msra.mxu1 %v12949_v55  ;;  %10661 = vmatprep.subr.bf16.mxu0 %v12959_v49  ;;  %v12997_v45 = vpack.c.bf16 %v7478_v40, %v7477_v59  ;;  %v13002_v49 = vpack.c.bf16 %v7494_v60, %v7493_v13  ;;  %v7463_v59 = vld [vmem:[%s12046_s17 + $0x660] sm:$0xff]  ;;  %v7464_v13 = vld [vmem:[%s12046_s17 + $0x668] sm:$0xff] }
 0x1a9   : > { %10693 = vmatprep.subr.bf16.mxu1 %v12965_v56 }
 0x1aa   : > { %2120 = vmatmul.mubr.f32.gmra.mrb[46].mxu0 %v12833_v6  ;;  %14682 = vst [vmem:[#allocation113_spill] sm:$0xff] %v12997_v45  ;;  %14683 = vst [vmem:[#allocation114_spill] sm:$0xff] %v13002_v49 }
 0x1ab   : > { %10663 = vmatpush3.bf16.msra.mxu0 %v12975_v51  ;;  %2376 = vmatprep.mubr.f32.mxu0 %v12596_v11  ;;  %v7479_v11 = vld [vmem:[%s12046_s17 + $0x6e0] sm:$0xff]  ;;  %v7496_v51 = vld [vmem:[%s12046_s17 + $0x768] sm:$0xff] }
 0x1ac   : > { %10695 = vmatpush3.bf16.msra.mxu1 %v12965_v56  ;;  %10665 = vmatprep.subr.bf16.mxu0 %v12979_v20  ;;  %v13009_v20 = vpack.c.bf16 %v7462_v35, %v7461_v38  ;;  %v13013_v40 = vpack.c.bf16 %v7480_v8, %v7479_v11  ;;  %v13018_v60 = vpack.c.bf16 %v7496_v51, %v7495_v42  ;;  %v7482_v38 = vld [vmem:[%s12046_s17 + $0x6f8] sm:$0xff]  ;;  %v7497_v35 = vld [vmem:[%s12046_s17 + $0x770] sm:$0xff]  ;;  %v7419_v56 = vld [vmem:[%s12046_s17 + $0x500] sm:$0xff] }
 0x1ad   : > { %10697 = vmatprep.subr.bf16.mxu1 %v12984_v61  ;;  %v7465_v8 = vld [vmem:[%s12046_s17 + $0x670] sm:$0xff]  ;;  %v7466_v51 = vld [vmem:[%s12046_s17 + $0x678] sm:$0xff] }
 0x1ae   : > { %14684 = vst [vmem:[#allocation115_spill] sm:$0xff] %v13009_v20  ;;  %14685 = vst [vmem:[#allocation116_spill] sm:$0xff] %v13013_v40 }
 0x1af   : > { %10667 = vmatpush3.bf16.msra.mxu0 %v12993_v52  ;;  %14686 = vst [vmem:[#allocation117_spill] sm:$0xff] %v13018_v60  ;;  %v7481_v52 = vld [vmem:[%s12046_s17 + $0x6f0] sm:$0xff] }
 0x1b0   : > { %10699 = vmatpush3.bf16.msra.mxu1 %v12984_v61  ;;  %10669 = vmatprep.subr.bf16.mxu0 %v12997_v45  ;;  %v7498_v61 = vld [vmem:[%s12046_s17 + $0x778] sm:$0xff]  ;;  %v13025_v45 = vpack.c.bf16 %v7464_v13, %v7463_v59  ;;  %v13029_v11 = vpack.c.bf16 %v7482_v38, %v7481_v52  ;;  %v7420_v59 = vld [vmem:[%s12046_s17 + $0x508] sm:$0xff]  ;;  %v7435_v13 = vld [vmem:[%s12046_s17 + $0x580] sm:$0xff]  ;;  %v13041_v52 = vpack.c.bf16 %v7466_v51, %v7465_v8 }
 0x1b1   : > { %10701 = vmatprep.subr.bf16.mxu1 %v13002_v49  ;;  %v13034_v42 = vpack.c.bf16 %v7498_v61, %v7497_v35  ;;  %v13045_v38 = vpack.c.bf16 %v7420_v59, %v7419_v56  ;;  %v7403_v35 = vld [vmem:[%s12046_s17 + $0x480] sm:$0xff]  ;;  %v7437_v8 = vld [vmem:[%s12046_s17 + $0x590] sm:$0xff]  ;;  %v7438_v51 = vld [vmem:[%s12046_s17 + $0x598] sm:$0xff] }
 0x1b2   : > { %14687 = vst [vmem:[#allocation118_spill] sm:$0xff] %v13025_v45  ;;  %14688 = vst [vmem:[#allocation119_spill] sm:$0xff] %v13029_v11  ;;  %v7405_v59 = vld [vmem:[%s12046_s17 + $0x490] sm:$0xff] }
 0x1b3   : > { %10671 = vmatpush3.bf16.msra.mxu0 %v13009_v20  ;;  %v7436_v20 = vld [vmem:[%s12046_s17 + $0x588] sm:$0xff]  ;;  %14689 = vst [vmem:[#allocation120_spill] sm:$0xff] %v13041_v52 }
 0x1b4   : > { %10703 = vmatpush3.bf16.msra.mxu1 %v13002_v49  ;;  %10673 = vmatprep.subr.bf16.mxu0 %v13013_v40  ;;  %v13048_v61 = vpack.c.bf16 %v7436_v20, %v7435_v13  ;;  %v7404_v40 = vld [vmem:[%s12046_s17 + $0x488] sm:$0xff]  ;;  %v7421_v49 = vld [vmem:[%s12046_s17 + $0x510] sm:$0xff]  ;;  %v7406_v13 = vld [vmem:[%s12046_s17 + $0x498] sm:$0xff] }
 0x1b5   : > { %10705 = vmatprep.subr.bf16.mxu1 %v13018_v60  ;;  %v13059_v56 = vpack.c.bf16 %v7404_v40, %v7403_v35  ;;  %v7439_v40 = vld [vmem:[%s12046_s17 + $0x5a0] sm:$0xff]  ;;  %v7440_v35 = vld [vmem:[%s12046_s17 + $0x5a8] sm:$0xff] }
 0x1b7   : > { %10675 = vmatpush3.bf16.msra.mxu0 %v13025_v45  ;;  %v7422_v45 = vld [vmem:[%s12046_s17 + $0x518] sm:$0xff] }
 0x1b8   : > { %10707 = vmatpush3.bf16.msra.mxu1 %v13018_v60  ;;  %10677 = vmatprep.subr.bf16.mxu0 %v13029_v11  ;;  %v13062_v20 = vpack.c.bf16 %v7422_v45, %v7421_v49  ;;  %v7423_v11 = vld [vmem:[%s12046_s17 + $0x520] sm:$0xff]  ;;  %v7424_v60 = vld [vmem:[%s12046_s17 + $0x528] sm:$0xff]  ;;  %v13077_v49 = vpack.c.bf16 %v7406_v13, %v7405_v59 }
 0x1b9   : > { %10709 = vmatprep.subr.bf16.mxu1 %v13034_v42  ;;  %v7408_v45 = vld [vmem:[%s12046_s17 + $0x4a8] sm:$0xff] }
 0x1ba   : > { %v7428_v13 = vld [vmem:[%s12046_s17 + $0x548] sm:$0xff] }
 0x1bb   : > { %10679 = vmatpush3.bf16.msra.mxu0 %v13041_v52  ;;  %v13067_v52 = vpack.c.bf16 %v7438_v51, %v7437_v8  ;;  %v7426_v8 = vld [vmem:[%s12046_s17 + $0x538] sm:$0xff] }
 0x1bc   : > { %10711 = vmatpush3.bf16.msra.mxu1 %v13034_v42  ;;  %10713 = vmatprep.subr.bf16.mxu0 %v13045_v38 }
 0x1bd   : > { %10745 = vmatprep.subr.bf16.mxu1 %v13048_v61 }
 0x1be   : > { %2377 = vmatmul.mubr.f32.vlgmr.msra.gmra.mrb[48].mxu0 %v12590_v29  ;;  %v13081_v29 = vpack.c.bf16 %v7424_v60, %v7423_v11  ;;  %v7441_v60 = vld [vmem:[%s12046_s17 + $0x5b0] sm:$0xff]  ;;  %v7442_v11 = vld [vmem:[%s12046_s17 + $0x5b8] sm:$0xff] }
 0x1bf   : > { %9189 = vmatmul.mubr.f32.vlgmr.msra.gmra.mrb[16].mxu1 %v12594_v12  ;;  %2381 = vmatprep.mubr.f32.mxu0 %v12622_v24  ;;  %v7407_v12 = vld [vmem:[%s12046_s17 + $0x4a0] sm:$0xff]  ;;  %v13087_v24 = vpack.c.bf16 %v7440_v35, %v7439_v40  ;;  %v13107_v59 = vpack.c.bf16 %v7442_v11, %v7441_v60  ;;  %v7444_v35 = vld [vmem:[%s12046_s17 + $0x5c8] sm:$0xff]  ;;  %v7430_v60 = vld [vmem:[%s12046_s17 + $0x558] sm:$0xff] }
 0x1c0   : > { %9191 = vmatprep.mubr.f32.mxu1 %v12627_v21  ;;  %10715 = vmatpush3.bf16.msra.mxu0 %v13059_v56  ;;  %v7425_v21 = vld [vmem:[%s12046_s17 + $0x530] sm:$0xff]  ;;  %v7443_v40 = vld [vmem:[%s12046_s17 + $0x5c0] sm:$0xff] }
 0x1c1   : > { %10747 = vmatpush3.bf16.msra.mxu1 %v13048_v61  ;;  %10717 = vmatprep.subr.bf16.mxu0 %v13062_v20  ;;  %v13101_v51 = vpack.c.bf16 %v7426_v8, %v7425_v21  ;;  %v7412_v21 = vld [vmem:[%s12046_s17 + $0x4c8] sm:$0xff]  ;;  %v7429_v8 = vld [vmem:[%s12046_s17 + $0x550] sm:$0xff] }
 0x1c2   : > { %2382 = vmatmul.mubr.f32.gmra.mrb[50].mxu0 %v12613_v46  ;;  %10749 = vmatprep.subr.bf16.mxu1 %v13067_v52  ;;  %v13097_v46 = vpack.c.bf16 %v7408_v45, %v7407_v12  ;;  %v7411_v45 = vld [vmem:[%s12046_s17 + $0x4c0] sm:$0xff]  ;;  %v7445_v11 = vld [vmem:[%s12046_s17 + $0x5d0] sm:$0xff] }
 0x1c3   : > { %9192 = vmatmul.mubr.f32.gmra.mrb[18].mxu1 %v12620_v44  ;;  %2386 = vmatprep.mubr.f32.mxu0 %v12649_v30  ;;  %v7409_v44 = vld [vmem:[%s12046_s17 + $0x4b0] sm:$0xff]  ;;  %v7410_v30 = vld [vmem:[%s12046_s17 + $0x4b8] sm:$0xff] }
 0x1c4   : > { %10719 = vmatpush3.bf16.msra.mxu0 %v13077_v49  ;;  %9226 = vmatprep.mubr.f32.mxu1 %v12566_v22  ;;  %v7427_v22 = vld [vmem:[%s12046_s17 + $0x540] sm:$0xff]  ;;  %v13115_v12 = vpack.c.bf16 %v7410_v30, %v7409_v44  ;;  %v7446_v44 = vld [vmem:[%s12046_s17 + $0x5d8] sm:$0xff]  ;;  %v13133_v30 = vpack.c.bf16 %v7412_v21, %v7411_v45  ;;  %v7448_v21 = vld [vmem:[%s12046_s17 + $0x5e8] sm:$0xff] }
 0x1c5   : > { %10751 = vmatpush3.bf16.msra.mxu1 %v13067_v52  ;;  %10721 = vmatprep.subr.bf16.mxu0 %v13081_v29  ;;  %v7447_v45 = vld [vmem:[%s12046_s17 + $0x5e0] sm:$0xff] }
 0x1c6   : > { %2387 = vmatmul.mubr.f32.gmra.mrb[52].mxu0 %v12643_v1  ;;  %10753 = vmatprep.subr.bf16.mxu1 %v13087_v24  ;;  %14690 = vst [vmem:[#allocation121_spill] sm:$0xff] %v13115_v12  ;;  %v13119_v1 = vpack.c.bf16 %v7428_v13, %v7427_v22  ;;  %14693 = vst [vmem:[#allocation124_spill] sm:$0xff] %v13133_v30  ;;  %v7413_v22 = vld [vmem:[%s12046_s17 + $0x4d0] sm:$0xff]  ;;  %v7414_v13 = vld [vmem:[%s12046_s17 + $0x4d8] sm:$0xff] }
 0x1c7   : > { %2391 = vmatprep.mubr.f32.mxu0 %v12671_v62  ;;  %v13125_v62 = vpack.c.bf16 %v7444_v35, %v7443_v40  ;;  %v7431_v40 = vld [vmem:[%s12046_s17 + $0x560] sm:$0xff]  ;;  %v7432_v35 = vld [vmem:[%s12046_s17 + $0x568] sm:$0xff] }
 0x1c8   : > { %10723 = vmatpush3.bf16.msra.mxu0 %v13097_v46  ;;  %14691 = vst [vmem:[#allocation122_spill] sm:$0xff] %v13119_v1 }
 0x1c9   : > { %10755 = vmatpush3.bf16.msra.mxu1 %v13087_v24  ;;  %10725 = vmatprep.subr.bf16.mxu0 %v13101_v51  ;;  %14692 = vst [vmem:[#allocation123_spill] sm:$0xff] %v13125_v62 }
 0x1ca   : > { %2392 = vmatmul.mubr.f32.gmra.mrb[54].mxu0 %v12666_v31  ;;  %10757 = vmatprep.subr.bf16.mxu1 %v13107_v59  ;;  %v13137_v31 = vpack.c.bf16 %v7430_v60, %v7429_v8  ;;  %v13153_v8 = vpack.c.bf16 %v7432_v35, %v7431_v40  ;;  %v7415_v60 = vld [vmem:[%s12046_s17 + $0x4e0] sm:$0xff]  ;;  %v7417_v35 = vld [vmem:[%s12046_s17 + $0x4f0] sm:$0xff] }
 0x1cb   : > { %2546 = vmatprep.mubr.f32.mxu0 %v12562_v16  ;;  %v13142_v16 = vpack.c.bf16 %v7446_v44, %v7445_v11  ;;  %v7416_v11 = vld [vmem:[%s12046_s17 + $0x4e8] sm:$0xff]  ;;  %v13158_v44 = vpack.c.bf16 %v7448_v21, %v7447_v45  ;;  %v7418_v45 = vld [vmem:[%s12046_s17 + $0x4f8] sm:$0xff] }
 0x1cc   : > { %10727 = vmatpush3.bf16.msra.mxu0 %v13115_v12  ;;  %14694 = vst [vmem:[#allocation125_spill] sm:$0xff] %v13137_v31  ;;  %14697 = vst [vmem:[#allocation128_spill] sm:$0xff] %v13153_v8  ;;  %v7515_v12 = vld [vmem:[%s12046_s17 + $0x800] sm:$0xff] }
 0x1cd   : > { %10759 = vmatpush3.bf16.msra.mxu1 %v13107_v59  ;;  %10729 = vmatprep.subr.bf16.mxu0 %v13119_v1  ;;  %14695 = vst [vmem:[#allocation126_spill] sm:$0xff] %v13142_v16  ;;  %v13149_v1 = vpack.c.bf16 %v7414_v13, %v7413_v22  ;;  %14698 = vst [vmem:[#allocation129_spill] sm:$0xff] %v13158_v44  ;;  %v7434_v22 = vld [vmem:[%s12046_s17 + $0x578] sm:$0xff]  ;;  %v7449_v13 = vld [vmem:[%s12046_s17 + $0x5f0] sm:$0xff] }
 0x1ce   : > { %10761 = vmatprep.subr.bf16.mxu1 %v13125_v62 }
 0x1cf   : > { %14696 = vst [vmem:[#allocation127_spill] sm:$0xff] %v13149_v1 }
 0x1d0   : > { %10731 = vmatpush3.bf16.msra.mxu0 %v13133_v30  ;;  %v7433_v30 = vld [vmem:[%s12046_s17 + $0x570] sm:$0xff] }
 0x1d1   : > { %10763 = vmatpush3.bf16.msra.mxu1 %v13125_v62  ;;  %10733 = vmatprep.subr.bf16.mxu0 %v13137_v31  ;;  %v7450_v62 = vld [vmem:[%s12046_s17 + $0x5f8] sm:$0xff]  ;;  %v13165_v31 = vpack.c.bf16 %v7416_v11, %v7415_v60  ;;  %v13169_v40 = vpack.c.bf16 %v7434_v22, %v7433_v30  ;;  %v7516_v60 = vld [vmem:[%s12046_s17 + $0x808] sm:$0xff]  ;;  %v7531_v11 = vld [vmem:[%s12046_s17 + $0x880] sm:$0xff]  ;;  %v13181_v30 = vpack.c.bf16 %v7418_v45, %v7417_v35 }
 0x1d2   : > { %10765 = vmatprep.subr.bf16.mxu1 %v13142_v16  ;;  %v13174_v21 = vpack.c.bf16 %v7450_v62, %v7449_v13  ;;  %v13185_v22 = vpack.c.bf16 %v7516_v60, %v7515_v12  ;;  %v7499_v13 = vld [vmem:[%s12046_s17 + $0x780] sm:$0xff]  ;;  %v7533_v35 = vld [vmem:[%s12046_s17 + $0x890] sm:$0xff]  ;;  %v7534_v45 = vld [vmem:[%s12046_s17 + $0x898] sm:$0xff] }
 0x1d3   : > { %14699 = vst [vmem:[#allocation130_spill] sm:$0xff] %v13165_v31  ;;  %14700 = vst [vmem:[#allocation131_spill] sm:$0xff] %v13169_v40  ;;  %v7501_v60 = vld [vmem:[%s12046_s17 + $0x790] sm:$0xff] }
 0x1d4   : > { %10735 = vmatpush3.bf16.msra.mxu0 %v13149_v1  ;;  %v7532_v1 = vld [vmem:[%s12046_s17 + $0x888] sm:$0xff]  ;;  %14701 = vst [vmem:[#allocation132_spill] sm:$0xff] %v13181_v30 }
 0x1d5   : > { %10767 = vmatpush3.bf16.msra.mxu1 %v13142_v16  ;;  %10737 = vmatprep.subr.bf16.mxu0 %v13153_v8  ;;  %v13188_v62 = vpack.c.bf16 %v7532_v1, %v7531_v11  ;;  %v7500_v8 = vld [vmem:[%s12046_s17 + $0x788] sm:$0xff]  ;;  %v7517_v16 = vld [vmem:[%s12046_s17 + $0x810] sm:$0xff]  ;;  %v7502_v11 = vld [vmem:[%s12046_s17 + $0x798] sm:$0xff] }
 0x1d6   : > { %10769 = vmatprep.subr.bf16.mxu1 %v13158_v44  ;;  %v13199_v12 = vpack.c.bf16 %v7500_v8, %v7499_v13  ;;  %v7535_v8 = vld [vmem:[%s12046_s17 + $0x8a0] sm:$0xff]  ;;  %v7536_v13 = vld [vmem:[%s12046_s17 + $0x8a8] sm:$0xff] }
 0x1d8   : > { %10739 = vmatpush3.bf16.msra.mxu0 %v13165_v31  ;;  %v7518_v31 = vld [vmem:[%s12046_s17 + $0x818] sm:$0xff] }
 0x1d9   : > { %10771 = vmatpush3.bf16.msra.mxu1 %v13158_v44  ;;  %10741 = vmatprep.subr.bf16.mxu0 %v13169_v40  ;;  %v13202_v1 = vpack.c.bf16 %v7518_v31, %v7517_v16  ;;  %v7519_v40 = vld [vmem:[%s12046_s17 + $0x820] sm:$0xff]  ;;  %v7520_v44 = vld [vmem:[%s12046_s17 + $0x828] sm:$0xff]  ;;  %v13217_v31 = vpack.c.bf16 %v7502_v11, %v7501_v60 }
 0x1da   : > { %10773 = vmatprep.subr.bf16.mxu1 %v13174_v21  ;;  %v7504_v16 = vld [vmem:[%s12046_s17 + $0x7a8] sm:$0xff] }
 0x1db   : > { %v7524_v11 = vld [vmem:[%s12046_s17 + $0x848] sm:$0xff] }
 0x1dc   : > { %10743 = vmatpush3.bf16.msra.mxu0 %v13181_v30  ;;  %v13207_v30 = vpack.c.bf16 %v7534_v45, %v7533_v35  ;;  %v7522_v35 = vld [vmem:[%s12046_s17 + $0x838] sm:$0xff] }
 0x1dd   : > { %10775 = vmatpush3.bf16.msra.mxu1 %v13174_v21  ;;  %10777 = vmatprep.subr.bf16.mxu0 %v13185_v22 }
 0x1de   : > { %10809 = vmatprep.subr.bf16.mxu1 %v13188_v62 }
 0x1df   : > { %2547 = vmatmul.mubr.f32.vlgmr.msra.gmra.mrb[56].mxu0 %v12560_v4  ;;  %v13221_v4 = vpack.c.bf16 %v7520_v44, %v7519_v40  ;;  %v7537_v44 = vld [vmem:[%s12046_s17 + $0x8b0] sm:$0xff]  ;;  %v7538_v40 = vld [vmem:[%s12046_s17 + $0x8b8] sm:$0xff] }
 0x1e0   : > { %9227 = vmatmul.mubr.f32.vlgmr.msra.gmra.mrb[16].mxu1 %v12564_v17  ;;  %2551 = vmatprep.mubr.f32.mxu0 %v12570_v26  ;;  %v7503_v17 = vld [vmem:[%s12046_s17 + $0x7a0] sm:$0xff]  ;;  %v13227_v26 = vpack.c.bf16 %v7536_v13, %v7535_v8  ;;  %v13247_v60 = vpack.c.bf16 %v7538_v40, %v7537_v44  ;;  %v7540_v13 = vld [vmem:[%s12046_s17 + $0x8c8] sm:$0xff]  ;;  %v7526_v44 = vld [vmem:[%s12046_s17 + $0x858] sm:$0xff] }
 0x1e1   : > { %9229 = vmatprep.mubr.f32.mxu1 %v12576_v39  ;;  %10779 = vmatpush3.bf16.msra.mxu0 %v13199_v12  ;;  %v7521_v39 = vld [vmem:[%s12046_s17 + $0x830] sm:$0xff]  ;;  %v7539_v8 = vld [vmem:[%s12046_s17 + $0x8c0] sm:$0xff] }
 0x1e2   : > { %10811 = vmatpush3.bf16.msra.mxu1 %v13188_v62  ;;  %10781 = vmatprep.subr.bf16.mxu0 %v13202_v1  ;;  %14702 = vst [vmem:[#allocation133_spill] sm:$0xff] %v13227_v26  ;;  %v13241_v45 = vpack.c.bf16 %v7522_v35, %v7521_v39  ;;  %14705 = vst [vmem:[#allocation136_spill] sm:$0xff] %v13247_v60  ;;  %v7508_v39 = vld [vmem:[%s12046_s17 + $0x7c8] sm:$0xff]  ;;  %v7525_v35 = vld [vmem:[%s12046_s17 + $0x850] sm:$0xff] }
 0x1e3   : > { %2552 = vmatmul.mubr.f32.gmra.mrb[58].mxu0 %v12568_v25  ;;  %10813 = vmatprep.subr.bf16.mxu1 %v13207_v30  ;;  %v13237_v25 = vpack.c.bf16 %v7504_v16, %v7503_v17  ;;  %v7507_v16 = vld [vmem:[%s12046_s17 + $0x7c0] sm:$0xff]  ;;  %v7541_v40 = vld [vmem:[%s12046_s17 + $0x8d0] sm:$0xff] }
 0x1e4   : > { %9230 = vmatmul.mubr.f32.gmra.mrb[18].mxu1 %v12572_v28  ;;  %2556 = vmatprep.mubr.f32.mxu0 %v12578_v47  ;;  %14704 = vst [vmem:[#allocation135_spill] sm:$0xff] %v13241_v45  ;;  %v7505_v28 = vld [vmem:[%s12046_s17 + $0x7b0] sm:$0xff]  ;;  %v7506_v47 = vld [vmem:[%s12046_s17 + $0x7b8] sm:$0xff] }
 0x1e5   : > { %10783 = vmatpush3.bf16.msra.mxu0 %v13217_v31  ;;  %9264 = vmatprep.mubr.f32.mxu1 %v12773_v48  ;;  %14703 = vst [vmem:[#allocation134_spill] sm:$0xff] %v13237_v25  ;;  %v7523_v48 = vld [vmem:[%s12046_s17 + $0x840] sm:$0xff]  ;;  %v13255_v17 = vpack.c.bf16 %v7506_v47, %v7505_v28  ;;  %v7542_v28 = vld [vmem:[%s12046_s17 + $0x8d8] sm:$0xff]  ;;  %v13273_v47 = vpack.c.bf16 %v7508_v39, %v7507_v16  ;;  %v7544_v39 = vld [vmem:[%s12046_s17 + $0x8e8] sm:$0xff] }
 0x1e6   : > { %10815 = vmatpush3.bf16.msra.mxu1 %v13207_v30  ;;  %10785 = vmatprep.subr.bf16.mxu0 %v13221_v4  ;;  %v7543_v16 = vld [vmem:[%s12046_s17 + $0x8e0] sm:$0xff] }
 0x1e7   : > { %2557 = vmatmul.mubr.f32.gmra.mrb[60].mxu0 %v12574_v37  ;;  %10817 = vmatprep.subr.bf16.mxu1 %v13227_v26  ;;  %14706 = vst [vmem:[#allocation137_spill] sm:$0xff] %v13255_v17  ;;  %v13259_v37 = vpack.c.bf16 %v7524_v11, %v7523_v48  ;;  %14709 = vst [vmem:[#allocation140_spill] sm:$0xff] %v13273_v47  ;;  %v7509_v48 = vld [vmem:[%s12046_s17 + $0x7d0] sm:$0xff]  ;;  %v7510_v11 = vld [vmem:[%s12046_s17 + $0x7d8] sm:$0xff] }
 0x1e8   : > { %2561 = vmatprep.mubr.f32.mxu0 %v12582_v57  ;;  %v13265_v57 = vpack.c.bf16 %v7540_v13, %v7539_v8  ;;  %v7527_v8 = vld [vmem:[%s12046_s17 + $0x860] sm:$0xff]  ;;  %v7528_v13 = vld [vmem:[%s12046_s17 + $0x868] sm:$0xff] }
 0x1e9   : > { %10787 = vmatpush3.bf16.msra.mxu0 %v13237_v25  ;;  %14707 = vst [vmem:[#allocation138_spill] sm:$0xff] %v13259_v37 }
 0x1ea   : > { %10819 = vmatpush3.bf16.msra.mxu1 %v13227_v26  ;;  %10789 = vmatprep.subr.bf16.mxu0 %v13241_v45  ;;  %14708 = vst [vmem:[#allocation139_spill] sm:$0xff] %v13265_v57  ;;  %v7545_v45 = vld [vmem:[%s12046_s17 + $0x8f0] sm:$0xff] }
 0x1eb   : > { %2562 = vmatmul.mubr.f32.gmra.mrb[62].mxu0 %v12580_v53  ;;  %10821 = vmatprep.subr.bf16.mxu1 %v13247_v60  ;;  %v13277_v53 = vpack.c.bf16 %v7526_v44, %v7525_v35  ;;  %v13293_v35 = vpack.c.bf16 %v7528_v13, %v7527_v8  ;;  %v7511_v44 = vld [vmem:[%s12046_s17 + $0x7e0] sm:$0xff]  ;;  %v7513_v8 = vld [vmem:[%s12046_s17 + $0x7f0] sm:$0xff]  ;;  %v7514_v13 = vld [vmem:[%s12046_s17 + $0x7f8] sm:$0xff] }
 0x1ec   : > { %2765 = vmatprep.mubr.f32.mxu0 %v12766_v3  ;;  %v13282_v3 = vpack.c.bf16 %v7542_v28, %v7541_v40  ;;  %v7512_v40 = vld [vmem:[%s12046_s17 + $0x7e8] sm:$0xff]  ;;  %v13298_v28 = vpack.c.bf16 %v7544_v39, %v7543_v16  ;;  %v13317_v39 = vpack.c.bf16 %v7514_v13, %v7513_v8  ;;  %v7550_v8 = vld [vmem:[%s12041_s13 + $0x78] sm:$0xff]  ;;  %v7551_v13 = vld [vmem:[%s12041_s13 + $0x80] sm:$0xff] }
 0x1ed   : > { %10791 = vmatpush3.bf16.msra.mxu0 %v13255_v17  ;;  %14710 = vst [vmem:[#allocation141_spill] sm:$0xff] %v13277_v53  ;;  %14713 = vst [vmem:[#allocation144_spill] sm:$0xff] %v13293_v35  ;;  %v7529_v17 = vld [vmem:[%s12046_s17 + $0x870] sm:$0xff] }
 0x1ee   : > { %10823 = vmatpush3.bf16.msra.mxu1 %v13247_v60  ;;  %10793 = vmatprep.subr.bf16.mxu0 %v13259_v37  ;;  %14711 = vst [vmem:[#allocation142_spill] sm:$0xff] %v13282_v3  ;;  %v13289_v37 = vpack.c.bf16 %v7510_v11, %v7509_v48  ;;  %14714 = vst [vmem:[#allocation145_spill] sm:$0xff] %v13298_v28  ;;  %v7530_v60 = vld [vmem:[%s12046_s17 + $0x878] sm:$0xff]  ;;  %v13305_v48 = vpack.c.bf16 %v7512_v40, %v7511_v44  ;;  %v7548_v44 = vld [vmem:[%s12041_s13 + $0x68] sm:$0xff] }
 0x1ef   : > { %10825 = vmatprep.subr.bf16.mxu1 %v13265_v57  ;;  %v13309_v11 = vpack.c.bf16 %v7530_v60, %v7529_v17  ;;  %14718 = vst [vmem:[#allocation149_spill] sm:$0xff] %v13317_v39  ;;  %v14729_v60 = vld [vmem:[#allocation25_spill] sm:$0xff]  ;;  %v14730_v17 = vld [vmem:[#allocation26_spill] sm:$0xff] }
 0x1f0   : > { %14712 = vst [vmem:[#allocation143_spill] sm:$0xff] %v13289_v37  ;;  %14715 = vst [vmem:[#allocation146_spill] sm:$0xff] %v13305_v48  ;;  %v7549_v40 = vld [vmem:[%s12041_s13 + $0x70] sm:$0xff] }
 0x1f1   : > { %10795 = vmatpush3.bf16.msra.mxu0 %v13273_v47  ;;  %v7546_v47 = vld [vmem:[%s12046_s17 + $0x8f8] sm:$0xff]  ;;  %14716 = vst [vmem:[#allocation147_spill] sm:$0xff] %v13309_v11  ;;  %v14805_v26 = vld [vmem:[#allocation90_spill] sm:$0xff] }
 0x1f2   : > { %10827 = vmatpush3.bf16.msra.mxu1 %v13265_v57  ;;  %10797 = vmatprep.subr.bf16.mxu0 %v13277_v53  ;;  %v13314_v16 = vpack.c.bf16 %v7546_v47, %v7545_v45  ;;  %v7547_v45 = vld [vmem:[%s12041_s13 + $0x60] sm:$0xff]  ;;  %v14731_v47 = vld [vmem:[#allocation27_spill] sm:$0xff] }
 0x1f3   : > { %10829 = vmatprep.subr.bf16.mxu1 %v13282_v3  ;;  %v14799_v53 = vld [vmem:[#allocation84_spill] sm:$0xff] }
 0x1f4   : > { %14717 = vst [vmem:[#allocation148_spill] sm:$0xff] %v13314_v16 }
 0x1f5   : > { %10799 = vmatpush3.bf16.msra.mxu0 %v13289_v37 }
 0x1f6   : > { %10831 = vmatpush3.bf16.msra.mxu1 %v13282_v3  ;;  %10801 = vmatprep.subr.bf16.mxu0 %v13293_v35  ;;  %v14798_v3 = vld [vmem:[#allocation83_spill] sm:$0xff] }
 0x1f7   : > { %10833 = vmatprep.subr.bf16.mxu1 %v13298_v28 }
 0x1f9   : > { %10803 = vmatpush3.bf16.msra.mxu0 %v13305_v48 }
 0x1fa   : > { %10835 = vmatpush3.bf16.msra.mxu1 %v13298_v28  ;;  %10805 = vmatprep.subr.bf16.mxu0 %v13309_v11  ;;  %v7552_v28 = vld [vmem:[%s12041_s13 + $0x88] sm:$0xff] }
 0x1fb   : > { %10837 = vmatprep.subr.bf16.mxu1 %v13314_v16 }
 0x1fd   : > { %10807 = vmatpush3.bf16.msra.mxu0 %v13317_v39 }
 0x1fe   : > { %10839 = vmatpush3.bf16.msra.mxu1 %v13314_v16  ;;  %10841 = vmatprep.subr.bf16.mxu0 %v12210_v5 }
 0x1ff   : > { %10873 = vmatprep.subr.bf16.mxu1 %v12215_v9 }
 0x200   : > { %2766 = vmatmul.mubr.f32.vlgmr.msra.gmra.mrb[64].mxu0 %v12757_v58  ;;  %v14726_v58 = vld [vmem:[#allocation22_spill] sm:$0xff] }
 0x201   : > { %9265 = vmatmul.mubr.f32.vlgmr.msra.gmra.mrb[16].mxu1 %v12764_v34  ;;  %2770 = vmatprep.mubr.f32.mxu0 %v12793_v63  ;;  %v14720_v63 = vld [vmem:[#allocation16_spill] sm:$0xff]  ;;  %v14723_v34 = vld [vmem:[#allocation19_spill] sm:$0xff] }
 0x202   : > { %9267 = vmatprep.mubr.f32.mxu1 %v12801_v2  ;;  %10843 = vmatpush1.bf16.msra.mxu0 %v12217_v10  ;;  %v14725_v2 = vld [vmem:[#allocation21_spill] sm:$0xff] }
 0x203   : > { %10875 = vmatpush3.bf16.msra.mxu1 %v12215_v9  ;;  %10845 = vmatprep.subr.bf16.mxu0 %v12223_v14 }
 0x204   : > { %2771 = vmatmul.mubr.f32.gmra.mrb[66].mxu0 %v12783_v43  ;;  %10877 = vmatprep.subr.bf16.mxu1 %v12230_v18  ;;  %v14727_v43 = vld [vmem:[#allocation23_spill] sm:$0xff] }
 0x205   : > { %9268 = vmatmul.mubr.f32.gmra.mrb[18].mxu1 %v12791_v7  ;;  %2775 = vmatprep.mubr.f32.mxu0 %v12819_v54  ;;  %v14719_v54 = vmov 0.0   ;;  %v14721_v7 = vld [vmem:[#allocation17_spill] sm:$0xff] }
 0x206   : > { %10847 = vmatpush1.bf16.msra.mxu0 %v12232_v19  ;;  %9302 = vmatprep.mubr.f32.mxu1 %v7547_v45 }
 0x207   : > { %10879 = vmatpush3.bf16.msra.mxu1 %v12230_v18  ;;  %10849 = vmatprep.subr.bf16.mxu0 %v12239_v23 }
 0x208   : > { %2776 = vmatmul.mubr.f32.gmra.mrb[68].mxu0 %v12811_v15  ;;  %10881 = vmatprep.subr.bf16.mxu1 %v12245_v27  ;;  %v14728_v15 = vld [vmem:[#allocation24_spill] sm:$0xff] }
 0x209   : > { %2780 = vmatprep.mubr.f32.mxu0 %v12841_v50  ;;  %v14722_v50 = vld [vmem:[#allocation18_spill] sm:$0xff] }
 0x20a   : > { %10851 = vmatpush1.bf16.msra.mxu0 %v12252_v32 }
 0x20b   : > { %10883 = vmatpush3.bf16.msra.mxu1 %v12245_v27  ;;  %10853 = vmatprep.subr.bf16.mxu0 %v12256_v33 }
 0x20c   : > { %2781 = vmatmul.mubr.f32.gmra.mrb[70].mxu0 %v12833_v6  ;;  %10885 = vmatprep.subr.bf16.mxu1 %v12261_v36  ;;  %v14724_v6 = vld [vmem:[#allocation20_spill] sm:$0xff] }
 0x20d   : > { %2948 = vmatprep.mubr.f32.mxu0 %v14719_v54 }
 0x20e   : > { %10855 = vmatpush1.bf16.msra.mxu0 %v12268_v41 }
 0x20f   : > { %10887 = vmatpush3.bf16.msra.mxu1 %v12261_v36  ;;  %10857 = vmatprep.subr.bf16.mxu0 %v14720_v63 }
 0x210   : > { %10889 = vmatprep.subr.bf16.mxu1 %v14721_v7 }
 0x212   : > { %10859 = vmatpush1.bf16.msra.mxu0 %v14722_v50 }
 0x213   : > { %10891 = vmatpush3.bf16.msra.mxu1 %v14721_v7  ;;  %10861 = vmatprep.subr.bf16.mxu0 %v14723_v34 }
 0x214   : > { %10893 = vmatprep.subr.bf16.mxu1 %v14724_v6 }
 0x216   : > { %10863 = vmatpush1.bf16.msra.mxu0 %v14725_v2 }
 0x217   : > { %10895 = vmatpush3.bf16.msra.mxu1 %v14724_v6  ;;  %10865 = vmatprep.subr.bf16.mxu0 %v14726_v58 }
 0x218   : > { %10897 = vmatprep.subr.bf16.mxu1 %v14727_v43 }
 0x21a   : > { %10867 = vmatpush1.bf16.msra.mxu0 %v14728_v15 }
 0x21b   : > { %10899 = vmatpush3.bf16.msra.mxu1 %v14727_v43  ;;  %10869 = vmatprep.subr.bf16.mxu0 %v14729_v60 }
 0x21c   : > { %10901 = vmatprep.subr.bf16.mxu1 %v14730_v17 }
 0x21e   : > { %10871 = vmatpush1.bf16.msra.mxu0 %v14731_v47 }
 0x21f   : > { %10903 = vmatpush3.bf16.msra.mxu1 %v14730_v17  ;;  %10905 = vmatprep.subr.bf16.mxu0 %v12210_v5 }
 0x220   : > { %10937 = vmatprep.subr.bf16.mxu1 %v12215_v9 }
 0x221   : > { %2949 = vmatmul.mubr.f32.vlgmr.msra.gmra.mrb[72].mxu0 %v7547_v45 }
 0x222   : > { %9303 = vmatmul.mubr.f32.vlgmr.msra.gmra.mrb[20].mxu1 %v7548_v44  ;;  %10907 = vmatpush1.bf16.msra.mxu0 %v12217_v10 }
 0x223   : > { %10939 = vmatpush3.bf16.msra.mxu1 %v12215_v9  ;;  %10909 = vmatprep.subr.bf16.mxu0 %v12223_v14 }
 0x224   : > { %10941 = vmatprep.subr.bf16.mxu1 %v12230_v18  ;;  %2954 = vmatprep.mubr.f32.mxu0 %v14719_v54 }
 0x225   : > { %2955 = vmatmul.mubr.f32.gmra.mrb[74].mxu0 %v7548_v44  ;;  %9305 = vmatprep.mubr.f32.mxu1 %v7549_v40 }
 0x226   : > { %10911 = vmatpush1.bf16.msra.mxu0 %v12232_v19  ;;  %2960 = vmatprep.mubr.f32.mxu0 %v14719_v54 }
 0x227   : > { %10943 = vmatpush3.bf16.msra.mxu1 %v12230_v18  ;;  %10913 = vmatprep.subr.bf16.mxu0 %v12239_v23 }
 0x228   : > { %10945 = vmatprep.subr.bf16.mxu1 %v12245_v27  ;;  %9306 = vmatmul.mubr.f32.gmra.mrb[22].mxu1 %v7550_v8 }
 0x229   : > { %2961 = vmatmul.mubr.f32.gmra.mrb[76].mxu0 %v7549_v40  ;;  %9340 = vmatprep.mubr.f32.mxu1 %v7551_v13 }
 0x22a   : > { %10915 = vmatpush1.bf16.msra.mxu0 %v12252_v32  ;;  %2966 = vmatprep.mubr.f32.mxu0 %v14719_v54 }
 0x22b   : > { %10947 = vmatpush3.bf16.msra.mxu1 %v12245_v27  ;;  %10917 = vmatprep.subr.bf16.mxu0 %v12256_v33 }
 0x22c   : > { %10949 = vmatprep.subr.bf16.mxu1 %v12261_v36 }
 0x22d   : > { %2967 = vmatmul.mubr.f32.gmra.mrb[78].mxu0 %v7550_v8 }
 0x22e   : > { %10919 = vmatpush1.bf16.msra.mxu0 %v12268_v41  ;;  %3127 = vmatprep.mubr.f32.mxu0 %v14719_v54 }
 0x22f   : > { %10951 = vmatpush3.bf16.msra.mxu1 %v12261_v36  ;;  %10921 = vmatprep.subr.bf16.mxu0 %v14720_v63 }
 0x230   : > { %10953 = vmatprep.subr.bf16.mxu1 %v14721_v7  ;;  %v7816_v45 = vpop.f32.mrb[24].mxu0 }
 0x231   : > { %v7817_v44 = vpop.f32.mrb[25].mxu0 }
 0x232   : > { %10923 = vmatpush1.bf16.msra.mxu0 %v14722_v50  ;;  %v7818_v40 = vadd.f32 %v7817_v44, %v7816_v45 }
 0x233   : > { %10955 = vmatpush3.bf16.msra.mxu1 %v14721_v7  ;;  %10925 = vmatprep.subr.bf16.mxu0 %v14723_v34 }
 0x234   : > { %10957 = vmatprep.subr.bf16.mxu1 %v14724_v6  ;;  %v7819_v8 = vpop.f32.mrb[26].mxu0 }
 0x235   : > { %v7820_v39 = vpop.f32.mrb[27].mxu0 }
 0x236   : > { %10927 = vmatpush1.bf16.msra.mxu0 %v14725_v2  ;;  %v7821_v16 = vadd.f32 %v7820_v39, %v7819_v8 }
 0x237   : > { %10959 = vmatpush3.bf16.msra.mxu1 %v14724_v6  ;;  %10929 = vmatprep.subr.bf16.mxu0 %v14726_v58 }
 0x238   : > { %10961 = vmatprep.subr.bf16.mxu1 %v14727_v43  ;;  %v7822_v45 = vpop.f32.mrb[28].mxu0 }
 0x239   : > { %v7823_v44 = vpop.f32.mrb[29].mxu0 }
 0x23a   : > { %10931 = vmatpush1.bf16.msra.mxu0 %v14728_v15  ;;  %v13403_v11 = vadd.f32 %v7823_v44, %v7822_v45  ;;  %v7553_v45 = vld [vmem:[%s12041_s13 + $0x90] sm:$0xff]  ;;  %v7554_v44 = vld [vmem:[%s12041_s13 + $0x98] sm:$0xff] }
 0x23b   : > { %10963 = vmatpush3.bf16.msra.mxu1 %v14727_v43  ;;  %10933 = vmatprep.subr.bf16.mxu0 %v14729_v60 }
 0x23c   : > { %10965 = vmatprep.subr.bf16.mxu1 %v14730_v17  ;;  %v7825_v39 = vpop.f32.mrb[30].mxu0 }
 0x23d   : > { %v7826_v8 = vpop.f32.mrb[31].mxu0 }
 0x23e   : > { %10935 = vmatpush1.bf16.msra.mxu0 %v14731_v47  ;;  %v13409_v48 = vadd.f32 %v7826_v8, %v7825_v39  ;;  %v7555_v39 = vld [vmem:[%s12041_s13 + $0xa0] sm:$0xff]  ;;  %v14743_v8 = vld [vmem:[#allocation39_spill] sm:$0xff] }
 0x23f   : > { %10967 = vmatpush3.bf16.msra.mxu1 %v14730_v17  ;;  %10969 = vmatprep.subr.bf16.mxu0 %v12210_v5 }
 0x240   : > { %11001 = vmatprep.subr.bf16.mxu1 %v12215_v9 }
 0x241   : > { %3128 = vmatmul.mubr.f32.vlgmr.msra.gmra.mrb[80].mxu0 %v7551_v13  ;;  %v14741_v13 = vld [vmem:[#allocation37_spill] sm:$0xff] }
 0x242   : > { %9341 = vmatmul.mubr.f32.vlgmr.msra.gmra.mrb[24].mxu1 %v7552_v28  ;;  %3133 = vmatprep.mubr.f32.mxu0 %v14719_v54 }
 0x243   : > { %9343 = vmatprep.mubr.f32.mxu1 %v7553_v45  ;;  %10971 = vmatpush1.bf16.msra.mxu0 %v12217_v10 }
 0x244   : > { %11003 = vmatpush3.bf16.msra.mxu1 %v12215_v9  ;;  %10973 = vmatprep.subr.bf16.mxu0 %v12223_v14 }
 0x245   : > { %3134 = vmatmul.mubr.f32.gmra.mrb[82].mxu0 %v7552_v28  ;;  %11005 = vmatprep.subr.bf16.mxu1 %v12230_v18 }
 0x246   : > { %9344 = vmatmul.mubr.f32.gmra.mrb[26].mxu1 %v7554_v44  ;;  %3139 = vmatprep.mubr.f32.mxu0 %v14719_v54 }
 0x247   : > { %10975 = vmatpush1.bf16.msra.mxu0 %v12232_v19  ;;  %9378 = vmatprep.mubr.f32.mxu1 %v7555_v39 }
 0x248   : > { %11007 = vmatpush3.bf16.msra.mxu1 %v12230_v18  ;;  %10977 = vmatprep.subr.bf16.mxu0 %v12239_v23 }
 0x249   : > { %3140 = vmatmul.mubr.f32.gmra.mrb[84].mxu0 %v7553_v45  ;;  %11009 = vmatprep.subr.bf16.mxu1 %v12245_v27 }
 0x24a   : > { %3145 = vmatprep.mubr.f32.mxu0 %v14719_v54 }
 0x24b   : > { %10979 = vmatpush1.bf16.msra.mxu0 %v12252_v32 }
 0x24c   : > { %11011 = vmatpush3.bf16.msra.mxu1 %v12245_v27  ;;  %10981 = vmatprep.subr.bf16.mxu0 %v12256_v33 }
 0x24d   : > { %3146 = vmatmul.mubr.f32.gmra.mrb[86].mxu0 %v7554_v44  ;;  %11013 = vmatprep.subr.bf16.mxu1 %v12261_v36  ;;  %v14744_v44 = vld [vmem:[#allocation40_spill] sm:$0xff] }
 0x24e   : > { %3306 = vmatprep.mubr.f32.mxu0 %v14719_v54 }
 0x24f   : > { %10983 = vmatpush1.bf16.msra.mxu0 %v12268_v41 }
 0x250   : > { %v7880_v5 = vpop.f32.mrb[32].mxu0  ;;  %11015 = vmatpush3.bf16.msra.mxu1 %v12261_v36  ;;  %10985 = vmatprep.subr.bf16.mxu0 %v14720_v63 }
 0x251   : > { %v7881_v9 = vpop.f32.mrb[33].mxu0  ;;  %11017 = vmatprep.subr.bf16.mxu1 %v14721_v7 }
 0x252   : > { %v7882_v10 = vadd.f32 %v7881_v9, %v7880_v5  ;;  %v14745_v9 = vld [vmem:[#allocation41_spill] sm:$0xff] }
 0x253   : > { %10987 = vmatpush1.bf16.msra.mxu0 %v14722_v50  ;;  %v7556_v50 = vld [vmem:[%s12041_s13 + $0xa8] sm:$0xff] }
 0x254   : > { %v13439_v14 = vadd.f32 %v7882_v10, %v7818_v40  ;;  %v7883_v18 = vpop.f32.mrb[34].mxu0  ;;  %11019 = vmatpush3.bf16.msra.mxu1 %v14721_v7  ;;  %10989 = vmatprep.subr.bf16.mxu0 %v14723_v34  ;;  %v7557_v34 = vld [vmem:[%s12041_s13 + $0xb0] sm:$0xff] }
 0x255   : > { %v7884_v19 = vpop.f32.mrb[35].mxu0  ;;  %11021 = vmatprep.subr.bf16.mxu1 %v14724_v6  ;;  %v14742_v40 = vld [vmem:[#allocation38_spill] sm:$0xff] }
 0x256   : > { %v7885_v23 = vadd.f32 %v7884_v19, %v7883_v18  ;;  %v14746_v19 = vld [vmem:[#allocation42_spill] sm:$0xff] }
 0x257   : > { %10991 = vmatpush1.bf16.msra.mxu0 %v14725_v2  ;;  %v7558_v2 = vld [vmem:[%s12041_s13 + $0xb8] sm:$0xff] }
 0x258   : > { %v13445_v27 = vadd.f32 %v7885_v23, %v7821_v16  ;;  %v7886_v32 = vpop.f32.mrb[36].mxu0  ;;  %11023 = vmatpush3.bf16.msra.mxu1 %v14724_v6  ;;  %10993 = vmatprep.subr.bf16.mxu0 %v14726_v58  ;;  %v14733_v6 = vld [vmem:[#allocation29_spill] sm:$0xff]  ;;  %v14734_v58 = vld [vmem:[#allocation30_spill] sm:$0xff] }
 0x259   : > { %v7887_v33 = vpop.f32.mrb[37].mxu0  ;;  %11025 = vmatprep.subr.bf16.mxu1 %v14727_v43 }
 0x25a   : > { %v7888_v36 = vadd.f32 %v7887_v33, %v7886_v32  ;;  %v14747_v33 = vld [vmem:[#allocation43_spill] sm:$0xff] }
 0x25b   : > { %10995 = vmatpush1.bf16.msra.mxu0 %v14728_v15  ;;  %v14737_v15 = vld [vmem:[#allocation33_spill] sm:$0xff] }
 0x25c   : > { %v13452_v41 = vadd.f32 %v7888_v36, %v13403_v11  ;;  %v7889_v28 = vpop.f32.mrb[38].mxu0  ;;  %11027 = vmatpush3.bf16.msra.mxu1 %v14727_v43  ;;  %10997 = vmatprep.subr.bf16.mxu0 %v14729_v60  ;;  %v14732_v11 = vld [vmem:[#allocation28_spill] sm:$0xff]  ;;  %v14738_v60 = vld [vmem:[#allocation34_spill] sm:$0xff] }
 0x25d   : > { %v7890_v16 = vpop.f32.mrb[39].mxu0  ;;  %11029 = vmatprep.subr.bf16.mxu1 %v14730_v17  ;;  %v14736_v43 = vld [vmem:[#allocation32_spill] sm:$0xff] }
 0x25e   : > { %v7891_v63 = vadd.f32 %v7890_v16, %v7889_v28  ;;  %v14748_v16 = vld [vmem:[#allocation44_spill] sm:$0xff] }
 0x25f   : > { %10999 = vmatpush1.bf16.msra.mxu0 %v14731_v47  ;;  %v14740_v47 = vld [vmem:[#allocation36_spill] sm:$0xff] }
 0x260   : > { %v13459_v7 = vadd.f32 %v7891_v63, %v13409_v48  ;;  %11031 = vmatpush3.bf16.msra.mxu1 %v14730_v17  ;;  %11033 = vmatprep.subr.bf16.mxu0 %v14732_v11  ;;  %v14735_v48 = vld [vmem:[#allocation31_spill] sm:$0xff] }
 0x261   : > { %11065 = vmatprep.subr.bf16.mxu1 %v14733_v6  ;;  %v14739_v17 = vld [vmem:[#allocation35_spill] sm:$0xff] }
 0x262   : > { %3307 = vmatmul.mubr.f32.vlgmr.msra.gmra.mrb[88].mxu0 %v7555_v39 }
 0x263   : > { %9379 = vmatmul.mubr.f32.vlgmr.msra.gmra.mrb[28].mxu1 %v7556_v50  ;;  %3312 = vmatprep.mubr.f32.mxu0 %v14719_v54 }
 0x264   : > { %9381 = vmatprep.mubr.f32.mxu1 %v7557_v34  ;;  %11035 = vmatpush3.bf16.msra.mxu0 %v14734_v58 }
 0x265   : > { %11067 = vmatpush3.bf16.msra.mxu1 %v14733_v6  ;;  %11037 = vmatprep.subr.bf16.mxu0 %v14735_v48  ;;  %v14752_v48 = vld [vmem:[#allocation47_spill] sm:$0xff] }
 0x266   : > { %3313 = vmatmul.mubr.f32.gmra.mrb[90].mxu0 %v7556_v50  ;;  %11069 = vmatprep.subr.bf16.mxu1 %v14736_v43 }
 0x267   : > { %9382 = vmatmul.mubr.f32.gmra.mrb[30].mxu1 %v7558_v2  ;;  %3318 = vmatprep.mubr.f32.mxu0 %v14719_v54 }
 0x268   : > { %11039 = vmatpush3.bf16.msra.mxu0 %v14737_v15 }
 0x269   : > { %11071 = vmatpush3.bf16.msra.mxu1 %v14736_v43  ;;  %11041 = vmatprep.subr.bf16.mxu0 %v14738_v60  ;;  %v14754_v60 = vld [vmem:[#allocation48_spill] sm:$0xff] }
 0x26a   : > { %3319 = vmatmul.mubr.f32.gmra.mrb[92].mxu0 %v7557_v34  ;;  %11073 = vmatprep.subr.bf16.mxu1 %v14739_v17  ;;  %v14750_v34 = vld [vmem:[#allocation45_spill] sm:$0xff] }
 0x26b   : > { %3324 = vmatprep.mubr.f32.mxu0 %v14719_v54  ;;  %v14774_v54 = vld [vmem:[#allocation60_spill] sm:$0xff] }
 0x26c   : > { %11043 = vmatpush3.bf16.msra.mxu0 %v14740_v47 }
 0x26d   : > { %11075 = vmatpush3.bf16.msra.mxu1 %v14739_v17  ;;  %11045 = vmatprep.subr.bf16.mxu0 %v14741_v13  ;;  %v14755_v13 = vld [vmem:[#allocation49_spill] sm:$0xff] }
 0x26e   : > { %3325 = vmatmul.mubr.f32.gmra.mrb[94].mxu0 %v7558_v2  ;;  %11077 = vmatprep.subr.bf16.mxu1 %v14742_v40 }
 0x270   : > { %11047 = vmatpush3.bf16.msra.mxu0 %v14743_v8 }
 0x271   : > { %v7944_v45 = vpop.f32.mrb[40].mxu0  ;;  %11079 = vmatpush3.bf16.msra.mxu1 %v14742_v40  ;;  %11049 = vmatprep.subr.bf16.mxu0 %v14744_v44  ;;  %v14756_v40 = vld [vmem:[#allocation50_spill] sm:$0xff]  ;;  %v14758_v44 = vld [vmem:[#allocation51_spill] sm:$0xff] }
 0x272   : > { %v9152_v39 = vpop.f32.mrb[12].mxu1  ;;  %v7945_v5 = vpop.f32.mrb[41].mxu0  ;;  %11081 = vmatprep.subr.bf16.mxu1 %v14745_v9 }
 0x273   : > { %v7946_v10 = vadd.f32 %v7945_v5, %v7944_v45  ;;  %v2191_v18 = vpop.f32.mrb[13].mxu1  ;;  %v14759_v5 = vld [vmem:[#allocation52_spill] sm:$0xff] }
 0x274   : > { %11051 = vmatpush3.bf16.msra.mxu0 %v14746_v19 }
 0x275   : > { %v11856_v23 = vadd.f32 %v13439_v14, %v7946_v10  ;;  %v7947_v32 = vpop.f32.mrb[42].mxu0  ;;  %11083 = vmatpush3.bf16.msra.mxu1 %v14745_v9  ;;  %11053 = vmatprep.subr.bf16.mxu0 %v14747_v33  ;;  %v14751_v14 = vld [vmem:[#allocation46_spill] sm:$0xff] }
 0x276   : > { %v9155_v36 = vpop.f32.mrb[14].mxu1  ;;  %v7948_v28 = vpop.f32.mrb[43].mxu0  ;;  %11085 = vmatprep.subr.bf16.mxu1 %v14748_v16 }
 0x277   : > { %v13491_v63 = vadd.f32 %v11856_v23, %v2191_v18  ;;  %v7949_v50 = vadd.f32 %v7948_v28, %v7947_v32  ;;  %v2201_v11 = vpop.f32.mrb[15].mxu1 }
 0x278   : > { %11055 = vmatpush3.bf16.msra.mxu0 %v14750_v34 }
 0x279   : > { %14749 = vst [vmem:[#allocation16_spill] sm:$0xff] %v13491_v63  ;;  %v11853_v6 = vadd.f32 %v13445_v27, %v7949_v50  ;;  %v7950_v2 = vpop.f32.mrb[44].mxu0  ;;  %11087 = vmatpush3.bf16.msra.mxu1 %v14748_v16  ;;  %11057 = vmatprep.subr.bf16.mxu0 %v14751_v14  ;;  %v14795_v63 = vld [vmem:[#allocation80_spill] sm:$0xff] }
 0x27a   : > { %v7951_v58 = vpop.f32.mrb[45].mxu0  ;;  %11089 = vmatprep.subr.bf16.mxu1 %v14752_v48 }
 0x27b   : > { %v13498_v43 = vadd.f32 %v11853_v6, %v9152_v39  ;;  %v7952_v15 = vadd.f32 %v7951_v58, %v7950_v2 }
 0x27c   : > { %11059 = vmatpush3.bf16.msra.mxu0 %v14754_v60 }
 0x27d   : > { %14753 = vst [vmem:[#allocation17_spill] sm:$0xff] %v13498_v43  ;;  %v11862_v17 = vadd.f32 %v13452_v41, %v7952_v15  ;;  %v7953_v47 = vpop.f32.mrb[46].mxu0  ;;  %11091 = vmatpush3.bf16.msra.mxu1 %v14752_v48  ;;  %11061 = vmatprep.subr.bf16.mxu0 %v14755_v13  ;;  %v14760_v41 = vld [vmem:[#allocation53_spill] sm:$0xff]  ;;  %v14785_v43 = vld [vmem:[#allocation71_spill] sm:$0xff] }
 0x27e   : > { %v7954_v27 = vpop.f32.mrb[47].mxu0  ;;  %11093 = vmatprep.subr.bf16.mxu1 %v14756_v40 }
 0x27f   : > { %v13505_v8 = vadd.f32 %v11862_v17, %v2201_v11  ;;  %v7955_v45 = vadd.f32 %v7954_v27, %v7953_v47 }
 0x280   : > { %11063 = vmatpush3.bf16.msra.mxu0 %v14758_v44 }
 0x281   : > { %14757 = vst [vmem:[#allocation18_spill] sm:$0xff] %v13505_v8  ;;  %v11859_v39 = vadd.f32 %v13459_v7, %v7955_v45  ;;  %11095 = vmatpush3.bf16.msra.mxu1 %v14756_v40  ;;  %11097 = vmatprep.subr.bf16.mxu0 %v14759_v5  ;;  %v14782_v8 = vld [vmem:[#allocation68_spill] sm:$0xff] }
 0x282   : > { %11129 = vmatprep.subr.bf16.mxu1 %v14760_v41 }
 0x283   : > { %v13512_v9 = vadd.f32 %v11859_v39, %v9155_v36 }
 0x285   : > { %14761 = vst [vmem:[#allocation19_spill] sm:$0xff] %v13512_v9  ;;  %v14776_v9 = vld [vmem:[#allocation62_spill] sm:$0xff] }
 0x291   : > { %v8008_v10 = vpop.f32.mrb[48].mxu0 }
 0x292   : > { %v8009_v18 = vpop.f32.mrb[49].mxu0 }
 0x293   : > { %v8010_v19 = vadd.f32 %v8009_v18, %v8008_v10 }
 0x295   : > { %v8011_v23 = vpop.f32.mrb[50].mxu0 }
 0x296   : > { %v8012_v32 = vpop.f32.mrb[51].mxu0 }
 0x297   : > { %v8013_v33 = vadd.f32 %v8012_v32, %v8011_v23 }
 0x299   : > { %v8014_v28 = vpop.f32.mrb[52].mxu0 }
 0x29a   : > { %v8015_v16 = vpop.f32.mrb[53].mxu0 }
 0x29b   : > { %v8016_v50 = vadd.f32 %v8015_v16, %v8014_v28 }
 0x29d   : > { %v8017_v11 = vpop.f32.mrb[54].mxu0 }
 0x29e   : > { %v8018_v34 = vpop.f32.mrb[55].mxu0 }
 0x29f   : > { %v8019_v7 = vadd.f32 %v8018_v34, %v8017_v11 }
 0x2b2   : > { %v8072_v6 = vpop.f32.mrb[56].mxu0 }
 0x2b3   : > { %v8073_v2 = vpop.f32.mrb[57].mxu0 }
 0x2b4   : > { %v8074_v14 = vadd.f32 %v8073_v2, %v8072_v6 }
 0x2b6   : > { %v11867_v58 = vadd.f32 %v8074_v14, %v8010_v19  ;;  %v8075_v48 = vpop.f32.mrb[58].mxu0 }
 0x2b7   : > { %v8076_v15 = vpop.f32.mrb[59].mxu0 }
 0x2b8   : > { %v8077_v36 = vadd.f32 %v8076_v15, %v8075_v48 }
 0x2ba   : > { %v11864_v60 = vadd.f32 %v8077_v36, %v8013_v33  ;;  %v8078_v17 = vpop.f32.mrb[60].mxu0  ;;  %v14772_v36 = vld [vmem:[#allocation58_spill] sm:$0xff] }
 0x2bb   : > { %v8079_v47 = vpop.f32.mrb[61].mxu0 }
 0x2bc   : > { %v8080_v13 = vadd.f32 %v8079_v47, %v8078_v17 }
 0x2be   : > { %v11873_v27 = vadd.f32 %v8080_v13, %v8016_v50  ;;  %v8081_v40 = vpop.f32.mrb[62].mxu0  ;;  %v14773_v50 = vld [vmem:[#allocation59_spill] sm:$0xff] }
 0x2bf   : > { %v8082_v45 = vpop.f32.mrb[63].mxu0 }
 0x2c0   : > { %v8083_v44 = vadd.f32 %v8082_v45, %v8081_v40  ;;  %v14770_v45 = vld [vmem:[#allocation56_spill] sm:$0xff] }
 0x2c2   : > { %v11870_v39 = vadd.f32 %v8083_v44, %v8019_v7 }
 0x2d3   : > { %v8136_v5 = vpop.f32.mrb[64].mxu0 }
 0x2d4   : > { %v9266_v10 = vpop.f32.mrb[16].mxu1  ;;  %v8137_v18 = vpop.f32.mrb[65].mxu0 }
 0x2d5   : > { %v8138_v23 = vadd.f32 %v8137_v18, %v8136_v5  ;;  %v2852_v32 = vpop.f32.mrb[17].mxu1 }
 0x2d7   : > { %v11868_v28 = vadd.f32 %v11867_v58, %v8138_v23  ;;  %v8139_v16 = vpop.f32.mrb[66].mxu0 }
 0x2d8   : > { %v9269_v19 = vpop.f32.mrb[18].mxu1  ;;  %v8140_v11 = vpop.f32.mrb[67].mxu0 }
 0x2d9   : > { %v13514_v34 = vadd.f32 %v11868_v28, %v2852_v32  ;;  %v8141_v33 = vadd.f32 %v8140_v11, %v8139_v16  ;;  %v2862_v6 = vpop.f32.mrb[19].mxu1 }
 0x2db   : > { %14762 = vst [vmem:[#allocation20_spill] sm:$0xff] %v13514_v34  ;;  %v11865_v2 = vadd.f32 %v11864_v60, %v8141_v33  ;;  %v8142_v14 = vpop.f32.mrb[68].mxu0 }
 0x2dc   : > { %v8143_v48 = vpop.f32.mrb[69].mxu0 }
 0x2dd   : > { %v13518_v7 = vadd.f32 %v11865_v2, %v9266_v10  ;;  %v8144_v15 = vadd.f32 %v8143_v48, %v8142_v14 }
 0x2df   : > { %14763 = vst [vmem:[#allocation21_spill] sm:$0xff] %v13518_v7  ;;  %v11874_v58 = vadd.f32 %v11873_v27, %v8144_v15  ;;  %v8145_v17 = vpop.f32.mrb[70].mxu0  ;;  %v14783_v7 = vld [vmem:[#allocation69_spill] sm:$0xff] }
 0x2e0   : > { %v8146_v47 = vpop.f32.mrb[71].mxu0 }
 0x2e1   : > { %v13522_v13 = vadd.f32 %v11874_v58, %v2862_v6  ;;  %v8147_v40 = vadd.f32 %v8146_v47, %v8145_v17  ;;  %v14768_v58 = vld [vmem:[#allocation54_spill] sm:$0xff] }
 0x2e3   : > { %14764 = vst [vmem:[#allocation22_spill] sm:$0xff] %v13522_v13  ;;  %v11871_v44 = vadd.f32 %v11870_v39, %v8147_v40  ;;  %v14779_v13 = vld [vmem:[#allocation65_spill] sm:$0xff] }
 0x2e5   : > { %v13526_v5 = vadd.f32 %v11871_v44, %v9269_v19  ;;  %v14769_v44 = vld [vmem:[#allocation55_spill] sm:$0xff] }
 0x2e7   : > { %14765 = vst [vmem:[#allocation23_spill] sm:$0xff] %v13526_v5 }
 0x2f4   : > { %v13530_v10 = vpop.f32.mrb[72].mxu0 }
 0x2f5   : > { %v13532_v18 = vpop.f32.mrb[73].mxu0  ;;  %v13534_v23 = vpop.f32.mrb[20].mxu1 }
 0x2f6   : > { %v13536_v27 = vpop.f32.mrb[21].mxu1 }
 0x2f8   : > { %v13538_v32 = vpop.f32.mrb[74].mxu0 }
 0x2f9   : > { %v13540_v28 = vpop.f32.mrb[75].mxu0 }
 0x2fb   : > { %v13542_v16 = vpop.f32.mrb[22].mxu1 }
 0x2fc   : > { %v13544_v39 = vpop.f32.mrb[76].mxu0  ;;  %v13546_v19 = vpop.f32.mrb[23].mxu1 }
 0x2fd   : > { %v13548_v11 = vpop.f32.mrb[77].mxu0 }
 0x300   : > { %v13550_v33 = vpop.f32.mrb[78].mxu0 }
 0x301   : > { %14766 = vst [vmem:[#allocation24_spill] sm:$0xff] %v13550_v33  ;;  %v13552_v6 = vpop.f32.mrb[79].mxu0 }
 0x302   : > { %14767 = vst [vmem:[#allocation25_spill] sm:$0xff] %v13552_v6 }
 0x314   : > { %v13554_v2 = vpop.f32.mrb[80].mxu0 }
 0x315   : > { %v13556_v14 = vpop.f32.mrb[24].mxu1  ;;  %v13558_v48 = vpop.f32.mrb[81].mxu0 }
 0x316   : > { %v13560_v15 = vpop.f32.mrb[25].mxu1  ;;  %3480 = vmatprep.mubr.f32.mxu0 %v13558_v48 }
 0x317   : > { %9416 = vmatprep.mubr.f32.mxu1 %v13560_v15  ;;  %3481 = vmatmul.mubr.f32.vlgmr.msra.gmra.mrb[96].mxu0 %v13554_v2 }
 0x318   : > { %9417 = vmatmul.mubr.f32.vlgmr.msra.gmra.mrb[32].mxu1 %v13556_v14  ;;  %11099 = vmatpush3.bf16.msra.mxu0 %v14768_v58  ;;  %v13567_v17 = vpop.f32.mrb[82].mxu0  ;;  %v14771_v58 = vld [vmem:[#allocation57_spill] sm:$0xff] }
 0x319   : > { %11131 = vmatpush3.bf16.msra.mxu1 %v14760_v41  ;;  %v13570_v47 = vpop.f32.mrb[26].mxu1  ;;  %v13572_v40 = vpop.f32.mrb[83].mxu0  ;;  %11101 = vmatprep.subr.bf16.mxu0 %v14769_v44 }
 0x31a   : > { %v13575_v60 = vpop.f32.mrb[27].mxu1  ;;  %3485 = vmatprep.mubr.f32.mxu0 %v13572_v40  ;;  %11133 = vmatprep.subr.bf16.mxu1 %v14770_v45 }
 0x31b   : > { %9419 = vmatprep.mubr.f32.mxu1 %v13575_v60  ;;  %3486 = vmatmul.mubr.f32.gmra.mrb[98].mxu0 %v13567_v17 }
 0x31c   : > { %9420 = vmatmul.mubr.f32.gmra.mrb[34].mxu1 %v13570_v47  ;;  %11103 = vmatpush3.bf16.msra.mxu0 %v14771_v58  ;;  %v13583_v41 = vpop.f32.mrb[84].mxu0 }
 0x31d   : > { %11135 = vmatpush3.bf16.msra.mxu1 %v14770_v45  ;;  %9454 = vmatprep.mubr.f32.mxu1 %v13536_v27  ;;  %v13587_v44 = vpop.f32.mrb[85].mxu0  ;;  %v14775_v45 = vld [vmem:[#allocation61_spill] sm:$0xff] }
 0x31e   : > { %3490 = vmatprep.mubr.f32.mxu0 %v13587_v44  ;;  %11105 = vmatprep.subr.bf16.mxu0 %v14772_v36  ;;  %v14777_v36 = vld [vmem:[#allocation63_spill] sm:$0xff] }
 0x31f   : > { %11137 = vmatprep.subr.bf16.mxu1 %v14773_v50  ;;  %3491 = vmatmul.mubr.f32.gmra.mrb[100].mxu0 %v13583_v41 }
 0x320   : > { %11107 = vmatpush3.bf16.msra.mxu0 %v14774_v54  ;;  %v13594_v5 = vpop.f32.mrb[86].mxu0  ;;  %v14778_v54 = vld [vmem:[#allocation64_spill] sm:$0xff] }
 0x321   : > { %11139 = vmatpush3.bf16.msra.mxu1 %v14773_v50  ;;  %v13597_v58 = vpop.f32.mrb[87].mxu0  ;;  %11109 = vmatprep.subr.bf16.mxu0 %v14775_v45  ;;  %v14780_v50 = vld [vmem:[#allocation66_spill] sm:$0xff]  ;;  %v14781_v45 = vld [vmem:[#allocation67_spill] sm:$0xff] }
 0x322   : > { %3495 = vmatprep.mubr.f32.mxu0 %v13597_v58  ;;  %11141 = vmatprep.subr.bf16.mxu1 %v14776_v9 }
 0x323   : > { %3496 = vmatmul.mubr.f32.gmra.mrb[102].mxu0 %v13594_v5 }
 0x324   : > { %11111 = vmatpush3.bf16.msra.mxu0 %v14777_v36  ;;  %3650 = vmatprep.mubr.f32.mxu0 %v13532_v18  ;;  %v14784_v36 = vld [vmem:[#allocation70_spill] sm:$0xff] }
 0x325   : > { %11143 = vmatpush3.bf16.msra.mxu1 %v14776_v9  ;;  %11113 = vmatprep.subr.bf16.mxu0 %v14778_v54  ;;  %v14786_v9 = vld [vmem:[#allocation72_spill] sm:$0xff]  ;;  %v14787_v54 = vld [vmem:[#allocation73_spill] sm:$0xff] }
 0x326   : > { %11145 = vmatprep.subr.bf16.mxu1 %v14779_v13 }
 0x328   : > { %11115 = vmatpush3.bf16.msra.mxu0 %v14780_v50  ;;  %v14788_v50 = vld [vmem:[#allocation74_spill] sm:$0xff] }
 0x329   : > { %11147 = vmatpush3.bf16.msra.mxu1 %v14779_v13  ;;  %11117 = vmatprep.subr.bf16.mxu0 %v14781_v45  ;;  %v14789_v13 = vld [vmem:[#allocation75_spill] sm:$0xff]  ;;  %v14790_v45 = vld [vmem:[#allocation76_spill] sm:$0xff] }
 0x32a   : > { %11149 = vmatprep.subr.bf16.mxu1 %v14782_v8 }
 0x32c   : > { %11119 = vmatpush3.bf16.msra.mxu0 %v14783_v7 }
 0x32d   : > { %11151 = vmatpush3.bf16.msra.mxu1 %v14782_v8  ;;  %11121 = vmatprep.subr.bf16.mxu0 %v14784_v36  ;;  %v14791_v8 = vld [vmem:[#allocation77_spill] sm:$0xff] }
 0x32e   : > { %11153 = vmatprep.subr.bf16.mxu1 %v14785_v43 }
 0x330   : > { %11123 = vmatpush3.bf16.msra.mxu0 %v14786_v9  ;;  %v14793_v9 = vld [vmem:[#allocation78_spill] sm:$0xff] }
 0x331   : > { %11155 = vmatpush3.bf16.msra.mxu1 %v14785_v43  ;;  %11125 = vmatprep.subr.bf16.mxu0 %v14787_v54 }
 0x332   : > { %11157 = vmatprep.subr.bf16.mxu1 %v14788_v50 }
 0x334   : > { %11127 = vmatpush3.bf16.msra.mxu0 %v14789_v13 }
 0x335   : > { %11159 = vmatpush3.bf16.msra.mxu1 %v14788_v50  ;;  %11161 = vmatprep.subr.bf16.mxu0 %v14790_v45  ;;  %v13623_v7 = vpop.f32.mrb[88].mxu0  ;;  %v14794_v50 = vld [vmem:[#allocation79_spill] sm:$0xff] }
 0x336   : > { %11193 = vmatprep.subr.bf16.mxu1 %v14791_v8  ;;  %v13626_v36 = vpop.f32.mrb[28].mxu1  ;;  %v13628_v34 = vpop.f32.mrb[89].mxu0 }
 0x337   : > { %14792 = vst [vmem:[#allocation26_spill] sm:$0xff] %v13628_v34  ;;  %3651 = vmatmul.mubr.f32.vlgmr.msra.gmra.mrb[104].mxu0 %v13530_v10  ;;  %v13631_v43 = vpop.f32.mrb[29].mxu1 }
 0x338   : > { %9455 = vmatmul.mubr.f32.vlgmr.msra.gmra.mrb[32].mxu1 %v13534_v23  ;;  %3655 = vmatprep.mubr.f32.mxu0 %v13540_v28 }
 0x339   : > { %9457 = vmatprep.mubr.f32.mxu1 %v13546_v19  ;;  %11163 = vmatpush3.bf16.msra.mxu0 %v14793_v9  ;;  %v13637_v54 = vpop.f32.mrb[90].mxu0  ;;  %v14796_v9 = vld [vmem:[#allocation81_spill] sm:$0xff] }
 0x33a   : > { %11195 = vmatpush3.bf16.msra.mxu1 %v14791_v8  ;;  %11165 = vmatprep.subr.bf16.mxu0 %v14794_v50  ;;  %v13641_v13 = vpop.f32.mrb[30].mxu1  ;;  %v13643_v45 = vpop.f32.mrb[91].mxu0  ;;  %v14797_v50 = vld [vmem:[#allocation82_spill] sm:$0xff] }
 0x33b   : > { %3656 = vmatmul.mubr.f32.gmra.mrb[106].mxu0 %v13538_v32  ;;  %11197 = vmatprep.subr.bf16.mxu1 %v14795_v63  ;;  %v13647_v35 = vpop.f32.mrb[31].mxu1 }
 0x33c   : > { %9458 = vmatmul.mubr.f32.gmra.mrb[34].mxu1 %v13542_v16  ;;  %3660 = vmatprep.mubr.f32.mxu0 %v13548_v11 }
 0x33d   : > { %11167 = vmatpush3.bf16.msra.mxu0 %v14796_v9  ;;  %9492 = vmatprep.mubr.f32.mxu1 %v13631_v43  ;;  %v13653_v8 = vpop.f32.mrb[92].mxu0  ;;  %v14800_v9 = vld [vmem:[#allocation85_spill] sm:$0xff] }
 0x33e   : > { %11199 = vmatpush3.bf16.msra.mxu1 %v14795_v63  ;;  %11169 = vmatprep.subr.bf16.mxu0 %v14797_v50  ;;  %v13657_v37 = vpop.f32.mrb[93].mxu0  ;;  %v14801_v63 = vld [vmem:[#allocation86_spill] sm:$0xff]  ;;  %v14802_v50 = vld [vmem:[#allocation87_spill] sm:$0xff] }
 0x33f   : > { %3661 = vmatmul.mubr.f32.gmra.mrb[108].mxu0 %v13544_v39  ;;  %11201 = vmatprep.subr.bf16.mxu1 %v14798_v3 }
 0x340   : > { %3665 = vmatprep.mubr.f32.mxu0 %v13552_v6  ;;  %v14803_v6 = vld [vmem:[#allocation88_spill] sm:$0xff] }
 0x341   : > { %11171 = vmatpush3.bf16.msra.mxu0 %v14799_v53  ;;  %v13663_v57 = vpop.f32.mrb[94].mxu0  ;;  %v14804_v53 = vld [vmem:[#allocation89_spill] sm:$0xff] }
 0x342   : > { %11203 = vmatpush3.bf16.msra.mxu1 %v14798_v3  ;;  %11173 = vmatprep.subr.bf16.mxu0 %v14800_v9  ;;  %v13667_v25 = vpop.f32.mrb[95].mxu0  ;;  %v14806_v3 = vld [vmem:[#allocation91_spill] sm:$0xff]  ;;  %v14807_v9 = vld [vmem:[#allocation92_spill] sm:$0xff] }
 0x343   : > { %3666 = vmatmul.mubr.f32.gmra.mrb[110].mxu0 %v13550_v33  ;;  %11205 = vmatprep.subr.bf16.mxu1 %v14801_v63  ;;  %v14808_v33 = vld [vmem:[#allocation93_spill] sm:$0xff] }
 0x344   : > { %3820 = vmatprep.mubr.f32.mxu0 %v13628_v34  ;;  %v14809_v34 = vld [vmem:[#allocation94_spill] sm:$0xff] }
 0x345   : > { %11175 = vmatpush3.bf16.msra.mxu0 %v14802_v50  ;;  %v14810_v50 = vld [vmem:[#allocation95_spill] sm:$0xff] }
 0x346   : > { %11207 = vmatpush3.bf16.msra.mxu1 %v14801_v63  ;;  %11177 = vmatprep.subr.bf16.mxu0 %v14803_v6  ;;  %v14811_v63 = vld [vmem:[#allocation96_spill] sm:$0xff]  ;;  %v14812_v6 = vld [vmem:[#allocation97_spill] sm:$0xff] }
 0x347   : > { %11209 = vmatprep.subr.bf16.mxu1 %v14804_v53 }
 0x349   : > { %11179 = vmatpush3.bf16.msra.mxu0 %v14805_v26  ;;  %v14813_v26 = vld [vmem:[#allocation98_spill] sm:$0xff] }
 0x34a   : > { %11211 = vmatpush3.bf16.msra.mxu1 %v14804_v53  ;;  %11181 = vmatprep.subr.bf16.mxu0 %v14806_v3  ;;  %v14814_v53 = vld [vmem:[#allocation99_spill] sm:$0xff]  ;;  %v14815_v3 = vld [vmem:[#allocation100_spill] sm:$0xff] }
 0x34b   : > { %11213 = vmatprep.subr.bf16.mxu1 %v14807_v9 }
 0x34d   : > { %11183 = vmatpush3.bf16.msra.mxu0 %v14808_v33  ;;  %v14816_v33 = vld [vmem:[#allocation101_spill] sm:$0xff] }
 0x34e   : > { %11215 = vmatpush3.bf16.msra.mxu1 %v14807_v9  ;;  %11185 = vmatprep.subr.bf16.mxu0 %v14809_v34  ;;  %v14817_v34 = vld [vmem:[#allocation102_spill] sm:$0xff]  ;;  %v14818_v9 = vld [vmem:[#allocation103_spill] sm:$0xff] }
 0x34f   : > { %11217 = vmatprep.subr.bf16.mxu1 %v14810_v50 }
 0x351   : > { %11187 = vmatpush3.bf16.msra.mxu0 %v14811_v63  ;;  %v14820_v63 = vld [vmem:[#allocation105_spill] sm:$0xff] }
 0x352   : > { %11219 = vmatpush3.bf16.msra.mxu1 %v14810_v50  ;;  %11189 = vmatprep.subr.bf16.mxu0 %v14812_v6  ;;  %v14819_v50 = vld [vmem:[#allocation104_spill] sm:$0xff]  ;;  %v14821_v6 = vld [vmem:[#allocation106_spill] sm:$0xff] }
 0x353   : > { %11221 = vmatprep.subr.bf16.mxu1 %v14813_v26 }
 0x355   : > { %11191 = vmatpush3.bf16.msra.mxu0 %v14814_v53  ;;  %v14823_v53 = vld [vmem:[#allocation108_spill] sm:$0xff] }
 0x356   : > { %11223 = vmatpush3.bf16.msra.mxu1 %v14813_v26  ;;  %11225 = vmatprep.subr.bf16.mxu0 %v14815_v3  ;;  %v14822_v26 = vld [vmem:[#allocation107_spill] sm:$0xff] }
 0x357   : > { %11257 = vmatprep.subr.bf16.mxu1 %v14816_v33  ;;  %v14826_v3 = vld [vmem:[#allocation111_spill] sm:$0xff] }
 0x358   : > { %3821 = vmatmul.mubr.f32.vlgmr.msra.gmra.mrb[112].mxu0 %v13623_v7 }
 0x359   : > { %9493 = vmatmul.mubr.f32.vlgmr.msra.gmra.mrb[32].mxu1 %v13626_v36  ;;  %11227 = vmatpush3.bf16.msra.mxu0 %v14817_v34  ;;  %v14829_v34 = vld [vmem:[#allocation114_spill] sm:$0xff] }
 0x35a   : > { %11259 = vmatpush3.bf16.msra.mxu1 %v14816_v33  ;;  %3825 = vmatprep.mubr.f32.mxu0 %v13643_v45  ;;  %v14827_v33 = vld [vmem:[#allocation112_spill] sm:$0xff] }
 0x35b   : > { %9495 = vmatprep.mubr.f32.mxu1 %v13647_v35  ;;  %11229 = vmatprep.subr.bf16.mxu0 %v14818_v9  ;;  %v14830_v9 = vld [vmem:[#allocation115_spill] sm:$0xff] }
 0x35c   : > { %3826 = vmatmul.mubr.f32.gmra.mrb[114].mxu0 %v13637_v54  ;;  %11261 = vmatprep.subr.bf16.mxu1 %v12927_v0 }
 0x35d   : > { %9496 = vmatmul.mubr.f32.gmra.mrb[34].mxu1 %v13641_v13  ;;  %11231 = vmatpush3.bf16.msra.mxu0 %v14819_v50  ;;  %v14831_v50 = vld [vmem:[#allocation116_spill] sm:$0xff] }
 0x35e   : > { %11263 = vmatpush3.bf16.msra.mxu1 %v12927_v0  ;;  %9530 = vmatprep.mubr.f32.mxu1 %v13560_v15  ;;  %v14824_v0 = vld [vmem:[#allocation109_spill] sm:$0xff]  ;;  %v14825_v15 = vld [vmem:[#allocation110_spill] sm:$0xff] }
 0x35f   : > { %3830 = vmatprep.mubr.f32.mxu0 %v13657_v37  ;;  %11233 = vmatprep.subr.bf16.mxu0 %v14820_v63  ;;  %v14833_v63 = vld [vmem:[#allocation118_spill] sm:$0xff] }
 0x360   : > { %3831 = vmatmul.mubr.f32.gmra.mrb[116].mxu0 %v13653_v8  ;;  %11265 = vmatprep.subr.bf16.mxu1 %v12949_v55 }
 0x361   : > { %11235 = vmatpush3.bf16.msra.mxu0 %v14821_v6  ;;  %3835 = vmatprep.mubr.f32.mxu0 %v13667_v25  ;;  %v14834_v6 = vld [vmem:[#allocation119_spill] sm:$0xff] }
 0x362   : > { %11267 = vmatpush3.bf16.msra.mxu1 %v12949_v55  ;;  %11237 = vmatprep.subr.bf16.mxu0 %v14822_v26  ;;  %v14828_v55 = vld [vmem:[#allocation113_spill] sm:$0xff]  ;;  %v14835_v26 = vld [vmem:[#allocation120_spill] sm:$0xff] }
 0x363   : > { %11269 = vmatprep.subr.bf16.mxu1 %v14823_v53 }
 0x364   : > { %3836 = vmatmul.mubr.f32.gmra.mrb[118].mxu0 %v13663_v57 }
 0x365   : > { %11239 = vmatpush3.bf16.msra.mxu0 %v14824_v0  ;;  %3998 = vmatprep.mubr.f32.mxu0 %v13558_v48  ;;  %v14832_v48 = vld [vmem:[#allocation117_spill] sm:$0xff] }
 0x366   : > { %11271 = vmatpush3.bf16.msra.mxu1 %v14823_v53  ;;  %11241 = vmatprep.subr.bf16.mxu0 %v14825_v15 }
 0x367   : > { %11273 = vmatprep.subr.bf16.mxu1 %v14826_v3 }
 0x369   : > { %11243 = vmatpush3.bf16.msra.mxu0 %v14827_v33 }
 0x36a   : > { %11275 = vmatpush3.bf16.msra.mxu1 %v14826_v3  ;;  %11245 = vmatprep.subr.bf16.mxu0 %v14828_v55 }
 0x36b   : > { %11277 = vmatprep.subr.bf16.mxu1 %v14829_v34 }
 0x36d   : > { %11247 = vmatpush3.bf16.msra.mxu0 %v14830_v9 }
 0x36e   : > { %11279 = vmatpush3.bf16.msra.mxu1 %v14829_v34  ;;  %11249 = vmatprep.subr.bf16.mxu0 %v14831_v50 }
 0x36f   : > { %11281 = vmatprep.subr.bf16.mxu1 %v14832_v48 }
 0x371   : > { %11251 = vmatpush3.bf16.msra.mxu0 %v14833_v63 }
 0x372   : > { %11283 = vmatpush3.bf16.msra.mxu1 %v14832_v48  ;;  %11253 = vmatprep.subr.bf16.mxu0 %v14834_v6 }
 0x373   : > { %11285 = vmatprep.subr.bf16.mxu1 %v13034_v42 }
 0x375   : > { %11255 = vmatpush3.bf16.msra.mxu0 %v14835_v26 }
 0x376   : > { %11287 = vmatpush3.bf16.msra.mxu1 %v13034_v42  ;;  %11289 = vmatprep.subr.bf16.mxu0 %v13045_v38  ;;  %v14836_v42 = vld [vmem:[#allocation121_spill] sm:$0xff]  ;;  %v14838_v38 = vld [vmem:[#allocation123_spill] sm:$0xff] }
 0x377   : > { %11321 = vmatprep.subr.bf16.mxu1 %v13048_v61 }
 0x378   : > { %3999 = vmatmul.mubr.f32.vlgmr.msra.gmra.mrb[120].mxu0 %v13554_v2 }
 0x379   : > { %9531 = vmatmul.mubr.f32.vlgmr.msra.gmra.mrb[36].mxu1 %v13556_v14  ;;  %4003 = vmatprep.mubr.f32.mxu0 %v13572_v40 }
 0x37a   : > { %9533 = vmatprep.mubr.f32.mxu1 %v13575_v60  ;;  %11291 = vmatpush3.bf16.msra.mxu0 %v13059_v56  ;;  %v14840_v56 = vld [vmem:[#allocation125_spill] sm:$0xff]  ;;  %v14857_v60 = vld [vmem:[#allocation139_spill] sm:$0xff] }
 0x37b   : > { %11323 = vmatpush3.bf16.msra.mxu1 %v13048_v61  ;;  %11293 = vmatprep.subr.bf16.mxu0 %v13062_v20  ;;  %v14839_v61 = vld [vmem:[#allocation124_spill] sm:$0xff]  ;;  %v14841_v20 = vld [vmem:[#allocation126_spill] sm:$0xff] }
 0x37c   : > { %4004 = vmatmul.mubr.f32.gmra.mrb[122].mxu0 %v13567_v17  ;;  %11325 = vmatprep.subr.bf16.mxu1 %v13067_v52 }
 0x37d   : > { %9534 = vmatmul.mubr.f32.gmra.mrb[38].mxu1 %v13570_v47  ;;  %4008 = vmatprep.mubr.f32.mxu0 %v13587_v44 }
 0x37e   : > { %11295 = vmatpush3.bf16.msra.mxu0 %v13077_v49  ;;  %9568 = vmatprep.mubr.f32.mxu1 %v13536_v27  ;;  %v14842_v49 = vld [vmem:[#allocation127_spill] sm:$0xff] }
 0x37f   : > { %11327 = vmatpush3.bf16.msra.mxu1 %v13067_v52  ;;  %11297 = vmatprep.subr.bf16.mxu0 %v13081_v29  ;;  %v14837_v52 = vld [vmem:[#allocation122_spill] sm:$0xff]  ;;  %v14843_v29 = vld [vmem:[#allocation128_spill] sm:$0xff]  ;;  %v14861_v27 = vld [vmem:[#allocation143_spill] sm:$0xff] }
 0x380   : > { %4009 = vmatmul.mubr.f32.gmra.mrb[124].mxu0 %v13583_v41  ;;  %11329 = vmatprep.subr.bf16.mxu1 %v13087_v24 }
 0x381   : > { %4013 = vmatprep.mubr.f32.mxu0 %v13597_v58 }
 0x382   : > { %11299 = vmatpush3.bf16.msra.mxu0 %v13097_v46  ;;  %v14845_v46 = vld [vmem:[#allocation130_spill] sm:$0xff] }
 0x383   : > { %11331 = vmatpush3.bf16.msra.mxu1 %v13087_v24  ;;  %11301 = vmatprep.subr.bf16.mxu0 %v13101_v51  ;;  %v14844_v24 = vld [vmem:[#allocation129_spill] sm:$0xff]  ;;  %v14846_v51 = vld [vmem:[#allocation131_spill] sm:$0xff] }
 0x384   : > { %4014 = vmatmul.mubr.f32.gmra.mrb[126].mxu0 %v13594_v5  ;;  %11333 = vmatprep.subr.bf16.mxu1 %v13107_v59  ;;  %v14854_v5 = vld [vmem:[#allocation26_spill] sm:$0xff] }
 0x385   : > { %4168 = vmatprep.mubr.f32.mxu0 %v13532_v18  ;;  %v14859_v18 = vld [vmem:[#allocation141_spill] sm:$0xff] }
 0x386   : > { %11303 = vmatpush3.bf16.msra.mxu0 %v14836_v42 }
 0x387   : > { %11335 = vmatpush3.bf16.msra.mxu1 %v13107_v59  ;;  %11305 = vmatprep.subr.bf16.mxu0 %v14837_v52  ;;  %v14847_v59 = vld [vmem:[#allocation132_spill] sm:$0xff] }
 0x388   : > { %11337 = vmatprep.subr.bf16.mxu1 %v14838_v38 }
 0x38a   : > { %11307 = vmatpush3.bf16.msra.mxu0 %v14839_v61  ;;  %v7561_v61 = vld [vmem:[%s12056_s25 + $0x10] sm:$0xff] }
 0x38b   : > { %11339 = vmatpush3.bf16.msra.mxu1 %v14838_v38  ;;  %11309 = vmatprep.subr.bf16.mxu0 %v14840_v56 }
 0x38c   : > { %11341 = vmatprep.subr.bf16.mxu1 %v14841_v20 }
 0x38e   : > { %11311 = vmatpush3.bf16.msra.mxu0 %v14842_v49 }
 0x38f   : > { %11343 = vmatpush3.bf16.msra.mxu1 %v14841_v20  ;;  %11313 = vmatprep.subr.bf16.mxu0 %v14843_v29 }
 0x390   : > { %11345 = vmatprep.subr.bf16.mxu1 %v14844_v24 }
 0x392   : > { %11315 = vmatpush3.bf16.msra.mxu0 %v14845_v46  ;;  %v14868_v46 = vld [vmem:[#allocation16_spill] sm:$0xff] }
 0x393   : > { %11347 = vmatpush3.bf16.msra.mxu1 %v14844_v24  ;;  %11317 = vmatprep.subr.bf16.mxu0 %v14846_v51  ;;  %v14869_v51 = vld [vmem:[#allocation20_spill] sm:$0xff] }
 0x394   : > { %11349 = vmatprep.subr.bf16.mxu1 %v13174_v21 }
 0x396   : > { %11319 = vmatpush3.bf16.msra.mxu0 %v14847_v59  ;;  %v14870_v59 = vmax.f32 %v14868_v46, %v14869_v51  ;;  %v4452_v51 = vld [vmem:[%s12051_s21] sm:$0x7] }
 0x397   : > { %11351 = vmatpush3.bf16.msra.mxu1 %v13174_v21  ;;  %11353 = vmatprep.subr.bf16.mxu0 %v13185_v22  ;;  %v14848_v21 = vld [vmem:[#allocation133_spill] sm:$0xff] }
 0x398   : > { %11385 = vmatprep.subr.bf16.mxu1 %v13188_v62  ;;  %v14849_v22 = vld [vmem:[#allocation25_spill] sm:$0xff] }
 0x399   : > { %4169 = vmatmul.mubr.f32.vlgmr.msra.gmra.mrb[128].mxu0 %v13530_v10  ;;  %v14858_v10 = vld [vmem:[#allocation140_spill] sm:$0xff] }
 0x39a   : > { %9569 = vmatmul.mubr.f32.vlgmr.msra.gmra.mrb[36].mxu1 %v13534_v23  ;;  %4173 = vmatprep.mubr.f32.mxu0 %v13540_v28  ;;  %v14860_v23 = vld [vmem:[#allocation142_spill] sm:$0xff]  ;;  %v14863_v28 = vld [vmem:[#allocation145_spill] sm:$0xff] }
 0x39b   : > { %9571 = vmatprep.mubr.f32.mxu1 %v13546_v19  ;;  %11355 = vmatpush3.bf16.msra.mxu0 %v13199_v12  ;;  %v14851_v12 = vld [vmem:[#allocation135_spill] sm:$0xff]  ;;  %v14866_v19 = vld [vmem:[#allocation148_spill] sm:$0xff] }
 0x39c   : > { %11387 = vmatpush3.bf16.msra.mxu1 %v13188_v62  ;;  %11357 = vmatprep.subr.bf16.mxu0 %v13202_v1  ;;  %v14850_v62 = vld [vmem:[#allocation134_spill] sm:$0xff]  ;;  %v14852_v1 = vld [vmem:[#allocation24_spill] sm:$0xff] }
 0x39d   : > { %4174 = vmatmul.mubr.f32.gmra.mrb[130].mxu0 %v13538_v32  ;;  %11389 = vmatprep.subr.bf16.mxu1 %v13207_v30  ;;  %v14862_v32 = vld [vmem:[#allocation144_spill] sm:$0xff] }
 0x39e   : > { %9572 = vmatmul.mubr.f32.gmra.mrb[38].mxu1 %v13542_v16  ;;  %4178 = vmatprep.mubr.f32.mxu0 %v13548_v11  ;;  %v14864_v16 = vld [vmem:[#allocation146_spill] sm:$0xff]  ;;  %v14867_v11 = vld [vmem:[#allocation149_spill] sm:$0xff] }
 0x39f   : > { %11359 = vmatpush3.bf16.msra.mxu0 %v13217_v31  ;;  %9606 = vmatprep.mubr.f32.mxu1 %v13631_v43  ;;  %v14853_v31 = vld [vmem:[#allocation136_spill] sm:$0xff] }
 0x3a0   : > { %11391 = vmatpush3.bf16.msra.mxu1 %v13207_v30  ;;  %11361 = vmatprep.subr.bf16.mxu0 %v13221_v4  ;;  %v14855_v30 = vld [vmem:[#allocation137_spill] sm:$0xff]  ;;  %v14856_v4 = vld [vmem:[#allocation138_spill] sm:$0xff] }
 0x3a1   : > { %4179 = vmatmul.mubr.f32.gmra.mrb[132].mxu0 %v13544_v39  ;;  %11393 = vmatprep.subr.bf16.mxu1 %v14848_v21  ;;  %v14865_v39 = vld [vmem:[#allocation147_spill] sm:$0xff] }
 0x3a2   : > { %4183 = vmatprep.mubr.f32.mxu0 %v14849_v22 }
 0x3a3   : > { %11363 = vmatpush3.bf16.msra.mxu0 %v14850_v62 }
 0x3a4   : > { %11395 = vmatpush3.bf16.msra.mxu1 %v14848_v21  ;;  %11365 = vmatprep.subr.bf16.mxu0 %v14851_v12 }
 0x3a5   : > { %4184 = vmatmul.mubr.f32.gmra.mrb[134].mxu0 %v14852_v1  ;;  %11397 = vmatprep.subr.bf16.mxu1 %v14853_v31 }
 0x3a6   : > { %4338 = vmatprep.mubr.f32.mxu0 %v14854_v5  ;;  %v4481_v5 = vld [vmem:[%s12056_s25] sm:$0xff] }
 0x3a7   : > { %11367 = vmatpush3.bf16.msra.mxu0 %v14855_v30  ;;  %v14871_v30 = vld [vmem:[#allocation17_spill] sm:$0xff] }
 0x3a8   : > { %11399 = vmatpush3.bf16.msra.mxu1 %v14853_v31  ;;  %11369 = vmatprep.subr.bf16.mxu0 %v14856_v4  ;;  %v14872_v4 = vld [vmem:[#allocation21_spill] sm:$0xff] }
 0x3a9   : > { %11401 = vmatprep.subr.bf16.mxu1 %v14857_v60 }
 0x3ab   : > { %11371 = vmatpush3.bf16.msra.mxu0 %v14858_v10 }
 0x3ac   : > { %11403 = vmatpush3.bf16.msra.mxu1 %v14857_v60  ;;  %11373 = vmatprep.subr.bf16.mxu0 %v14859_v18  ;;  %v14873_v60 = vmax.f32 %v14871_v30, %v14872_v4 }
 0x3ad   : > { %11405 = vmatprep.subr.bf16.mxu1 %v14860_v23 }
 0x3af   : > { %11375 = vmatpush3.bf16.msra.mxu0 %v14861_v27 }
 0x3b0   : > { %11407 = vmatpush3.bf16.msra.mxu1 %v14860_v23  ;;  %11377 = vmatprep.subr.bf16.mxu0 %v14862_v32 }
 0x3b1   : > { %11409 = vmatprep.subr.bf16.mxu1 %v14863_v28 }
 0x3b3   : > { %11379 = vmatpush3.bf16.msra.mxu0 %v14864_v16  ;;  %v14874_v16 = vld [vmem:[#allocation18_spill] sm:$0xff] }
 0x3b4   : > { %11411 = vmatpush3.bf16.msra.mxu1 %v14863_v28  ;;  %11381 = vmatprep.subr.bf16.mxu0 %v14865_v39  ;;  %v14875_v39 = vld [vmem:[#allocation22_spill] sm:$0xff] }
 0x3b5   : > { %11413 = vmatprep.subr.bf16.mxu1 %v14866_v19 }
 0x3b7   : > { %11383 = vmatpush3.bf16.msra.mxu0 %v14867_v11 }
 0x3b8   : > { %11415 = vmatpush3.bf16.msra.mxu1 %v14866_v19  ;;  %v14876_v19 = vmax.f32 %v14874_v16, %v14875_v39 }
 0x3ba   : > { %4339 = vmatmul.mubr.f32.vlgmr.msra.gmra.mrb[136].mxu0 %v13623_v7 }
 0x3bb   : > { %9607 = vmatmul.mubr.f32.vlgmr.msra.gmra.mrb[36].mxu1 %v13626_v36  ;;  %4343 = vmatprep.mubr.f32.mxu0 %v13643_v45 }
 0x3bc   : > { %9609 = vmatprep.mubr.f32.mxu1 %v13647_v35 }
 0x3be   : > { %4344 = vmatmul.mubr.f32.gmra.mrb[138].mxu0 %v13637_v54 }
 0x3bf   : > { %9610 = vmatmul.mubr.f32.gmra.mrb[38].mxu1 %v13641_v13  ;;  %4348 = vmatprep.mubr.f32.mxu0 %v13657_v37 }
 0x3c0   : > { %9620 = vmatprep.mubr.msk.f32.mxu1 %vm4483_vm0, %v4481_v5 }
 0x3c2   : > { %4349 = vmatmul.mubr.f32.gmra.mrb[140].mxu0 %v13653_v8 }
 0x3c3   : > { %4353 = vmatprep.mubr.f32.mxu0 %v13667_v25 }
 0x3c6   : > { %4354 = vmatmul.mubr.f32.gmra.mrb[142].mxu0 %v13663_v57 }
 0x3c7   : > { %9631 = vmatprep.mubr.msk.f32.mxu0 %vm4483_vm0, %v7561_v61 }
 0x3ea   : > { %v8260_v2 = vpop.f32.mrb[96].mxu0 }
 0x3eb   : > { %v8261_v14 = vpop.f32.mrb[97].mxu0 }
 0x3ec   : > { %v8262_v17 = vadd.f32 %v8261_v14, %v8260_v2 }
 0x3ee   : > { %v8263_v47 = vpop.f32.mrb[98].mxu0 }
 0x3ef   : > { %v8264_v40 = vpop.f32.mrb[99].mxu0 }
 0x3f0   : > { %v8265_v41 = vadd.f32 %v8264_v40, %v8263_v47  ;;  %v14878_v47 = vld [vmem:[#allocation23_spill] sm:$0xff] }
 0x3f2   : > { %v8266_v44 = vpop.f32.mrb[100].mxu0 }
 0x3f3   : > { %v8267_v35 = vpop.f32.mrb[101].mxu0 }
 0x3f4   : > { %v8268_v58 = vadd.f32 %v8267_v35, %v8266_v44 }
 0x3f6   : > { %v8269_v7 = vpop.f32.mrb[102].mxu0 }
 0x3f7   : > { %v8270_v36 = vpop.f32.mrb[103].mxu0 }
 0x3f8   : > { %v8271_v43 = vadd.f32 %v8270_v36, %v8269_v7 }
 0x40a   : > { %v8324_v54 = vpop.f32.mrb[104].mxu0 }
 0x40b   : > { %v8325_v37 = vpop.f32.mrb[105].mxu0 }
 0x40c   : > { %v8326_v13 = vadd.f32 %v8325_v37, %v8324_v54 }
 0x40e   : > { %v11879_v45 = vadd.f32 %v8326_v13, %v8262_v17  ;;  %v8327_v8 = vpop.f32.mrb[106].mxu0  ;;  %v14877_v17 = vld [vmem:[#allocation19_spill] sm:$0xff] }
 0x40f   : > { %v8328_v25 = vpop.f32.mrb[107].mxu0  ;;  %v14879_v40 = vmax.f32 %v14877_v17, %v14878_v47 }
 0x410   : > { %v8329_v53 = vadd.f32 %v8328_v25, %v8327_v8 }
 0x412   : > { %v11876_v57 = vadd.f32 %v8329_v53, %v8265_v41  ;;  %v8330_v0 = vpop.f32.mrb[108].mxu0 }
 0x413   : > { %v8331_v15 = vpop.f32.mrb[109].mxu0 }
 0x414   : > { %v8332_v3 = vadd.f32 %v8331_v15, %v8330_v0 }
 0x416   : > { %v11885_v33 = vadd.f32 %v8332_v3, %v8268_v58  ;;  %v8333_v55 = vpop.f32.mrb[110].mxu0 }
 0x417   : > { %v8334_v34 = vpop.f32.mrb[111].mxu0 }
 0x418   : > { %v8335_v9 = vadd.f32 %v8334_v34, %v8333_v55 }
 0x41a   : > { %v11882_v50 = vadd.f32 %v8335_v9, %v8271_v43 }
 0x42b   : > { %v8388_v48 = vpop.f32.mrb[112].mxu0 }
 0x42c   : > { %v9494_v63 = vpop.f32.mrb[32].mxu1  ;;  %v8389_v6 = vpop.f32.mrb[113].mxu0 }
 0x42d   : > { %v8390_v26 = vadd.f32 %v8389_v6, %v8388_v48  ;;  %v3907_v42 = vpop.f32.mrb[33].mxu1 }
 0x42f   : > { %v11880_v52 = vadd.f32 %v11879_v45, %v8390_v26  ;;  %v8391_v38 = vpop.f32.mrb[114].mxu0 }
 0x430   : > { %v9497_v56 = vpop.f32.mrb[34].mxu1  ;;  %v8392_v20 = vpop.f32.mrb[115].mxu0 }
 0x431   : > { %v11881_v49 = vadd.f32 %v11880_v52, %v3907_v42  ;;  %v8393_v29 = vadd.f32 %v8392_v20, %v8391_v38  ;;  %v3917_v24 = vpop.f32.mrb[35].mxu1  ;;  %v4453_v38 = vlaneseq }
 0x433   : > { %v13837_v21 = vmax.f32 %v14870_v59, %v11881_v49  ;;  %v11877_v22 = vadd.f32 %v11876_v57, %v8393_v29  ;;  %v8394_v62 = vpop.f32.mrb[116].mxu0  ;;  %v4454_v61 = vshrl.u32 %v4453_v38, 7  ;;  %v7569_v38 = vld [vmem:[%s12061_s29 + $0xa0] sm:$0xff] }
 0x434   : > { %v8395_v12 = vpop.f32.mrb[117].mxu0 }
 0x435   : > { %v11878_v1 = vadd.f32 %v11877_v22, %v9494_v63  ;;  %v8396_v31 = vadd.f32 %v8395_v12, %v8394_v62  ;;  %v13856_v46 = vsub.s32 0, %v4454_v61  ;;  %v13863_v39 = vsub.s32 2, %v4454_v61 }
 0x437   : > { %v13843_v10 = vmax.f32 %v14873_v60, %v11878_v1  ;;  %v11886_v18 = vadd.f32 %v11885_v33, %v8396_v31  ;;  %v8397_v23 = vpop.f32.mrb[118].mxu0  ;;  %v4456_v31 = vrot.slane %v4452_v51, %v13856_v46  ;;  %v13861_v60 = vsub.s32 1, %v4454_v61  ;;  %v7570_v61 = vld [vmem:[%s12061_s29 + $0xa8] sm:$0xff] }
 0x438   : > { %v8398_v27 = vpop.f32.mrb[119].mxu0 }
 0x439   : > { %v11887_v32 = vadd.f32 %v11886_v18, %v3917_v24  ;;  %v8399_v28 = vadd.f32 %v8398_v27, %v8397_v23 }
 0x43b   : > { %v13849_v11 = vmax.f32 %v14876_v19, %v11887_v32  ;;  %v11883_v2 = vadd.f32 %v11882_v50, %v8399_v28 }
 0x43d   : > { %v11884_v14 = vadd.f32 %v11883_v2, %v9497_v56  ;;  %v4468_v2 = vrot.slane %v4452_v51, %v13861_v60 }
 0x43f   : > { %v13854_v41 = vmax.f32 %v14879_v40, %v11884_v14 }
 0x44b   : > { %v8452_v44 = vpop.f32.mrb[120].mxu0 }
 0x44c   : > { %v8453_v35 = vpop.f32.mrb[121].mxu0 }
 0x44d   : > { %v8454_v58 = vadd.f32 %v8453_v35, %v8452_v44 }
 0x44f   : > { %v8455_v7 = vpop.f32.mrb[122].mxu0 }
 0x450   : > { %v8456_v36 = vpop.f32.mrb[123].mxu0 }
 0x451   : > { %v8457_v43 = vadd.f32 %v8456_v36, %v8455_v7 }
 0x453   : > { %v8458_v54 = vpop.f32.mrb[124].mxu0 }
 0x454   : > { %v8459_v37 = vpop.f32.mrb[125].mxu0 }
 0x455   : > { %v8460_v13 = vadd.f32 %v8459_v37, %v8458_v54 }
 0x457   : > { %v8461_v45 = vpop.f32.mrb[126].mxu0 }
 0x458   : > { %v8462_v8 = vpop.f32.mrb[127].mxu0 }
 0x459   : > { %v8463_v25 = vadd.f32 %v8462_v8, %v8461_v45 }
 0x46c   : > { %v8516_v53 = vpop.f32.mrb[128].mxu0 }
 0x46d   : > { %v8517_v57 = vpop.f32.mrb[129].mxu0 }
 0x46e   : > { %v8518_v0 = vadd.f32 %v8517_v57, %v8516_v53 }
 0x470   : > { %v11891_v15 = vadd.f32 %v8518_v0, %v8454_v58  ;;  %v8519_v3 = vpop.f32.mrb[130].mxu0  ;;  %v4476_v58 = vrot.slane %v4452_v51, %v13863_v39  ;;  %v7573_v51 = vld [vmem:[%s12061_s29 + $0xc0] sm:$0xff] }
 0x471   : > { %v8520_v33 = vpop.f32.mrb[131].mxu0 }
 0x472   : > { %v8521_v55 = vadd.f32 %v8520_v33, %v8519_v3  ;;  %v7565_v33 = vld [vmem:[%s12061_s29 + $0x80] sm:$0xff] }
 0x474   : > { %v11888_v34 = vadd.f32 %v8521_v55, %v8457_v43  ;;  %v8522_v9 = vpop.f32.mrb[132].mxu0  ;;  %v7566_v55 = vld [vmem:[%s12061_s29 + $0x88] sm:$0xff] }
 0x475   : > { %v8523_v50 = vpop.f32.mrb[133].mxu0 }
 0x476   : > { %v8524_v48 = vadd.f32 %v8523_v50, %v8522_v9 }
 0x478   : > { %v11897_v63 = vadd.f32 %v8524_v48, %v8460_v13  ;;  %v8525_v6 = vpop.f32.mrb[134].mxu0  ;;  %v7567_v48 = vld [vmem:[%s12061_s29 + $0x90] sm:$0xff] }
 0x479   : > { %v8526_v26 = vpop.f32.mrb[135].mxu0 }
 0x47a   : > { %v8527_v42 = vadd.f32 %v8526_v26, %v8525_v6  ;;  %v7562_v6 = vld [vmem:[%s12056_s25 + $0x18] sm:$0xff]  ;;  %v4482_v26 = vld [vmem:[%s12056_s25 + $0x8] sm:$0xff] }
 0x47c   : > { %v11894_v52 = vadd.f32 %v8527_v42, %v8463_v25  ;;  %v7581_v42 = vld [vmem:[%s12056_s25 + $0x20] sm:$0xff] }
 0x48d   : > { %v8580_v56 = vpop.f32.mrb[136].mxu0 }
 0x48e   : > { %v9608_v20 = vpop.f32.mrb[36].mxu1  ;;  %v8581_v49 = vpop.f32.mrb[137].mxu0 }
 0x48f   : > { %v8582_v29 = vadd.f32 %v8581_v49, %v8580_v56  ;;  %v4425_v24 = vpop.f32.mrb[37].mxu1  ;;  %v11440_v56 = vpack.c.bf16 %v7570_v61, %v7569_v38  ;;  %v7572_v49 = vld [vmem:[%s12061_s29 + $0xb8] sm:$0xff]  ;;  %v7593_v38 = vld [vmem:[%s12061_s29 + $0x140] sm:$0xff]  ;;  %v7594_v61 = vld [vmem:[%s12061_s29 + $0x148] sm:$0xff] }
 0x491   : > { %v11892_v59 = vadd.f32 %v11891_v15, %v8582_v29  ;;  %v8583_v22 = vpop.f32.mrb[138].mxu0  ;;  %v7582_v29 = vld [vmem:[%s12056_s25 + $0x28] sm:$0xff] }
 0x492   : > { %v9611_v62 = vpop.f32.mrb[38].mxu1  ;;  %v8584_v12 = vpop.f32.mrb[139].mxu0 }
 0x493   : > { %v11893_v1 = vadd.f32 %v11892_v59, %v4425_v24  ;;  %v8585_v5 = vadd.f32 %v8584_v12, %v8583_v22  ;;  %v4435_v30 = vpop.f32.mrb[39].mxu1  ;;  %v7574_v59 = vld [vmem:[%s12061_s29 + $0xc8] sm:$0xff]  ;;  %v7576_v12 = vld [vmem:[%s12061_s29 + $0xd8] sm:$0xff] }
 0x494   : > { %v11448_v22 = vpack.c.bf16 %v7574_v59, %v7573_v51  ;;  %v7598_v51 = vld [vmem:[%s12061_s29 + $0x168] sm:$0xff] }
 0x495   : > { %v4448_v4 = vmax.f32 %v13837_v21, %v11893_v1  ;;  %v11889_v18 = vadd.f32 %v11888_v34, %v8585_v5  ;;  %v8586_v23 = vpop.f32.mrb[140].mxu0  ;;  %v7578_v5 = vld [vmem:[%s12061_s29 + $0xe8] sm:$0xff] }
 0x496   : > { %v8587_v27 = vpop.f32.mrb[141].mxu0 }
 0x497   : > { %v4457_v32 = vadd.f32 %v4456_v31, %v4448_v4  ;;  %v11890_v28 = vadd.f32 %v11889_v18, %v9608_v20  ;;  %v8588_v16 = vadd.f32 %v8587_v27, %v8586_v23  ;;  %v7571_v20 = vld [vmem:[%s12061_s29 + $0xb0] sm:$0xff]  ;;  %v7580_v18 = vld [vmem:[%s12061_s29 + $0xf8] sm:$0xff]  ;;  %v4565_v27 = vld [vmem:[%s12061_s29] sm:$0xff] }
 0x498   : > { %v11444_v24 = vpack.c.bf16 %v7572_v49, %v7571_v20  ;;  %v7579_v4 = vld [vmem:[%s12061_s29 + $0xf0] sm:$0xff]  ;;  %v7596_v49 = vld [vmem:[%s12061_s29 + $0x158] sm:$0xff] }
 0x499   : > { %v4461_v19 = vmax.f32 %v4457_v32, 0.0  ;;  %v4449_v14 = vmax.f32 %v13843_v10, %v11890_v28  ;;  %v11898_v17 = vadd.f32 %v11897_v63, %v8588_v16  ;;  %v8589_v47 = vpop.f32.mrb[142].mxu0  ;;  %v7568_v63 = vld [vmem:[%s12061_s29 + $0x98] sm:$0xff]  ;;  %v11460_v23 = vpack.c.bf16 %v7580_v18, %v7579_v4  ;;  %v4566_v32 = vld [vmem:[%s12061_s29 + $0x8] sm:$0xff]  ;;  %v4567_v16 = vld [vmem:[%s12061_s29 + $0x10] sm:$0xff] }
 0x49a   : > { %v8590_v40 = vpop.f32.mrb[143].mxu0  ;;  %v11464_v28 = vpack.c.bf16 %v4566_v32, %v4565_v27  ;;  %v7595_v20 = vld [vmem:[%s12061_s29 + $0x150] sm:$0xff] }
 0x49b   : > { %v4458_v44 = vadd.f32 %v4456_v31, %v4449_v14  ;;  %v11899_v21 = vadd.f32 %v11898_v17, %v4435_v30  ;;  %v8591_v35 = vadd.f32 %v8590_v40, %v8589_v47  ;;  %v4469_v7 = vmul.f32 %v4468_v2, %v4461_v19  ;;  %v4568_v19 = vld [vmem:[%s12061_s29 + $0x18] sm:$0xff] }
 0x49c   : > { %v11468_v47 = vpack.c.bf16 %v4568_v19, %v4567_v16 }
 0x49d   : > { %v4462_v36 = vmax.f32 %v4458_v44, 0.0  ;;  %v4450_v43 = vmax.f32 %v13849_v11, %v11899_v21  ;;  %v11895_v54 = vadd.f32 %v11894_v52, %v8591_v35  ;;  %v4477_v8 = vadd.f32 %v4476_v58, %v4469_v7  ;;  %v4569_v44 = vld [vmem:[%s12061_s29 + $0x20] sm:$0xff]  ;;  %v4570_v21 = vld [vmem:[%s12061_s29 + $0x28] sm:$0xff]  ;;  %v4572_v7 = vld [vmem:[%s12061_s29 + $0x38] sm:$0xff] }
 0x49e   : > { %v11436_v52 = vpack.c.bf16 %v7568_v63, %v7567_v48  ;;  %v11472_v35 = vpack.c.bf16 %v4570_v21, %v4569_v44  ;;  %v7589_v48 = vld [vmem:[%s12061_s29 + $0x120] sm:$0xff]  ;;  %v7590_v63 = vld [vmem:[%s12061_s29 + $0x128] sm:$0xff] }
 0x49f   : > { %v4470_v37 = vmul.f32 %v4468_v2, %v4462_v36  ;;  %v4459_v13 = vadd.f32 %v4456_v31, %v4450_v43  ;;  %v11896_v45 = vadd.f32 %v11895_v54, %v9611_v62  ;;  %v7575_v62 = vld [vmem:[%s12061_s29 + $0xd0] sm:$0xff]  ;;  %v5031_v44 = vld [vmem:[%s12071_s8] sm:$0xff] }
 0x4a0   : > { %v11452_v1 = vpack.c.bf16 %v7576_v12, %v7575_v62  ;;  %v7600_v62 = vld [vmem:[%s12061_s29 + $0x178] sm:$0xff]  ;;  %v7604_v21 = vld [vmem:[%s12076_s14 + $0x80] sm:$0xff] }
 0x4a1   : > { %v4478_v10 = vadd.f32 %v4476_v58, %v4470_v37  ;;  %v4463_v25 = vmax.f32 %v4459_v13, 0.0  ;;  %v4451_v53 = vmax.f32 %v13854_v41, %v11896_v45  ;;  %v11432_v41 = vpack.c.bf16 %v7566_v55, %v7565_v33  ;;  %v4573_v37 = vld [vmem:[%s12061_s29 + $0x40] sm:$0xff]  ;;  %v4574_v13 = vld [vmem:[%s12061_s29 + $0x48] sm:$0xff] }
 0x4a2   : > { %v11480_v45 = vpack.c.bf16 %v4574_v13, %v4573_v37  ;;  %v7585_v33 = vld [vmem:[%s12061_s29 + $0x100] sm:$0xff]  ;;  %v7586_v55 = vld [vmem:[%s12061_s29 + $0x108] sm:$0xff] }
 0x4a3   : > { %v11416_v57 = vpack.c.bf16 %v4478_v10, %v4477_v8  ;;  %v4460_v0 = vadd.f32 %v4456_v31, %v4451_v53  ;;  %v4471_v15 = vmul.f32 %v4468_v2, %v4463_v25  ;;  %v7577_v31 = vld [vmem:[%s12061_s29 + $0xe0] sm:$0xff]  ;;  %v4575_v8 = vld [vmem:[%s12061_s29 + $0x50] sm:$0xff]  ;;  %v4576_v10 = vld [vmem:[%s12061_s29 + $0x58] sm:$0xff] }
 0x4a4   : > { %v11456_v30 = vpack.c.bf16 %v7578_v5, %v7577_v31  ;;  %v11484_v25 = vpack.c.bf16 %v4576_v10, %v4575_v8  ;;  %v4577_v53 = vld [vmem:[%s12061_s29 + $0x60] sm:$0xff]  ;;  %v12020_v31 = vmov 0.0|0.0   ;;  %v7609_v13 = vld [vmem:[%s12076_s14 + $0xa8] sm:$0xff]  ;;  %v7610_v8 = vld [vmem:[%s12076_s14 + $0xb0] sm:$0xff] }
 0x4a5   : > { %v4464_v3 = vmax.f32 %v4460_v0, 0.0  ;;  %11417 = vmatprep.subr.bf16.mxu1 %v11416_v57  ;;  %11425 = vmatprep.subr.bf16.mxu0 %v11416_v57  ;;  %v4479_v34 = vadd.f32 %v4476_v58, %v4471_v15  ;;  %v4579_v15 = vld [vmem:[%s12061_s29 + $0x70] sm:$0xff]  ;;  %v5010_v5 = vld [vmem:[%s12066_s3] sm:$0x7]  ;;  %v7611_v10 = vld [vmem:[%s12076_s14 + $0xb8] sm:$0xff] }
 0x4a6   : > { %11419 = vmatpush3.bf16.msra.mxu1 %v11416_v57  ;;  %11427 = vmatpush3.bf16.msra.mxu0 %v11416_v57  ;;  %v5028_v16 = vrot.slane %v5010_v5, %v13863_v39  ;;  %v7608_v37 = vld [vmem:[%s12076_s14 + $0xa0] sm:$0xff] }
 0x4a7   : > { %v4472_v11 = vmul.f32 %v4468_v2, %v4464_v3  ;;  %v4580_v3 = vld [vmem:[%s12061_s29 + $0x78] sm:$0xff] }
 0x4a9   : > { %v4480_v9 = vadd.f32 %v4476_v58, %v4472_v11  ;;  %v4571_v58 = vld [vmem:[%s12061_s29 + $0x30] sm:$0xff]  ;;  %v11492_v11 = vpack.c.bf16 %v4580_v3, %v4579_v15  ;;  %v7615_v3 = vld [vmem:[%s12076_s14 + $0xd8] sm:$0xff] }
 0x4aa   : > { %v11476_v43 = vpack.c.bf16 %v4572_v7, %v4571_v58  ;;  %v7602_v58 = vld [vmem:[%s12071_s8 + $0x8] sm:$0xff]  ;;  %v7614_v15 = vld [vmem:[%s12076_s14 + $0xd0] sm:$0xff] }
 0x4ab   : > { %v11420_v50 = vpack.c.bf16 %v4480_v9, %v4479_v34  ;;  %v11504_v34 = vpack.c.bf16 %v7586_v55, %v7585_v33  ;;  %v7587_v9 = vld [vmem:[%s12061_s29 + $0x110] sm:$0xff]  ;;  %v7616_v33 = vld [vmem:[%s12076_s14 + $0xe0] sm:$0xff]  ;;  %v7617_v55 = vld [vmem:[%s12076_s14 + $0xe8] sm:$0xff] }
 0x4ad   : > { %11421 = vmatprep.subr.bf16.mxu1 %v11420_v50  ;;  %11429 = vmatprep.subr.bf16.mxu0 %v11420_v50 }
 0x4ae   : > { %11423 = vmatpush3.bf16.msra.mxu1 %v11420_v50  ;;  %11431 = vmatpush3.bf16.msra.mxu0 %v11420_v50 }
 0x4af   : > { %11497 = vmatprep.subr.bf16.mxu0 %v11416_v57  ;;  %11433 = vmatprep.subr.bf16.mxu1 %v11432_v41 }
 0x4b1   : > { %9632 = vmatmul.mubr.msk.f32.vlgmr.msra.gmra.mrb[144].mxu0 %vm4483_vm0, %v7562_v6  ;;  %9621 = vmatmul.mubr.msk.f32.vlgmr.msra.gmra.mrb[40].mxu1 %vm4483_vm0, %v4482_v26  ;;  %v11512_v6 = vpack.c.bf16 %v7590_v63, %v7589_v48  ;;  %v7591_v26 = vld [vmem:[%s12061_s29 + $0x130] sm:$0xff]  ;;  %v5106_v48 = vld [vmem:[%s12076_s14] sm:$0xff]  ;;  %v5107_v63 = vld [vmem:[%s12076_s14 + $0x8] sm:$0xff] }
 0x4b2   : > { %11499 = vmatpush3.bf16.msra.mxu0 %v11416_v57  ;;  %9712 = vmatprep.mubr.msk.f32.mxu0 %vm4483_vm0, %v7581_v42  ;;  %v4578_v57 = vld [vmem:[%s12061_s29 + $0x68] sm:$0xff]  ;;  %v7592_v42 = vld [vmem:[%s12061_s29 + $0x138] sm:$0xff] }
 0x4b3   : > { %11501 = vmatprep.subr.bf16.mxu0 %v11420_v50  ;;  %11435 = vmatpush3.bf16.msra.mxu1 %v11432_v41  ;;  %v11488_v0 = vpack.c.bf16 %v4578_v57, %v4577_v53  ;;  %v7612_v53 = vld [vmem:[%s12076_s14 + $0xc0] sm:$0xff]  ;;  %v7613_v57 = vld [vmem:[%s12076_s14 + $0xc8] sm:$0xff] }
 0x4b4   : > { %11437 = vmatprep.subr.bf16.mxu1 %v11436_v52 }
 0x4b6   : > { %11503 = vmatpush3.bf16.msra.mxu0 %v11420_v50  ;;  %v7588_v50 = vld [vmem:[%s12061_s29 + $0x118] sm:$0xff] }
 0x4b7   : > { %11439 = vmatpush3.bf16.msra.mxu1 %v11436_v52  ;;  %v11508_v41 = vpack.c.bf16 %v7588_v50, %v7587_v9  ;;  %v11516_v52 = vpack.c.bf16 %v7592_v42, %v7591_v26  ;;  %11536 = vmatprep.subr.bf16.mxu0 %v12020_v31  ;;  %v7618_v9 = vld [vmem:[%s12076_s14 + $0xf0] sm:$0xff]  ;;  %v7619_v50 = vld [vmem:[%s12076_s14 + $0xf8] sm:$0xff]  ;;  %v11567_v42 = vpack.c.bf16 %v5107_v63, %v5106_v48  ;;  %v5609_v63 = vld [vmem:[%s12091_s30] sm:$0xff] }
 0x4b8   : > { %11441 = vmatprep.subr.bf16.mxu1 %v11440_v56 }
 0x4b9   : > { %9713 = vmatmul.mubr.msk.f32.vlgmr.msra.gmra.mrb[146].mxu0 %vm4483_vm0, %v7582_v29  ;;  %v11524_v29 = vpack.c.bf16 %v7596_v49, %v7595_v20  ;;  %v5110_v49 = vld [vmem:[%s12076_s14 + $0x20] sm:$0xff] }
 0x4bb   : > { %11443 = vmatpush3.bf16.msra.mxu1 %v11440_v56  ;;  %v11520_v56 = vpack.c.bf16 %v7594_v61, %v7593_v38  ;;  %v5109_v38 = vld [vmem:[%s12076_s14 + $0x18] sm:$0xff] }
 0x4bc   : > { %11445 = vmatprep.subr.bf16.mxu1 %v11444_v24 }
 0x4bf   : > { %11447 = vmatpush3.bf16.msra.mxu1 %v11444_v24  ;;  %v7597_v24 = vld [vmem:[%s12061_s29 + $0x160] sm:$0xff] }
 0x4c0   : > { %11449 = vmatprep.subr.bf16.mxu1 %v11448_v22  ;;  %v11528_v59 = vpack.c.bf16 %v7598_v51, %v7597_v24  ;;  %v5112_v51 = vld [vmem:[%s12076_s14 + $0x30] sm:$0xff] }
 0x4c3   : > { %11451 = vmatpush3.bf16.msra.mxu1 %v11448_v22  ;;  %v7599_v22 = vld [vmem:[%s12061_s29 + $0x170] sm:$0xff] }
 0x4c4   : > { %11453 = vmatprep.subr.bf16.mxu1 %v11452_v1  ;;  %v11532_v12 = vpack.c.bf16 %v7600_v62, %v7599_v22  ;;  %v5114_v62 = vld [vmem:[%s12076_s14 + $0x40] sm:$0xff] }
 0x4c7   : > { %11455 = vmatpush3.bf16.msra.mxu1 %v11452_v1  ;;  %v14880_v1 = vmov 0.0  }
 0x4c8   : > { %11457 = vmatprep.subr.bf16.mxu1 %v11456_v30  ;;  %9754 = vmatprep.mubr.msk.f32.mxu0 %vm12021_vm1, %v14880_v1 }
 0x4cb   : > { %11459 = vmatpush3.bf16.msra.mxu1 %v11456_v30  ;;  %v5014_v30 = vrot.slane %v5010_v5, %v13856_v46 }
 0x4cc   : > { %11461 = vmatprep.subr.bf16.mxu1 %v11460_v23 }
 0x4cf   : > { %11463 = vmatpush3.bf16.msra.mxu1 %v11460_v23  ;;  %v5022_v23 = vrot.slane %v5010_v5, %v13861_v60 }
 0x4d0   : > { %11465 = vmatprep.subr.bf16.mxu1 %v11464_v28 }
 0x584   : > { %v9633_v2 = vpop.f32.mrb[144].mxu0  ;;  %v9622_v14 = vpop.f32.mrb[40].mxu1 }
 0x585   : > { %v4656_v17 = vpop.f32.mrb[145].mxu0  ;;  %v4556_v40 = vpop.f32.mrb[41].mxu1 }
 0x586   : > { %9666 = vmatprep.mubr.f32.mxu1 %v4656_v17 }
 0x587   : > { %9667 = vmatmul.mubr.f32.vlgmr.msra.gmra.mrb[42].mxu1 %v9633_v2 }
 0x588   : > { %11467 = vmatpush3.bf16.msra.mxu1 %v11464_v28  ;;  %9701 = vmatprep.mubr.f32.mxu1 %v4556_v40 }
 0x589   : > { %11469 = vmatprep.subr.bf16.mxu1 %v11468_v47 }
 0x58c   : > { %11471 = vmatpush3.bf16.msra.mxu1 %v11468_v47  ;;  %v13902_v36 = vpop.f32.mrb[146].mxu0 }
 0x58d   : > { %11473 = vmatprep.subr.bf16.mxu1 %v11472_v35  ;;  %v4907_v54 = vpop.f32.mrb[147].mxu0 }
 0x590   : > { %11475 = vmatpush3.bf16.msra.mxu1 %v11472_v35  ;;  %v7605_v35 = vld [vmem:[%s12076_s14 + $0x88] sm:$0xff] }
 0x591   : > { %11477 = vmatprep.subr.bf16.mxu1 %v11476_v43  ;;  %v11543_v7 = vpack.c.bf16 %v7605_v35, %v7604_v21  ;;  %v7626_v35 = vld [vmem:[%s12076_s14 + $0x120] sm:$0xff] }
 0x594   : > { %11479 = vmatpush3.bf16.msra.mxu1 %v11476_v43  ;;  %v7607_v43 = vld [vmem:[%s12076_s14 + $0x98] sm:$0xff] }
 0x595   : > { %11481 = vmatprep.subr.bf16.mxu1 %v11480_v45 }
 0x598   : > { %11483 = vmatpush3.bf16.msra.mxu1 %v11480_v45  ;;  %v11549_v45 = vpack.c.bf16 %v7609_v13, %v7608_v37  ;;  %v7630_v37 = vld [vmem:[%s12076_s14 + $0x140] sm:$0xff]  ;;  %v7631_v13 = vld [vmem:[%s12076_s14 + $0x148] sm:$0xff] }
 0x599   : > { %11485 = vmatprep.subr.bf16.mxu1 %v11484_v25 }
 0x59c   : > { %11487 = vmatpush3.bf16.msra.mxu1 %v11484_v25  ;;  %v11552_v25 = vpack.c.bf16 %v7611_v10, %v7610_v8  ;;  %v7632_v8 = vld [vmem:[%s12076_s14 + $0x150] sm:$0xff]  ;;  %v7633_v10 = vld [vmem:[%s12076_s14 + $0x158] sm:$0xff] }
 0x59d   : > { %11489 = vmatprep.subr.bf16.mxu1 %v11488_v0 }
 0x5a0   : > { %11491 = vmatpush3.bf16.msra.mxu1 %v11488_v0  ;;  %v11555_v0 = vpack.c.bf16 %v7613_v57, %v7612_v53  ;;  %v7634_v53 = vld [vmem:[%s12076_s14 + $0x160] sm:$0xff]  ;;  %v7635_v57 = vld [vmem:[%s12076_s14 + $0x168] sm:$0xff] }
 0x5a1   : > { %11493 = vmatprep.subr.bf16.mxu1 %v11492_v11 }
 0x5a4   : > { %11495 = vmatpush3.bf16.msra.mxu1 %v11492_v11  ;;  %v11558_v11 = vpack.c.bf16 %v7615_v3, %v7614_v15  ;;  %v7636_v15 = vld [vmem:[%s12076_s14 + $0x170] sm:$0xff]  ;;  %v7637_v3 = vld [vmem:[%s12076_s14 + $0x178] sm:$0xff] }
 0x5a5   : > { %11505 = vmatprep.subr.bf16.mxu1 %v11504_v34 }
 0x5a7   : > { %9702 = vmatmul.mubr.f32.vlgmr.msra.gmra.mrb[42].mxu1 %v9622_v14 }
 0x5a8   : > { %11507 = vmatpush3.bf16.msra.mxu1 %v11504_v34  ;;  %9747 = vmatprep.mubr.f32.mxu1 %v4907_v54  ;;  %v11561_v34 = vpack.c.bf16 %v7617_v55, %v7616_v33 }
 0x5a9   : > { %11509 = vmatprep.subr.bf16.mxu1 %v11508_v41 }
 0x5ac   : > { %11511 = vmatpush3.bf16.msra.mxu1 %v11508_v41  ;;  %v11564_v41 = vpack.c.bf16 %v7619_v50, %v7618_v9 }
 0x5ad   : > { %11513 = vmatprep.subr.bf16.mxu1 %v11512_v6 }
 0x5b0   : > { %11515 = vmatpush3.bf16.msra.mxu1 %v11512_v6 }
 0x5b1   : > { %11517 = vmatprep.subr.bf16.mxu1 %v11516_v52 }
 0x5b4   : > { %11519 = vmatpush3.bf16.msra.mxu1 %v11516_v52  ;;  %v5108_v52 = vld [vmem:[%s12076_s14 + $0x10] sm:$0xff] }
 0x5b5   : > { %11521 = vmatprep.subr.bf16.mxu1 %v11520_v56  ;;  %v11570_v20 = vpack.c.bf16 %v5109_v38, %v5108_v52  ;;  %v5612_v52 = vld [vmem:[%s12091_s30 + $0x18] sm:$0xff] }
 0x5b8   : > { %11523 = vmatpush3.bf16.msra.mxu1 %v11520_v56 }
 0x5b9   : > { %11525 = vmatprep.subr.bf16.mxu1 %v11524_v29 }
 0x5bc   : > { %11527 = vmatpush3.bf16.msra.mxu1 %v11524_v29  ;;  %v5111_v29 = vld [vmem:[%s12076_s14 + $0x28] sm:$0xff] }
 0x5bd   : > { %11529 = vmatprep.subr.bf16.mxu1 %v11528_v59  ;;  %v11573_v24 = vpack.c.bf16 %v5111_v29, %v5110_v49  ;;  %v5615_v49 = vld [vmem:[%s12091_s30 + $0x30] sm:$0xff]  ;;  %v5616_v29 = vld [vmem:[%s12091_s30 + $0x38] sm:$0xff] }
 0x5c0   : > { %11531 = vmatpush3.bf16.msra.mxu1 %v11528_v59  ;;  %v5113_v59 = vld [vmem:[%s12076_s14 + $0x38] sm:$0xff] }
 0x5c1   : > { %11533 = vmatprep.subr.bf16.mxu1 %v11532_v12  ;;  %v11576_v22 = vpack.c.bf16 %v5113_v59, %v5112_v51  ;;  %v5617_v51 = vld [vmem:[%s12091_s30 + $0x40] sm:$0xff]  ;;  %v5618_v59 = vld [vmem:[%s12091_s30 + $0x48] sm:$0xff] }
 0x5c4   : > { %11535 = vmatpush3.bf16.msra.mxu1 %v11532_v12  ;;  %v5115_v12 = vld [vmem:[%s12076_s14 + $0x48] sm:$0xff] }
 0x5c5   : > { %9876 = vmatprep.subr.mxu1 %v14880_v1  ;;  %v11579_v5 = vpack.c.bf16 %v5115_v12, %v5114_v62  ;;  %v5619_v62 = vld [vmem:[%s12091_s30 + $0x50] sm:$0xff]  ;;  %v5620_v12 = vld [vmem:[%s12091_s30 + $0x58] sm:$0xff] }
 0x5c7   : > { %9748 = vmatmul.mubr.f32.vlgmr.msra.gmra.mrb[42].mxu1 %v13902_v36  ;;  %v7606_v36 = vld [vmem:[%s12076_s14 + $0x90] sm:$0xff] }
 0x5c8   : > { %9878 = vmatprep.mubr.msk.f32.mxu1 %vm12021_vm1, %v14880_v1  ;;  %v11546_v54 = vpack.c.bf16 %v7607_v43, %v7606_v36  ;;  %v7628_v36 = vld [vmem:[%s12076_s14 + $0x130] sm:$0xff]  ;;  %v7629_v43 = vld [vmem:[%s12076_s14 + $0x138] sm:$0xff] }
 0x69a   : > { %v9749_v4 = vpop.f32.mrb[42].mxu1 }
 0x69b   : > { %v5016_v18 = vadd.f32 %v9749_v4, %v5014_v30  ;;  %v4999_v27 = vpop.f32.mrb[43].mxu1  ;;  %v5117_v4 = vld [vmem:[%s12076_s14 + $0x58] sm:$0xff] }
 0x69c   : > { %v5015_v32 = vadd.f32 %v5014_v30, %v4999_v27  ;;  %v5116_v30 = vld [vmem:[%s12076_s14 + $0x50] sm:$0xff]  ;;  %v5119_v27 = vld [vmem:[%s12076_s14 + $0x68] sm:$0xff] }
 0x69d   : > { %v5018_v28 = vmax.f32 %v5016_v18, 0.0  ;;  %v11582_v18 = vpack.c.bf16 %v5117_v4, %v5116_v30  ;;  %v5621_v30 = vld [vmem:[%s12091_s30 + $0x60] sm:$0xff]  ;;  %v5622_v4 = vld [vmem:[%s12091_s30 + $0x68] sm:$0xff] }
 0x69e   : > { %v5017_v19 = vmax.f32 %v5015_v32, 0.0 }
 0x69f   : > { %v5024_v2 = vmul.f32 %v5022_v23, %v5018_v28  ;;  %v5120_v28 = vld [vmem:[%s12076_s14 + $0x70] sm:$0xff] }
 0x6a0   : > { %v5023_v14 = vmul.f32 %v5022_v23, %v5017_v19  ;;  %v5118_v23 = vld [vmem:[%s12076_s14 + $0x60] sm:$0xff] }
 0x6a1   : > { %v5030_v17 = vadd.f32 %v5028_v16, %v5024_v2  ;;  %v11585_v32 = vpack.c.bf16 %v5119_v27, %v5118_v23  ;;  %v7620_v2 = vld [vmem:[%s12071_s8 + $0x10] sm:$0xff]  ;;  %v5624_v27 = vld [vmem:[%s12091_s30 + $0x78] sm:$0xff] }
 0x6a2   : > { %v5029_v47 = vadd.f32 %v5028_v16, %v5023_v14  ;;  %v5121_v16 = vld [vmem:[%s12076_s14 + $0x78] sm:$0xff]  ;;  %v7622_v14 = vld [vmem:[%s12076_s14 + $0x100] sm:$0xff]  ;;  %v5623_v23 = vld [vmem:[%s12091_s30 + $0x70] sm:$0xff] }
 0x6a3   : > { %v11588_v19 = vpack.c.bf16 %v5121_v16, %v5120_v28  ;;  %v5517_v28 = vld [vmem:[%s12081_s19] sm:$0x7] }
 0x6a4   : > { %v13939_v40 = vpack.c.bf16 %v5030_v17, %v5029_v47  ;;  %v7623_v17 = vld [vmem:[%s12076_s14 + $0x108] sm:$0xff]  ;;  %v7624_v47 = vld [vmem:[%s12076_s14 + $0x110] sm:$0xff]  ;;  %v5521_v16 = vrot.slane %v5517_v28, %v13856_v46 }
 0x6a6   : > { %11538 = vmatpush3.bf16.msra.mxu0 %v13939_v40 }
 0x6a7   : > { %11539 = vmatprep.subr.bf16.mxu0 %v12020_v31 }
 0x6a9   : > { %9755 = vmatmul.mubr.msk.f32.vlgmr.msra.gmra.mrb[148].mxu0 %vm5032_vm2, %v5031_v44  ;;  %v11594_v44 = vpack.c.bf16 %v7623_v17, %v7622_v14 }
 0x6aa   : > { %11541 = vmatpush3.bf16.msra.mxu0 %v13939_v40  ;;  %9761 = vmatprep.mubr.msk.f32.mxu0 %vm12021_vm1, %v14880_v1 }
 0x6ab   : > { %11542 = vmatprep.subr.bf16.mxu0 %v12020_v31 }
 0x6ad   : > { %9762 = vmatmul.mubr.msk.f32.vlgmr.msra.gmra.mrb[150].mxu0 %vm5032_vm2, %v7602_v58  ;;  %v7627_v58 = vld [vmem:[%s12076_s14 + $0x128] sm:$0xff] }
 0x6ae   : > { %11544 = vmatpush3.bf16.msra.mxu0 %v11543_v7  ;;  %9796 = vmatprep.mubr.msk.f32.mxu0 %vm12021_vm1, %v14880_v1  ;;  %v11600_v7 = vpack.c.bf16 %v7627_v58, %v7626_v35  ;;  %v5534_v58 = vld [vmem:[%s12086_s24] sm:$0xf] }
 0x6af   : > { %11545 = vmatprep.subr.bf16.mxu0 %v12020_v31 }
 0x6b2   : > { %11547 = vmatpush3.bf16.msra.mxu0 %v11546_v54  ;;  %v11603_v54 = vpack.c.bf16 %v7629_v43, %v7628_v36  ;;  %v7642_v36 = vld [vmem:[%s12091_s30 + $0x88] sm:$0xff]  ;;  %v7639_v43 = vld [vmem:[%s12086_s24 + $0x4] sm:$0xf] }
 0x6b3   : > { %11548 = vmatprep.subr.bf16.mxu0 %v12020_v31 }
 0x6b6   : > { %11550 = vmatpush3.bf16.msra.mxu0 %v11549_v45  ;;  %v11606_v45 = vpack.c.bf16 %v7631_v13, %v7630_v37  ;;  %v7643_v37 = vld [vmem:[%s12091_s30 + $0x90] sm:$0xff]  ;;  %v7644_v13 = vld [vmem:[%s12091_s30 + $0x98] sm:$0xff] }
 0x6b7   : > { %11551 = vmatprep.subr.bf16.mxu0 %v12020_v31 }
 0x6ba   : > { %11553 = vmatpush3.bf16.msra.mxu0 %v11552_v25  ;;  %v11609_v25 = vpack.c.bf16 %v7633_v10, %v7632_v8  ;;  %v7645_v8 = vld [vmem:[%s12091_s30 + $0xa0] sm:$0xff]  ;;  %v7646_v10 = vld [vmem:[%s12091_s30 + $0xa8] sm:$0xff] }
 0x6bb   : > { %11554 = vmatprep.subr.bf16.mxu0 %v12020_v31 }
 0x6be   : > { %11556 = vmatpush3.bf16.msra.mxu0 %v11555_v0  ;;  %v11612_v0 = vpack.c.bf16 %v7635_v57, %v7634_v53  ;;  %v7647_v53 = vld [vmem:[%s12091_s30 + $0xb0] sm:$0xff]  ;;  %v7648_v57 = vld [vmem:[%s12091_s30 + $0xb8] sm:$0xff] }
 0x6bf   : > { %11557 = vmatprep.subr.bf16.mxu0 %v12020_v31 }
 0x6c2   : > { %11559 = vmatpush3.bf16.msra.mxu0 %v11558_v11  ;;  %v11615_v11 = vpack.c.bf16 %v7637_v3, %v7636_v15  ;;  %v7649_v15 = vld [vmem:[%s12091_s30 + $0xc0] sm:$0xff]  ;;  %v7650_v3 = vld [vmem:[%s12091_s30 + $0xc8] sm:$0xff] }
 0x6c3   : > { %11560 = vmatprep.subr.bf16.mxu0 %v12020_v31 }
 0x6c6   : > { %11562 = vmatpush3.bf16.msra.mxu0 %v11561_v34 }
 0x6c7   : > { %11563 = vmatprep.subr.bf16.mxu0 %v12020_v31 }
 0x6ca   : > { %11565 = vmatpush3.bf16.msra.mxu0 %v11564_v41 }
 0x6cb   : > { %11566 = vmatprep.subr.bf16.mxu0 %v12020_v31 }
 0x77c   : > { %v5102_v6 = vpop.f32.mrb[148].mxu0 }
 0x77d   : > { %v9756_v26 = vpop.f32.mrb[149].mxu0 }
 0x780   : > { %v5193_v61 = vpop.f32.mrb[150].mxu0 }
 0x781   : > { %9797 = vmatmul.mubr.f32.vlgmr.msra.gmra.mrb[152].mxu0 %v5193_v61  ;;  %v9763_v56 = vpop.f32.mrb[151].mxu0  ;;  %v5613_v61 = vld [vmem:[%s12091_s30 + $0x20] sm:$0xff] }
 0x782   : > { %11568 = vmatpush3.bf16.msra.mxu0 %v11567_v42  ;;  %9831 = vmatprep.mubr.msk.f32.mxu0 %vm12021_vm1, %v14880_v1  ;;  %v5611_v42 = vld [vmem:[%s12091_s30 + $0x10] sm:$0xff]  ;;  %v5614_v56 = vld [vmem:[%s12091_s30 + $0x28] sm:$0xff] }
 0x783   : > { %11569 = vmatprep.subr.bf16.mxu0 %v12020_v31  ;;  %v11645_v38 = vpack.c.bf16 %v5612_v52, %v5611_v42  ;;  %v7659_v52 = vld [vmem:[%s12091_s30 + $0x100] sm:$0xff] }
 0x786   : > { %11571 = vmatpush3.bf16.msra.mxu0 %v11570_v20  ;;  %v11648_v20 = vpack.c.bf16 %v5614_v56, %v5613_v61 }
 0x787   : > { %11572 = vmatprep.subr.bf16.mxu0 %v12020_v31 }
 0x78a   : > { %11574 = vmatpush3.bf16.msra.mxu0 %v11573_v24  ;;  %v11651_v24 = vpack.c.bf16 %v5616_v29, %v5615_v49  ;;  %v7661_v29 = vld [vmem:[%s12091_s30 + $0x110] sm:$0xff] }
 0x78b   : > { %11575 = vmatprep.subr.bf16.mxu0 %v12020_v31 }
 0x78e   : > { %11577 = vmatpush3.bf16.msra.mxu0 %v11576_v22  ;;  %v11654_v22 = vpack.c.bf16 %v5618_v59, %v5617_v51  ;;  %v7663_v59 = vld [vmem:[%s12091_s30 + $0x120] sm:$0xff] }
 0x78f   : > { %11578 = vmatprep.subr.bf16.mxu0 %v12020_v31 }
 0x792   : > { %11580 = vmatpush3.bf16.msra.mxu0 %v11579_v5  ;;  %v11657_v5 = vpack.c.bf16 %v5620_v12, %v5619_v62  ;;  %v7665_v12 = vld [vmem:[%s12091_s30 + $0x130] sm:$0xff] }
 0x793   : > { %11581 = vmatprep.subr.bf16.mxu0 %v12020_v31 }
 0x796   : > { %11583 = vmatpush3.bf16.msra.mxu0 %v11582_v18  ;;  %v11660_v18 = vpack.c.bf16 %v5622_v4, %v5621_v30  ;;  %v7667_v4 = vld [vmem:[%s12091_s30 + $0x140] sm:$0xff] }
 0x797   : > { %11584 = vmatprep.subr.bf16.mxu0 %v12020_v31 }
 0x79a   : > { %11586 = vmatpush3.bf16.msra.mxu0 %v11585_v32  ;;  %v11663_v32 = vpack.c.bf16 %v5624_v27, %v5623_v23  ;;  %v7669_v27 = vld [vmem:[%s12091_s30 + $0x150] sm:$0xff] }
 0x79b   : > { %11587 = vmatprep.subr.bf16.mxu0 %v12020_v31 }
 0x79e   : > { %11589 = vmatpush3.bf16.msra.mxu0 %v11588_v19 }
 0x79f   : > { %11590 = vmatprep.subr.bf16.mxu0 %v12020_v31 }
 0x7a1   : > { %9832 = vmatmul.mubr.f32.vlgmr.msra.gmra.mrb[154].mxu0 %v5102_v6  ;;  %v5610_v6 = vld [vmem:[%s12091_s30 + $0x8] sm:$0xff] }
 0x7a2   : > { %11592 = vmatpush3.bf16.msra.mxu0 %v13939_v40  ;;  %9838 = vmatprep.mubr.msk.f32.mxu0 %vm12021_vm1, %v14880_v1  ;;  %v7625_v40 = vld [vmem:[%s12076_s14 + $0x118] sm:$0xff]  ;;  %v11642_v26 = vpack.c.bf16 %v5610_v6, %v5609_v63 }
 0x7a3   : > { %11593 = vmatprep.subr.bf16.mxu0 %v12020_v31  ;;  %v11597_v21 = vpack.c.bf16 %v7625_v40, %v7624_v47  ;;  %v5527_v47 = vrot.slane %v5517_v28, %v13861_v60  ;;  %v5532_v40 = vrot.slane %v5517_v28, %v13863_v39  ;;  %v7656_v63 = vld [vmem:[%s12091_s30 + $0xf8] sm:$0xff] }
 0x7a5   : > { %9839 = vmatmul.mubr.msk.f32.vlgmr.msra.gmra.mrb[156].mxu0 %vm5032_vm2, %v7620_v2 }
 0x7a6   : > { %9873 = vmatprep.mubr.msk.f32.mxu0 %vm12021_vm1, %v14880_v1  ;;  %11595 = vmatpush3.bf16.msra.mxu0 %v11594_v44 }
 0x7a7   : > { %11596 = vmatprep.subr.bf16.mxu0 %v12020_v31 }
 0x7aa   : > { %11598 = vmatpush3.bf16.msra.mxu0 %v11597_v21 }
 0x7ab   : > { %11599 = vmatprep.subr.bf16.mxu0 %v12020_v31 }
 0x7ae   : > { %11601 = vmatpush3.bf16.msra.mxu0 %v11600_v7  ;;  %v7641_v7 = vld [vmem:[%s12091_s30 + $0x80] sm:$0xff] }
 0x7af   : > { %11602 = vmatprep.subr.bf16.mxu0 %v12020_v31 }
 0x7b2   : > { %11604 = vmatpush3.bf16.msra.mxu0 %v11603_v54  ;;  %v11618_v54 = vpack.c.bf16 %v7642_v36, %v7641_v7 }
 0x7b3   : > { %11605 = vmatprep.subr.bf16.mxu0 %v12020_v31 }
 0x7b6   : > { %11607 = vmatpush3.bf16.msra.mxu0 %v11606_v45  ;;  %v11621_v45 = vpack.c.bf16 %v7644_v13, %v7643_v37  ;;  %v6118_v13 = vld [vmem:[%s12106_s20 + $0x10] sm:$0xff] }
 0x7b7   : > { %11608 = vmatprep.subr.bf16.mxu0 %v12020_v31 }
 0x7ba   : > { %11610 = vmatpush3.bf16.msra.mxu0 %v11609_v25  ;;  %v11624_v25 = vpack.c.bf16 %v7646_v10, %v7645_v8  ;;  %v6120_v10 = vld [vmem:[%s12106_s20 + $0x20] sm:$0xff] }
 0x7bb   : > { %11611 = vmatprep.subr.bf16.mxu0 %v12020_v31 }
 0x7be   : > { %11613 = vmatpush3.bf16.msra.mxu0 %v11612_v0  ;;  %v11627_v0 = vpack.c.bf16 %v7648_v57, %v7647_v53  ;;  %v6122_v57 = vld [vmem:[%s12106_s20 + $0x30] sm:$0xff] }
 0x7bf   : > { %11614 = vmatprep.subr.bf16.mxu0 %v12020_v31 }
 0x7c2   : > { %11616 = vmatpush3.bf16.msra.mxu0 %v11615_v11  ;;  %v11630_v11 = vpack.c.bf16 %v7650_v3, %v7649_v15  ;;  %v6124_v3 = vld [vmem:[%s12106_s20 + $0x40] sm:$0xff] }
 0x7c3   : > { %11641 = vmatprep.subr.bf16.mxu0 %v12020_v31 }
 0x854   : > { %v5280_v33 = vpop.f32.mrb[152].mxu0 }
 0x855   : > { %v9798_v55 = vpop.f32.mrb[153].mxu0 }
 0x856   : > { %v7652_v55 = vld [vmem:[%s12091_s30 + $0xd8] sm:$0xff] }
 0x874   : > { %v5350_v34 = vpop.f32.mrb[154].mxu0 }
 0x875   : > { %v5351_v9 = vadd.f32 %v5350_v34, %v5280_v33  ;;  %v9833_v50 = vpop.f32.mrb[155].mxu0  ;;  %v7651_v33 = vld [vmem:[%s12091_s30 + $0xd0] sm:$0xff] }
 0x876   : > { %v11633_v34 = vpack.c.bf16 %v7652_v55, %v7651_v33  ;;  %v7654_v50 = vld [vmem:[%s12091_s30 + $0xe8] sm:$0xff]  ;;  %v6126_v55 = vld [vmem:[%s12106_s20 + $0x50] sm:$0xff] }
 0x878   : > { %v5425_v41 = vpop.f32.mrb[156].mxu0 }
 0x879   : > { %9874 = vmatmul.mubr.f32.vlgmr.msra.gmra.mrb[158].mxu0 %v5425_v41  ;;  %v9840_v48 = vpop.f32.mrb[157].mxu0 }
 0x87a   : > { %9953 = vmatprep.mubr.msk.f32.mxu0 %vm12021_vm1, %v14880_v1  ;;  %11643 = vmatpush3.bf16.msra.mxu0 %v11642_v26  ;;  %v7655_v48 = vld [vmem:[%s12091_s30 + $0xf0] sm:$0xff] }
 0x87b   : > { %11644 = vmatprep.subr.bf16.mxu0 %v12020_v31  ;;  %v11639_v6 = vpack.c.bf16 %v7656_v63, %v7655_v48  ;;  %v6020_v63 = vld [vmem:[%s12096_s6] sm:$0x7] }
 0x87e   : > { %11646 = vmatpush3.bf16.msra.mxu0 %v11645_v38  ;;  %v7660_v38 = vld [vmem:[%s12091_s30 + $0x108] sm:$0xff] }
 0x87f   : > { %11647 = vmatprep.subr.bf16.mxu0 %v12020_v31  ;;  %v11666_v49 = vpack.c.bf16 %v7660_v38, %v7659_v52 }
 0x882   : > { %11649 = vmatpush3.bf16.msra.mxu0 %v11648_v20  ;;  %v7657_v20 = vld [vmem:[%s12086_s24 + $0x8] sm:$0xf] }
 0x883   : > { %11650 = vmatprep.subr.bf16.mxu0 %v12020_v31 }
 0x886   : > { %11652 = vmatpush3.bf16.msra.mxu0 %v11651_v24  ;;  %v7662_v24 = vld [vmem:[%s12091_s30 + $0x118] sm:$0xff] }
 0x887   : > { %11653 = vmatprep.subr.bf16.mxu0 %v12020_v31  ;;  %v11669_v51 = vpack.c.bf16 %v7662_v24, %v7661_v29  ;;  %v6037_v24 = vld [vmem:[%s14881_s28] sm:$0x3] }
 0x88a   : > { %11655 = vmatpush3.bf16.msra.mxu0 %v11654_v22  ;;  %v7664_v22 = vld [vmem:[%s12091_s30 + $0x128] sm:$0xff] }
 0x88b   : > { %11656 = vmatprep.subr.bf16.mxu0 %v12020_v31  ;;  %v11672_v62 = vpack.c.bf16 %v7664_v22, %v7663_v59  ;;  %v7681_v59 = vld [vmem:[%s12106_s20 + $0x88] sm:$0xff]  ;;  %v7677_v22 = vld [vmem:[%s14881_s28 + $0x2] sm:$0x3] }
 0x88e   : > { %11658 = vmatpush3.bf16.msra.mxu0 %v11657_v5  ;;  %v7666_v5 = vld [vmem:[%s12091_s30 + $0x138] sm:$0xff] }
 0x88f   : > { %11659 = vmatprep.subr.bf16.mxu0 %v12020_v31  ;;  %v11675_v30 = vpack.c.bf16 %v7666_v5, %v7665_v12  ;;  %v7682_v12 = vld [vmem:[%s12106_s20 + $0x90] sm:$0xff]  ;;  %v7683_v5 = vld [vmem:[%s12106_s20 + $0x98] sm:$0xff] }
 0x892   : > { %11661 = vmatpush3.bf16.msra.mxu0 %v11660_v18  ;;  %v7668_v18 = vld [vmem:[%s12091_s30 + $0x148] sm:$0xff] }
 0x893   : > { %11662 = vmatprep.subr.bf16.mxu0 %v12020_v31  ;;  %v11678_v23 = vpack.c.bf16 %v7668_v18, %v7667_v4  ;;  %v7684_v4 = vld [vmem:[%s12106_s20 + $0xa0] sm:$0xff]  ;;  %v7685_v18 = vld [vmem:[%s12106_s20 + $0xa8] sm:$0xff] }
 0x896   : > { %11664 = vmatpush3.bf16.msra.mxu0 %v11663_v32  ;;  %v7670_v32 = vld [vmem:[%s12091_s30 + $0x158] sm:$0xff] }
 0x897   : > { %9996 = vmatprep.subr.mxu0 %v14880_v1  ;;  %v11681_v28 = vpack.c.bf16 %v7670_v32, %v7669_v27  ;;  %v7686_v27 = vld [vmem:[%s12106_s20 + $0xb0] sm:$0xff]  ;;  %v7687_v32 = vld [vmem:[%s12106_s20 + $0xb8] sm:$0xff] }
 0x94c   : > { %v5512_v19 = vpop.f32.mrb[158].mxu0 }
 0x94d   : > { %v5516_v2 = vadd.f32 %v5512_v19, %v5351_v9  ;;  %v9875_v14 = vpop.f32.mrb[159].mxu0  ;;  %v7653_v9 = vld [vmem:[%s12091_s30 + $0xe0] sm:$0xff]  ;;  %v7672_v19 = vld [vmem:[%s12091_s30 + $0x168] sm:$0xff] }
 0x94e   : > { %v11636_v41 = vpack.c.bf16 %v7654_v50, %v7653_v9  ;;  %v7673_v14 = vld [vmem:[%s12091_s30 + $0x170] sm:$0xff]  ;;  %v6128_v50 = vld [vmem:[%s12106_s20 + $0x60] sm:$0xff] }
 0x94f   : > { %v5522_v17 = vadd.f32 %v5521_v16, %v5516_v2  ;;  %v7671_v16 = vld [vmem:[%s12091_s30 + $0x160] sm:$0xff] }
 0x950   : > { %v11684_v2 = vpack.c.bf16 %v7672_v19, %v7671_v16  ;;  %v7688_v16 = vld [vmem:[%s12106_s20 + $0xc0] sm:$0xff]  ;;  %v7689_v19 = vld [vmem:[%s12106_s20 + $0xc8] sm:$0xff] }
 0x951   : > { %v5523_v44 = vmax.f32 %v5522_v17, 0.0  ;;  %v7674_v17 = vld [vmem:[%s12091_s30 + $0x178] sm:$0xff] }
 0x953   : > { %v5528_v21 = vmul.f32 %v5527_v47, %v5523_v44  ;;  %v11687_v47 = vpack.c.bf16 %v7674_v17, %v7673_v14  ;;  %v7690_v14 = vld [vmem:[%s12106_s20 + $0xd0] sm:$0xff]  ;;  %v7691_v17 = vld [vmem:[%s12106_s20 + $0xd8] sm:$0xff] }
 0x955   : > { %v5533_v35 = vadd.f32 %v5532_v40, %v5528_v21 }
 0x957   : > { %9877 = vmatpush3.msra.mxu1 %v5533_v35 }
 0x958   : > { %9879 = vmatmul.mubr.msk.f32.vlgmr.msra.gmra.mrb[44].mxu1 %vm5535_vm3, %v5534_v58  ;;  %9881 = vmatprep.subr.mxu1 %v14880_v1 }
 0x959   : > { %9882 = vmatpush3.msra.mxu1 %v5533_v35  ;;  %9883 = vmatprep.mubr.msk.f32.mxu1 %vm12021_vm1, %v14880_v1 }
 0x95a   : > { %11617 = vmatprep.subr.bf16.mxu1 %v12020_v31 }
 0x95c   : > { %9884 = vmatmul.mubr.msk.f32.vlgmr.msra.gmra.mrb[46].mxu1 %vm5535_vm3, %v7639_v43  ;;  %v6116_v43 = vld [vmem:[%s12106_s20] sm:$0xff] }
 0x95d   : > { %11619 = vmatpush3.bf16.msra.mxu1 %v11618_v54  ;;  %9918 = vmatprep.mubr.msk.f32.mxu1 %vm12021_vm1, %v14880_v1  ;;  %v6117_v54 = vld [vmem:[%s12106_s20 + $0x8] sm:$0xff] }
 0x95e   : > { %11620 = vmatprep.subr.bf16.mxu1 %v12020_v31  ;;  %v11714_v37 = vpack.c.bf16 %v6117_v54, %v6116_v43  ;;  %v6131_v43 = vld [vmem:[%s12106_s20 + $0x78] sm:$0xff] }
 0x961   : > { %11622 = vmatpush3.bf16.msra.mxu1 %v11621_v45  ;;  %v6119_v45 = vld [vmem:[%s12106_s20 + $0x18] sm:$0xff] }
 0x962   : > { %11623 = vmatprep.subr.bf16.mxu1 %v12020_v31  ;;  %v11717_v8 = vpack.c.bf16 %v6119_v45, %v6118_v13  ;;  %v7699_v45 = vld [vmem:[%s12106_s20 + $0x100] sm:$0xff] }
 0x965   : > { %11625 = vmatpush3.bf16.msra.mxu1 %v11624_v25  ;;  %v6121_v25 = vld [vmem:[%s12106_s20 + $0x28] sm:$0xff] }
 0x966   : > { %11626 = vmatprep.subr.bf16.mxu1 %v12020_v31  ;;  %v11720_v53 = vpack.c.bf16 %v6121_v25, %v6120_v10 }
 0x969   : > { %11628 = vmatpush3.bf16.msra.mxu1 %v11627_v0  ;;  %v6123_v0 = vld [vmem:[%s12106_s20 + $0x38] sm:$0xff] }
 0x96a   : > { %11629 = vmatprep.subr.bf16.mxu1 %v12020_v31  ;;  %v11723_v15 = vpack.c.bf16 %v6123_v0, %v6122_v57  ;;  %v7701_v0 = vld [vmem:[%s12106_s20 + $0x110] sm:$0xff] }
 0x96d   : > { %11631 = vmatpush3.bf16.msra.mxu1 %v11630_v11  ;;  %v6125_v11 = vld [vmem:[%s12106_s20 + $0x48] sm:$0xff] }
 0x96e   : > { %11632 = vmatprep.subr.bf16.mxu1 %v12020_v31  ;;  %v11726_v33 = vpack.c.bf16 %v6125_v11, %v6124_v3  ;;  %v7703_v11 = vld [vmem:[%s12106_s20 + $0x120] sm:$0xff] }
 0x971   : > { %11634 = vmatpush3.bf16.msra.mxu1 %v11633_v34  ;;  %v6127_v34 = vld [vmem:[%s12106_s20 + $0x58] sm:$0xff] }
 0x972   : > { %11635 = vmatprep.subr.bf16.mxu1 %v12020_v31  ;;  %v11729_v9 = vpack.c.bf16 %v6127_v34, %v6126_v55  ;;  %v7705_v34 = vld [vmem:[%s12106_s20 + $0x130] sm:$0xff] }
 0x975   : > { %11637 = vmatpush3.bf16.msra.mxu1 %v11636_v41  ;;  %v6129_v41 = vld [vmem:[%s12106_s20 + $0x68] sm:$0xff] }
 0x976   : > { %11638 = vmatprep.subr.bf16.mxu1 %v12020_v31  ;;  %v11732_v48 = vpack.c.bf16 %v6129_v41, %v6128_v50  ;;  %v7707_v41 = vld [vmem:[%s12106_s20 + $0x140] sm:$0xff] }
 0x979   : > { %11640 = vmatpush3.bf16.msra.mxu1 %v11639_v6  ;;  %v6024_v6 = vrot.slane %v6020_v63, %v13856_v46 }
 0x97a   : > { %9956 = vmatprep.subr.mxu1 %v14880_v1 }
 0xa2b   : > { %v5605_v26 = vpop.f32.mrb[44].mxu1 }
 0xa2c   : > { %v9880_v42 = vpop.f32.mrb[45].mxu1  ;;  %9954 = vmatmul.mubr.f32.vlgmr.msra.gmra.mrb[160].mxu0 %v5605_v26 }
 0xa2d   : > { %9998 = vmatprep.mubr.msk.f32.mxu0 %vm12021_vm1, %v14880_v1 }
 0xa2f   : > { %v5696_v61 = vpop.f32.mrb[46].mxu1 }
 0xa30   : > { %9919 = vmatmul.mubr.f32.vlgmr.msra.gmra.mrb[48].mxu1 %v5696_v61  ;;  %v9885_v56 = vpop.f32.mrb[47].mxu1  ;;  %v6030_v61 = vrot.slane %v6020_v63, %v13861_v60 }
 0xa31   : > { %9957 = vmatpush3.msra.mxu1 %v5533_v35  ;;  %9958 = vmatprep.mubr.msk.f32.mxu1 %vm12021_vm1, %v14880_v1 }
 0xa32   : > { %11665 = vmatprep.subr.bf16.mxu1 %v12020_v31 }
 0xa34   : > { %9959 = vmatmul.mubr.msk.f32.vlgmr.msra.gmra.mrb[50].mxu1 %vm5535_vm3, %v7657_v20  ;;  %v6035_v20 = vrot.slane %v6020_v63, %v13863_v39 }
 0xa35   : > { %11667 = vmatpush3.bf16.msra.mxu1 %v11666_v49  ;;  %9993 = vmatprep.mubr.msk.f32.mxu1 %vm12021_vm1, %v14880_v1 }
 0xa36   : > { %11668 = vmatprep.subr.bf16.mxu1 %v12020_v31 }
 0xa39   : > { %11670 = vmatpush3.bf16.msra.mxu1 %v11669_v51  ;;  %v7680_v51 = vld [vmem:[%s12106_s20 + $0x80] sm:$0xff] }
 0xa3a   : > { %11671 = vmatprep.subr.bf16.mxu1 %v12020_v31 }
 0xa3d   : > { %11673 = vmatpush3.bf16.msra.mxu1 %v11672_v62  ;;  %v11690_v62 = vpack.c.bf16 %v7681_v59, %v7680_v51  ;;  %v6562_v59 = vld [vmem:[%s14882_s1 + $0x10] sm:$0xff] }
 0xa3e   : > { %11674 = vmatprep.subr.bf16.mxu1 %v12020_v31 }
 0xa41   : > { %11676 = vmatpush3.bf16.msra.mxu1 %v11675_v30  ;;  %v11693_v30 = vpack.c.bf16 %v7683_v5, %v7682_v12  ;;  %v6564_v12 = vld [vmem:[%s14882_s1 + $0x20] sm:$0xff]  ;;  %v6565_v5 = vld [vmem:[%s14882_s1 + $0x28] sm:$0xff] }
 0xa42   : > { %11677 = vmatprep.subr.bf16.mxu1 %v12020_v31 }
 0xa45   : > { %11679 = vmatpush3.bf16.msra.mxu1 %v11678_v23  ;;  %v11696_v23 = vpack.c.bf16 %v7685_v18, %v7684_v4  ;;  %v6566_v4 = vld [vmem:[%s14882_s1 + $0x30] sm:$0xff]  ;;  %v6567_v18 = vld [vmem:[%s14882_s1 + $0x38] sm:$0xff] }
 0xa46   : > { %11680 = vmatprep.subr.bf16.mxu1 %v12020_v31 }
 0xa49   : > { %11682 = vmatpush3.bf16.msra.mxu1 %v11681_v28  ;;  %v11699_v28 = vpack.c.bf16 %v7687_v32, %v7686_v27  ;;  %v6568_v27 = vld [vmem:[%s14882_s1 + $0x40] sm:$0xff]  ;;  %v6569_v32 = vld [vmem:[%s14882_s1 + $0x48] sm:$0xff] }
 0xa4a   : > { %11683 = vmatprep.subr.bf16.mxu1 %v12020_v31 }
 0xa4d   : > { %11685 = vmatpush3.bf16.msra.mxu1 %v11684_v2  ;;  %v11702_v2 = vpack.c.bf16 %v7689_v19, %v7688_v16 }
 0xa4e   : > { %11686 = vmatprep.subr.bf16.mxu1 %v12020_v31 }
 0xa51   : > { %11688 = vmatpush3.bf16.msra.mxu1 %v11687_v47  ;;  %v11705_v47 = vpack.c.bf16 %v7691_v17, %v7690_v14  ;;  %v6545_v14 = vld [vmem:[%s14883_s2 + $0x8] sm:$0xff] }
 0xa52   : > { %11713 = vmatprep.subr.bf16.mxu1 %v12020_v31 }
 0xaff   : > { %v5853_v44 = vpop.f32.mrb[160].mxu0 }
 0xb00   : > { %v9955_v40 = vpop.f32.mrb[161].mxu0 }
 0xb01   : > { %v7693_v40 = vld [vmem:[%s12106_s20 + $0xe8] sm:$0xff] }
 0xb03   : > { %v5783_v21 = vpop.f32.mrb[48].mxu1 }
 0xb04   : > { %v5854_v35 = vadd.f32 %v5853_v44, %v5783_v21  ;;  %v9920_v58 = vpop.f32.mrb[49].mxu1  ;;  %v7692_v44 = vld [vmem:[%s12106_s20 + $0xe0] sm:$0xff] }
 0xb05   : > { %v11708_v21 = vpack.c.bf16 %v7693_v40, %v7692_v44  ;;  %v7695_v58 = vld [vmem:[%s12106_s20 + $0xf8] sm:$0xff] }
 0xb07   : > { %v5928_v7 = vpop.f32.mrb[50].mxu1 }
 0xb08   : > { %9994 = vmatmul.mubr.f32.vlgmr.msra.gmra.mrb[52].mxu1 %v5928_v7  ;;  %v9960_v36 = vpop.f32.mrb[51].mxu1 }
 0xb09   : > { %10073 = vmatprep.mubr.msk.f32.mxu1 %vm12021_vm1, %v14880_v1  ;;  %11715 = vmatpush3.bf16.msra.mxu1 %v11714_v37  ;;  %v6130_v36 = vld [vmem:[%s12106_s20 + $0x70] sm:$0xff] }
 0xb0a   : > { %11716 = vmatprep.subr.bf16.mxu1 %v12020_v31  ;;  %v11735_v54 = vpack.c.bf16 %v6131_v43, %v6130_v36  ;;  %v6548_v43 = vld [vmem:[%s14883_s2 + $0x20] sm:$0xff] }
 0xb0d   : > { %11718 = vmatpush3.bf16.msra.mxu1 %v11717_v8  ;;  %v7700_v8 = vld [vmem:[%s12106_s20 + $0x108] sm:$0xff] }
 0xb0e   : > { %11719 = vmatprep.subr.bf16.mxu1 %v12020_v31  ;;  %v11738_v57 = vpack.c.bf16 %v7700_v8, %v7699_v45  ;;  %v6551_v45 = vld [vmem:[%s14883_s2 + $0x38] sm:$0xff] }
 0xb11   : > { %11721 = vmatpush3.bf16.msra.mxu1 %v11720_v53  ;;  %v7696_v53 = vld [vmem:[%s14881_s28 + $0x4] sm:$0x3] }
 0xb12   : > { %11722 = vmatprep.subr.bf16.mxu1 %v12020_v31 }
 0xb15   : > { %11724 = vmatpush3.bf16.msra.mxu1 %v11723_v15  ;;  %v7702_v15 = vld [vmem:[%s12106_s20 + $0x118] sm:$0xff] }
 0xb16   : > { %11725 = vmatprep.subr.bf16.mxu1 %v12020_v31  ;;  %v11741_v3 = vpack.c.bf16 %v7702_v15, %v7701_v0  ;;  %v6555_v0 = vld [vmem:[%s14883_s2 + $0x58] sm:$0xff] }
 0xb19   : > { %11727 = vmatpush3.bf16.msra.mxu1 %v11726_v33  ;;  %v7704_v33 = vld [vmem:[%s12106_s20 + $0x128] sm:$0xff] }
 0xb1a   : > { %11728 = vmatprep.subr.bf16.mxu1 %v12020_v31  ;;  %v11744_v55 = vpack.c.bf16 %v7704_v33, %v7703_v11  ;;  %v6571_v11 = vld [vmem:[%s14882_s1 + $0x58] sm:$0xff] }
 0xb1d   : > { %11730 = vmatpush3.bf16.msra.mxu1 %v11729_v9  ;;  %v7706_v9 = vld [vmem:[%s12106_s20 + $0x138] sm:$0xff] }
 0xb1e   : > { %11731 = vmatprep.subr.bf16.mxu1 %v12020_v31  ;;  %v11747_v50 = vpack.c.bf16 %v7706_v9, %v7705_v34  ;;  %v6557_v34 = vld [vmem:[%s14883_s2 + $0x68] sm:$0xff] }
 0xb21   : > { %11733 = vmatpush3.bf16.msra.mxu1 %v11732_v48  ;;  %v7708_v48 = vld [vmem:[%s12106_s20 + $0x148] sm:$0xff] }
 0xb22   : > { %11734 = vmatprep.subr.bf16.mxu1 %v12020_v31  ;;  %v11750_v63 = vpack.c.bf16 %v7708_v48, %v7707_v41  ;;  %v6573_v41 = vld [vmem:[%s14882_s1 + $0x68] sm:$0xff] }
 0xb25   : > { %11736 = vmatpush3.bf16.msra.mxu1 %v11735_v54  ;;  %v6549_v54 = vld [vmem:[%s14883_s2 + $0x28] sm:$0xff] }
 0xb26   : > { %11761 = vmatprep.subr.bf16.mxu1 %v12020_v31 }
 0xbdb   : > { %v6015_v26 = vpop.f32.mrb[52].mxu1 }
 0xbdc   : > { %v6019_v42 = vadd.f32 %v6015_v26, %v5854_v35  ;;  %v9995_v52 = vpop.f32.mrb[53].mxu1  ;;  %v7694_v35 = vld [vmem:[%s12106_s20 + $0xf0] sm:$0xff]  ;;  %v7710_v26 = vld [vmem:[%s12106_s20 + $0x158] sm:$0xff] }
 0xbdd   : > { %v11711_v7 = vpack.c.bf16 %v7695_v58, %v7694_v35  ;;  %v7711_v52 = vld [vmem:[%s12106_s20 + $0x160] sm:$0xff]  ;;  %v6547_v35 = vld [vmem:[%s14883_s2 + $0x18] sm:$0xff] }
 0xbde   : > { %v6025_v38 = vadd.f32 %v6024_v6, %v6019_v42  ;;  %v7709_v6 = vld [vmem:[%s12106_s20 + $0x150] sm:$0xff] }
 0xbdf   : > { %v11753_v42 = vpack.c.bf16 %v7710_v26, %v7709_v6  ;;  %v6559_v6 = vld [vmem:[%s14883_s2 + $0x78] sm:$0xff] }
 0xbe0   : > { %v6026_v56 = vmax.f32 %v6025_v38, 0.0  ;;  %v7712_v38 = vld [vmem:[%s12106_s20 + $0x168] sm:$0xff] }
 0xbe2   : > { %v6031_v49 = vmul.f32 %v6030_v61, %v6026_v56  ;;  %v11756_v61 = vpack.c.bf16 %v7712_v38, %v7711_v52  ;;  %v7713_v56 = vld [vmem:[%s12106_s20 + $0x170] sm:$0xff]  ;;  %v6575_v52 = vld [vmem:[%s14882_s1 + $0x78] sm:$0xff] }
 0xbe4   : > { %v14159_v29 = vadd.f32 %v6035_v20, %v6031_v49  ;;  %v7714_v20 = vld [vmem:[%s12106_s20 + $0x178] sm:$0xff] }
 0xbe5   : > { %v11759_v49 = vpack.c.bf16 %v7714_v20, %v7713_v56 }
 0xbe6   : > { %9997 = vmatpush3.msk.msra.mxu0 %vm6042_vm4, %v14159_v29 }
 0xbe7   : > { %9999 = vmatmul.mubr.msk.f32.vlgmr.msra.gmra.mrb[162].mxu0 %vm6038_vm5, %v6037_v24  ;;  %10001 = vmatprep.subr.mxu0 %v14880_v1  ;;  %v6561_v24 = vld [vmem:[%s14882_s1 + $0x8] sm:$0xff] }
 0xbe8   : > { %10002 = vmatpush3.msk.msra.mxu0 %vm6042_vm4, %v14159_v29  ;;  %10003 = vmatprep.mubr.msk.f32.mxu0 %vm12021_vm1, %v14880_v1 }
 0xbe9   : > { %11689 = vmatprep.subr.bf16.mxu0 %v12020_v31 }
 0xbeb   : > { %10004 = vmatmul.mubr.msk.f32.vlgmr.msra.gmra.mrb[164].mxu0 %vm6038_vm5, %v7677_v22  ;;  %v6563_v22 = vld [vmem:[%s14882_s1 + $0x18] sm:$0xff] }
 0xbec   : > { %11691 = vmatpush3.bf16.msra.mxu0 %v11690_v62  ;;  %10038 = vmatprep.mubr.msk.f32.mxu0 %vm12021_vm1, %v14880_v1  ;;  %v11765_v62 = vpack.c.bf16 %v6563_v22, %v6562_v59 }
 0xbed   : > { %11692 = vmatprep.subr.bf16.mxu0 %v12020_v31 }
 0xbf0   : > { %11694 = vmatpush3.bf16.msra.mxu0 %v11693_v30  ;;  %v11768_v30 = vpack.c.bf16 %v6565_v5, %v6564_v12  ;;  %v6722_v12 = vld [vmem:[%s14885_s10] sm:$0xff]  ;;  %v6723_v5 = vld [vmem:[%s14885_s10 + $0x8] sm:$0xff] }
 0xbf1   : > { %11695 = vmatprep.subr.bf16.mxu0 %v12020_v31 }
 0xbf4   : > { %11697 = vmatpush3.bf16.msra.mxu0 %v11696_v23  ;;  %v11771_v23 = vpack.c.bf16 %v6567_v18, %v6566_v4  ;;  %v11810_v4 = vpack.c.bf16 %v6723_v5, %v6722_v12  ;;  %v6724_v18 = vld [vmem:[%s14885_s10 + $0x10] sm:$0xff] }
 0xbf5   : > { %11698 = vmatprep.subr.bf16.mxu0 %v12020_v31 }
 0xbf8   : > { %11700 = vmatpush3.bf16.msra.mxu0 %v11699_v28  ;;  %v11774_v28 = vpack.c.bf16 %v6569_v32, %v6568_v27  ;;  %v6727_v27 = vld [vmem:[%s14885_s10 + $0x28] sm:$0xff] }
 0xbf9   : > { %11701 = vmatprep.subr.bf16.mxu0 %v12020_v31 }
 0xbfc   : > { %11703 = vmatpush3.bf16.msra.mxu0 %v11702_v2  ;;  %v6544_v2 = vld [vmem:[%s14883_s2] sm:$0xff] }
 0xbfd   : > { %11704 = vmatprep.subr.bf16.mxu0 %v12020_v31  ;;  %v11786_v40 = vpack.c.bf16 %v6545_v14, %v6544_v2  ;;  %v6730_v2 = vld [vmem:[%s14885_s10 + $0x40] sm:$0xff]  ;;  %v6731_v14 = vld [vmem:[%s14885_s10 + $0x48] sm:$0xff] }
 0xc00   : > { %11706 = vmatpush3.bf16.msra.mxu0 %v11705_v47 }
 0xc01   : > { %11707 = vmatprep.subr.bf16.mxu0 %v12020_v31 }
 0xc04   : > { %11709 = vmatpush3.bf16.msra.mxu0 %v11708_v21  ;;  %v6546_v21 = vld [vmem:[%s14883_s2 + $0x10] sm:$0xff] }
 0xc05   : > { %11710 = vmatprep.subr.bf16.mxu0 %v12020_v31  ;;  %v11789_v36 = vpack.c.bf16 %v6547_v35, %v6546_v21  ;;  %v6734_v21 = vld [vmem:[%s14885_s10 + $0x60] sm:$0xff]  ;;  %v6735_v35 = vld [vmem:[%s14885_s10 + $0x68] sm:$0xff] }
 0xc08   : > { %11712 = vmatpush3.bf16.msra.mxu0 %v11711_v7 }
 0xc09   : > { %10076 = vmatprep.subr.mxu0 %v14880_v1 }
 0xcba   : > { %v6112_v37 = vpop.f32.mrb[162].mxu0 }
 0xcbb   : > { %v10000_v13 = vpop.f32.mrb[163].mxu0  ;;  %10074 = vmatmul.mubr.f32.vlgmr.msra.gmra.mrb[54].mxu1 %v6112_v37  ;;  %v11792_v37 = vpack.c.bf16 %v6549_v54, %v6548_v43  ;;  %v6810_v54 = vld [vmem:[%s14886_s11] sm:$0xff] }
 0xcbc   : > { %10148 = vmatprep.mubr.msk.f32.mxu1 %vm12021_vm1, %v14880_v1  ;;  %v6550_v13 = vld [vmem:[%s14883_s2 + $0x30] sm:$0xff] }
 0xcbd   : > { %v11795_v8 = vpack.c.bf16 %v6551_v45, %v6550_v13  ;;  %v6812_v13 = vld [vmem:[%s14886_s11 + $0x10] sm:$0xff] }
 0xcbe   : > { %v6203_v10 = vpop.f32.mrb[164].mxu0 }
 0xcbf   : > { %10039 = vmatmul.mubr.f32.vlgmr.msra.gmra.mrb[166].mxu0 %v6203_v10  ;;  %v10005_v25 = vpop.f32.mrb[165].mxu0  ;;  %v6552_v10 = vld [vmem:[%s14883_s2 + $0x40] sm:$0xff] }
 0xcc0   : > { %10077 = vmatpush3.msk.msra.mxu0 %vm6042_vm4, %v14159_v29  ;;  %10078 = vmatprep.mubr.msk.f32.mxu0 %vm12021_vm1, %v14880_v1  ;;  %v6560_v29 = vld [vmem:[%s14882_s1] sm:$0xff]  ;;  %v6553_v25 = vld [vmem:[%s14883_s2 + $0x48] sm:$0xff] }
 0xcc1   : > { %11737 = vmatprep.subr.bf16.mxu0 %v12020_v31  ;;  %v11762_v51 = vpack.c.bf16 %v6561_v24, %v6560_v29 }
 0xcc3   : > { %10079 = vmatmul.mubr.msk.f32.vlgmr.msra.gmra.mrb[168].mxu0 %vm6038_vm5, %v7696_v53  ;;  %11763 = vmatpush3.bf16.msra.mxu1 %v11762_v51  ;;  %v11798_v53 = vpack.c.bf16 %v6553_v25, %v6552_v10  ;;  %v6814_v25 = vld [vmem:[%s14886_s11 + $0x20] sm:$0xff] }
 0xcc4   : > { %11739 = vmatpush3.bf16.msra.mxu0 %v11738_v57  ;;  %10113 = vmatprep.mubr.msk.f32.mxu0 %vm12021_vm1, %v14880_v1  ;;  %v6554_v57 = vld [vmem:[%s14883_s2 + $0x50] sm:$0xff] }
 0xcc5   : > { %11740 = vmatprep.subr.bf16.mxu0 %v12020_v31  ;;  %11764 = vmatprep.subr.bf16.mxu1 %v12020_v31  ;;  %v11801_v15 = vpack.c.bf16 %v6555_v0, %v6554_v57 }
 0xcc7   : > { %11766 = vmatpush3.bf16.msra.mxu1 %v11765_v62 }
 0xcc8   : > { %11742 = vmatpush3.bf16.msra.mxu0 %v11741_v3  ;;  %11767 = vmatprep.subr.bf16.mxu1 %v12020_v31  ;;  %v6570_v3 = vld [vmem:[%s14882_s1 + $0x50] sm:$0xff] }
 0xcc9   : > { %11743 = vmatprep.subr.bf16.mxu0 %v12020_v31  ;;  %v11777_v33 = vpack.c.bf16 %v6571_v11, %v6570_v3  ;;  %v6719_v11 = vld [vmem:[%s14887_s15] sm:$0x1]  ;;  %s14893_s15 = sld [smem:[#allocation14_spill]] }
 0xccb   : > { %11769 = vmatpush3.bf16.msra.mxu1 %v11768_v30 }
 0xccc   : > { %11745 = vmatpush3.bf16.msra.mxu0 %v11744_v55  ;;  %11770 = vmatprep.subr.bf16.mxu1 %v12020_v31  ;;  %v6556_v55 = vld [vmem:[%s14883_s2 + $0x60] sm:$0xff] }
 0xccd   : > { %11746 = vmatprep.subr.bf16.mxu0 %v12020_v31  ;;  %v11804_v9 = vpack.c.bf16 %v6557_v34, %v6556_v55 }
 0xccf   : > { %11772 = vmatpush3.bf16.msra.mxu1 %v11771_v23  ;;  %v6725_v23 = vld [vmem:[%s14885_s10 + $0x18] sm:$0xff] }
 0xcd0   : > { %11748 = vmatpush3.bf16.msra.mxu0 %v11747_v50  ;;  %11773 = vmatprep.subr.bf16.mxu1 %v12020_v31  ;;  %v6572_v50 = vld [vmem:[%s14882_s1 + $0x60] sm:$0xff] }
 0xcd1   : > { %11749 = vmatprep.subr.bf16.mxu0 %v12020_v31  ;;  %v11780_v48 = vpack.c.bf16 %v6573_v41, %v6572_v50  ;;  %v6816_v50 = vld [vmem:[%s14886_s11 + $0x30] sm:$0xff]  ;;  %v6817_v41 = vld [vmem:[%s14886_s11 + $0x38] sm:$0xff] }
 0xcd3   : > { %11775 = vmatpush3.bf16.msra.mxu1 %v11774_v28  ;;  %v6728_v28 = vld [vmem:[%s14885_s10 + $0x30] sm:$0xff] }
 0xcd4   : > { %11751 = vmatpush3.bf16.msra.mxu0 %v11750_v63  ;;  %11776 = vmatprep.subr.bf16.mxu1 %v12020_v31  ;;  %v6558_v63 = vld [vmem:[%s14883_s2 + $0x70] sm:$0xff] }
 0xcd5   : > { %11752 = vmatprep.subr.bf16.mxu0 %v12020_v31  ;;  %v11807_v26 = vpack.c.bf16 %v6559_v6, %v6558_v63  ;;  %v6738_v63 = vld [vmem:[%s14888_s16] sm:$0x1]  ;;  %s14894_s16 = sld [smem:[#allocation13_spill]] }
 0xcd7   : > { %11778 = vmatpush3.bf16.msra.mxu1 %v11777_v33 }
 0xcd8   : > { %11754 = vmatpush3.bf16.msra.mxu0 %v11753_v42  ;;  %11779 = vmatprep.subr.bf16.mxu1 %v12020_v31  ;;  %v6574_v42 = vld [vmem:[%s14882_s1 + $0x70] sm:$0xff] }
 0xcd9   : > { %11755 = vmatprep.subr.bf16.mxu0 %v12020_v31  ;;  %v11783_v38 = vpack.c.bf16 %v6575_v52, %v6574_v42 }
 0xcdb   : > { %11781 = vmatpush3.bf16.msra.mxu1 %v11780_v48  ;;  %v11843_v48 = vpack.c.bf16 %v6817_v41, %v6816_v50 }
 0xcdc   : > { %11757 = vmatpush3.bf16.msra.mxu0 %v11756_v61  ;;  %11782 = vmatprep.subr.bf16.mxu1 %v12020_v31  ;;  %v6527_v61 = vld [vmem:[%s14884_s7] sm:$0x7]  ;;  %s14892_s7 = sld [smem:[#allocation2_spill]] }
 0xcdd   : > { %11758 = vmatprep.subr.bf16.mxu0 %v12020_v31  ;;  %v6531_v56 = vrot.slane %v6527_v61, %v13856_v46  ;;  %v6537_v51 = vrot.slane %v6527_v61, %v13861_v60  ;;  %v6542_v22 = vrot.slane %v6527_v61, %v13863_v39  ;;  %v11813_v60 = vpack.c.bf16 %v6725_v23, %v6724_v18  ;;  %v6726_v39 = vld [vmem:[%s14885_s10 + $0x20] sm:$0xff]  ;;  %v6895_v61 = vld [vmem:[%s14889_s18 + $0x8] sm:$0xff] }
 0xcde   : > { %v11816_v32 = vpack.c.bf16 %v6727_v27, %v6726_v39  ;;  %v7125_v23 = vld [vmem:[%s12176_s4] sm:$0xff] }
 0xcdf   : > { %11784 = vmatpush3.bf16.msra.mxu1 %v11783_v38  ;;  %v6894_v38 = vld [vmem:[%s14889_s18] sm:$0xff] }
 0xce0   : > { %11760 = vmatpush3.bf16.msra.mxu0 %v11759_v49  ;;  %11809 = vmatprep.subr.bf16.mxu1 %v12020_v31  ;;  %v7122_v27 = vld [vmem:[%s12171_s27] sm:$0x1] }
 0xce1   : > { %11785 = vmatprep.subr.bf16.mxu0 %v12020_v31 }
 0xce2   : > { %s965_s1 = scalar_lea.vmem %s14892_s7, %s14896_s23 }
 0xd8e   : > { %v6360_v16 = vpop.f32.mrb[54].mxu1 }
 0xd8f   : > { %v10075_v19 = vpop.f32.mrb[55].mxu1 }
 0xd92   : > { %v6290_v17 = vpop.f32.mrb[166].mxu0 }
 0xd93   : > { %v6361_v47 = vadd.f32 %v6360_v16, %v6290_v17  ;;  %v10040_v44 = vpop.f32.mrb[167].mxu0  ;;  %v6729_v16 = vld [vmem:[%s14885_s10 + $0x38] sm:$0xff]  ;;  %v11822_v17 = vpack.c.bf16 %v6731_v14, %v6730_v2  ;;  %v7127_v2 = vld [vmem:[%s12181_s9] sm:$0x1] }
 0xd94   : > { %v11819_v19 = vpack.c.bf16 %v6729_v16, %v6728_v28  ;;  %v6733_v44 = vld [vmem:[%s14885_s10 + $0x58] sm:$0xff] }
 0xd96   : > { %v6435_v58 = vpop.f32.mrb[168].mxu0 }
 0xd97   : > { %10114 = vmatmul.mubr.f32.vlgmr.msra.gmra.mrb[170].mxu0 %v6435_v58  ;;  %v10080_v7 = vpop.f32.mrb[169].mxu0  ;;  %v11828_v58 = vpack.c.bf16 %v6735_v35, %v6734_v21 }
 0xd98   : > { %11787 = vmatpush3.bf16.msra.mxu0 %v11786_v40  ;;  %10183 = vmatprep.mubr.msk.f32.mxu0 %vm12021_vm1, %v14880_v1  ;;  %v6736_v7 = vld [vmem:[%s14885_s10 + $0x70] sm:$0xff] }
 0xd99   : > { %11788 = vmatprep.subr.bf16.mxu0 %v12020_v31 }
 0xd9c   : > { %11790 = vmatpush3.bf16.msra.mxu0 %v11789_v36  ;;  %v6737_v36 = vld [vmem:[%s14885_s10 + $0x78] sm:$0xff] }
 0xd9d   : > { %11791 = vmatprep.subr.bf16.mxu0 %v12020_v31  ;;  %v11831_v43 = vpack.c.bf16 %v6737_v36, %v6736_v7 }
 0xda0   : > { %11793 = vmatpush3.bf16.msra.mxu0 %v11792_v37  ;;  %v6811_v37 = vld [vmem:[%s14886_s11 + $0x8] sm:$0xff] }
 0xda1   : > { %11794 = vmatprep.subr.bf16.mxu0 %v12020_v31  ;;  %v11834_v45 = vpack.c.bf16 %v6811_v37, %v6810_v54 }
 0xda4   : > { %11796 = vmatpush3.bf16.msra.mxu0 %v11795_v8  ;;  %v6813_v8 = vld [vmem:[%s14886_s11 + $0x18] sm:$0xff] }
 0xda5   : > { %11797 = vmatprep.subr.bf16.mxu0 %v12020_v31  ;;  %v11837_v10 = vpack.c.bf16 %v6813_v8, %v6812_v13 }
 0xda8   : > { %11799 = vmatpush3.bf16.msra.mxu0 %v11798_v53  ;;  %v6815_v53 = vld [vmem:[%s14886_s11 + $0x28] sm:$0xff] }
 0xda9   : > { %11800 = vmatprep.subr.bf16.mxu0 %v12020_v31  ;;  %v11840_v57 = vpack.c.bf16 %v6815_v53, %v6814_v25 }
 0xdac   : > { %11802 = vmatpush3.bf16.msra.mxu0 %v11801_v15 }
 0xdad   : > { %11803 = vmatprep.subr.bf16.mxu0 %v12020_v31 }
 0xdb0   : > { %11805 = vmatpush3.bf16.msra.mxu0 %v11804_v9 }
 0xdb1   : > { %11806 = vmatprep.subr.bf16.mxu0 %v12020_v31 }
 0xdb4   : > { %11808 = vmatpush3.bf16.msra.mxu0 %v11807_v26 }
 0xdb5   : > { %11833 = vmatprep.subr.bf16.mxu0 %v12020_v31 }
 0xe6a   : > { %v6522_v20 = vpop.f32.mrb[170].mxu0 }
 0xe6b   : > { %v6526_v49 = vadd.f32 %v6522_v20, %v6361_v47  ;;  %v10115_v29 = vpop.f32.mrb[171].mxu0  ;;  %v6732_v47 = vld [vmem:[%s14885_s10 + $0x50] sm:$0xff] }
 0xe6c   : > { %v11825_v40 = vpack.c.bf16 %v6733_v44, %v6732_v47 }
 0xe6d   : > { %v6532_v24 = vadd.f32 %v6531_v56, %v6526_v49  ;;  %v11846_v56 = vpack.c.bf16 %v6895_v61, %v6894_v38 }
 0xe6f   : > { %v6533_v59 = vmax.f32 %v6532_v24, 0.0 }
 0xe71   : > { %v6538_v62 = vmul.f32 %v6537_v51, %v6533_v59  ;;  %v6972_v51 = vld [vmem:[%s14891_s26] sm:$0xf] }
 0xe72   : > { %v1017_v59 = vld [vmem:[%s965_s1] sm:$0x1]  ;;  %s968_s1 = scalar_lea.vmem %s12186_s12, %s14896_s23 }
 0xe73   : > { %v6543_v30 = vadd.f32 %v6542_v22, %v6538_v62  ;;  %v6971_v22 = vld [vmem:[%s14893_s15] sm:$0xff] }
 0xe74   : > { %v6896_v62 = vld [vmem:[%s14894_s16] sm:$0x1] }
 0xe75   : > { %10184 = vmatmul.mubr.f32.vlgmr.msra.gmra.mrb[172].mxu0 %v6543_v30  ;;  %v6577_v46 = vrot.slane %v6543_v30, 1 }
 0xe76   : > { %10237 = vmatprep.mubr.msk.f32.mxu0 %vm12021_vm1, %v14880_v1  ;;  %11835 = vmatpush3.bf16.msra.mxu0 %v11834_v45 }
 0xe77   : > { %10149 = vmatmul.mubr.f32.vlgmr.msra.gmra.mrb[56].mxu1 %v6577_v46  ;;  %11836 = vmatprep.subr.bf16.mxu0 %v12020_v31 }
 0xe78   : > { %11811 = vmatpush3.bf16.msra.mxu1 %v11810_v4  ;;  %10218 = vmatprep.mubr.msk.f32.mxu1 %vm12021_vm1, %v14880_v1 }
 0xe79   : > { %11812 = vmatprep.subr.bf16.mxu1 %v12020_v31 }
 0xe7a   : > { %11838 = vmatpush3.bf16.msra.mxu0 %v11837_v10 }
 0xe7b   : > { %11839 = vmatprep.subr.bf16.mxu0 %v12020_v31 }
 0xe7c   : > { %11814 = vmatpush3.bf16.msra.mxu1 %v11813_v60  ;;  %v7126_v60 = vld [vmem:[%s12176_s4 + $0x8] sm:$0xf] }
 0xe7d   : > { %11815 = vmatprep.subr.bf16.mxu1 %v12020_v31  ;;  %v11849_v39 = vpack.c.bf16 %v7126_v60, %v7125_v23 }
 0xe7e   : > { %11841 = vmatpush3.bf16.msra.mxu0 %v11840_v57 }
 0xe7f   : > { %11842 = vmatprep.subr.bf16.mxu0 %v12020_v31 }
 0xe80   : > { %11817 = vmatpush3.bf16.msra.mxu1 %v11816_v32 }
 0xe81   : > { %11818 = vmatprep.subr.bf16.mxu1 %v12020_v31 }
 0xe82   : > { %11844 = vmatpush3.bf16.msra.mxu0 %v11843_v48 }
 0xe83   : > { %11848 = vmatprep.subr.bf16.mxu0 %v12020_v31 }
 0xe84   : > { %11820 = vmatpush3.bf16.msra.mxu1 %v11819_v19 }
 0xe85   : > { %11821 = vmatprep.subr.bf16.mxu1 %v12020_v31 }
 0xe88   : > { %11823 = vmatpush3.bf16.msra.mxu1 %v11822_v17 }
 0xe89   : > { %11824 = vmatprep.subr.bf16.mxu1 %v12020_v31 }
 0xe8c   : > { %11826 = vmatpush3.bf16.msra.mxu1 %v11825_v40 }
 0xe8d   : > { %11827 = vmatprep.subr.bf16.mxu1 %v12020_v31 }
 0xe90   : > { %11829 = vmatpush3.bf16.msra.mxu1 %v11828_v58 }
 0xe91   : > { %11830 = vmatprep.subr.bf16.mxu1 %v12020_v31 }
 0xe94   : > { %11832 = vmatpush3.bf16.msra.mxu1 %v11831_v43 }
 0xe95   : > { %11845 = vmatprep.subr.bf16.mxu1 %v12020_v31  ;;  %v6818_v31 = vld [vmem:[%s14890_s0] sm:$0x1] }
 0xf48   : > { %v6715_v0 = vpop.f32.mrb[172].mxu0 }
 0xf49   : > { %v10185_v15 = vpop.f32.mrb[173].mxu0 }
 0xf4a   : > { %v6645_v3 = vpop.f32.mrb[56].mxu1 }
 0xf4b   : > { %v6716_v33 = vadd.f32 %v6715_v0, %v6645_v3  ;;  %v10150_v55 = vpop.f32.mrb[57].mxu1 }
 0xf4d   : > { %v6720_v34 = vadd.f32 %v6719_v11, %v6716_v33 }
 0xf4f   : > { %v6721_v9 = vmax.f32 %v6720_v34, 0.0 }
 0xf51   : > { %10219 = vmatmul.mubr.f32.vlgmr.msra.gmra.mrb[58].mxu1 %v6721_v9 }
 0xf52   : > { %10244 = vmatprep.mubr.msk.f32.mxu1 %vm12021_vm1, %v14880_v1  ;;  %11847 = vmatpush3.bf16.msra.mxu1 %v11846_v56 }
 0xf53   : > { %10247 = vmatprep.subr.mxu1 %v14880_v1 }
0x1024   : > { %v6805_v6 = vpop.f32.mrb[58].mxu1 }
0x1025   : > { %v6806_v26 = vadd.f32 %v6805_v6, %v6738_v63  ;;  %v10220_v42 = vpop.f32.mrb[59].mxu1 }
0x1027   : > { %v6809_v52 = vmax.f32 %v6806_v26, 0.0 }
0x1029   : > { %10238 = vmatmul.mubr.msk.f32.vlgmr.msra.gmra.mrb[174].mxu0 %vm6819_vm6, %v6809_v52 }
0x102a   : > { %10261 = vmatprep.mubr.msk.f32.mxu0 %vm12021_vm1, %v14880_v1  ;;  %11851 = vmatpush3.bf16.msk.msra.mxu0 %vm11850_vm8, %v11849_v39 }
0x10fc   : > { %v6889_v20 = vpop.f32.mrb[174].mxu0 }
0x10fd   : > { %v6890_v49 = vadd.f32 %v6889_v20, %v6818_v31  ;;  %v10239_v29 = vpop.f32.mrb[175].mxu0 }
0x10ff   : > { %v6893_v24 = vmax.f32 %v6890_v49, 0.0 }
0x1101   : > { %10245 = vmatmul.mubr.msk.f32.vlgmr.msra.gmra.mrb[60].mxu1 %vm5032_vm2, %v6893_v24 }
0x1102   : > { %10249 = vmatprep.mubr.msk.f32.mxu1 %vm12021_vm1, %v14880_v1  ;;  %10248 = vmatpush3.msk.msra.mxu1 %vm6042_vm4, %v6972_v51 }
0x1103   : > { %10252 = vmatprep.subr.mxu1 %v14880_v1 }
0x1105   : > { %10250 = vmatmul.mubr.msk.f32.vlgmr.msra.gmra.mrb[62].mxu1 %vm6038_vm5, %v1017_v59 }
0x1106   : > { %10254 = vmatprep.mubr.msk.f32.mxu1 %vm12021_vm1, %v14880_v1  ;;  %10253 = vmatpush3.msra.mxu1 %v6971_v22 }
0x11d4   : > { %v6966_v12 = vpop.f32.mrb[60].mxu1 }
0x11d5   : > { %v6967_v5 = vadd.f32 %v6966_v12, %v6896_v62  ;;  %v10246_v30 = vpop.f32.mrb[61].mxu1 }
0x11d7   : > { %v6970_v4 = vmax.f32 %v6967_v5, 0.0 }
0x11d8   : > { %v7045_v46 = vpop.f32.mrb[62].mxu1 }
0x11d9   : > { %10255 = vmatmul.mubr.msk.f32.vlgmr.msra.gmra.mrb[64].mxu1 %vm5535_vm3, %v6970_v4  ;;  %v10251_v18 = vpop.f32.mrb[63].mxu1 }
0x12ac   : > { %v7118_v1 = vpop.f32.mrb[64].mxu1 }
0x12ad   : > { %v7119_v32 = vadd.f32 %v7118_v1, %v7045_v46  ;;  %v10256_v28 = vpop.f32.mrb[65].mxu1 }
0x12af   : > { %v7123_v16 = vadd.f32 %v7122_v27, %v7119_v32 }
0x12b1   : > { %v7124_v19 = vmax.f32 %v7123_v16, 0.0 }
0x12b3   : > { %10262 = vmatmul.mubr.msk.f32.vlgmr.msra.gmra.mrb[176].mxu0 %vm7128_vm9, %v7124_v19 }
0x1386   : > { %v7201_v14 = vpop.f32.mrb[176].mxu0 }
0x1387   : > { %v7202_v17 = vadd.f32 %v7201_v14, %v7127_v2  ;;  %v10263_v47 = vpop.f32.mrb[177].mxu0 }
0x1389   : > { %7205 = vst [vmem:[%s968_s1] sm:$0x1] %v7202_v17 }
0x138a PF: > { %s73_s22 = sadd.s32 1, %s11986_s22  }
0x138b   : > { %p70_p4 = scmp.ge.s32.totalorder %s73_s22, 4  }
0x138d   :  { %72 = sbr.rel (!%p70_p4) target bundleno = 50 (0x32), region = 234 }

</bundles_post_ra>
